<compile_context>
chip_gen: v5e
topology: v5e:2x2
jax: 0.10.0
libtpu: 0.0.40
codegen_flags: <defaults>
</compile_context>

<pallas_src>
import functools
import jax
import jax.numpy as jnp
from jax.experimental import pallas as pl
from jax.experimental.pallas import tpu as pltpu

_BN_EPS = 1e-5  # nn.BatchNorm2d default


# ---------------------------------------------------------------------------
# Fused ResNetBlock kernel: cv1(1x1)+SiLU -> cv2(3x3)+SiLU -> cv3(1x1) + shortcut -> ReLU
# Spatial dims are flattened to a single "row" axis of a (rows, channels) 2-D tile; the
# image is zero-padded by (top=1, bottom=2, left=1, right=1) on the host so every 3x3 tap
# of the output frame q = t*Wp + w is the contiguous slice a1[q + di*Wp + dj].
# ---------------------------------------------------------------------------
def _fused_block_kernel(*refs, TRo, Wp, Wo, Lwin, Lq, has_shortcut):
    if has_shortcut:
        (x_ref, m_ref, w1_ref, b1_ref, w2_ref, b2_ref, w3_ref, b3_ref,
         wsc_ref, bsc_ref, o_ref, x_scr, a1_scr, out_scr) = refs
    else:
        (x_ref, m_ref, w1_ref, b1_ref, w2_ref, b2_ref, w3_ref, b3_ref,
         o_ref, x_scr, a1_scr, out_scr) = refs

    r = pl.program_id(1)
    start = pl.multiple_of(r * (TRo * Wp), TRo * Wp)

    # Stage the (flattened, spatially padded) input row-window once in VMEM (f32).
    x_scr[...] = x_ref[0, pl.ds(start, Lwin), :].astype(jnp.float32)

    # ---- cv1: 1x1 conv (BN folded into weights) + SiLU, f32 math ----
    y1 = jnp.dot(x_scr[...].astype(jnp.bfloat16), w1_ref[...],
                 preferred_element_type=jnp.float32) + b1_ref[...]
    a1 = y1 * jax.nn.sigmoid(y1)
    # Zero the positions that correspond to conv zero-padding (cv2's padded input).
    a1_scr[...] = a1 * m_ref[pl.ds(start, Lwin), :]

    # ---- cv2: 3x3 conv (stride 1) as 9 shifted matmuls, f32 accumulation ----
    acc = jnp.zeros((Lq, b2_ref.shape[1]), jnp.float32)
    for di in range(3):
        for dj in range(3):
            tap = a1_scr[pl.ds(di * Wp + dj, Lq), :].astype(jnp.bfloat16)
            acc = acc + jnp.dot(tap, w2_ref[di * 3 + dj],
                                preferred_element_type=jnp.float32)
    y2 = acc + b2_ref[...]
    a2 = (y2 * jax.nn.sigmoid(y2)).astype(jnp.bfloat16)

    # ---- cv3 (1x1, no act) + shortcut + ReLU ----
    y3 = jnp.dot(a2, w3_ref[...], preferred_element_type=jnp.float32) + b3_ref[...]
    xs = x_scr[pl.ds(Wp + 1, Lq), :]           # block input sampled at output positions
    if has_shortcut:
        sc = jnp.dot(xs.astype(jnp.bfloat16), wsc_ref[...],
                     preferred_element_type=jnp.float32) + bsc_ref[...]
    else:
        sc = xs                                # identity shortcut (C1 == C3)
    out_scr[...] = jnp.maximum(y3 + sc, 0.0)

    # ---- store: drop the padded-width garbage columns, row by row ----
    for t in range(TRo):
        o_ref[0, t, :, :] = out_scr[pl.ds(t * Wp, Wo), :].astype(o_ref.dtype)


def _row_tile(Ho, max_rows):
    t = min(Ho, max_rows)
    while Ho % t:
        t -= 1
    return t


def fused_resnet_block(x_nhwc, blk, *, out_dtype=jnp.float32, max_tile_rows=32):
    """One ResNetBlock (stride 1) as a single pallas_call over (batch, row-tile) grid."""
    N, H, W, C1 = x_nhwc.shape
    C2 = blk["w1"].shape[1]
    C3 = blk["w3"].shape[1]
    has_shortcut = "wsc" in blk
    Ho, Wo = H, W                       # 3x3, pad=1, stride=1 keeps spatial dims
    Hp, Wp = H + 3, W + 2               # 1 top / 2 bottom / 1 left / 1 right zero ring
    TRo = _row_tile(Ho, max_tile_rows)  # output rows per grid step
    R = Ho // TRo
    Lq = TRo * Wp                       # padded-width output frame length
    Lwin = (TRo + 3) * Wp               # input rows (with halo + over-read row)

    # Host: cast to bf16 (halves HBM traffic), pad spatially, flatten H,W -> one axis.
    xp = jnp.pad(x_nhwc.astype(jnp.bfloat16),
                 ((0, 0), (1, 2), (1, 1), (0, 0))).reshape(N, Hp * Wp, C1)
    # 1.0 on real pixels, 0.0 on the zero-padding ring.
    mask = jnp.zeros((Hp, Wp), jnp.float32).at[1:H + 1, 1:W + 1].set(1.0)
    mask = mask.reshape(Hp * Wp, 1)

    in_specs = [
        pl.BlockSpec((1, Hp * Wp, C1), lambda b, r: (b, 0, 0)),   # input image (per batch)
        pl.BlockSpec((Hp * Wp, 1), lambda b, r: (0, 0)),          # padding mask
        pl.BlockSpec((C1, C2), lambda b, r: (0, 0)),              # cv1 weight (BN folded)
        pl.BlockSpec((1, C2), lambda b, r: (0, 0)),               # cv1 bias
        pl.BlockSpec((9, C2, C2), lambda b, r: (0, 0, 0)),        # cv2 weight taps
        pl.BlockSpec((1, C2), lambda b, r: (0, 0)),               # cv2 bias
        pl.BlockSpec((C2, C3), lambda b, r: (0, 0)),              # cv3 weight
        pl.BlockSpec((1, C3), lambda b, r: (0, 0)),               # cv3 bias
    ]
    args = [xp, mask, blk["w1"], blk["b1"], blk["w2"], blk["b2"], blk["w3"], blk["b3"]]
    if has_shortcut:
        in_specs += [pl.BlockSpec((C1, C3), lambda b, r: (0, 0)),
                     pl.BlockSpec((1, C3), lambda b, r: (0, 0))]
        args += [blk["wsc"], blk["bsc"]]

    kernel = functools.partial(_fused_block_kernel, TRo=TRo, Wp=Wp, Wo=Wo,
                               Lwin=Lwin, Lq=Lq, has_shortcut=has_shortcut)
    return pl.pallas_call(
        kernel,
        out_shape=jax.ShapeDtypeStruct((N, Ho, Wo, C3), out_dtype),
        grid_spec=pltpu.PrefetchScalarGridSpec(
            num_scalar_prefetch=0,
            grid=(N, R),
            in_specs=in_specs,
            out_specs=pl.BlockSpec((1, TRo, Wo, C3), lambda b, r: (b, r, 0, 0)),
            scratch_shapes=[pltpu.VMEM((Lwin, C1), jnp.float32),
                            pltpu.VMEM((Lwin, C2), jnp.float32),
                            pltpu.VMEM((Lq, C3), jnp.float32)],
        ),
        compiler_params=pltpu.CompilerParams(
            dimension_semantics=("parallel", "parallel"),
            vmem_limit_bytes=48 * 1024 * 1024),
    )(*args)


# ---------------------------------------------------------------------------
# Parameters (deterministic synthetic init) and one-time inference preparation
# ---------------------------------------------------------------------------
def make_conv_params(key, c1, c2, k):
    kw, kg, kb, km, kv = jax.random.split(key, 5)
    return dict(
        w=0.1 * jax.random.normal(kw, (c2, c1, k, k), jnp.float32),   # OIHW
        gamma=1.0 + 0.1 * jax.random.normal(kg, (c2,), jnp.float32),
        beta=0.1 * jax.random.normal(kb, (c2,), jnp.float32),
        mean=0.1 * jax.random.normal(km, (c2,), jnp.float32),
        var=1.0 + 0.1 * jnp.abs(jax.random.normal(kv, (c2,), jnp.float32)),
    )


def make_resnet_block_params(key, c1, c2, s=1, e=4):
    c3 = e * c2
    k1, k2, k3, k4 = jax.random.split(key, 4)
    return dict(
        s=s,
        cv1=make_conv_params(k1, c1, c2, 1),
        cv2=make_conv_params(k2, c2, c2, 3),
        cv3=make_conv_params(k3, c2, c3, 1),
        shortcut=(make_conv_params(k4, c1, c3, 1) if (s != 1 or c1 != c3) else None),
    )


def make_resnet_layer_params(key, c1, c2, s=1, is_first=False, n=1, e=4):
    # TODO(synk): is_first=True stem (7x7/s2 Conv + MaxPool2d 3x3/s2) not implemented.
    assert not is_first
    keys = jax.random.split(key, n)
    blocks = [make_resnet_block_params(keys[0], c1, c2, s, e)]
    blocks += [make_resnet_block_params(keys[i], e * c2, c2, 1, e) for i in range(1, n)]
    return blocks


def _fold_conv(p, k):
    """Fold eval-mode BN into the conv weight (done once, outside the forward path)."""
    scale = p["gamma"] / jnp.sqrt(p["var"] + _BN_EPS)
    bias = (p["beta"] - p["mean"] * scale).reshape(1, -1).astype(jnp.float32)
    w = jnp.transpose(p["w"], (2, 3, 1, 0)) * scale            # (kh, kw, Cin, Cout)
    cin, cout = w.shape[2], w.shape[3]
    w = w.reshape(cin, cout) if k == 1 else w.reshape(k * k, cin, cout)
    return w.astype(jnp.bfloat16), bias


def prepare_resnet_layer(blocks):
    """One-time weight relayout + BN folding + bf16 cast."""
    prepared = []
    for blk in blocks:
        # TODO(synk): stride != 1 first block not supported by the fused kernel.
        assert blk["s"] == 1, "stride != 1 not supported in the fused Pallas block"
        w1, b1 = _fold_conv(blk["cv1"], 1)
        w2, b2 = _fold_conv(blk["cv2"], 3)
        w3, b3 = _fold_conv(blk["cv3"], 1)
        p = dict(w1=w1, b1=b1, w2=w2, b2=b2, w3=w3, b3=b3)
        if blk["shortcut"] is not None:
            wsc, bsc = _fold_conv(blk["shortcut"], 1)
            p.update(wsc=wsc, bsc=bsc)
        prepared.append(p)
    return prepared


def resnet_layer_forward(x_nchw, prepared):
    x = jnp.transpose(x_nchw, (0, 2, 3, 1))          # NCHW -> NHWC
    for i, blk in enumerate(prepared):
        last = i == len(prepared) - 1
        # Intermediate block outputs stay bf16 in HBM; final layer output is f32.
        x = fused_resnet_block(x, blk,
                               out_dtype=jnp.float32 if last else jnp.bfloat16,
                               max_tile_rows=8)      # 8 -> exercises row tiling at H=16
    return jnp.transpose(x, (0, 3, 1, 2))            # NHWC -> NCHW


# ---------------------------------------------------------------------------
# Pure-JAX f32 reference (numerical sanity check)
# ---------------------------------------------------------------------------
def _ref_conv(x_nhwc, p, k, s, pad, act):
    w = jnp.transpose(p["w"], (2, 3, 1, 0))          # OIHW -> HWIO
    y = jax.lax.conv_general_dilated(
        x_nhwc, w, (s, s), ((pad, pad), (pad, pad)),
        dimension_numbers=("NHWC", "HWIO", "NHWC"))
    scale = p["gamma"] / jnp.sqrt(p["var"] + _BN_EPS)
    y = y * scale + (p["beta"] - p["mean"] * scale)
    if act == "silu":
        y = y * jax.nn.sigmoid(y)
    return y


def _ref_layer(x_nchw, blocks):
    x = jnp.transpose(x_nchw, (0, 2, 3, 1))
    for blk in blocks:
        y = _ref_conv(x, blk["cv1"], 1, 1, 0, "silu")
        y = _ref_conv(y, blk["cv2"], 3, blk["s"], 1, "silu")
        sc = x if blk["shortcut"] is None else _ref_conv(x, blk["shortcut"], 1, blk["s"], 0, "none")
        x = jnp.maximum(_ref_conv(y, blk["cv3"], 1, 1, 0, "none") + sc, 0.0)
    return jnp.transpose(x, (0, 3, 1, 2))


if __name__ == "__main__":
    key = jax.random.PRNGKey(0)
    kx, kp = jax.random.split(key)

    # ResNetLayer(c1=4, c2=4, s=1, is_first=False, n=2, e=4); input NCHW (2, 4, 16, 16)
    N, C1, H, W = 2, 4, 16, 16
    C2, S, NBLK, E = 4, 1, 2, 4
    x = jax.random.normal(kx, (N, C1, H, W), jnp.float32)
    blocks = make_resnet_layer_params(kp, C1, C2, s=S, is_first=False, n=NBLK, e=E)
    prepared = prepare_resnet_layer(blocks)          # one-time weight prep (outside fwd)

    fwd = jax.jit(resnet_layer_forward)
    out = jax.block_until_ready(fwd(x, prepared))
    ref = jax.block_until_ready(_ref_layer(x, blocks))

    assert out.shape == (N, E * C2, H, W), out.shape
    err = float(jnp.max(jnp.abs(out - ref)))
    # Tolerance reflects bf16 matmul inputs / bf16 inter-block activations (f32 accumulate).
    assert err < 3e-2, f"max abs err {err}"
    print("KERNEL_OK")
</pallas_src>

<mosaic_0001>
module attributes {stable_mosaic.version = 11 : i64} {
  func.func @_fused_block_kernel(%arg0: i32, %arg1: i32, %arg2: memref<1x342x4xbf16, #tpu.memory_space<vmem>>, %arg3: memref<342x1xf32, #tpu.memory_space<vmem>>, %arg4: memref<4x4xbf16, #tpu.memory_space<vmem>>, %arg5: memref<1x4xf32, #tpu.memory_space<vmem>>, %arg6: memref<9x4x4xbf16, #tpu.memory_space<vmem>>, %arg7: memref<1x4xf32, #tpu.memory_space<vmem>>, %arg8: memref<4x16xbf16, #tpu.memory_space<vmem>>, %arg9: memref<1x16xf32, #tpu.memory_space<vmem>>, %arg10: memref<4x16xbf16, #tpu.memory_space<vmem>>, %arg11: memref<1x16xf32, #tpu.memory_space<vmem>>, %arg12: memref<1x8x16x16xbf16, #tpu.memory_space<vmem>>, %arg13: memref<198x4xf32, #tpu.memory_space<vmem>>, %arg14: memref<198x4xf32, #tpu.memory_space<vmem>>, %arg15: memref<144x16xf32, #tpu.memory_space<vmem>>) attributes {dimension_semantics = [#tpu.dimension_semantics<parallel>, #tpu.dimension_semantics<parallel>], iteration_bounds = array<i64: 2, 2>, scalar_prefetch = 0 : i64, scratch_operands = 3 : i64, tpu.core_type = #tpu.core_type<tc>, window_params = [{transform_indices = @transform_0, window_bounds = array<i64: 1, 342, 4>}, {pipeline_mode = #tpu.pipeline_mode<synchronous>, transform_indices = @transform_1, window_bounds = array<i64: 342, 1>}, {pipeline_mode = #tpu.pipeline_mode<synchronous>, transform_indices = @transform_2, window_bounds = array<i64: 4, 4>}, {pipeline_mode = #tpu.pipeline_mode<synchronous>, transform_indices = @transform_3, window_bounds = array<i64: 1, 4>}, {pipeline_mode = #tpu.pipeline_mode<synchronous>, transform_indices = @transform_4, window_bounds = array<i64: 9, 4, 4>}, {pipeline_mode = #tpu.pipeline_mode<synchronous>, transform_indices = @transform_5, window_bounds = array<i64: 1, 4>}, {pipeline_mode = #tpu.pipeline_mode<synchronous>, transform_indices = @transform_6, window_bounds = array<i64: 4, 16>}, {pipeline_mode = #tpu.pipeline_mode<synchronous>, transform_indices = @transform_7, window_bounds = array<i64: 1, 16>}, {pipeline_mode = #tpu.pipeline_mode<synchronous>, transform_indices = @transform_8, window_bounds = array<i64: 4, 16>}, {pipeline_mode = #tpu.pipeline_mode<synchronous>, transform_indices = @transform_9, window_bounds = array<i64: 1, 16>}, {transform_indices = @transform_10, window_bounds = array<i64: 1, 8, 16, 16>}]} {
    %c144_i32 = arith.constant 144 : i32
    %0 = arith.muli %arg1, %c144_i32 : i32
    %1 = tpu.assume_multiple %0, 144 : i32
    %c0 = arith.constant 0 : index
    %2 = arith.index_cast %1 : i32 to index
    %c0_0 = arith.constant 0 : index
    %3 = vector.load %arg2[%c0, %2, %c0_0] : memref<1x342x4xbf16, #tpu.memory_space<vmem>>, vector<1x198x4xbf16>
    %4 = vector.shape_cast %3 : vector<1x198x4xbf16> to vector<198x4xbf16>
    %5 = arith.extf %4 : vector<198x4xbf16> to vector<198x4xf32>
    %c0_1 = arith.constant 0 : index
    %c0_2 = arith.constant 0 : index
    %6 = vector.load %arg13[%c0_1, %c0_2] : memref<198x4xf32, #tpu.memory_space<vmem>>, vector<198x4xf32>
    tpu.vector_store %arg13[%c0_1, %c0_2], %5 {strides = array<i32>} : memref<198x4xf32, #tpu.memory_space<vmem>>, vector<198x4xf32>,
    %c0_3 = arith.constant 0 : index
    %c0_4 = arith.constant 0 : index
    %7 = vector.load %arg13[%c0_3, %c0_4] : memref<198x4xf32, #tpu.memory_space<vmem>>, vector<198x4xf32>
    %8 = arith.truncf %7 : vector<198x4xf32> to vector<198x4xbf16>
    %c0_5 = arith.constant 0 : index
    %c0_6 = arith.constant 0 : index
    %9 = vector.load %arg4[%c0_5, %c0_6] : memref<4x4xbf16, #tpu.memory_space<vmem>>, vector<4x4xbf16>
    %cst = arith.constant dense<0.000000e+00> : vector<198x4xf32>
    %10 = tpu.matmul %8, %9, %cst {dimension_numbers = #tpu.dot_dimension_numbers<[1], [0], [0], [1], [0, 0, 1, 1], [], []>} : vector<198x4xbf16>, vector<4x4xbf16>, vector<198x4xf32> -> vector<198x4xf32>
    %c0_7 = arith.constant 0 : index
    %c0_8 = arith.constant 0 : index
    %11 = vector.load %arg5[%c0_7, %c0_8] : memref<1x4xf32, #tpu.memory_space<vmem>>, vector<1x4xf32>
    %12 = vector.broadcast %11 : vector<1x4xf32> to vector<198x4xf32>
    %13 = arith.addf %10, %12 : vector<198x4xf32>
    %14 = arith.negf %13 : vector<198x4xf32>
    %15 = math.exp %14 : vector<198x4xf32>
    %cst_9 = arith.constant 1.000000e+00 : f32
    %16 = vector.broadcast %cst_9 : f32 to vector<198x4xf32>
    %17 = arith.addf %16, %15 : vector<198x4xf32>
    %18 = arith.divf %16, %17 : vector<198x4xf32>
    %19 = arith.mulf %13, %18 : vector<198x4xf32>
    %20 = arith.index_cast %1 : i32 to index
    %c0_10 = arith.constant 0 : index
    %21 = vector.load %arg3[%20, %c0_10] : memref<342x1xf32, #tpu.memory_space<vmem>>, vector<198x1xf32>
    %22 = vector.broadcast %21 : vector<198x1xf32> to vector<198x4xf32>
    %23 = arith.mulf %19, %22 : vector<198x4xf32>
    %c0_11 = arith.constant 0 : index
    %c0_12 = arith.constant 0 : index
    %24 = vector.load %arg14[%c0_11, %c0_12] : memref<198x4xf32, #tpu.memory_space<vmem>>, vector<198x4xf32>
    tpu.vector_store %arg14[%c0_11, %c0_12], %23 {strides = array<i32>} : memref<198x4xf32, #tpu.memory_space<vmem>>, vector<198x4xf32>,
    %cst_13 = arith.constant 0.000000e+00 : f32
    %25 = vector.broadcast %cst_13 : f32 to vector<144x4xf32>
    %c0_14 = arith.constant 0 : index
    %c0_15 = arith.constant 0 : index
    %26 = vector.load %arg14[%c0_14, %c0_15] : memref<198x4xf32, #tpu.memory_space<vmem>>, vector<144x4xf32>
    %27 = arith.truncf %26 : vector<144x4xf32> to vector<144x4xbf16>
    %c0_16 = arith.constant 0 : index
    %c0_17 = arith.constant 0 : index
    %c0_18 = arith.constant 0 : index
    %28 = vector.load %arg6[%c0_16, %c0_17, %c0_18] : memref<9x4x4xbf16, #tpu.memory_space<vmem>>, vector<1x4x4xbf16>
    %29 = vector.shape_cast %28 : vector<1x4x4xbf16> to vector<4x4xbf16>
    %cst_19 = arith.constant dense<0.000000e+00> : vector<144x4xf32>
    %30 = tpu.matmul %27, %29, %cst_19 {dimension_numbers = #tpu.dot_dimension_numbers<[1], [0], [0], [1], [0, 0, 1, 1], [], []>} : vector<144x4xbf16>, vector<4x4xbf16>, vector<144x4xf32> -> vector<144x4xf32>
    %31 = arith.addf %25, %30 : vector<144x4xf32>
    %c1 = arith.constant 1 : index
    %c0_20 = arith.constant 0 : index
    %32 = vector.load %arg14[%c1, %c0_20] : memref<198x4xf32, #tpu.memory_space<vmem>>, vector<144x4xf32>
    %33 = arith.truncf %32 : vector<144x4xf32> to vector<144x4xbf16>
    %c1_21 = arith.constant 1 : index
    %c0_22 = arith.constant 0 : index
    %c0_23 = arith.constant 0 : index
    %34 = vector.load %arg6[%c1_21, %c0_22, %c0_23] : memref<9x4x4xbf16, #tpu.memory_space<vmem>>, vector<1x4x4xbf16>
    %35 = vector.shape_cast %34 : vector<1x4x4xbf16> to vector<4x4xbf16>
    %cst_24 = arith.constant dense<0.000000e+00> : vector<144x4xf32>
    %36 = tpu.matmul %33, %35, %cst_24 {dimension_numbers = #tpu.dot_dimension_numbers<[1], [0], [0], [1], [0, 0, 1, 1], [], []>} : vector<144x4xbf16>, vector<4x4xbf16>, vector<144x4xf32> -> vector<144x4xf32>
    %37 = arith.addf %31, %36 : vector<144x4xf32>
    %c2 = arith.constant 2 : index
    %c0_25 = arith.constant 0 : index
    %38 = vector.load %arg14[%c2, %c0_25] : memref<198x4xf32, #tpu.memory_space<vmem>>, vector<144x4xf32>
    %39 = arith.truncf %38 : vector<144x4xf32> to vector<144x4xbf16>
    %c2_26 = arith.constant 2 : index
    %c0_27 = arith.constant 0 : index
    %c0_28 = arith.constant 0 : index
    %40 = vector.load %arg6[%c2_26, %c0_27, %c0_28] : memref<9x4x4xbf16, #tpu.memory_space<vmem>>, vector<1x4x4xbf16>
    %41 = vector.shape_cast %40 : vector<1x4x4xbf16> to vector<4x4xbf16>
    %cst_29 = arith.constant dense<0.000000e+00> : vector<144x4xf32>
    %42 = tpu.matmul %39, %41, %cst_29 {dimension_numbers = #tpu.dot_dimension_numbers<[1], [0], [0], [1], [0, 0, 1, 1], [], []>} : vector<144x4xbf16>, vector<4x4xbf16>, vector<144x4xf32> -> vector<144x4xf32>
    %43 = arith.addf %37, %42 : vector<144x4xf32>
    %c18 = arith.constant 18 : index
    %c0_30 = arith.constant 0 : index
    %44 = vector.load %arg14[%c18, %c0_30] : memref<198x4xf32, #tpu.memory_space<vmem>>, vector<144x4xf32>
    %45 = arith.truncf %44 : vector<144x4xf32> to vector<144x4xbf16>
    %c3 = arith.constant 3 : index
    %c0_31 = arith.constant 0 : index
    %c0_32 = arith.constant 0 : index
    %46 = vector.load %arg6[%c3, %c0_31, %c0_32] : memref<9x4x4xbf16, #tpu.memory_space<vmem>>, vector<1x4x4xbf16>
    %47 = vector.shape_cast %46 : vector<1x4x4xbf16> to vector<4x4xbf16>
    %cst_33 = arith.constant dense<0.000000e+00> : vector<144x4xf32>
    %48 = tpu.matmul %45, %47, %cst_33 {dimension_numbers = #tpu.dot_dimension_numbers<[1], [0], [0], [1], [0, 0, 1, 1], [], []>} : vector<144x4xbf16>, vector<4x4xbf16>, vector<144x4xf32> -> vector<144x4xf32>
    %49 = arith.addf %43, %48 : vector<144x4xf32>
    %c19 = arith.constant 19 : index
    %c0_34 = arith.constant 0 : index
    %50 = vector.load %arg14[%c19, %c0_34] : memref<198x4xf32, #tpu.memory_space<vmem>>, vector<144x4xf32>
    %51 = arith.truncf %50 : vector<144x4xf32> to vector<144x4xbf16>
    %c4 = arith.constant 4 : index
    %c0_35 = arith.constant 0 : index
    %c0_36 = arith.constant 0 : index
    %52 = vector.load %arg6[%c4, %c0_35, %c0_36] : memref<9x4x4xbf16, #tpu.memory_space<vmem>>, vector<1x4x4xbf16>
    %53 = vector.shape_cast %52 : vector<1x4x4xbf16> to vector<4x4xbf16>
    %cst_37 = arith.constant dense<0.000000e+00> : vector<144x4xf32>
    %54 = tpu.matmul %51, %53, %cst_37 {dimension_numbers = #tpu.dot_dimension_numbers<[1], [0], [0], [1], [0, 0, 1, 1], [], []>} : vector<144x4xbf16>, vector<4x4xbf16>, vector<144x4xf32> -> vector<144x4xf32>
    %55 = arith.addf %49, %54 : vector<144x4xf32>
    %c20 = arith.constant 20 : index
    %c0_38 = arith.constant 0 : index
    %56 = vector.load %arg14[%c20, %c0_38] : memref<198x4xf32, #tpu.memory_space<vmem>>, vector<144x4xf32>
    %57 = arith.truncf %56 : vector<144x4xf32> to vector<144x4xbf16>
    %c5 = arith.constant 5 : index
    %c0_39 = arith.constant 0 : index
    %c0_40 = arith.constant 0 : index
    %58 = vector.load %arg6[%c5, %c0_39, %c0_40] : memref<9x4x4xbf16, #tpu.memory_space<vmem>>, vector<1x4x4xbf16>
    %59 = vector.shape_cast %58 : vector<1x4x4xbf16> to vector<4x4xbf16>
    %cst_41 = arith.constant dense<0.000000e+00> : vector<144x4xf32>
    %60 = tpu.matmul %57, %59, %cst_41 {dimension_numbers = #tpu.dot_dimension_numbers<[1], [0], [0], [1], [0, 0, 1, 1], [], []>} : vector<144x4xbf16>, vector<4x4xbf16>, vector<144x4xf32> -> vector<144x4xf32>
    %61 = arith.addf %55, %60 : vector<144x4xf32>
    %c36 = arith.constant 36 : index
    %c0_42 = arith.constant 0 : index
    %62 = vector.load %arg14[%c36, %c0_42] : memref<198x4xf32, #tpu.memory_space<vmem>>, vector<144x4xf32>
    %63 = arith.truncf %62 : vector<144x4xf32> to vector<144x4xbf16>
    %c6 = arith.constant 6 : index
    %c0_43 = arith.constant 0 : index
    %c0_44 = arith.constant 0 : index
    %64 = vector.load %arg6[%c6, %c0_43, %c0_44] : memref<9x4x4xbf16, #tpu.memory_space<vmem>>, vector<1x4x4xbf16>
    %65 = vector.shape_cast %64 : vector<1x4x4xbf16> to vector<4x4xbf16>
    %cst_45 = arith.constant dense<0.000000e+00> : vector<144x4xf32>
    %66 = tpu.matmul %63, %65, %cst_45 {dimension_numbers = #tpu.dot_dimension_numbers<[1], [0], [0], [1], [0, 0, 1, 1], [], []>} : vector<144x4xbf16>, vector<4x4xbf16>, vector<144x4xf32> -> vector<144x4xf32>
    %67 = arith.addf %61, %66 : vector<144x4xf32>
    %c37 = arith.constant 37 : index
    %c0_46 = arith.constant 0 : index
    %68 = vector.load %arg14[%c37, %c0_46] : memref<198x4xf32, #tpu.memory_space<vmem>>, vector<144x4xf32>
    %69 = arith.truncf %68 : vector<144x4xf32> to vector<144x4xbf16>
    %c7 = arith.constant 7 : index
    %c0_47 = arith.constant 0 : index
    %c0_48 = arith.constant 0 : index
    %70 = vector.load %arg6[%c7, %c0_47, %c0_48] : memref<9x4x4xbf16, #tpu.memory_space<vmem>>, vector<1x4x4xbf16>
    %71 = vector.shape_cast %70 : vector<1x4x4xbf16> to vector<4x4xbf16>
    %cst_49 = arith.constant dense<0.000000e+00> : vector<144x4xf32>
    %72 = tpu.matmul %69, %71, %cst_49 {dimension_numbers = #tpu.dot_dimension_numbers<[1], [0], [0], [1], [0, 0, 1, 1], [], []>} : vector<144x4xbf16>, vector<4x4xbf16>, vector<144x4xf32> -> vector<144x4xf32>
    %73 = arith.addf %67, %72 : vector<144x4xf32>
    %c38 = arith.constant 38 : index
    %c0_50 = arith.constant 0 : index
    %74 = vector.load %arg14[%c38, %c0_50] : memref<198x4xf32, #tpu.memory_space<vmem>>, vector<144x4xf32>
    %75 = arith.truncf %74 : vector<144x4xf32> to vector<144x4xbf16>
    %c8 = arith.constant 8 : index
    %c0_51 = arith.constant 0 : index
    %c0_52 = arith.constant 0 : index
    %76 = vector.load %arg6[%c8, %c0_51, %c0_52] : memref<9x4x4xbf16, #tpu.memory_space<vmem>>, vector<1x4x4xbf16>
    %77 = vector.shape_cast %76 : vector<1x4x4xbf16> to vector<4x4xbf16>
    %cst_53 = arith.constant dense<0.000000e+00> : vector<144x4xf32>
    %78 = tpu.matmul %75, %77, %cst_53 {dimension_numbers = #tpu.dot_dimension_numbers<[1], [0], [0], [1], [0, 0, 1, 1], [], []>} : vector<144x4xbf16>, vector<4x4xbf16>, vector<144x4xf32> -> vector<144x4xf32>
    %79 = arith.addf %73, %78 : vector<144x4xf32>
    %c0_54 = arith.constant 0 : index
    %c0_55 = arith.constant 0 : index
    %80 = vector.load %arg7[%c0_54, %c0_55] : memref<1x4xf32, #tpu.memory_space<vmem>>, vector<1x4xf32>
    %81 = vector.broadcast %80 : vector<1x4xf32> to vector<144x4xf32>
    %82 = arith.addf %79, %81 : vector<144x4xf32>
    %83 = arith.negf %82 : vector<144x4xf32>
    %84 = math.exp %83 : vector<144x4xf32>
    %cst_56 = arith.constant 1.000000e+00 : f32
    %85 = vector.broadcast %cst_56 : f32 to vector<144x4xf32>
    %86 = arith.addf %85, %84 : vector<144x4xf32>
    %87 = arith.divf %85, %86 : vector<144x4xf32>
    %88 = arith.mulf %82, %87 : vector<144x4xf32>
    %89 = arith.truncf %88 : vector<144x4xf32> to vector<144x4xbf16>
    %c0_57 = arith.constant 0 : index
    %c0_58 = arith.constant 0 : index
    %90 = vector.load %arg8[%c0_57, %c0_58] : memref<4x16xbf16, #tpu.memory_space<vmem>>, vector<4x16xbf16>
    %cst_59 = arith.constant dense<0.000000e+00> : vector<144x16xf32>
    %91 = tpu.matmul %89, %90, %cst_59 {dimension_numbers = #tpu.dot_dimension_numbers<[1], [0], [0], [1], [0, 0, 1, 1], [], []>} : vector<144x4xbf16>, vector<4x16xbf16>, vector<144x16xf32> -> vector<144x16xf32>
    %c0_60 = arith.constant 0 : index
    %c0_61 = arith.constant 0 : index
    %92 = vector.load %arg9[%c0_60, %c0_61] : memref<1x16xf32, #tpu.memory_space<vmem>>, vector<1x16xf32>
    %93 = vector.broadcast %92 : vector<1x16xf32> to vector<144x16xf32>
    %94 = arith.addf %91, %93 : vector<144x16xf32>
    %c19_62 = arith.constant 19 : index
    %c0_63 = arith.constant 0 : index
    %95 = vector.load %arg13[%c19_62, %c0_63] : memref<198x4xf32, #tpu.memory_space<vmem>>, vector<144x4xf32>
    %96 = arith.truncf %95 : vector<144x4xf32> to vector<144x4xbf16>
    %c0_64 = arith.constant 0 : index
    %c0_65 = arith.constant 0 : index
    %97 = vector.load %arg10[%c0_64, %c0_65] : memref<4x16xbf16, #tpu.memory_space<vmem>>, vector<4x16xbf16>
    %cst_66 = arith.constant dense<0.000000e+00> : vector<144x16xf32>
    %98 = tpu.matmul %96, %97, %cst_66 {dimension_numbers = #tpu.dot_dimension_numbers<[1], [0], [0], [1], [0, 0, 1, 1], [], []>} : vector<144x4xbf16>, vector<4x16xbf16>, vector<144x16xf32> -> vector<144x16xf32>
    %c0_67 = arith.constant 0 : index
    %c0_68 = arith.constant 0 : index
    %99 = vector.load %arg11[%c0_67, %c0_68] : memref<1x16xf32, #tpu.memory_space<vmem>>, vector<1x16xf32>
    %100 = vector.broadcast %99 : vector<1x16xf32> to vector<144x16xf32>
    %101 = arith.addf %98, %100 : vector<144x16xf32>
    %102 = arith.addf %94, %101 : vector<144x16xf32>
    %cst_69 = arith.constant 0.000000e+00 : f32
    %103 = vector.broadcast %cst_69 : f32 to vector<144x16xf32>
    %104 = arith.maximumf %102, %103 : vector<144x16xf32>
    %c0_70 = arith.constant 0 : index
    %c0_71 = arith.constant 0 : index
    %105 = vector.load %arg15[%c0_70, %c0_71] : memref<144x16xf32, #tpu.memory_space<vmem>>, vector<144x16xf32>
    tpu.vector_store %arg15[%c0_70, %c0_71], %104 {strides = array<i32>} : memref<144x16xf32, #tpu.memory_space<vmem>>, vector<144x16xf32>,
    %c0_72 = arith.constant 0 : index
    %c0_73 = arith.constant 0 : index
    %106 = vector.load %arg15[%c0_72, %c0_73] : memref<144x16xf32, #tpu.memory_space<vmem>>, vector<16x16xf32>
    %107 = arith.truncf %106 : vector<16x16xf32> to vector<16x16xbf16>
    %c0_74 = arith.constant 0 : index
    %c0_75 = arith.constant 0 : index
    %c0_76 = arith.constant 0 : index
    %c0_77 = arith.constant 0 : index
    %108 = vector.load %arg12[%c0_74, %c0_75, %c0_76, %c0_77] : memref<1x8x16x16xbf16, #tpu.memory_space<vmem>>, vector<1x1x16x16xbf16>
    %109 = vector.shape_cast %108 : vector<1x1x16x16xbf16> to vector<16x16xbf16>
    %110 = vector.shape_cast %107 : vector<16x16xbf16> to vector<1x1x16x16xbf16>
    tpu.vector_store %arg12[%c0_74, %c0_75, %c0_76, %c0_77], %110 {strides = array<i32>} : memref<1x8x16x16xbf16, #tpu.memory_space<vmem>>, vector<1x1x16x16xbf16>,
    %c18_78 = arith.constant 18 : index
    %c0_79 = arith.constant 0 : index
    %111 = vector.load %arg15[%c18_78, %c0_79] : memref<144x16xf32, #tpu.memory_space<vmem>>, vector<16x16xf32>
    %112 = arith.truncf %111 : vector<16x16xf32> to vector<16x16xbf16>
    %c0_80 = arith.constant 0 : index
    %c1_81 = arith.constant 1 : index
    %c0_82 = arith.constant 0 : index
    %c0_83 = arith.constant 0 : index
    %113 = vector.load %arg12[%c0_80, %c1_81, %c0_82, %c0_83] : memref<1x8x16x16xbf16, #tpu.memory_space<vmem>>, vector<1x1x16x16xbf16>
    %114 = vector.shape_cast %113 : vector<1x1x16x16xbf16> to vector<16x16xbf16>
    %115 = vector.shape_cast %112 : vector<16x16xbf16> to vector<1x1x16x16xbf16>
    tpu.vector_store %arg12[%c0_80, %c1_81, %c0_82, %c0_83], %115 {strides = array<i32>} : memref<1x8x16x16xbf16, #tpu.memory_space<vmem>>, vector<1x1x16x16xbf16>,
    %c36_84 = arith.constant 36 : index
    %c0_85 = arith.constant 0 : index
    %116 = vector.load %arg15[%c36_84, %c0_85] : memref<144x16xf32, #tpu.memory_space<vmem>>, vector<16x16xf32>
    %117 = arith.truncf %116 : vector<16x16xf32> to vector<16x16xbf16>
    %c0_86 = arith.constant 0 : index
    %c2_87 = arith.constant 2 : index
    %c0_88 = arith.constant 0 : index
    %c0_89 = arith.constant 0 : index
    %118 = vector.load %arg12[%c0_86, %c2_87, %c0_88, %c0_89] : memref<1x8x16x16xbf16, #tpu.memory_space<vmem>>, vector<1x1x16x16xbf16>
    %119 = vector.shape_cast %118 : vector<1x1x16x16xbf16> to vector<16x16xbf16>
    %120 = vector.shape_cast %117 : vector<16x16xbf16> to vector<1x1x16x16xbf16>
    tpu.vector_store %arg12[%c0_86, %c2_87, %c0_88, %c0_89], %120 {strides = array<i32>} : memref<1x8x16x16xbf16, #tpu.memory_space<vmem>>, vector<1x1x16x16xbf16>,
    %c54 = arith.constant 54 : index
    %c0_90 = arith.constant 0 : index
    %121 = vector.load %arg15[%c54, %c0_90] : memref<144x16xf32, #tpu.memory_space<vmem>>, vector<16x16xf32>
    %122 = arith.truncf %121 : vector<16x16xf32> to vector<16x16xbf16>
    %c0_91 = arith.constant 0 : index
    %c3_92 = arith.constant 3 : index
    %c0_93 = arith.constant 0 : index
    %c0_94 = arith.constant 0 : index
    %123 = vector.load %arg12[%c0_91, %c3_92, %c0_93, %c0_94] : memref<1x8x16x16xbf16, #tpu.memory_space<vmem>>, vector<1x1x16x16xbf16>
    %124 = vector.shape_cast %123 : vector<1x1x16x16xbf16> to vector<16x16xbf16>
    %125 = vector.shape_cast %122 : vector<16x16xbf16> to vector<1x1x16x16xbf16>
    tpu.vector_store %arg12[%c0_91, %c3_92, %c0_93, %c0_94], %125 {strides = array<i32>} : memref<1x8x16x16xbf16, #tpu.memory_space<vmem>>, vector<1x1x16x16xbf16>,
    %c72 = arith.constant 72 : index
    %c0_95 = arith.constant 0 : index
    %126 = vector.load %arg15[%c72, %c0_95] : memref<144x16xf32, #tpu.memory_space<vmem>>, vector<16x16xf32>
    %127 = arith.truncf %126 : vector<16x16xf32> to vector<16x16xbf16>
    %c0_96 = arith.constant 0 : index
    %c4_97 = arith.constant 4 : index
    %c0_98 = arith.constant 0 : index
    %c0_99 = arith.constant 0 : index
    %128 = vector.load %arg12[%c0_96, %c4_97, %c0_98, %c0_99] : memref<1x8x16x16xbf16, #tpu.memory_space<vmem>>, vector<1x1x16x16xbf16>
    %129 = vector.shape_cast %128 : vector<1x1x16x16xbf16> to vector<16x16xbf16>
    %130 = vector.shape_cast %127 : vector<16x16xbf16> to vector<1x1x16x16xbf16>
    tpu.vector_store %arg12[%c0_96, %c4_97, %c0_98, %c0_99], %130 {strides = array<i32>} : memref<1x8x16x16xbf16, #tpu.memory_space<vmem>>, vector<1x1x16x16xbf16>,
    %c90 = arith.constant 90 : index
    %c0_100 = arith.constant 0 : index
    %131 = vector.load %arg15[%c90, %c0_100] : memref<144x16xf32, #tpu.memory_space<vmem>>, vector<16x16xf32>
    %132 = arith.truncf %131 : vector<16x16xf32> to vector<16x16xbf16>
    %c0_101 = arith.constant 0 : index
    %c5_102 = arith.constant 5 : index
    %c0_103 = arith.constant 0 : index
    %c0_104 = arith.constant 0 : index
    %133 = vector.load %arg12[%c0_101, %c5_102, %c0_103, %c0_104] : memref<1x8x16x16xbf16, #tpu.memory_space<vmem>>, vector<1x1x16x16xbf16>
    %134 = vector.shape_cast %133 : vector<1x1x16x16xbf16> to vector<16x16xbf16>
    %135 = vector.shape_cast %132 : vector<16x16xbf16> to vector<1x1x16x16xbf16>
    tpu.vector_store %arg12[%c0_101, %c5_102, %c0_103, %c0_104], %135 {strides = array<i32>} : memref<1x8x16x16xbf16, #tpu.memory_space<vmem>>, vector<1x1x16x16xbf16>,
    %c108 = arith.constant 108 : index
    %c0_105 = arith.constant 0 : index
    %136 = vector.load %arg15[%c108, %c0_105] : memref<144x16xf32, #tpu.memory_space<vmem>>, vector<16x16xf32>
    %137 = arith.truncf %136 : vector<16x16xf32> to vector<16x16xbf16>
    %c0_106 = arith.constant 0 : index
    %c6_107 = arith.constant 6 : index
    %c0_108 = arith.constant 0 : index
    %c0_109 = arith.constant 0 : index
    %138 = vector.load %arg12[%c0_106, %c6_107, %c0_108, %c0_109] : memref<1x8x16x16xbf16, #tpu.memory_space<vmem>>, vector<1x1x16x16xbf16>
    %139 = vector.shape_cast %138 : vector<1x1x16x16xbf16> to vector<16x16xbf16>
    %140 = vector.shape_cast %137 : vector<16x16xbf16> to vector<1x1x16x16xbf16>
    tpu.vector_store %arg12[%c0_106, %c6_107, %c0_108, %c0_109], %140 {strides = array<i32>} : memref<1x8x16x16xbf16, #tpu.memory_space<vmem>>, vector<1x1x16x16xbf16>,
    %c126 = arith.constant 126 : index
    %c0_110 = arith.constant 0 : index
    %141 = vector.load %arg15[%c126, %c0_110] : memref<144x16xf32, #tpu.memory_space<vmem>>, vector<16x16xf32>
    %142 = arith.truncf %141 : vector<16x16xf32> to vector<16x16xbf16>
    %c0_111 = arith.constant 0 : index
    %c7_112 = arith.constant 7 : index
    %c0_113 = arith.constant 0 : index
    %c0_114 = arith.constant 0 : index
    %143 = vector.load %arg12[%c0_111, %c7_112, %c0_113, %c0_114] : memref<1x8x16x16xbf16, #tpu.memory_space<vmem>>, vector<1x1x16x16xbf16>
    %144 = vector.shape_cast %143 : vector<1x1x16x16xbf16> to vector<16x16xbf16>
    %145 = vector.shape_cast %142 : vector<16x16xbf16> to vector<1x1x16x16xbf16>
    tpu.vector_store %arg12[%c0_111, %c7_112, %c0_113, %c0_114], %145 {strides = array<i32>} : memref<1x8x16x16xbf16, #tpu.memory_space<vmem>>, vector<1x1x16x16xbf16>,
    return
  }
  func.func @transform_0(%arg0: i32, %arg1: i32) -> (i32, i32, i32) {
    %c0_i32 = arith.constant 0 : i32
    %c0_i32_0 = arith.constant 0 : i32
    %c0_i32_1 = arith.constant 0 : i32
    return %arg0, %c0_i32, %c0_i32_0 : i32, i32, i32
  }
  func.func @transform_1(%arg0: i32, %arg1: i32) -> (i32, i32) {
    %c0_i32 = arith.constant 0 : i32
    %c0_i32_0 = arith.constant 0 : i32
    %c0_i32_1 = arith.constant 0 : i32
    return %c0_i32, %c0_i32_0 : i32, i32
  }
  func.func @transform_2(%arg0: i32, %arg1: i32) -> (i32, i32) {
    %c0_i32 = arith.constant 0 : i32
    %c0_i32_0 = arith.constant 0 : i32
    %c0_i32_1 = arith.constant 0 : i32
    return %c0_i32, %c0_i32_0 : i32, i32
  }
  func.func @transform_3(%arg0: i32, %arg1: i32) -> (i32, i32) {
    %c0_i32 = arith.constant 0 : i32
    %c0_i32_0 = arith.constant 0 : i32
    %c0_i32_1 = arith.constant 0 : i32
    return %c0_i32, %c0_i32_0 : i32, i32
  }
  func.func @transform_4(%arg0: i32, %arg1: i32) -> (i32, i32, i32) {
    %c0_i32 = arith.constant 0 : i32
    %c0_i32_0 = arith.constant 0 : i32
    %c0_i32_1 = arith.constant 0 : i32
    %c0_i32_2 = arith.constant 0 : i32
    return %c0_i32, %c0_i32_0, %c0_i32_1 : i32, i32, i32
  }
  func.func @transform_5(%arg0: i32, %arg1: i32) -> (i32, i32) {
    %c0_i32 = arith.constant 0 : i32
    %c0_i32_0 = arith.constant 0 : i32
    %c0_i32_1 = arith.constant 0 : i32
    return %c0_i32, %c0_i32_0 : i32, i32
  }
  func.func @transform_6(%arg0: i32, %arg1: i32) -> (i32, i32) {
    %c0_i32 = arith.constant 0 : i32
    %c0_i32_0 = arith.constant 0 : i32
    %c0_i32_1 = arith.constant 0 : i32
    return %c0_i32, %c0_i32_0 : i32, i32
  }
  func.func @transform_7(%arg0: i32, %arg1: i32) -> (i32, i32) {
    %c0_i32 = arith.constant 0 : i32
    %c0_i32_0 = arith.constant 0 : i32
    %c0_i32_1 = arith.constant 0 : i32
    return %c0_i32, %c0_i32_0 : i32, i32
  }
  func.func @transform_8(%arg0: i32, %arg1: i32) -> (i32, i32) {
    %c0_i32 = arith.constant 0 : i32
    %c0_i32_0 = arith.constant 0 : i32
    %c0_i32_1 = arith.constant 0 : i32
    return %c0_i32, %c0_i32_0 : i32, i32
  }
  func.func @transform_9(%arg0: i32, %arg1: i32) -> (i32, i32) {
    %c0_i32 = arith.constant 0 : i32
    %c0_i32_0 = arith.constant 0 : i32
    %c0_i32_1 = arith.constant 0 : i32
    return %c0_i32, %c0_i32_0 : i32, i32
  }
  func.func @transform_10(%arg0: i32, %arg1: i32) -> (i32, i32, i32, i32) {
    %c0_i32 = arith.constant 0 : i32
    %c0_i32_0 = arith.constant 0 : i32
    %c0_i32_1 = arith.constant 0 : i32
    return %arg0, %arg1, %c0_i32, %c0_i32_0 : i32, i32, i32, i32
  }
}

module attributes {stable_mosaic.version = 11 : i64} {
  func.func @_fused_block_kernel(%arg0: i32, %arg1: i32, %arg2: memref<1x342x16xbf16, #tpu.memory_space<vmem>>, %arg3: memref<342x1xf32, #tpu.memory_space<vmem>>, %arg4: memref<16x4xbf16, #tpu.memory_space<vmem>>, %arg5: memref<1x4xf32, #tpu.memory_space<vmem>>, %arg6: memref<9x4x4xbf16, #tpu.memory_space<vmem>>, %arg7: memref<1x4xf32, #tpu.memory_space<vmem>>, %arg8: memref<4x16xbf16, #tpu.memory_space<vmem>>, %arg9: memref<1x16xf32, #tpu.memory_space<vmem>>, %arg10: memref<1x8x16x16xf32, #tpu.memory_space<vmem>>, %arg11: memref<198x16xf32, #tpu.memory_space<vmem>>, %arg12: memref<198x4xf32, #tpu.memory_space<vmem>>, %arg13: memref<144x16xf32, #tpu.memory_space<vmem>>) attributes {dimension_semantics = [#tpu.dimension_semantics<parallel>, #tpu.dimension_semantics<parallel>], iteration_bounds = array<i64: 2, 2>, scalar_prefetch = 0 : i64, scratch_operands = 3 : i64, tpu.core_type = #tpu.core_type<tc>, window_params = [{transform_indices = @transform_0, window_bounds = array<i64: 1, 342, 16>}, {pipeline_mode = #tpu.pipeline_mode<synchronous>, transform_indices = @transform_1, window_bounds = array<i64: 342, 1>}, {pipeline_mode = #tpu.pipeline_mode<synchronous>, transform_indices = @transform_2, window_bounds = array<i64: 16, 4>}, {pipeline_mode = #tpu.pipeline_mode<synchronous>, transform_indices = @transform_3, window_bounds = array<i64: 1, 4>}, {pipeline_mode = #tpu.pipeline_mode<synchronous>, transform_indices = @transform_4, window_bounds = array<i64: 9, 4, 4>}, {pipeline_mode = #tpu.pipeline_mode<synchronous>, transform_indices = @transform_5, window_bounds = array<i64: 1, 4>}, {pipeline_mode = #tpu.pipeline_mode<synchronous>, transform_indices = @transform_6, window_bounds = array<i64: 4, 16>}, {pipeline_mode = #tpu.pipeline_mode<synchronous>, transform_indices = @transform_7, window_bounds = array<i64: 1, 16>}, {transform_indices = @transform_8, window_bounds = array<i64: 1, 8, 16, 16>}]} {
    %c144_i32 = arith.constant 144 : i32
    %0 = arith.muli %arg1, %c144_i32 : i32
    %1 = tpu.assume_multiple %0, 144 : i32
    %c0 = arith.constant 0 : index
    %2 = arith.index_cast %1 : i32 to index
    %c0_0 = arith.constant 0 : index
    %3 = vector.load %arg2[%c0, %2, %c0_0] : memref<1x342x16xbf16, #tpu.memory_space<vmem>>, vector<1x198x16xbf16>
    %4 = vector.shape_cast %3 : vector<1x198x16xbf16> to vector<198x16xbf16>
    %5 = arith.extf %4 : vector<198x16xbf16> to vector<198x16xf32>
    %c0_1 = arith.constant 0 : index
    %c0_2 = arith.constant 0 : index
    %6 = vector.load %arg11[%c0_1, %c0_2] : memref<198x16xf32, #tpu.memory_space<vmem>>, vector<198x16xf32>
    tpu.vector_store %arg11[%c0_1, %c0_2], %5 {strides = array<i32>} : memref<198x16xf32, #tpu.memory_space<vmem>>, vector<198x16xf32>,
    %c0_3 = arith.constant 0 : index
    %c0_4 = arith.constant 0 : index
    %7 = vector.load %arg11[%c0_3, %c0_4] : memref<198x16xf32, #tpu.memory_space<vmem>>, vector<198x16xf32>
    %8 = arith.truncf %7 : vector<198x16xf32> to vector<198x16xbf16>
    %c0_5 = arith.constant 0 : index
    %c0_6 = arith.constant 0 : index
    %9 = vector.load %arg4[%c0_5, %c0_6] : memref<16x4xbf16, #tpu.memory_space<vmem>>, vector<16x4xbf16>
    %cst = arith.constant dense<0.000000e+00> : vector<198x4xf32>
    %10 = tpu.matmul %8, %9, %cst {dimension_numbers = #tpu.dot_dimension_numbers<[1], [0], [0], [1], [0, 0, 1, 1], [], []>} : vector<198x16xbf16>, vector<16x4xbf16>, vector<198x4xf32> -> vector<198x4xf32>
    %c0_7 = arith.constant 0 : index
    %c0_8 = arith.constant 0 : index
    %11 = vector.load %arg5[%c0_7, %c0_8] : memref<1x4xf32, #tpu.memory_space<vmem>>, vector<1x4xf32>
    %12 = vector.broadcast %11 : vector<1x4xf32> to vector<198x4xf32>
    %13 = arith.addf %10, %12 : vector<198x4xf32>
    %14 = arith.negf %13 : vector<198x4xf32>
    %15 = math.exp %14 : vector<198x4xf32>
    %cst_9 = arith.constant 1.000000e+00 : f32
    %16 = vector.broadcast %cst_9 : f32 to vector<198x4xf32>
    %17 = arith.addf %16, %15 : vector<198x4xf32>
    %18 = arith.divf %16, %17 : vector<198x4xf32>
    %19 = arith.mulf %13, %18 : vector<198x4xf32>
    %20 = arith.index_cast %1 : i32 to index
    %c0_10 = arith.constant 0 : index
    %21 = vector.load %arg3[%20, %c0_10] : memref<342x1xf32, #tpu.memory_space<vmem>>, vector<198x1xf32>
    %22 = vector.broadcast %21 : vector<198x1xf32> to vector<198x4xf32>
    %23 = arith.mulf %19, %22 : vector<198x4xf32>
    %c0_11 = arith.constant 0 : index
    %c0_12 = arith.constant 0 : index
    %24 = vector.load %arg12[%c0_11, %c0_12] : memref<198x4xf32, #tpu.memory_space<vmem>>, vector<198x4xf32>
    tpu.vector_store %arg12[%c0_11, %c0_12], %23 {strides = array<i32>} : memref<198x4xf32, #tpu.memory_space<vmem>>, vector<198x4xf32>,
    %cst_13 = arith.constant 0.000000e+00 : f32
    %25 = vector.broadcast %cst_13 : f32 to vector<144x4xf32>
    %c0_14 = arith.constant 0 : index
    %c0_15 = arith.constant 0 : index
    %26 = vector.load %arg12[%c0_14, %c0_15] : memref<198x4xf32, #tpu.memory_space<vmem>>, vector<144x4xf32>
    %27 = arith.truncf %26 : vector<144x4xf32> to vector<144x4xbf16>
    %c0_16 = arith.constant 0 : index
    %c0_17 = arith.constant 0 : index
    %c0_18 = arith.constant 0 : index
    %28 = vector.load %arg6[%c0_16, %c0_17, %c0_18] : memref<9x4x4xbf16, #tpu.memory_space<vmem>>, vector<1x4x4xbf16>
    %29 = vector.shape_cast %28 : vector<1x4x4xbf16> to vector<4x4xbf16>
    %cst_19 = arith.constant dense<0.000000e+00> : vector<144x4xf32>
    %30 = tpu.matmul %27, %29, %cst_19 {dimension_numbers = #tpu.dot_dimension_numbers<[1], [0], [0], [1], [0, 0, 1, 1], [], []>} : vector<144x4xbf16>, vector<4x4xbf16>, vector<144x4xf32> -> vector<144x4xf32>
    %31 = arith.addf %25, %30 : vector<144x4xf32>
    %c1 = arith.constant 1 : index
    %c0_20 = arith.constant 0 : index
    %32 = vector.load %arg12[%c1, %c0_20] : memref<198x4xf32, #tpu.memory_space<vmem>>, vector<144x4xf32>
    %33 = arith.truncf %32 : vector<144x4xf32> to vector<144x4xbf16>
    %c1_21 = arith.constant 1 : index
    %c0_22 = arith.constant 0 : index
    %c0_23 = arith.constant 0 : index
    %34 = vector.load %arg6[%c1_21, %c0_22, %c0_23] : memref<9x4x4xbf16, #tpu.memory_space<vmem>>, vector<1x4x4xbf16>
    %35 = vector.shape_cast %34 : vector<1x4x4xbf16> to vector<4x4xbf16>
    %cst_24 = arith.constant dense<0.000000e+00> : vector<144x4xf32>
    %36 = tpu.matmul %33, %35, %cst_24 {dimension_numbers = #tpu.dot_dimension_numbers<[1], [0], [0], [1], [0, 0, 1, 1], [], []>} : vector<144x4xbf16>, vector<4x4xbf16>, vector<144x4xf32> -> vector<144x4xf32>
    %37 = arith.addf %31, %36 : vector<144x4xf32>
    %c2 = arith.constant 2 : index
    %c0_25 = arith.constant 0 : index
    %38 = vector.load %arg12[%c2, %c0_25] : memref<198x4xf32, #tpu.memory_space<vmem>>, vector<144x4xf32>
    %39 = arith.truncf %38 : vector<144x4xf32> to vector<144x4xbf16>
    %c2_26 = arith.constant 2 : index
    %c0_27 = arith.constant 0 : index
    %c0_28 = arith.constant 0 : index
    %40 = vector.load %arg6[%c2_26, %c0_27, %c0_28] : memref<9x4x4xbf16, #tpu.memory_space<vmem>>, vector<1x4x4xbf16>
    %41 = vector.shape_cast %40 : vector<1x4x4xbf16> to vector<4x4xbf16>
    %cst_29 = arith.constant dense<0.000000e+00> : vector<144x4xf32>
    %42 = tpu.matmul %39, %41, %cst_29 {dimension_numbers = #tpu.dot_dimension_numbers<[1], [0], [0], [1], [0, 0, 1, 1], [], []>} : vector<144x4xbf16>, vector<4x4xbf16>, vector<144x4xf32> -> vector<144x4xf32>
    %43 = arith.addf %37, %42 : vector<144x4xf32>
    %c18 = arith.constant 18 : index
    %c0_30 = arith.constant 0 : index
    %44 = vector.load %arg12[%c18, %c0_30] : memref<198x4xf32, #tpu.memory_space<vmem>>, vector<144x4xf32>
    %45 = arith.truncf %44 : vector<144x4xf32> to vector<144x4xbf16>
    %c3 = arith.constant 3 : index
    %c0_31 = arith.constant 0 : index
    %c0_32 = arith.constant 0 : index
    %46 = vector.load %arg6[%c3, %c0_31, %c0_32] : memref<9x4x4xbf16, #tpu.memory_space<vmem>>, vector<1x4x4xbf16>
    %47 = vector.shape_cast %46 : vector<1x4x4xbf16> to vector<4x4xbf16>
    %cst_33 = arith.constant dense<0.000000e+00> : vector<144x4xf32>
    %48 = tpu.matmul %45, %47, %cst_33 {dimension_numbers = #tpu.dot_dimension_numbers<[1], [0], [0], [1], [0, 0, 1, 1], [], []>} : vector<144x4xbf16>, vector<4x4xbf16>, vector<144x4xf32> -> vector<144x4xf32>
    %49 = arith.addf %43, %48 : vector<144x4xf32>
    %c19 = arith.constant 19 : index
    %c0_34 = arith.constant 0 : index
    %50 = vector.load %arg12[%c19, %c0_34] : memref<198x4xf32, #tpu.memory_space<vmem>>, vector<144x4xf32>
    %51 = arith.truncf %50 : vector<144x4xf32> to vector<144x4xbf16>
    %c4 = arith.constant 4 : index
    %c0_35 = arith.constant 0 : index
    %c0_36 = arith.constant 0 : index
    %52 = vector.load %arg6[%c4, %c0_35, %c0_36] : memref<9x4x4xbf16, #tpu.memory_space<vmem>>, vector<1x4x4xbf16>
    %53 = vector.shape_cast %52 : vector<1x4x4xbf16> to vector<4x4xbf16>
    %cst_37 = arith.constant dense<0.000000e+00> : vector<144x4xf32>
    %54 = tpu.matmul %51, %53, %cst_37 {dimension_numbers = #tpu.dot_dimension_numbers<[1], [0], [0], [1], [0, 0, 1, 1], [], []>} : vector<144x4xbf16>, vector<4x4xbf16>, vector<144x4xf32> -> vector<144x4xf32>
    %55 = arith.addf %49, %54 : vector<144x4xf32>
    %c20 = arith.constant 20 : index
    %c0_38 = arith.constant 0 : index
    %56 = vector.load %arg12[%c20, %c0_38] : memref<198x4xf32, #tpu.memory_space<vmem>>, vector<144x4xf32>
    %57 = arith.truncf %56 : vector<144x4xf32> to vector<144x4xbf16>
    %c5 = arith.constant 5 : index
    %c0_39 = arith.constant 0 : index
    %c0_40 = arith.constant 0 : index
    %58 = vector.load %arg6[%c5, %c0_39, %c0_40] : memref<9x4x4xbf16, #tpu.memory_space<vmem>>, vector<1x4x4xbf16>
    %59 = vector.shape_cast %58 : vector<1x4x4xbf16> to vector<4x4xbf16>
    %cst_41 = arith.constant dense<0.000000e+00> : vector<144x4xf32>
    %60 = tpu.matmul %57, %59, %cst_41 {dimension_numbers = #tpu.dot_dimension_numbers<[1], [0], [0], [1], [0, 0, 1, 1], [], []>} : vector<144x4xbf16>, vector<4x4xbf16>, vector<144x4xf32> -> vector<144x4xf32>
    %61 = arith.addf %55, %60 : vector<144x4xf32>
    %c36 = arith.constant 36 : index
    %c0_42 = arith.constant 0 : index
    %62 = vector.load %arg12[%c36, %c0_42] : memref<198x4xf32, #tpu.memory_space<vmem>>, vector<144x4xf32>
    %63 = arith.truncf %62 : vector<144x4xf32> to vector<144x4xbf16>
    %c6 = arith.constant 6 : index
    %c0_43 = arith.constant 0 : index
    %c0_44 = arith.constant 0 : index
    %64 = vector.load %arg6[%c6, %c0_43, %c0_44] : memref<9x4x4xbf16, #tpu.memory_space<vmem>>, vector<1x4x4xbf16>
    %65 = vector.shape_cast %64 : vector<1x4x4xbf16> to vector<4x4xbf16>
    %cst_45 = arith.constant dense<0.000000e+00> : vector<144x4xf32>
    %66 = tpu.matmul %63, %65, %cst_45 {dimension_numbers = #tpu.dot_dimension_numbers<[1], [0], [0], [1], [0, 0, 1, 1], [], []>} : vector<144x4xbf16>, vector<4x4xbf16>, vector<144x4xf32> -> vector<144x4xf32>
    %67 = arith.addf %61, %66 : vector<144x4xf32>
    %c37 = arith.constant 37 : index
    %c0_46 = arith.constant 0 : index
    %68 = vector.load %arg12[%c37, %c0_46] : memref<198x4xf32, #tpu.memory_space<vmem>>, vector<144x4xf32>
    %69 = arith.truncf %68 : vector<144x4xf32> to vector<144x4xbf16>
    %c7 = arith.constant 7 : index
    %c0_47 = arith.constant 0 : index
    %c0_48 = arith.constant 0 : index
    %70 = vector.load %arg6[%c7, %c0_47, %c0_48] : memref<9x4x4xbf16, #tpu.memory_space<vmem>>, vector<1x4x4xbf16>
    %71 = vector.shape_cast %70 : vector<1x4x4xbf16> to vector<4x4xbf16>
    %cst_49 = arith.constant dense<0.000000e+00> : vector<144x4xf32>
    %72 = tpu.matmul %69, %71, %cst_49 {dimension_numbers = #tpu.dot_dimension_numbers<[1], [0], [0], [1], [0, 0, 1, 1], [], []>} : vector<144x4xbf16>, vector<4x4xbf16>, vector<144x4xf32> -> vector<144x4xf32>
    %73 = arith.addf %67, %72 : vector<144x4xf32>
    %c38 = arith.constant 38 : index
    %c0_50 = arith.constant 0 : index
    %74 = vector.load %arg12[%c38, %c0_50] : memref<198x4xf32, #tpu.memory_space<vmem>>, vector<144x4xf32>
    %75 = arith.truncf %74 : vector<144x4xf32> to vector<144x4xbf16>
    %c8 = arith.constant 8 : index
    %c0_51 = arith.constant 0 : index
    %c0_52 = arith.constant 0 : index
    %76 = vector.load %arg6[%c8, %c0_51, %c0_52] : memref<9x4x4xbf16, #tpu.memory_space<vmem>>, vector<1x4x4xbf16>
    %77 = vector.shape_cast %76 : vector<1x4x4xbf16> to vector<4x4xbf16>
    %cst_53 = arith.constant dense<0.000000e+00> : vector<144x4xf32>
    %78 = tpu.matmul %75, %77, %cst_53 {dimension_numbers = #tpu.dot_dimension_numbers<[1], [0], [0], [1], [0, 0, 1, 1], [], []>} : vector<144x4xbf16>, vector<4x4xbf16>, vector<144x4xf32> -> vector<144x4xf32>
    %79 = arith.addf %73, %78 : vector<144x4xf32>
    %c0_54 = arith.constant 0 : index
    %c0_55 = arith.constant 0 : index
    %80 = vector.load %arg7[%c0_54, %c0_55] : memref<1x4xf32, #tpu.memory_space<vmem>>, vector<1x4xf32>
    %81 = vector.broadcast %80 : vector<1x4xf32> to vector<144x4xf32>
    %82 = arith.addf %79, %81 : vector<144x4xf32>
    %83 = arith.negf %82 : vector<144x4xf32>
    %84 = math.exp %83 : vector<144x4xf32>
    %cst_56 = arith.constant 1.000000e+00 : f32
    %85 = vector.broadcast %cst_56 : f32 to vector<144x4xf32>
    %86 = arith.addf %85, %84 : vector<144x4xf32>
    %87 = arith.divf %85, %86 : vector<144x4xf32>
    %88 = arith.mulf %82, %87 : vector<144x4xf32>
    %89 = arith.truncf %88 : vector<144x4xf32> to vector<144x4xbf16>
    %c0_57 = arith.constant 0 : index
    %c0_58 = arith.constant 0 : index
    %90 = vector.load %arg8[%c0_57, %c0_58] : memref<4x16xbf16, #tpu.memory_space<vmem>>, vector<4x16xbf16>
    %cst_59 = arith.constant dense<0.000000e+00> : vector<144x16xf32>
    %91 = tpu.matmul %89, %90, %cst_59 {dimension_numbers = #tpu.dot_dimension_numbers<[1], [0], [0], [1], [0, 0, 1, 1], [], []>} : vector<144x4xbf16>, vector<4x16xbf16>, vector<144x16xf32> -> vector<144x16xf32>
    %c0_60 = arith.constant 0 : index
    %c0_61 = arith.constant 0 : index
    %92 = vector.load %arg9[%c0_60, %c0_61] : memref<1x16xf32, #tpu.memory_space<vmem>>, vector<1x16xf32>
    %93 = vector.broadcast %92 : vector<1x16xf32> to vector<144x16xf32>
    %94 = arith.addf %91, %93 : vector<144x16xf32>
    %c19_62 = arith.constant 19 : index
    %c0_63 = arith.constant 0 : index
    %95 = vector.load %arg11[%c19_62, %c0_63] : memref<198x16xf32, #tpu.memory_space<vmem>>, vector<144x16xf32>
    %96 = arith.addf %94, %95 : vector<144x16xf32>
    %cst_64 = arith.constant 0.000000e+00 : f32
    %97 = vector.broadcast %cst_64 : f32 to vector<144x16xf32>
    %98 = arith.maximumf %96, %97 : vector<144x16xf32>
    %c0_65 = arith.constant 0 : index
    %c0_66 = arith.constant 0 : index
    %99 = vector.load %arg13[%c0_65, %c0_66] : memref<144x16xf32, #tpu.memory_space<vmem>>, vector<144x16xf32>
    tpu.vector_store %arg13[%c0_65, %c0_66], %98 {strides = array<i32>} : memref<144x16xf32, #tpu.memory_space<vmem>>, vector<144x16xf32>,
    %c0_67 = arith.constant 0 : index
    %c0_68 = arith.constant 0 : index
    %100 = vector.load %arg13[%c0_67, %c0_68] : memref<144x16xf32, #tpu.memory_space<vmem>>, vector<16x16xf32>
    %c0_69 = arith.constant 0 : index
    %c0_70 = arith.constant 0 : index
    %c0_71 = arith.constant 0 : index
    %c0_72 = arith.constant 0 : index
    %101 = vector.load %arg10[%c0_69, %c0_70, %c0_71, %c0_72] : memref<1x8x16x16xf32, #tpu.memory_space<vmem>>, vector<1x1x16x16xf32>
    %102 = vector.shape_cast %101 : vector<1x1x16x16xf32> to vector<16x16xf32>
    %103 = vector.shape_cast %100 : vector<16x16xf32> to vector<1x1x16x16xf32>
    tpu.vector_store %arg10[%c0_69, %c0_70, %c0_71, %c0_72], %103 {strides = array<i32>} : memref<1x8x16x16xf32, #tpu.memory_space<vmem>>, vector<1x1x16x16xf32>,
    %c18_73 = arith.constant 18 : index
    %c0_74 = arith.constant 0 : index
    %104 = vector.load %arg13[%c18_73, %c0_74] : memref<144x16xf32, #tpu.memory_space<vmem>>, vector<16x16xf32>
    %c0_75 = arith.constant 0 : index
    %c1_76 = arith.constant 1 : index
    %c0_77 = arith.constant 0 : index
    %c0_78 = arith.constant 0 : index
    %105 = vector.load %arg10[%c0_75, %c1_76, %c0_77, %c0_78] : memref<1x8x16x16xf32, #tpu.memory_space<vmem>>, vector<1x1x16x16xf32>
    %106 = vector.shape_cast %105 : vector<1x1x16x16xf32> to vector<16x16xf32>
    %107 = vector.shape_cast %104 : vector<16x16xf32> to vector<1x1x16x16xf32>
    tpu.vector_store %arg10[%c0_75, %c1_76, %c0_77, %c0_78], %107 {strides = array<i32>} : memref<1x8x16x16xf32, #tpu.memory_space<vmem>>, vector<1x1x16x16xf32>,
    %c36_79 = arith.constant 36 : index
    %c0_80 = arith.constant 0 : index
    %108 = vector.load %arg13[%c36_79, %c0_80] : memref<144x16xf32, #tpu.memory_space<vmem>>, vector<16x16xf32>
    %c0_81 = arith.constant 0 : index
    %c2_82 = arith.constant 2 : index
    %c0_83 = arith.constant 0 : index
    %c0_84 = arith.constant 0 : index
    %109 = vector.load %arg10[%c0_81, %c2_82, %c0_83, %c0_84] : memref<1x8x16x16xf32, #tpu.memory_space<vmem>>, vector<1x1x16x16xf32>
    %110 = vector.shape_cast %109 : vector<1x1x16x16xf32> to vector<16x16xf32>
    %111 = vector.shape_cast %108 : vector<16x16xf32> to vector<1x1x16x16xf32>
    tpu.vector_store %arg10[%c0_81, %c2_82, %c0_83, %c0_84], %111 {strides = array<i32>} : memref<1x8x16x16xf32, #tpu.memory_space<vmem>>, vector<1x1x16x16xf32>,
    %c54 = arith.constant 54 : index
    %c0_85 = arith.constant 0 : index
    %112 = vector.load %arg13[%c54, %c0_85] : memref<144x16xf32, #tpu.memory_space<vmem>>, vector<16x16xf32>
    %c0_86 = arith.constant 0 : index
    %c3_87 = arith.constant 3 : index
    %c0_88 = arith.constant 0 : index
    %c0_89 = arith.constant 0 : index
    %113 = vector.load %arg10[%c0_86, %c3_87, %c0_88, %c0_89] : memref<1x8x16x16xf32, #tpu.memory_space<vmem>>, vector<1x1x16x16xf32>
    %114 = vector.shape_cast %113 : vector<1x1x16x16xf32> to vector<16x16xf32>
    %115 = vector.shape_cast %112 : vector<16x16xf32> to vector<1x1x16x16xf32>
    tpu.vector_store %arg10[%c0_86, %c3_87, %c0_88, %c0_89], %115 {strides = array<i32>} : memref<1x8x16x16xf32, #tpu.memory_space<vmem>>, vector<1x1x16x16xf32>,
    %c72 = arith.constant 72 : index
    %c0_90 = arith.constant 0 : index
    %116 = vector.load %arg13[%c72, %c0_90] : memref<144x16xf32, #tpu.memory_space<vmem>>, vector<16x16xf32>
    %c0_91 = arith.constant 0 : index
    %c4_92 = arith.constant 4 : index
    %c0_93 = arith.constant 0 : index
    %c0_94 = arith.constant 0 : index
    %117 = vector.load %arg10[%c0_91, %c4_92, %c0_93, %c0_94] : memref<1x8x16x16xf32, #tpu.memory_space<vmem>>, vector<1x1x16x16xf32>
    %118 = vector.shape_cast %117 : vector<1x1x16x16xf32> to vector<16x16xf32>
    %119 = vector.shape_cast %116 : vector<16x16xf32> to vector<1x1x16x16xf32>
    tpu.vector_store %arg10[%c0_91, %c4_92, %c0_93, %c0_94], %119 {strides = array<i32>} : memref<1x8x16x16xf32, #tpu.memory_space<vmem>>, vector<1x1x16x16xf32>,
    %c90 = arith.constant 90 : index
    %c0_95 = arith.constant 0 : index
    %120 = vector.load %arg13[%c90, %c0_95] : memref<144x16xf32, #tpu.memory_space<vmem>>, vector<16x16xf32>
    %c0_96 = arith.constant 0 : index
    %c5_97 = arith.constant 5 : index
    %c0_98 = arith.constant 0 : index
    %c0_99 = arith.constant 0 : index
    %121 = vector.load %arg10[%c0_96, %c5_97, %c0_98, %c0_99] : memref<1x8x16x16xf32, #tpu.memory_space<vmem>>, vector<1x1x16x16xf32>
    %122 = vector.shape_cast %121 : vector<1x1x16x16xf32> to vector<16x16xf32>
    %123 = vector.shape_cast %120 : vector<16x16xf32> to vector<1x1x16x16xf32>
    tpu.vector_store %arg10[%c0_96, %c5_97, %c0_98, %c0_99], %123 {strides = array<i32>} : memref<1x8x16x16xf32, #tpu.memory_space<vmem>>, vector<1x1x16x16xf32>,
    %c108 = arith.constant 108 : index
    %c0_100 = arith.constant 0 : index
    %124 = vector.load %arg13[%c108, %c0_100] : memref<144x16xf32, #tpu.memory_space<vmem>>, vector<16x16xf32>
    %c0_101 = arith.constant 0 : index
    %c6_102 = arith.constant 6 : index
    %c0_103 = arith.constant 0 : index
    %c0_104 = arith.constant 0 : index
    %125 = vector.load %arg10[%c0_101, %c6_102, %c0_103, %c0_104] : memref<1x8x16x16xf32, #tpu.memory_space<vmem>>, vector<1x1x16x16xf32>
    %126 = vector.shape_cast %125 : vector<1x1x16x16xf32> to vector<16x16xf32>
    %127 = vector.shape_cast %124 : vector<16x16xf32> to vector<1x1x16x16xf32>
    tpu.vector_store %arg10[%c0_101, %c6_102, %c0_103, %c0_104], %127 {strides = array<i32>} : memref<1x8x16x16xf32, #tpu.memory_space<vmem>>, vector<1x1x16x16xf32>,
    %c126 = arith.constant 126 : index
    %c0_105 = arith.constant 0 : index
    %128 = vector.load %arg13[%c126, %c0_105] : memref<144x16xf32, #tpu.memory_space<vmem>>, vector<16x16xf32>
    %c0_106 = arith.constant 0 : index
    %c7_107 = arith.constant 7 : index
    %c0_108 = arith.constant 0 : index
    %c0_109 = arith.constant 0 : index
    %129 = vector.load %arg10[%c0_106, %c7_107, %c0_108, %c0_109] : memref<1x8x16x16xf32, #tpu.memory_space<vmem>>, vector<1x1x16x16xf32>
    %130 = vector.shape_cast %129 : vector<1x1x16x16xf32> to vector<16x16xf32>
    %131 = vector.shape_cast %128 : vector<16x16xf32> to vector<1x1x16x16xf32>
    tpu.vector_store %arg10[%c0_106, %c7_107, %c0_108, %c0_109], %131 {strides = array<i32>} : memref<1x8x16x16xf32, #tpu.memory_space<vmem>>, vector<1x1x16x16xf32>,
    return
  }
  func.func @transform_0(%arg0: i32, %arg1: i32) -> (i32, i32, i32) {
    %c0_i32 = arith.constant 0 : i32
    %c0_i32_0 = arith.constant 0 : i32
    %c0_i32_1 = arith.constant 0 : i32
    return %arg0, %c0_i32, %c0_i32_0 : i32, i32, i32
  }
  func.func @transform_1(%arg0: i32, %arg1: i32) -> (i32, i32) {
    %c0_i32 = arith.constant 0 : i32
    %c0_i32_0 = arith.constant 0 : i32
    %c0_i32_1 = arith.constant 0 : i32
    return %c0_i32, %c0_i32_0 : i32, i32
  }
  func.func @transform_2(%arg0: i32, %arg1: i32) -> (i32, i32) {
    %c0_i32 = arith.constant 0 : i32
    %c0_i32_0 = arith.constant 0 : i32
    %c0_i32_1 = arith.constant 0 : i32
    return %c0_i32, %c0_i32_0 : i32, i32
  }
  func.func @transform_3(%arg0: i32, %arg1: i32) -> (i32, i32) {
    %c0_i32 = arith.constant 0 : i32
    %c0_i32_0 = arith.constant 0 : i32
    %c0_i32_1 = arith.constant 0 : i32
    return %c0_i32, %c0_i32_0 : i32, i32
  }
  func.func @transform_4(%arg0: i32, %arg1: i32) -> (i32, i32, i32) {
    %c0_i32 = arith.constant 0 : i32
    %c0_i32_0 = arith.constant 0 : i32
    %c0_i32_1 = arith.constant 0 : i32
    %c0_i32_2 = arith.constant 0 : i32
    return %c0_i32, %c0_i32_0, %c0_i32_1 : i32, i32, i32
  }
  func.func @transform_5(%arg0: i32, %arg1: i32) -> (i32, i32) {
    %c0_i32 = arith.constant 0 : i32
    %c0_i32_0 = arith.constant 0 : i32
    %c0_i32_1 = arith.constant 0 : i32
    return %c0_i32, %c0_i32_0 : i32, i32
  }
  func.func @transform_6(%arg0: i32, %arg1: i32) -> (i32, i32) {
    %c0_i32 = arith.constant 0 : i32
    %c0_i32_0 = arith.constant 0 : i32
    %c0_i32_1 = arith.constant 0 : i32
    return %c0_i32, %c0_i32_0 : i32, i32
  }
  func.func @transform_7(%arg0: i32, %arg1: i32) -> (i32, i32) {
    %c0_i32 = arith.constant 0 : i32
    %c0_i32_0 = arith.constant 0 : i32
    %c0_i32_1 = arith.constant 0 : i32
    return %c0_i32, %c0_i32_0 : i32, i32
  }
  func.func @transform_8(%arg0: i32, %arg1: i32) -> (i32, i32, i32, i32) {
    %c0_i32 = arith.constant 0 : i32
    %c0_i32_0 = arith.constant 0 : i32
    %c0_i32_1 = arith.constant 0 : i32
    return %arg0, %arg1, %c0_i32, %c0_i32_0 : i32, i32, i32, i32
  }
}

</mosaic_0001>

<bundles_post_ra>
// kernel: resnet_layer_forward.2
= control target key start
LH: loop header
LB: loop body
LE: loop exit
PB: predicated region body
PF: predicated region fallthrough
CT: control target
= control target key end

     0   :  { %s3841_s13 = smov 0   ;;  %s3843_s14 = smov 0   ;;  %s5168_s0 = inlined_call_operand.vmem [shape: bf16[2,342,4], index: 0, kind: input, shape index: {}]   ;;  %s5169_s1 = inlined_call_operand.vmem [shape: f32[342,1], index: 1, kind: input, shape index: {}]   ;;  %s5170_s2 = inlined_call_operand.vmem [shape: bf16[4,4], index: 2, kind: input, shape index: {}]   ;;  %s5171_s3 = inlined_call_operand.vmem [shape: f32[1,4], index: 3, kind: input, shape index: {}]   ;;  %s5172_s4 = inlined_call_operand.vmem [shape: bf16[9,4,4], index: 4, kind: input, shape index: {}]   ;;  %s5173_s5 = inlined_call_operand.vmem [shape: f32[1,4], index: 5, kind: input, shape index: {}]   ;;  %s5174_s6 = inlined_call_operand.vmem [shape: bf16[4,16], index: 6, kind: input, shape index: {}]   ;;  %s5175_s7 = inlined_call_operand.vmem [shape: f32[1,16], index: 7, kind: input, shape index: {}]   ;;  %s5176_s8 = inlined_call_operand.vmem [shape: bf16[4,16], index: 8, kind: input, shape index: {}]   ;;  %s5177_s9 = inlined_call_operand.vmem [shape: f32[1,16], index: 9, kind: input, shape index: {}]   ;;  %s5178_s10 = inlined_call_operand.vmem [shape: bf16[2,16,16,16], index: 10, kind: output, shape index: {}]  }
   0x1   :  { %s3845_s15 = smov 0   ;;  %s3847_s16 = smov 0  }
   0x2   :  { %s3849_s17 = smov 0  }
   0x3 LB: > { %s29_s18 = sadd.s32 1, %s3775_s15  ;;  %s32_s19 = sadd.s32 1, %s3779_s16  ;;  %s3783_s17 = sphi %s3849_s17, %s20_s17   ;;  %s3779_s16 = sphi %s3847_s16, %s5218_s16   ;;  %s3775_s15 = sphi %s3845_s15, %s5217_s15   ;;  %s3771_s14 = sphi %s3843_s14, %s5216_s14   ;;  %s3767_s13 = sphi %s3841_s13, %s5215_s13  }
   0x4   : > { %p30_p0 = scmp.ge.s32.totalorder %s29_s18, 2  ;;  %p3275_p1 = scmp.ge.s32.totalorder %s3783_s17, 1 }
   0x5   : > { %p326_p2 = scmp.lt.s32.totalorder %s3783_s17, 5 }
   0x6   : > { %s5220_s18 = smov (%p30_p0, %s29_s18), 0  ;;  %s5222_s19 = smov (!%p30_p0, %s32_s19), %s3779_s16 }
   0x7   : > { %p327_p3 = pnand %p3275_p1, %p326_p2  ;;  %p34_p4 = scmp.ge.s32.totalorder %s5222_s19, 2 }
   0x8   : > { %s386_s20 = smul.u32 (!%p327_p3), 144, %s3767_s13  ;;  %p369_p5 = scmp.lt.s32.totalorder (!%p327_p3), %s3771_s14, 1 }
   0x9   : > { %s5224_s19 = smov (%p34_p4, %s5222_s19), 0  ;;  %330 = sbr.rel (%p327_p3) target bundleno = 968 (0x3c8), region = 60 }
   0xa   : > { %s3884_s25 = scalar_lea.vmem (!%p327_p3), %s5169_s1, %s386_s20  ;;  %s387_s27 = sshra.s32 (!%p327_p3), %s386_s20, 3 }
   0xb   : > { %s3281_s11 = sshll.u32 (!%p327_p3), %s387_s27, 2  ;;  %s3277_s22 = sshll.u32 (!%p327_p3), %s3767_s13, 3 }
   0xc   : > { %p377_p6 = scmp.lt.s32.totalorder (!%p327_p3), %s3277_s22, 15 }
   0xe   : > { %v506_v0 = vld [vmem:[%s5170_s2] sm:$0x3]  ;;  %vm550_vm0 = vcmask 1041408   ;;  %v3785_v1 = vmov 0   ;;  %v1130_v4 = vld [vmem:[%s3884_s25 + $0x10] sm:$0xff]  ;;  %s5226_s14 = smov (!%p369_p5, %s3771_s14), 1 }
   0xf   : > { %3565 = vset.pattern.permute.xlu0 %v3785_v1  ;;  %3566 = vset.pattern.permute.xlu1 %v3785_v1  ;;  %v552_v2 = vsel %vm550_vm0, %v506_v0, 0  ;;  %v1128_v3 = vld [vmem:[%s3884_s25] sm:$0xff]  ;;  %s3523_s26 = smul.u32 172, %s5226_s14  ;;  %v1129_v5 = vld [vmem:[%s3884_s25 + $0x8] sm:$0xff]  ;;  %v1131_v6 = vld [vmem:[%s3884_s25 + $0x18] sm:$0xff]  ;;  %vm441_vm1 = vcmask 31744  }
  0x10   : > { %561 = vmatpush.bf16.msra.mxu0 %v552_v2  ;;  %3520 = vmatpush.bf16.msra.mxu1 %v552_v2  ;;  %v1132_v15 = vld [vmem:[%s3884_s25 + $0x20] sm:$0xff]  ;;  %vm466_vm2 = vcmask 29696   ;;  %v1134_v22 = vld [vmem:[%s3884_s25 + $0x30] sm:$0xff]  ;;  %v1135_v23 = vld [vmem:[%s3884_s25 + $0x38] sm:$0xff]  ;;  %s5228_s22 = smov (!%p377_p6, %s3277_s22), 15  ;;  %s3279_s27 = sshll.u32 %s5226_s14, 5 }
  0x11   : > { %3522 = vmatpush.bf16.msra.mxu3 %v552_v2  ;;  %3521 = vmatpush.bf16.msra.mxu2 %v552_v2  ;;  %s373_s30 = scalar_lea.vmem %s5168_s0, %s3523_s26  ;;  %v1133_v34 = vld [vmem:[%s3884_s25 + $0x28] sm:$0xff]  ;;  %v1138_v38 = vld [vmem:[%s3884_s25 + $0x50] sm:$0xff]  ;;  %v1136_v41 = vld [vmem:[%s3884_s25 + $0x40] sm:$0xff]  ;;  %s3278_s13 = sshll.u32 %s5228_s22, 1 }
  0x12   : > { %1155 = vperm.xlu0 %3565, %v1128_v3   ;;  %1165 = vperm.xlu1 %3566, %v1130_v4   ;;  %s3896_s12 = scalar_lea.vmem %s373_s30, %s3281_s11  ;;  %v1137_v37 = vld [vmem:[%s3884_s25 + $0x48] sm:$0xff]  ;;  %v1140_v45 = vld [vmem:[%s3884_s25 + $0x60] sm:$0xff]  ;;  %v1139_v50 = vld [vmem:[%s3884_s25 + $0x58] sm:$0xff]  ;;  %s381_s28 = sadd.s32 %s3279_s27, %s3278_s13 }
  0x13   : > { %3567 = vset.pattern.permute.xlu2 %v3785_v1  ;;  %v3462_v7 = vld [vmem:[%s3896_s12] sm:$0xff]   ;;  %v3518_v8 = vld [vmem:[%s3896_s12 + $0x50] sm:$0xff]   ;;  %v3519_v13 = vld [vmem:[%s3896_s12 + $0x58] sm:$0xff]   ;;  %s3280_s29 = sshll.u32 %s381_s28, 2 }
  0x14   : > { %v415_v9 = vld [vmem:[%s3896_s12 + $0x60] sm:$0x7]  ;;  %v3463_v10 = vunpack.c.l.bf16 %v3462_v7  ;;  %v3464_v11 = vunpack.c.h.bf16 %v3462_v7  ;;  %v3503_v12 = vunpack.c.l.bf16 %v3518_v8  ;;  %v3504_v14 = vunpack.c.h.bf16 %v3518_v8  ;;  %v3509_v17 = vld [vmem:[%s3896_s12 + $0x8] sm:$0xff]   ;;  %1175 = vperm.xlu2 %3567, %v1132_v15   ;;  %v3510_v20 = vld [vmem:[%s3896_s12 + $0x10] sm:$0xff]  }
  0x15   : > { %v440_v16 = vunpack.c.l.bf16 %v415_v9  ;;  %v3507_v18 = vunpack.c.l.bf16 %v3519_v13  ;;  %v3508_v19 = vunpack.c.h.bf16 %v3519_v13  ;;  %v3467_v21 = vunpack.c.l.bf16 %v3509_v17  ;;  %v3511_v42 = vld [vmem:[%s3896_s12 + $0x18] sm:$0xff]   ;;  %v1141_v48 = vld [vmem:[%s3884_s25 + $0x68] sm:$0xff]  ;;  %v1144_v52 = vld [vmem:[%s3884_s25 + $0x80] sm:$0xff] }
  0x16   : > { %442 = vst.msk [vmem:[#allocation2] sm:$0xff] %vm441_vm1, %v3463_v10  ;;  %v3468_v24 = vunpack.c.h.bf16 %v3509_v17  ;;  %v3471_v25 = vunpack.c.l.bf16 %v3510_v20  ;;  %v3472_v26 = vunpack.c.h.bf16 %v3510_v20  ;;  %v3475_v43 = vunpack.c.l.bf16 %v3511_v42  ;;  %v1143_v51 = vld [vmem:[%s3884_s25 + $0x78] sm:$0xff]  ;;  %v3512_v53 = vld [vmem:[%s3896_s12 + $0x20] sm:$0xff]   ;;  %v1142_v56 = vld [vmem:[%s3884_s25 + $0x70] sm:$0xff] }
  0x17   : > { %443 = vst.msk [vmem:[#allocation2 + $0x8] sm:$0xff] %vm441_vm1, %v3464_v11  ;;  %v3476_v44 = vunpack.c.h.bf16 %v3511_v42  ;;  %v3479_v54 = vunpack.c.l.bf16 %v3512_v53  ;;  %v3480_v55 = vunpack.c.h.bf16 %v3512_v53  ;;  %v1146_v57 = vld [vmem:[%s3884_s25 + $0x90] sm:$0xff]  ;;  %v1147_v60 = vld [vmem:[%s3884_s25 + $0x98] sm:$0xff]  ;;  %v1145_v62 = vld [vmem:[%s3884_s25 + $0x88] sm:$0xff] }
  0x18   : > { %462 = vst.msk [vmem:[#allocation2 + $0xa0] sm:$0xff] %vm441_vm1, %v3503_v12  ;;  %v3513_v63 = vld [vmem:[%s3896_s12 + $0x28] sm:$0xff]   ;;  %v1150_v1 = vld [vmem:[%s3884_s25 + $0xb0] sm:$0xff]  ;;  %v1148_v4 = vld [vmem:[%s3884_s25 + $0xa0] sm:$0xff] }
  0x19   : > { %463 = vst.msk [vmem:[#allocation2 + $0xa8] sm:$0xff] %vm441_vm1, %v3504_v14  ;;  %v1149_v0 = vld [vmem:[%s3884_s25 + $0xa8] sm:$0xff]  ;;  %v3483_v2 = vunpack.c.l.bf16 %v3513_v63  ;;  %v3484_v3 = vunpack.c.h.bf16 %v3513_v63  ;;  %v3514_v9 = vld [vmem:[%s3896_s12 + $0x30] sm:$0xff]   ;;  %v1151_v15 = vld [vmem:[%s3884_s25 + $0xb8] sm:$0xff] }
  0x1a   : > { %1160 = vperm.xlu0 %3565, %v1129_v5   ;;  %1170 = vperm.xlu1 %3566, %v1131_v6   ;;  %467 = vst.msk [vmem:[#allocation2 + $0xc0] sm:$0x3f] %vm466_vm2, %v440_v16  ;;  %v1152_v5 = vld [vmem:[%s3884_s25 + $0xc0] sm:$0x3f]  ;;  %v3487_v10 = vunpack.c.l.bf16 %v3514_v9  ;;  %v3488_v11 = vunpack.c.h.bf16 %v3514_v9  ;;  %v3515_v16 = vld [vmem:[%s3896_s12 + $0x38] sm:$0xff]  }
  0x1b   : > { %464 = vst.msk [vmem:[#allocation2 + $0xb0] sm:$0xff] %vm441_vm1, %v3507_v18  ;;  %v3491_v17 = vunpack.c.l.bf16 %v3515_v16  ;;  %v3492_v18 = vunpack.c.h.bf16 %v3515_v16 }
  0x1c   : > { %465 = vst.msk [vmem:[#allocation2 + $0xb8] sm:$0xff] %vm441_vm1, %v3508_v19  ;;  %1180 = vperm.xlu2 %3567, %v1133_v34  }
  0x1d   : > { %v468_v27 = vld [vmem:[#allocation2] sm:$0xff]  ;;  %444 = vst.msk [vmem:[#allocation2 + $0x10] sm:$0xff] %vm441_vm1, %v3467_v21 }
  0x1e   : > { %v469_v28 = vld [vmem:[#allocation2 + $0x8] sm:$0xff]  ;;  %445 = vst.msk [vmem:[#allocation2 + $0x18] sm:$0xff] %vm441_vm1, %v3468_v24 }
  0x1f   : > { %v493_v29 = vpack.c.bf16 %v469_v28, %v468_v27  ;;  %v488_v30 = vld [vmem:[#allocation2 + $0xa0] sm:$0xff]  ;;  %446 = vst.msk [vmem:[#allocation2 + $0x20] sm:$0xff] %vm441_vm1, %v3471_v25 }
  0x20   : > { %v489_v31 = vld [vmem:[#allocation2 + $0xa8] sm:$0xff]  ;;  %447 = vst.msk [vmem:[#allocation2 + $0x28] sm:$0xff] %vm441_vm1, %v3472_v26 }
  0x21   : > { %3282 = vmatmul.msk.bf16.vlgmr.msra.gmra.mxu0 %vm441_vm1, %v493_v29  ;;  %v503_v32 = vpack.c.bf16 %v489_v31, %v488_v30  ;;  %v492_v33 = vld [vmem:[#allocation2 + $0xc0] sm:$0x3f]  ;;  %448 = vst.msk [vmem:[#allocation2 + $0x30] sm:$0xff] %vm441_vm1, %v3475_v43  ;;  %v3517_v30 = vld [vmem:[%s3896_s12 + $0x48] sm:$0xff]  }
  0x22   : > { %1185 = vperm.xlu0 %3565, %v1134_v22   ;;  %1190 = vperm.xlu1 %3566, %v1135_v23   ;;  %v505_v35 = vpack.c.bf16 %v492_v33, %v492_v33  ;;  %v490_v36 = vld [vmem:[#allocation2 + $0xb0] sm:$0xff]  ;;  %449 = vst.msk [vmem:[#allocation2 + $0x38] sm:$0xff] %vm441_vm1, %v3476_v44  ;;  %v3516_v22 = vld [vmem:[%s3896_s12 + $0x40] sm:$0xff]   ;;  %v3499_v33 = vunpack.c.l.bf16 %v3517_v30  ;;  %v3500_v34 = vunpack.c.h.bf16 %v3517_v30  ;;  %s5070_s12 = scalar_lea.vmem %s5178_s10, %s3280_s29 }
  0x23   : > { %3292 = vmatmul.msk.bf16.vlgmr.msra.gmra.mxu1 %vm441_vm1, %v503_v32  ;;  %v491_v39 = vld [vmem:[#allocation2 + $0xb8] sm:$0xff]  ;;  %450 = vst.msk [vmem:[#allocation2 + $0x40] sm:$0xff] %vm441_vm1, %v3479_v54  ;;  %v3495_v23 = vunpack.c.l.bf16 %v3516_v22  ;;  %v3496_v24 = vunpack.c.h.bf16 %v3516_v22  ;;  %v3985_v43 = vld [vmem:[%s5171_s3] ss:$0 sm:$0xff] }
  0x24   : > { %3294 = vmatmul.msk.bf16.vlgmr.msra.gmra.mxu3 %vm441_vm1, %v505_v35  ;;  %v504_v40 = vpack.c.bf16 %v491_v39, %v490_v36  ;;  %v470_v46 = vld [vmem:[#allocation2 + $0x10] sm:$0xff]  ;;  %1195 = vperm.xlu2 %3567, %v1136_v41   ;;  %451 = vst.msk [vmem:[#allocation2 + $0x48] sm:$0xff] %vm441_vm1, %v3480_v55 }
  0x25   : > { %v471_v47 = vld [vmem:[#allocation2 + $0x18] sm:$0xff]  ;;  %452 = vst.msk [vmem:[#allocation2 + $0x50] sm:$0xff] %vm441_vm1, %v3483_v2 }
  0x26   : > { %3293 = vmatmul.msk.bf16.vlgmr.msra.gmra.mxu2 %vm441_vm1, %v504_v40  ;;  %v494_v49 = vpack.c.bf16 %v471_v47, %v470_v46  ;;  %v472_v58 = vld [vmem:[#allocation2 + $0x20] sm:$0xff]  ;;  %453 = vst.msk [vmem:[#allocation2 + $0x58] sm:$0xff] %vm441_vm1, %v3484_v3 }
  0x27   : > { %v473_v59 = vld [vmem:[#allocation2 + $0x28] sm:$0xff]  ;;  %454 = vst.msk [vmem:[#allocation2 + $0x60] sm:$0xff] %vm441_vm1, %v3487_v10 }
  0x28   : > { %v495_v61 = vpack.c.bf16 %v473_v59, %v472_v58  ;;  %v474_v6 = vld [vmem:[#allocation2 + $0x30] sm:$0xff]  ;;  %455 = vst.msk [vmem:[#allocation2 + $0x68] sm:$0xff] %vm441_vm1, %v3488_v11 }
  0x29   : > { %v475_v7 = vld [vmem:[#allocation2 + $0x38] sm:$0xff]  ;;  %456 = vst.msk [vmem:[#allocation2 + $0x70] sm:$0xff] %vm441_vm1, %v3491_v17 }
  0x2a   : > { %1200 = vperm.xlu0 %3565, %v1137_v37   ;;  %1205 = vperm.xlu1 %3566, %v1138_v38   ;;  %v496_v8 = vpack.c.bf16 %v475_v7, %v474_v6  ;;  %v476_v12 = vld [vmem:[#allocation2 + $0x40] sm:$0xff]  ;;  %457 = vst.msk [vmem:[#allocation2 + $0x78] sm:$0xff] %vm441_vm1, %v3492_v18 }
  0x2b   : > { %v477_v13 = vld [vmem:[#allocation2 + $0x48] sm:$0xff]  ;;  %458 = vst.msk [vmem:[#allocation2 + $0x80] sm:$0xff] %vm441_vm1, %v3495_v23 }
  0x2c   : > { %1210 = vperm.xlu2 %3567, %v1139_v50   ;;  %v497_v14 = vpack.c.bf16 %v477_v13, %v476_v12  ;;  %v478_v19 = vld [vmem:[#allocation2 + $0x50] sm:$0xff]  ;;  %459 = vst.msk [vmem:[#allocation2 + $0x88] sm:$0xff] %vm441_vm1, %v3496_v24 }
  0x2d   : > { %v479_v20 = vld [vmem:[#allocation2 + $0x58] sm:$0xff]  ;;  %460 = vst.msk [vmem:[#allocation2 + $0x90] sm:$0xff] %vm441_vm1, %v3499_v33 }
  0x2e   : > { %v498_v21 = vpack.c.bf16 %v479_v20, %v478_v19  ;;  %v480_v25 = vld [vmem:[#allocation2 + $0x60] sm:$0xff]  ;;  %461 = vst.msk [vmem:[#allocation2 + $0x98] sm:$0xff] %vm441_vm1, %v3500_v34 }
  0x2f   : > { %v481_v26 = vld [vmem:[#allocation2 + $0x68] sm:$0xff] }
  0x30   : > { %v499_v27 = vpack.c.bf16 %v481_v26, %v480_v25  ;;  %v482_v31 = vld [vmem:[#allocation2 + $0x70] sm:$0xff] }
  0x31   : > { %3283 = vmatmul.msk.bf16.gmra.mxu0 %vm441_vm1, %v494_v49  ;;  %v483_v32 = vld [vmem:[#allocation2 + $0x78] sm:$0xff] }
  0x32   : > { %1215 = vperm.xlu0 %3565, %v1140_v45   ;;  %1220 = vperm.xlu1 %3566, %v1141_v48   ;;  %v500_v36 = vpack.c.bf16 %v483_v32, %v482_v31  ;;  %v484_v41 = vld [vmem:[#allocation2 + $0x80] sm:$0xff] }
  0x33   : > { %v485_v42 = vld [vmem:[#allocation2 + $0x88] sm:$0xff] }
  0x34   : > { %1225 = vperm.xlu2 %3567, %v1142_v56   ;;  %v501_v45 = vpack.c.bf16 %v485_v42, %v484_v41  ;;  %v486_v3 = vld [vmem:[#allocation2 + $0x90] sm:$0xff] }
  0x3a   : > { %1230 = vperm.xlu0 %3565, %v1143_v51   ;;  %1235 = vperm.xlu1 %3566, %v1144_v52  }
  0x3c   : > { %1240 = vperm.xlu2 %3567, %v1145_v62  }
  0x41   : > { %3284 = vmatmul.msk.bf16.gmra.mxu0 %vm441_vm1, %v495_v61 }
  0x42   : > { %1245 = vperm.xlu0 %3565, %v1146_v57   ;;  %1250 = vperm.xlu1 %3566, %v1147_v60  }
  0x44   : > { %1255 = vperm.xlu2 %3567, %v1148_v4   ;;  %v487_v4 = vld [vmem:[#allocation2 + $0x98] sm:$0xff] }
  0x45   : > { %v502_v9 = vpack.c.bf16 %v487_v4, %v486_v3 }
  0x4a   : > { %1260 = vperm.xlu0 %3565, %v1149_v0   ;;  %1265 = vperm.xlu1 %3566, %v1150_v1  }
  0x4c   : > { %1270 = vperm.xlu2 %3567, %v1151_v15  }
  0x51   : > { %3285 = vmatmul.msk.bf16.gmra.mxu0 %vm441_vm1, %v496_v8 }
  0x52   : > { %1275 = vperm.xlu0 %3565, %v1152_v5  }
  0x61   : > { %3286 = vmatmul.msk.bf16.gmra.mxu0 %vm441_vm1, %v497_v14 }
  0x6e   : > { %v3976_v38 = vpop.permute.xlu2 %1175 }
  0x71   : > { %3287 = vmatmul.msk.bf16.gmra.mxu0 %vm441_vm1, %v498_v21 }
  0x76   : > { %v3987_v44 = vpop.permute.xlu2 %1180 }
  0x7e   : > { %v4002_v56 = vpop.permute.xlu2 %1195 }
  0x81   : > { %3288 = vmatmul.msk.bf16.gmra.mxu0 %vm441_vm1, %v499_v27 }
  0x84   : > { %v3963_v28 = vpop.permute.xlu0 %1155  ;;  %v3970_v35 = vpop.permute.xlu1 %1165 }
  0x86   : > { %v4024_v17 = vpop.permute.xlu2 %1210 }
  0x8c   : > { %v3966_v29 = vpop.permute.xlu0 %1160  ;;  %v3978_v39 = vpop.permute.xlu1 %1170 }
  0x91   : > { %3289 = vmatmul.msk.bf16.gmra.mxu0 %vm441_vm1, %v500_v36 }
  0x94   : > { %v3973_v37 = vpop.permute.xlu0 %1185  ;;  %v3992_v49 = vpop.permute.xlu1 %1190 }
  0x9c   : > { %v3980_v40 = vpop.permute.xlu0 %1200  ;;  %v4015_v5 = vpop.permute.xlu1 %1205 }
  0x9e   : > { %v563_v46 = vpop.f32.mrf.mxu0 }
  0x9f   : > { %v3990_v47 = vadd.f32 %v3985_v43, %v563_v46 }
  0xa0   : > { %v613_v48 = vpop.f32.mrf.mxu1 }
  0xa1   : > { %v3295_v50 = vmul.f32 -1.442695, %v3990_v47  ;;  %v3996_v51 = vadd.f32 %v3985_v43, %v613_v48  ;;  %3290 = vmatmul.msk.bf16.gmra.mxu0 %vm441_vm1, %v501_v45 }
  0xa3   : > { %3572 = vpow2.f32 %v3295_v50  ;;  %v3315_v53 = vmul.f32 -1.442695, %v3996_v51 }
  0xa4   : > { %v3999_v52 = vpop.permute.xlu0 %1215  ;;  %v4041_v36 = vpop.permute.xlu1 %1220 }
  0xa5   : > { %3574 = vpow2.f32 %v3315_v53 }
  0xa6   : > { %v565_v54 = vpop.f32.mrf.mxu0 }
  0xa7   : > { %v623_v55 = vpop.f32.mrf.mxu3  ;;  %v4005_v57 = vadd.f32 %v3985_v43, %v565_v54 }
  0xa8   : > { %v624_v58 = vadd.f32 %v3985_v43, %v623_v55  ;;  %v615_v59 = vpop.f32.mrf.mxu1 }
  0xa9   : > { %v3573_v60 = vpop.eup %3572  ;;  %v3296_v61 = vmul.f32 -1.442695, %v4005_v57  ;;  %v4010_v62 = vadd.f32 %v3985_v43, %v615_v59  ;;  %v618_v63 = vpop.f32.mrf.mxu2 }
  0xaa   : > { %v702_v0 = vadd.f32 1.0, %v3573_v60  ;;  %v3319_v1 = vmul.f32 -1.442695, %v624_v58  ;;  %v4013_v2 = vadd.f32 %v3985_v43, %v618_v63 }
  0xab   : > { %3576 = vpow2.f32 %v3296_v61  ;;  %v3316_v6 = vmul.f32 -1.442695, %v4010_v62  ;;  %v3575_v11 = vpop.eup %3574 }
  0xac   : > { %3578 = vrcp.f32 %v702_v0  ;;  %v4018_v7 = vpop.permute.xlu0 %1230  ;;  %v3317_v8 = vmul.f32 -1.442695, %v4013_v2  ;;  %v736_v15 = vand.u32 2147483647, %v702_v0  ;;  %v738_v16 = vand.u32 2147483648, %v702_v0 }
  0xad   : > { %3580 = vpow2.f32 %v3319_v1  ;;  %v4028_v21 = vadd.f32 1.0, %v3575_v11  ;;  %vm732_vm3 = vweird.f32 %v702_v0  ;;  %v4070_v11 = vpop.permute.xlu2 %1225 }
  0xae   : > { %3582 = vpow2.f32 %v3316_v6  ;;  %v568_v10 = vpop.f32.mrf.mxu0  ;;  %vm4035_vm4 = vcmp.eq.f32.partialorder %v736_v15, 8.507059e+37  ;;  %v739_v33 = vor.u32 1.1754944e-38, %v738_v16 }
  0xaf   : > { %v4022_v12 = vadd.f32 %v3985_v43, %v568_v10  ;;  %v625_v13 = vpop.f32.mrf.mxu3  ;;  %3584 = vpow2.f32 %v3317_v8  ;;  %v1038_v30 = vand.u32 2147483648, %v4028_v21  ;;  %v1036_v58 = vand.u32 2147483647, %v4028_v21 }
  0xb0   : > { %vm1032_vm13 = vweird.f32 %v4028_v21 }
  0xb1   : > { %v3577_v14 = vpop.eup %3576  ;;  %v3297_v18 = vmul.f32 -1.442695, %v4022_v12  ;;  %3291 = vmatmul.msk.bf16.gmra.mxu0 %vm441_vm1, %v502_v9  ;;  %v620_v19 = vpop.f32.mrf.mxu2  ;;  %v4055_v59 = vor.u32 1.1754944e-38, %v1038_v30 }
  0xb2   : > { %v3579_v20 = vpop.eup %3578  ;;  %v4030_v22 = vadd.f32 1.0, %v3577_v14  ;;  %v621_v25 = vadd.f32 %v3985_v43, %v620_v19 }
  0xb3   : > { %v3581_v23 = vpop.eup %3580  ;;  %v728_v24 = vmul.f32 %v3579_v20, %v702_v0  ;;  %3586 = vpow2.f32 %v3297_v18  ;;  %vm733_vm5 = vweird.f32 %v3579_v20 }
  0xb4   : > { %v3583_v26 = vpop.eup %3582  ;;  %v726_v27 = vadd.f32 1.0, %v3581_v23  ;;  %3588 = vrcp.f32 %v4030_v22  ;;  %v751_v42 = vand.u32 2147483647, %v4030_v22  ;;  %v753_v45 = vand.u32 2147483648, %v4030_v22  ;;  %v4045_v46 = vpop.permute.xlu0 %1245  ;;  %vm734_vm7 = vmor %vm732_vm3, %vm733_vm5 }
  0xb5   : > { %v729_v31 = vsub.f32 1.0, %v728_v24  ;;  %v4039_v34 = vadd.f32 1.0, %v3583_v26  ;;  %v3585_v41 = vpop.eup %3584  ;;  %v3318_v54 = vmul.f32 -1.442695, %v621_v25  ;;  %vm747_vm6 = vweird.f32 %v4030_v22 }
  0xb6   : > { %3590 = vrcp.f32 %v726_v27  ;;  %v570_v48 = vpop.f32.mrf.mxu0  ;;  %v4048_v53 = vadd.f32 1.0, %v3585_v41  ;;  %vm4066_vm8 = vcmp.eq.f32.partialorder %v751_v42, 8.507059e+37  ;;  %v754_v10 = vor.u32 1.1754944e-38, %v753_v45 }
  0xb7   : > { %v730_v50 = vmul.f32 %v3579_v20, %v729_v31  ;;  %3592 = vrcp.f32 %v4039_v34  ;;  %v4052_v55 = vadd.f32 %v3985_v43, %v570_v48  ;;  %v1051_v4 = vand.u32 2147483647, %v4039_v34  ;;  %v4092_v31 = vpop.permute.xlu1 %1235 }
  0xb8   : > { %3594 = vrcp.f32 %v4028_v21  ;;  %vm1047_vm9 = vweird.f32 %v4039_v34  ;;  %v1053_v14 = vand.u32 2147483648, %v4039_v34  ;;  %vm4121_vm5 = vcmp.eq.f32.partialorder %v1036_v58, 8.507059e+37 }
  0xb9   : > { %v3587_v60 = vpop.eup %3586  ;;  %v731_v61 = vadd.f32 %v3579_v20, %v730_v50  ;;  %3596 = vrcp.f32 %v4048_v53  ;;  %v3298_v3 = vmul.f32 -1.442695, %v4052_v55  ;;  %vm4081_vm11 = vcmp.eq.f32.partialorder %v1051_v4, 8.507059e+37 }
  0xba   : > { %v3589_v63 = vpop.eup %3588  ;;  %v4061_v1 = vadd.f32 1.0, %v3587_v60  ;;  %3598 = vpow2.f32 %v3318_v54  ;;  %v1054_v41 = vor.u32 1.1754944e-38, %v1053_v14 }
  0xbb   : > { %v735_v6 = vsel %vm734_vm7, %v3579_v20, %v731_v61  ;;  %v743_v8 = vmul.f32 %v3589_v63, %v4030_v22  ;;  %vm748_vm10 = vweird.f32 %v3589_v63 }
  0xbc   : > { %v3591_v0 = vpop.eup %3590  ;;  %v740_v13 = vsel %vm4035_vm4, %v739_v33, %v735_v6  ;;  %3600 = vrcp.f32 %v4061_v1  ;;  %v766_v27 = vand.u32 2147483647, %v4061_v1  ;;  %v1261_v32 = vpop.permute.xlu0 %1260  ;;  %vm749_vm14 = vmor %vm747_vm6, %vm748_vm10  ;;  %vm762_vm15 = vweird.f32 %v4061_v1 }
  0xbd   : > { %v3593_v15 = vpop.eup %3592  ;;  %v1102_v16 = vmul.f32 %v740_v13, %v3990_v47  ;;  %v744_v18 = vsub.f32 1.0, %v743_v8  ;;  %3602 = vpow2.f32 %v3298_v3  ;;  %v768_v54 = vand.u32 2147483648, %v4061_v1  ;;  %v1355_v8 = vld [vmem:[%s5172_s4] sm:$0x3] }
  0xbe   : > { %v4078_v19 = vpop.eup %3594  ;;  %v1043_v20 = vmul.f32 %v3593_v15, %v4039_v34  ;;  %v573_v24 = vpop.f32.mrf.mxu0  ;;  %vm1048_vm12 = vweird.f32 %v3593_v15  ;;  %vm4105_vm2 = vcmp.eq.f32.partialorder %v766_v27, 8.507059e+37  ;;  %vm1062_vm10 = vweird.f32 %v4048_v53 }
  0xbf   : > { %v1278_v25 = vmul.f32 %v3963_v28, %v1102_v16  ;;  %v745_v26 = vmul.f32 %v3589_v63, %v744_v18  ;;  %v4088_v30 = vadd.f32 %v3985_v43, %v573_v24  ;;  %v4090_v47 = vpop.eup %3596  ;;  %v1028_v48 = vmul.f32 %v4078_v19, %v4028_v21  ;;  %vm4112_vm3 = vmor %vm1047_vm9, %vm1048_vm12  ;;  %v4126_v16 = vpop.permute.xlu2 %1240 }
  0xc0   : > { %v1044_v33 = vsub.f32 1.0, %v1043_v20  ;;  %v3599_v42 = vpop.eup %3598  ;;  %vm1033_vm4 = vweird.f32 %v4078_v19  ;;  %v1068_v13 = vand.u32 2147483648, %v4048_v53 }
  0xc1   : > { %1303 = vst.msk [vmem:[#allocation3] sm:$0xff] %vm441_vm1, %v1278_v25  ;;  %v746_v28 = vadd.f32 %v3589_v63, %v745_v26  ;;  %v3299_v45 = vmul.f32 -1.442695, %v4088_v30  ;;  %v1029_v18 = vsub.f32 1.0, %v1028_v48  ;;  %v725_v9 = vadd.f32 1.0, %v3599_v42  ;;  %vm4154_vm9 = vmor %vm1032_vm13, %vm1033_vm4 }
  0xc2   : > { %v3601_v50 = vpop.eup %3600  ;;  %v1045_v60 = vmul.f32 %v3593_v15, %v1044_v33 }
  0xc3   : > { %v3603_v61 = vpop.eup %3602  ;;  %v750_v3 = vsel %vm749_vm14, %v3589_v63, %v746_v28  ;;  %v758_v4 = vmul.f32 %v3601_v50, %v4061_v1  ;;  %3604 = vpow2.f32 %v3299_v45  ;;  %vm763_vm6 = vweird.f32 %v3601_v50 }
  0xc4   : > { %v755_v22 = vsel %vm4066_vm8, %v754_v10, %v750_v3  ;;  %v4118_v0 = vadd.f32 1.0, %v3603_v61  ;;  %v1046_v63 = vadd.f32 %v3593_v15, %v1045_v60  ;;  %v1058_v10 = vmul.f32 %v4090_v47, %v4048_v53  ;;  %vm764_vm7 = vmor %vm762_vm15, %vm763_vm6  ;;  %v1276_v23 = vpop.permute.xlu0 %1275 }
  0xc5   : > { %v1103_v14 = vmul.f32 %v755_v22, %v4005_v57  ;;  %v759_v34 = vsub.f32 1.0, %v758_v4  ;;  %v1030_v45 = vmul.f32 %v4078_v19, %v1029_v18  ;;  %v1069_v23 = vor.u32 1.1754944e-38, %v1068_v13 }
  0xc6   : > { %3606 = vrcp.f32 %v4118_v0  ;;  %v575_v20 = vpop.f32.mrf.mxu0  ;;  %v1050_v25 = vsel %vm4112_vm3, %v3593_v15, %v1046_v63  ;;  %v781_v57 = vand.u32 2147483647, %v4118_v0  ;;  %v783_v26 = vand.u32 2147483648, %v4118_v0  ;;  %v4144_v15 = vpop.permute.xlu1 %1250 }
  0xc7   : > { %v1279_v24 = vmul.f32 %v3966_v29, %v1103_v14  ;;  %v760_v58 = vmul.f32 %v3601_v50, %v759_v34  ;;  %v1055_v27 = vsel %vm4081_vm11, %v1054_v41, %v1050_v25  ;;  %v769_v29 = vor.u32 1.1754944e-38, %v768_v54  ;;  %v3320_v14 = vld [vmem:[%s5172_s4 + $0x2] sm:$0x3] }
  0xc8   : > { %v1123_v28 = vmul.f32 %v1055_v27, %v4010_v62  ;;  %3608 = vrcp.f32 %v725_v9  ;;  %v1059_v41 = vsub.f32 1.0, %v1058_v10  ;;  %vm777_vm8 = vweird.f32 %v4118_v0  ;;  %v1328_v1 = vld [vmem:[#allocation3] sm:$0xff] }
  0xc9   : > { %v3605_v33 = vpop.eup %3604  ;;  %1304 = vst.msk [vmem:[#allocation3 + $0x8] sm:$0xff] %vm441_vm1, %v1279_v24  ;;  %v761_v42 = vadd.f32 %v3601_v50, %v760_v58  ;;  %v1031_v62 = vadd.f32 %v4078_v19, %v1030_v45  ;;  %vm1063_vm11 = vweird.f32 %v4090_v47  ;;  %vm4168_vm12 = vcmp.eq.f32.partialorder %v781_v57, 8.507059e+37  ;;  %v1256_v24 = vpop.permute.xlu2 %1255 }
  0xca   : > { %v4146_v48 = vadd.f32 1.0, %v3605_v33  ;;  %v1299_v61 = vmul.f32 %v1261_v32, %v1123_v28  ;;  %v784_v4 = vor.u32 1.1754944e-38, %v783_v26  ;;  %v1060_v22 = vmul.f32 %v4090_v47, %v1059_v41  ;;  %vm4195_vm14 = vmor %vm1062_vm10, %vm1063_vm11  ;;  %v3339_v28 = vld [vmem:[%s5172_s4 + $0x4] sm:$0x3] }
  0xcb   : > { %v765_v60 = vsel %vm764_vm7, %v3601_v50, %v761_v42  ;;  %v1066_v63 = vand.u32 2147483647, %v4048_v53  ;;  %v4210_v27 = vadd.f32 %v3985_v43, %v575_v20  ;;  %v1497_v33 = vsel %vm550_vm0, %v1355_v8, 0 }
  0xcc   : > { %v4158_v54 = vpop.eup %3606  ;;  %v770_v3 = vsel %vm4105_vm2, %v769_v29, %v765_v60  ;;  %3610 = vrcp.f32 %v4146_v48  ;;  %1324 = vst.msk [vmem:[#allocation3 + $0xa8] sm:$0xff] %vm441_vm1, %v1299_v61  ;;  %v796_v6 = vand.u32 2147483647, %v4146_v48  ;;  %v798_v10 = vand.u32 2147483648, %v4146_v48  ;;  %1506 = vmatpush.bf16.msrb.mxu2 %v1497_v33 }
  0xcd   : > { %v1104_v32 = vmul.f32 %v770_v3, %v4022_v12  ;;  %v773_v21 = vmul.f32 %v4158_v54, %v4118_v0  ;;  %vm778_vm13 = vweird.f32 %v4158_v54  ;;  %v1035_v12 = vsel %vm4154_vm9, %v4078_v19, %v1031_v62 }
  0xce   : > { %v578_v34 = vpop.f32.mrf.mxu0  ;;  %v1040_v58 = vsel %vm4121_vm5, %v4055_v59, %v1035_v12  ;;  %v3609_v25 = vpop.eup %3608  ;;  %vm4201_vm15 = vcmp.eq.f32.partialorder %v1066_v63, 8.507059e+37  ;;  %vm792_vm2 = vweird.f32 %v4146_v48  ;;  %v799_v61 = vor.u32 1.1754944e-38, %v798_v10  ;;  %vm779_vm3 = vmor %vm777_vm8, %vm778_vm13 }
  0xcf   : > { %v1280_v18 = vmul.f32 %v3970_v35, %v1104_v32  ;;  %v774_v9 = vsub.f32 1.0, %v773_v21  ;;  %v1122_v57 = vmul.f32 %v1040_v58, %v3996_v51  ;;  %v1061_v35 = vadd.f32 %v4090_v47, %v1060_v22 }
  0xd0   : > { %v1413_v51 = vsel %vm550_vm0, %v3320_v14, 0  ;;  %v1329_v42 = vld [vmem:[#allocation3 + $0x8] sm:$0xff]  ;;  %v4221_v20 = vadd.f32 %v3985_v43, %v578_v34  ;;  %v3300_v62 = vmul.f32 -1.442695, %v4210_v27  ;;  %v1610_v8 = vsel %vm550_vm0, %v3339_v28, 0 }
  0xd1   : > { %1305 = vst.msk [vmem:[#allocation3 + $0x10] sm:$0xff] %vm441_vm1, %v1280_v18  ;;  %v775_v59 = vmul.f32 %v4158_v54, %v774_v9  ;;  %v1298_v53 = vmul.f32 %v1256_v24, %v1122_v57  ;;  %v1065_v29 = vsel %vm4195_vm14, %v4090_v47, %v1061_v35  ;;  %1422 = vmatpush.bf16.msrb.mxu1 %v1413_v51  ;;  %v1266_v47 = vpop.permute.xlu1 %1265  ;;  %v1553_v25 = vld [vmem:[#allocation3 + $0x2] sm:$0xff]  ;;  %vm797_vm6 = vcmp.eq.f32.partialorder %v796_v6, 8.507059e+37 }
  0xd2   : > { %v3611_v45 = vpop.eup %3610  ;;  %v1070_v3 = vsel %vm4201_vm15, %v1069_v23, %v1065_v29  ;;  %v3301_v32 = vmul.f32 -1.442695, %v4221_v20  ;;  %v1346_v21 = vpack.c.bf16 %v1329_v42, %v1328_v1  ;;  %3612 = vpow2.f32 %v3300_v62  ;;  %1619 = vmatpush.bf16.msrb.mxu3 %v1610_v8  ;;  %v3379_v8 = vld [vmem:[%s5172_s4 + $0xc] sm:$0x3] }
  0xd3   : > { %v776_v41 = vadd.f32 %v4158_v54, %v775_v59  ;;  %v788_v60 = vmul.f32 %v3611_v45, %v4146_v48  ;;  %1323 = vst.msk [vmem:[#allocation3 + $0xa0] sm:$0xff] %vm441_vm1, %v1298_v53  ;;  %v1124_v63 = vmul.f32 %v1070_v3, %v4013_v2  ;;  %vm793_vm4 = vweird.f32 %v3611_v45 }
  0xd4   : > { %3614 = vpow2.f32 %v3301_v32  ;;  %3330 = vmatmul.msk.bf16.vlgmr.msrb.gmra.mxu2 %vm441_vm1, %v1346_v21  ;;  %vm794_vm5 = vmor %vm792_vm2, %vm793_vm4 }
  0xd5   : > { %v780_v12 = vsel %vm779_vm3, %v4158_v54, %v776_v41  ;;  %v789_v22 = vsub.f32 1.0, %v788_v60  ;;  %v1300_v9 = vmul.f32 %v1266_v47, %v1124_v63  ;;  %v1356_v54 = vld [vmem:[#allocation3 + $0x1] sm:$0xff]  ;;  %v1271_v41 = vpop.permute.xlu2 %1270 }
  0xd6   : > { %v785_v0 = vsel %vm4168_vm12, %v784_v4, %v780_v12  ;;  %v580_v14 = vpop.f32.mrf.mxu0  ;;  %v3359_v4 = vld [vmem:[%s5172_s4 + $0x8] sm:$0x3] }
  0xd7   : > { %v1105_v34 = vmul.f32 %v785_v0, %v4052_v55  ;;  %v790_v18 = vmul.f32 %v3611_v45, %v789_v22  ;;  %v4242_v10 = vadd.f32 %v3985_v43, %v580_v14  ;;  %1325 = vst.msk [vmem:[#allocation3 + $0xb0] sm:$0xff] %vm441_vm1, %v1300_v9  ;;  %v1872_v57 = vsel %vm550_vm0, %v3359_v4, 0 }
  0xd8   : > { %v1357_v24 = vld [vmem:[#allocation3 + $0x9] sm:$0xff]  ;;  %v3613_v26 = vpop.eup %3612  ;;  %1881 = vmatpush.bf16.msra.mxu2 %v1872_v57  ;;  %v2134_v14 = vsel %vm550_vm0, %v3379_v8, 0 }
  0xd9   : > { %v1554_v2 = vld [vmem:[#allocation3 + $0xa] sm:$0xff]  ;;  %v1281_v58 = vmul.f32 %v3978_v39, %v1105_v34  ;;  %v791_v19 = vadd.f32 %v3611_v45, %v790_v18  ;;  %v3302_v50 = vmul.f32 -1.442695, %v4242_v10  ;;  %v1374_v55 = vpack.c.bf16 %v1357_v24, %v1356_v54  ;;  %v3349_v39 = vld [vmem:[%s5172_s4 + $0x6] sm:$0x3]  ;;  %2143 = vmatpush.bf16.msrb.mxu0 %v2134_v14 }
  0xda   : > { %v1571_v35 = vpack.c.bf16 %v1554_v2, %v1553_v25  ;;  %v1741_v59 = vsel %vm550_vm0, %v3349_v39, 0  ;;  %v3615_v33 = vpop.eup %3614  ;;  %v707_v42 = vadd.f32 1.0, %v3613_v26  ;;  %v1330_v60 = vld [vmem:[#allocation3 + $0x10] sm:$0xff] }
  0xdb   : > { %1306 = vst.msk [vmem:[#allocation3 + $0x18] sm:$0xff] %vm441_vm1, %v1281_v58  ;;  %v795_v13 = vsel %vm794_vm5, %v3611_v45, %v791_v19  ;;  %3616 = vpow2.f32 %v3302_v50  ;;  %3321 = vmatmul.msk.bf16.vlgmr.msrb.gmra.mxu1 %vm441_vm1, %v1374_v55  ;;  %v708_v53 = vadd.f32 1.0, %v3615_v33 }
  0xdc   : > { %v800_v51 = vsel %vm797_vm6, %v799_v61, %v795_v13  ;;  %3340 = vmatmul.msk.bf16.vlgmr.msrb.gmra.mxu3 %vm441_vm1, %v1571_v35  ;;  %1750 = vmatpush.bf16.msra.mxu1 %v1741_v59  ;;  %3618 = vrcp.f32 %v707_v42  ;;  %v811_v3 = vand.u32 2147483647, %v707_v42  ;;  %v813_v34 = vand.u32 2147483648, %v707_v42 }
  0xdd   : > { %v1106_v28 = vmul.f32 %v800_v51, %v4088_v30  ;;  %3620 = vrcp.f32 %v708_v53  ;;  %v826_v22 = vand.u32 2147483647, %v708_v53  ;;  %v828_v9 = vand.u32 2147483648, %v708_v53 }
  0xde   : > { %v583_v45 = vpop.f32.mrf.mxu0  ;;  %vm807_vm8 = vweird.f32 %v707_v42  ;;  %vm822_vm9 = vweird.f32 %v708_v53  ;;  %vm812_vm11 = vcmp.eq.f32.partialorder %v811_v3, 8.507059e+37  ;;  %v814_v26 = vor.u32 1.1754944e-38, %v813_v34 }
  0xdf   : > { %v1282_v48 = vmul.f32 %v3976_v38, %v1106_v28  ;;  %v4267_v29 = vadd.f32 %v3985_v43, %v583_v45  ;;  %vm827_vm13 = vcmp.eq.f32.partialorder %v826_v22, 8.507059e+37  ;;  %v829_v51 = vor.u32 1.1754944e-38, %v828_v9 }
  0xe1   : > { %v3617_v6 = vpop.eup %3616  ;;  %1307 = vst.msk [vmem:[#allocation3 + $0x20] sm:$0xff] %vm441_vm1, %v1282_v48  ;;  %v3303_v62 = vmul.f32 -1.442695, %v4267_v29 }
  0xe2   : > { %v4269_v23 = vadd.f32 1.0, %v3617_v6  ;;  %v1331_v61 = vld [vmem:[#allocation3 + $0x18] sm:$0xff]  ;;  %v3619_v1 = vpop.eup %3618 }
  0xe3   : > { %v1347_v30 = vpack.c.bf16 %v1331_v61, %v1330_v60  ;;  %v3621_v47 = vpop.eup %3620  ;;  %v803_v38 = vmul.f32 %v3619_v1, %v707_v42  ;;  %v1358_v0 = vld [vmem:[#allocation3 + $0x11] sm:$0xff]  ;;  %vm808_vm7 = vweird.f32 %v3619_v1 }
  0xe4   : > { %3622 = vrcp.f32 %v4269_v23  ;;  %v818_v32 = vmul.f32 %v3621_v47, %v708_v53  ;;  %v1555_v24 = vld [vmem:[#allocation3 + $0x12] sm:$0xff]  ;;  %vm823_vm10 = vweird.f32 %v3621_v47  ;;  %vm809_vm12 = vmor %vm807_vm8, %vm808_vm7  ;;  %v841_v28 = vand.u32 2147483647, %v4269_v23 }
  0xe5   : > { %3624 = vpow2.f32 %v3303_v62  ;;  %3331 = vmatmul.msk.bf16.gmra.mxu2 %vm441_vm1, %v1347_v30  ;;  %v804_v12 = vsub.f32 1.0, %v803_v38  ;;  %vm824_vm14 = vmor %vm822_vm9, %vm823_vm10  ;;  %v843_v6 = vand.u32 2147483648, %v4269_v23  ;;  %vm837_vm2 = vweird.f32 %v4269_v23 }
  0xe6   : > { %v585_v21 = vpop.f32.mrf.mxu0  ;;  %v819_v18 = vsub.f32 1.0, %v818_v32  ;;  %vm842_vm4 = vcmp.eq.f32.partialorder %v841_v28, 8.507059e+37 }
  0xe7   : > { %v4278_v63 = vadd.f32 %v3985_v43, %v585_v21  ;;  %v805_v58 = vmul.f32 %v3619_v1, %v804_v12  ;;  %v844_v32 = vor.u32 1.1754944e-38, %v843_v6 }
  0xe8   : > { %v1359_v54 = vld [vmem:[#allocation3 + $0x19] sm:$0xff]  ;;  %v820_v25 = vmul.f32 %v3621_v47, %v819_v18 }
  0xe9   : > { %v1556_v2 = vld [vmem:[#allocation3 + $0x1a] sm:$0xff]  ;;  %v3304_v19 = vmul.f32 -1.442695, %v4278_v63  ;;  %v1375_v50 = vpack.c.bf16 %v1359_v54, %v1358_v0  ;;  %v806_v35 = vadd.f32 %v3619_v1, %v805_v58 }
  0xea   : > { %v4282_v4 = vpack.c.bf16 %v1556_v2, %v1555_v24  ;;  %v3623_v55 = vpop.eup %3622  ;;  %v821_v13 = vadd.f32 %v3621_v47, %v820_v25 }
  0xeb   : > { %v3625_v57 = vpop.eup %3624  ;;  %v833_v39 = vmul.f32 %v3623_v55, %v4269_v23  ;;  %3626 = vpow2.f32 %v3304_v19  ;;  %3322 = vmatmul.msk.bf16.gmra.mxu1 %vm441_vm1, %v1375_v50  ;;  %v810_v33 = vsel %vm809_vm12, %v3619_v1, %v806_v35  ;;  %vm838_vm15 = vweird.f32 %v3623_v55 }
  0xec   : > { %v710_v59 = vadd.f32 1.0, %v3625_v57  ;;  %3341 = vmatmul.msk.bf16.gmra.mxu3 %vm441_vm1, %v4282_v4  ;;  %v815_v45 = vsel %vm812_vm11, %v814_v26, %v810_v33  ;;  %v825_v48 = vsel %vm824_vm14, %v3621_v47, %v821_v13  ;;  %vm839_vm3 = vmor %vm837_vm2, %vm838_vm15 }
  0xed   : > { %v834_v42 = vsub.f32 1.0, %v833_v39  ;;  %v1107_v60 = vmul.f32 %v815_v45, %v4210_v27  ;;  %v830_v61 = vsel %vm827_vm13, %v829_v51, %v825_v48 }
  0xee   : > { %3628 = vrcp.f32 %v710_v59  ;;  %v588_v41 = vpop.f32.mrf.mxu0  ;;  %v1108_v30 = vmul.f32 %v830_v61, %v4221_v20  ;;  %v856_v14 = vand.u32 2147483647, %v710_v59  ;;  %v858_v18 = vand.u32 2147483648, %v710_v59 }
  0xef   : > { %v835_v62 = vmul.f32 %v3623_v55, %v834_v42  ;;  %v4295_v53 = vadd.f32 %v3985_v43, %v588_v41  ;;  %v1283_v38 = vmul.f32 %v3987_v44, %v1107_v60  ;;  %vm852_vm6 = vweird.f32 %v710_v59 }
  0xf0   : > { %v1284_v47 = vmul.f32 %v3973_v37, %v1108_v30  ;;  %vm4313_vm7 = vcmp.eq.f32.partialorder %v856_v14, 8.507059e+37  ;;  %v859_v26 = vor.u32 1.1754944e-38, %v858_v18 }
  0xf1   : > { %v3627_v1 = vpop.eup %3626  ;;  %v836_v3 = vadd.f32 %v3623_v55, %v835_v62  ;;  %v3305_v27 = vmul.f32 -1.442695, %v4295_v53  ;;  %1308 = vst.msk [vmem:[#allocation3 + $0x28] sm:$0xff] %vm441_vm1, %v1283_v38 }
  0xf2   : > { %v4300_v21 = vadd.f32 1.0, %v3627_v1  ;;  %1309 = vst.msk [vmem:[#allocation3 + $0x30] sm:$0xff] %vm441_vm1, %v1284_v47 }
  0xf3   : > { %v840_v20 = vsel %vm839_vm3, %v3623_v55, %v836_v3 }
  0xf4   : > { %v3629_v8 = vpop.eup %3628  ;;  %v845_v12 = vsel %vm842_vm4, %v844_v32, %v840_v20  ;;  %3630 = vrcp.f32 %v4300_v21  ;;  %v871_v41 = vand.u32 2147483647, %v4300_v21  ;;  %v873_v60 = vand.u32 2147483648, %v4300_v21 }
  0xf5   : > { %v1109_v44 = vmul.f32 %v845_v12, %v4242_v10  ;;  %v848_v23 = vmul.f32 %v3629_v8, %v710_v59  ;;  %3632 = vpow2.f32 %v3305_v27  ;;  %vm853_vm5 = vweird.f32 %v3629_v8  ;;  %v1332_v10 = vld [vmem:[#allocation3 + $0x20] sm:$0xff] }
  0xf6   : > { %v590_v37 = vpop.f32.mrf.mxu0  ;;  %vm854_vm8 = vmor %vm852_vm6, %vm853_vm5  ;;  %vm867_vm10 = vweird.f32 %v4300_v21  ;;  %v874_v32 = vor.u32 1.1754944e-38, %v873_v60  ;;  %vm872_vm12 = vcmp.eq.f32.partialorder %v871_v41, 8.507059e+37 }
  0xf7   : > { %v1285_v22 = vmul.f32 %v3992_v49, %v1109_v44  ;;  %v849_v0 = vsub.f32 1.0, %v848_v23  ;;  %v4309_v34 = vadd.f32 %v3985_v43, %v590_v37 }
  0xf8   : > { %v1333_v2 = vld [vmem:[#allocation3 + $0x28] sm:$0xff] }
  0xf9   : > { %1310 = vst.msk [vmem:[#allocation3 + $0x38] sm:$0xff] %vm441_vm1, %v1285_v22  ;;  %v850_v9 = vmul.f32 %v3629_v8, %v849_v0  ;;  %v3306_v54 = vmul.f32 -1.442695, %v4309_v34  ;;  %v1360_v58 = vld [vmem:[#allocation3 + $0x21] sm:$0xff]  ;;  %v1348_v55 = vpack.c.bf16 %v1333_v2, %v1332_v10  ;;  %v1361_v25 = vld [vmem:[#allocation3 + $0x29] sm:$0xff] }
  0xfa   : > { %v3631_v24 = vpop.eup %3630  ;;  %v1557_v57 = vld [vmem:[#allocation3 + $0x22] sm:$0xff]  ;;  %v1558_v35 = vld [vmem:[#allocation3 + $0x2a] sm:$0xff]  ;;  %v1376_v13 = vpack.c.bf16 %v1361_v25, %v1360_v58 }
  0xfb   : > { %v851_v19 = vadd.f32 %v3629_v8, %v850_v9  ;;  %v863_v50 = vmul.f32 %v3631_v24, %v4300_v21  ;;  %v3633_v39 = vpop.eup %3632  ;;  %3634 = vpow2.f32 %v3306_v54  ;;  %v4319_v59 = vpack.c.bf16 %v1558_v35, %v1557_v57  ;;  %v2077_v33 = vld [vmem:[#allocation3 + $0x24] sm:$0xff]  ;;  %v2078_v51 = vld [vmem:[#allocation3 + $0x2c] sm:$0xff]  ;;  %3332 = vmatmul.msk.bf16.gmra.mxu2 %vm441_vm1, %v1348_v55 }
  0xfc   : > { %v4321_v45 = vadd.f32 1.0, %v3633_v39  ;;  %v4324_v48 = vpack.c.bf16 %v2078_v51, %v2077_v33  ;;  %3323 = vmatmul.msk.bf16.gmra.mxu1 %vm441_vm1, %v1376_v13  ;;  %vm868_vm9 = vweird.f32 %v3631_v24  ;;  %v1334_v14 = vld [vmem:[#allocation3 + $0x30] sm:$0xff] }
  0xfd   : > { %v855_v42 = vsel %vm854_vm8, %v3629_v8, %v851_v19  ;;  %v864_v28 = vsub.f32 1.0, %v863_v50  ;;  %3342 = vmatmul.msk.bf16.gmra.mxu3 %vm441_vm1, %v4319_v59  ;;  %vm869_vm11 = vmor %vm867_vm10, %vm868_vm9 }
  0xfe   : > { %v860_v6 = vsel %vm4313_vm7, %v859_v26, %v855_v42  ;;  %v593_v61 = vpop.f32.mrf.mxu0  ;;  %3636 = vrcp.f32 %v4321_v45  ;;  %3380 = vmatmul.msk.bf16.vlgmr.msrb.gmra.mxu0 %vm441_vm1, %v4324_v48  ;;  %v888_v18 = vand.u32 2147483648, %v4321_v45  ;;  %v886_v58 = vand.u32 2147483647, %v4321_v45 }
  0xff   : > { %v1110_v62 = vmul.f32 %v860_v6, %v4267_v29  ;;  %v865_v30 = vmul.f32 %v3631_v24, %v864_v28  ;;  %v4338_v1 = vadd.f32 %v3985_v43, %v593_v61  ;;  %vm882_vm14 = vweird.f32 %v4321_v45 }
 0x100   : > { %v1335_v21 = vld [vmem:[#allocation3 + $0x38] sm:$0xff]  ;;  %v889_v33 = vor.u32 1.1754944e-38, %v888_v18  ;;  %vm887_vm2 = vcmp.eq.f32.partialorder %v886_v58, 8.507059e+37 }
 0x101   : > { %v1286_v38 = vmul.f32 %v4002_v56, %v1110_v62  ;;  %v866_v3 = vadd.f32 %v3631_v24, %v865_v30  ;;  %v3635_v47 = vpop.eup %3634  ;;  %v3307_v29 = vmul.f32 -1.442695, %v4338_v1  ;;  %v1349_v9 = vpack.c.bf16 %v1335_v21, %v1334_v14  ;;  %v1362_v54 = vld [vmem:[#allocation3 + $0x31] sm:$0xff] }
 0x102   : > { %v4344_v20 = vadd.f32 1.0, %v3635_v47  ;;  %v2079_v35 = vld [vmem:[#allocation3 + $0x34] sm:$0xff] }
 0x103   : > { %1311 = vst.msk [vmem:[#allocation3 + $0x40] sm:$0xff] %vm441_vm1, %v1286_v38  ;;  %v870_v27 = vsel %vm869_vm11, %v3631_v24, %v866_v3  ;;  %3638 = vpow2.f32 %v3307_v29  ;;  %v1559_v24 = vld [vmem:[#allocation3 + $0x32] sm:$0xff] }
 0x104   : > { %v875_v8 = vsel %vm872_vm12, %v874_v32, %v870_v27  ;;  %v3637_v12 = vpop.eup %3636  ;;  %3640 = vrcp.f32 %v4344_v20  ;;  %v903_v6 = vand.u32 2147483648, %v4344_v20  ;;  %v901_v62 = vand.u32 2147483647, %v4344_v20  ;;  %v4392_v21 = vld [vmem:[%s5171_s3] ss:$0 sm:$0xff] }
 0x105   : > { %v1111_v44 = vmul.f32 %v875_v8, %v4278_v63  ;;  %v878_v56 = vmul.f32 %v3637_v12, %v4321_v45  ;;  %vm883_vm13 = vweird.f32 %v3637_v12  ;;  %vm897_vm4 = vweird.f32 %v4344_v20 }
 0x106   : > { %v595_v23 = vpop.f32.mrf.mxu0  ;;  %vm884_vm15 = vmor %vm882_vm14, %vm883_vm13  ;;  %vm902_vm6 = vcmp.eq.f32.partialorder %v901_v62, 8.507059e+37 }
 0x107   : > { %v1287_v37 = vmul.f32 %v3980_v40, %v1111_v44  ;;  %v4351_v22 = vadd.f32 %v3985_v43, %v595_v23  ;;  %v879_v0 = vsub.f32 1.0, %v878_v56 }
 0x109   : > { %1312 = vst.msk [vmem:[#allocation3 + $0x48] sm:$0xff] %vm441_vm1, %v1287_v37  ;;  %v3308_v63 = vmul.f32 -1.442695, %v4351_v22  ;;  %v3639_v10 = vpop.eup %3638  ;;  %v880_v2 = vmul.f32 %v3637_v12, %v879_v0 }
 0x10a   : > { %v1363_v40 = vld [vmem:[#allocation3 + $0x39] sm:$0xff]  ;;  %v3641_v50 = vpop.eup %3640  ;;  %v4357_v55 = vadd.f32 1.0, %v3639_v10 }
 0x10b   : > { %v1560_v19 = vld [vmem:[#allocation3 + $0x3a] sm:$0xff]  ;;  %3642 = vpow2.f32 %v3308_v63  ;;  %v1377_v25 = vpack.c.bf16 %v1363_v40, %v1362_v54  ;;  %v881_v39 = vadd.f32 %v3637_v12, %v880_v2  ;;  %v893_v26 = vmul.f32 %v3641_v50, %v4344_v20  ;;  %3333 = vmatmul.msk.bf16.gmra.mxu2 %vm441_vm1, %v1349_v9 }
 0x10c   : > { %v2080_v49 = vld [vmem:[#allocation3 + $0x3c] sm:$0xff]  ;;  %v4359_v57 = vpack.c.bf16 %v1560_v19, %v1559_v24  ;;  %3644 = vrcp.f32 %v4357_v55  ;;  %vm898_vm3 = vweird.f32 %v3641_v50  ;;  %v918_v56 = vand.u32 2147483648, %v4357_v55 }
 0x10d   : > { %v4363_v13 = vpack.c.bf16 %v2080_v49, %v2079_v35  ;;  %v885_v51 = vsel %vm884_vm15, %v3637_v12, %v881_v39  ;;  %v894_v42 = vsub.f32 1.0, %v893_v26  ;;  %3324 = vmatmul.msk.bf16.gmra.mxu1 %vm441_vm1, %v1377_v25  ;;  %vm899_vm5 = vmor %vm897_vm4, %vm898_vm3  ;;  %v916_v14 = vand.u32 2147483647, %v4357_v55 }
 0x10e   : > { %3343 = vmatmul.msk.bf16.gmra.mxu3 %vm441_vm1, %v4359_v57  ;;  %v598_v28 = vpop.f32.mrf.mxu0  ;;  %v890_v45 = vsel %vm887_vm2, %v889_v33, %v885_v51  ;;  %vm912_vm8 = vweird.f32 %v4357_v55  ;;  %v919_v2 = vor.u32 1.1754944e-38, %v918_v56 }
 0x10f   : > { %3381 = vmatmul.msk.bf16.gmra.mxu0 %vm441_vm1, %v4363_v13  ;;  %v4375_v41 = vadd.f32 %v3985_v43, %v598_v28  ;;  %v1112_v60 = vmul.f32 %v890_v45, %v4295_v53  ;;  %v895_v61 = vmul.f32 %v3641_v50, %v894_v42  ;;  %v904_v43 = vor.u32 1.1754944e-38, %v903_v6 }
 0x110   : > { %v1337_v44 = vld [vmem:[#allocation3 + $0x48] sm:$0xff]  ;;  %vm917_vm10 = vcmp.eq.f32.partialorder %v916_v14, 8.507059e+37 }
 0x111   : > { %v3643_v30 = vpop.eup %3642  ;;  %v3309_v38 = vmul.f32 -1.442695, %v4375_v41  ;;  %v1288_v3 = vmul.f32 %v4015_v5, %v1112_v60  ;;  %v896_v47 = vadd.f32 %v3641_v50, %v895_v61  ;;  %v1561_v39 = vld [vmem:[#allocation3 + $0x42] sm:$0xff] }
 0x112   : > { %v4382_v32 = vadd.f32 1.0, %v3643_v30  ;;  %v3645_v29 = vpop.eup %3644  ;;  %v2081_v26 = vld [vmem:[#allocation3 + $0x44] sm:$0xff] }
 0x113   : > { %3646 = vpow2.f32 %v3309_v38  ;;  %1313 = vst.msk [vmem:[#allocation3 + $0x50] sm:$0xff] %vm441_vm1, %v1288_v3  ;;  %v900_v53 = vsel %vm899_vm5, %v3641_v50, %v896_v47  ;;  %v908_v27 = vmul.f32 %v3645_v29, %v4357_v55  ;;  %vm913_vm7 = vweird.f32 %v3645_v29  ;;  %v1364_v50 = vld [vmem:[#allocation3 + $0x41] sm:$0xff] }
 0x114   : > { %3648 = vrcp.f32 %v4382_v32  ;;  %v905_v8 = vsel %vm902_vm6, %v904_v43, %v900_v53  ;;  %vm914_vm9 = vmor %vm912_vm8, %vm913_vm7  ;;  %v933_v51 = vand.u32 2147483648, %v4382_v32  ;;  %v931_v60 = vand.u32 2147483647, %v4382_v32 }
 0x115   : > { %v1113_v5 = vmul.f32 %v905_v8, %v4309_v34  ;;  %v909_v12 = vsub.f32 1.0, %v908_v27  ;;  %v1336_v34 = vld [vmem:[#allocation3 + $0x40] sm:$0xff]  ;;  %vm927_vm12 = vweird.f32 %v4382_v32 }
 0x116   : > { %v600_v20 = vpop.f32.mrf.mxu0  ;;  %v1350_v9 = vpack.c.bf16 %v1337_v44, %v1336_v34  ;;  %v934_v47 = vor.u32 1.1754944e-38, %v933_v51  ;;  %vm932_vm14 = vcmp.eq.f32.partialorder %v931_v60, 8.507059e+37 }
 0x117   : > { %v4395_v23 = vadd.f32 %v4392_v21, %v600_v20  ;;  %v1289_v37 = vmul.f32 %v4024_v17, %v1113_v5  ;;  %v910_v0 = vmul.f32 %v3645_v29, %v909_v12 }
 0x119   : > { %v3647_v18 = vpop.eup %3646  ;;  %v3310_v63 = vmul.f32 -1.442695, %v4395_v23  ;;  %1314 = vst.msk [vmem:[#allocation3 + $0x58] sm:$0xff] %vm441_vm1, %v1289_v37  ;;  %v911_v24 = vadd.f32 %v3645_v29, %v910_v0 }
 0x11a   : > { %v3649_v54 = vpop.eup %3648  ;;  %v4403_v10 = vadd.f32 1.0, %v3647_v18  ;;  %v1365_v58 = vld [vmem:[#allocation3 + $0x49] sm:$0xff] }
 0x11b   : > { %v923_v17 = vmul.f32 %v3649_v54, %v4382_v32  ;;  %3650 = vpow2.f32 %v3310_v63  ;;  %v1562_v40 = vld [vmem:[#allocation3 + $0x4a] sm:$0xff]  ;;  %v915_v49 = vsel %vm914_vm9, %v3645_v29, %v911_v24  ;;  %3334 = vmatmul.msk.bf16.gmra.mxu2 %vm441_vm1, %v1350_v9  ;;  %v1378_v35 = vpack.c.bf16 %v1365_v58, %v1364_v50 }
 0x11c   : > { %v2082_v19 = vld [vmem:[#allocation3 + $0x4c] sm:$0xff]  ;;  %3652 = vrcp.f32 %v4403_v10  ;;  %v920_v55 = vsel %vm917_vm10, %v919_v2, %v915_v49  ;;  %v4410_v42 = vpack.c.bf16 %v1562_v40, %v1561_v39  ;;  %vm928_vm11 = vweird.f32 %v3649_v54 }
 0x11d   : > { %v924_v25 = vsub.f32 1.0, %v923_v17  ;;  %v1114_v33 = vmul.f32 %v920_v55, %v4338_v1  ;;  %v4412_v28 = vpack.c.bf16 %v2082_v19, %v2081_v26  ;;  %3325 = vmatmul.msk.bf16.gmra.mxu1 %vm441_vm1, %v1378_v35  ;;  %vm929_vm13 = vmor %vm927_vm12, %vm928_vm11  ;;  %v946_v8 = vand.u32 2147483647, %v4403_v10  ;;  %v1338_v0 = vld [vmem:[#allocation3 + $0x50] sm:$0xff] }
 0x11e   : > { %v603_v45 = vpop.f32.mrf.mxu0  ;;  %3344 = vmatmul.msk.bf16.gmra.mxu3 %vm441_vm1, %v4410_v42  ;;  %v948_v5 = vand.u32 2147483648, %v4403_v10  ;;  %vm942_vm2 = vweird.f32 %v4403_v10 }
 0x11f   : > { %v925_v6 = vmul.f32 %v3649_v54, %v924_v25  ;;  %v4417_v61 = vadd.f32 %v4392_v21, %v603_v45  ;;  %v1290_v62 = vmul.f32 %v3999_v52, %v1114_v33  ;;  %3382 = vmatmul.msk.bf16.gmra.mxu0 %vm441_vm1, %v4412_v28  ;;  %vm947_vm4 = vcmp.eq.f32.partialorder %v946_v8, 8.507059e+37 }
 0x120   : > { %v1339_v12 = vld [vmem:[#allocation3 + $0x58] sm:$0xff] }
 0x121   : > { %v3651_v1 = vpop.eup %3650  ;;  %v926_v30 = vadd.f32 %v3649_v54, %v925_v6  ;;  %v3311_v38 = vmul.f32 -1.442695, %v4417_v61  ;;  %1315 = vst.msk [vmem:[#allocation3 + $0x60] sm:$0xff] %vm441_vm1, %v1290_v62  ;;  %v1366_v17 = vld [vmem:[#allocation3 + $0x51] sm:$0xff] }
 0x122   : > { %v3653_v3 = vpop.eup %3652  ;;  %v4427_v29 = vadd.f32 1.0, %v3651_v1  ;;  %v1563_v49 = vld [vmem:[#allocation3 + $0x52] sm:$0xff] }
 0x123   : > { %v930_v52 = vsel %vm929_vm13, %v3649_v54, %v926_v30  ;;  %v938_v43 = vmul.f32 %v3653_v3, %v4403_v10  ;;  %3654 = vpow2.f32 %v3311_v38  ;;  %vm943_vm15 = vweird.f32 %v3653_v3  ;;  %v2083_v10 = vld [vmem:[#allocation3 + $0x54] sm:$0xff] }
 0x124   : > { %v935_v53 = vsel %vm932_vm14, %v934_v47, %v930_v52  ;;  %3656 = vrcp.f32 %v4427_v29  ;;  %vm944_vm3 = vmor %vm942_vm2, %vm943_vm15  ;;  %v961_v26 = vand.u32 2147483647, %v4427_v29  ;;  %v963_v33 = vand.u32 2147483648, %v4427_v29 }
 0x125   : > { %v1115_v27 = vmul.f32 %v935_v53, %v4351_v22  ;;  %v939_v32 = vsub.f32 1.0, %v938_v43  ;;  %v1351_v22 = vpack.c.bf16 %v1339_v12, %v1338_v0  ;;  %vm957_vm6 = vweird.f32 %v4427_v29 }
 0x126   : > { %v605_v44 = vpop.f32.mrf.mxu0  ;;  %v964_v30 = vor.u32 1.1754944e-38, %v963_v33  ;;  %vm962_vm8 = vcmp.eq.f32.partialorder %v961_v26, 8.507059e+37 }
 0x127   : > { %v1291_v20 = vmul.f32 %v4041_v36, %v1115_v27  ;;  %v940_v56 = vmul.f32 %v3653_v3, %v939_v32  ;;  %v4436_v37 = vadd.f32 %v4392_v21, %v605_v44  ;;  %v949_v36 = vor.u32 1.1754944e-38, %v948_v5 }
 0x128   : > { %v1367_v9 = vld [vmem:[#allocation3 + $0x59] sm:$0xff] }
 0x129   : > { %v3655_v14 = vpop.eup %3654  ;;  %1316 = vst.msk [vmem:[#allocation3 + $0x68] sm:$0xff] %vm441_vm1, %v1291_v20  ;;  %v941_v34 = vadd.f32 %v3653_v3, %v940_v56  ;;  %v3312_v18 = vmul.f32 -1.442695, %v4436_v37  ;;  %v1564_v63 = vld [vmem:[#allocation3 + $0x5a] sm:$0xff]  ;;  %v1379_v19 = vpack.c.bf16 %v1367_v9, %v1366_v17 }
 0x12a   : > { %v2084_v54 = vld [vmem:[#allocation3 + $0x5c] sm:$0xff]  ;;  %v3657_v24 = vpop.eup %3656  ;;  %v4441_v2 = vadd.f32 1.0, %v3655_v14  ;;  %v4445_v55 = vpack.c.bf16 %v1564_v63, %v1563_v49 }
 0x12b   : > { %v945_v58 = vsel %vm944_vm3, %v3653_v3, %v941_v34  ;;  %v953_v40 = vmul.f32 %v3657_v24, %v4427_v29  ;;  %3658 = vpow2.f32 %v3312_v18  ;;  %v4447_v25 = vpack.c.bf16 %v2084_v54, %v2083_v10  ;;  %3335 = vmatmul.msk.bf16.gmra.mxu2 %vm441_vm1, %v1351_v22  ;;  %v1340_v20 = vld [vmem:[#allocation3 + $0x60] sm:$0xff] }
 0x12c   : > { %v950_v50 = vsel %vm947_vm4, %v949_v36, %v945_v58  ;;  %3660 = vrcp.f32 %v4441_v2  ;;  %vm958_vm5 = vweird.f32 %v3657_v24  ;;  %v976_v29 = vand.u32 2147483647, %v4441_v2 }
 0x12d   : > { %v1116_v35 = vmul.f32 %v950_v50, %v4375_v41  ;;  %v954_v39 = vsub.f32 1.0, %v953_v40  ;;  %3326 = vmatmul.msk.bf16.gmra.mxu1 %vm441_vm1, %v1379_v19  ;;  %vm959_vm7 = vmor %vm957_vm6, %vm958_vm5  ;;  %v978_v27 = vand.u32 2147483648, %v4441_v2  ;;  %vm972_vm10 = vweird.f32 %v4441_v2 }
 0x12e   : > { %v608_v51 = vpop.f32.mrf.mxu0  ;;  %3345 = vmatmul.msk.bf16.gmra.mxu3 %vm441_vm1, %v4445_v55  ;;  %vm977_vm12 = vcmp.eq.f32.partialorder %v976_v29, 8.507059e+37 }
 0x12f   : > { %v1292_v45 = vmul.f32 %v4070_v11, %v1116_v35  ;;  %v955_v6 = vmul.f32 %v3657_v24, %v954_v39  ;;  %v4456_v60 = vadd.f32 %v4392_v21, %v608_v51  ;;  %3383 = vmatmul.msk.bf16.gmra.mxu0 %vm441_vm1, %v4447_v25 }
 0x130   : > { %v1341_v32 = vld [vmem:[#allocation3 + $0x68] sm:$0xff] }
 0x131   : > { %v3659_v41 = vpop.eup %3658  ;;  %1317 = vst.msk [vmem:[#allocation3 + $0x70] sm:$0xff] %vm441_vm1, %v1292_v45  ;;  %v956_v62 = vadd.f32 %v3657_v24, %v955_v6  ;;  %v3313_v11 = vmul.f32 -1.442695, %v4456_v60  ;;  %v1352_v14 = vpack.c.bf16 %v1341_v32, %v1340_v20  ;;  %v1565_v17 = vld [vmem:[#allocation3 + $0x62] sm:$0xff] }
 0x132   : > { %v3661_v1 = vpop.eup %3660  ;;  %v4465_v38 = vadd.f32 1.0, %v3659_v41  ;;  %v2085_v58 = vld [vmem:[#allocation3 + $0x64] sm:$0xff]  ;;  %v3369_v6 = vld [vmem:[%s5172_s4 + $0xa] sm:$0x3] }
 0x133   : > { %v960_v3 = vsel %vm959_vm7, %v3657_v24, %v956_v62  ;;  %v968_v47 = vmul.f32 %v3661_v1, %v4441_v2  ;;  %3662 = vpow2.f32 %v3313_v11  ;;  %vm973_vm9 = vweird.f32 %v3661_v1 }
 0x134   : > { %v965_v52 = vsel %vm962_vm8, %v964_v30, %v960_v3  ;;  %3664 = vrcp.f32 %v4465_v38  ;;  %vm974_vm11 = vmor %vm972_vm10, %vm973_vm9  ;;  %v993_v50 = vand.u32 2147483648, %v4465_v38  ;;  %v991_v26 = vand.u32 2147483647, %v4465_v38 }
 0x135   : > { %v1117_v43 = vmul.f32 %v965_v52, %v4395_v23  ;;  %v969_v53 = vsub.f32 1.0, %v968_v47  ;;  %vm987_vm14 = vweird.f32 %v4465_v38  ;;  %v2003_v11 = vsel %vm550_vm0, %v3369_v6, 0 }
 0x136   : > { %v610_v8 = vpop.f32.mrf.mxu0  ;;  %vm992_vm2 = vcmp.eq.f32.partialorder %v991_v26, 8.507059e+37  ;;  %2012 = vmatpush.bf16.msra.mxu3 %v2003_v11 }
 0x137   : > { %v1293_v5 = vmul.f32 %v4018_v7, %v1117_v43  ;;  %v970_v12 = vmul.f32 %v3661_v1, %v969_v53  ;;  %v4474_v44 = vadd.f32 %v4392_v21, %v610_v8  ;;  %v979_v7 = vor.u32 1.1754944e-38, %v978_v27  ;;  %v1368_v21 = vld [vmem:[#allocation3 + $0x61] sm:$0xff] }
 0x138   : > { %v1369_v56 = vld [vmem:[#allocation3 + $0x69] sm:$0xff] }
 0x139   : > { %v3663_v0 = vpop.eup %3662  ;;  %1318 = vst.msk [vmem:[#allocation3 + $0x78] sm:$0xff] %vm441_vm1, %v1293_v5  ;;  %v971_v23 = vadd.f32 %v3661_v1, %v970_v12  ;;  %v3314_v34 = vmul.f32 -1.442695, %v4474_v44  ;;  %v1566_v22 = vld [vmem:[#allocation3 + $0x6a] sm:$0xff]  ;;  %v1380_v36 = vpack.c.bf16 %v1369_v56, %v1368_v21  ;;  %v3399_v21 = vld [vmem:[%s5172_s4 + $0x10] sm:$0x3] }
 0x13a   : > { %v2086_v18 = vld [vmem:[#allocation3 + $0x6c] sm:$0xff]  ;;  %v3665_v9 = vpop.eup %3664  ;;  %v720_v63 = vadd.f32 1.0, %v3663_v0  ;;  %v4480_v2 = vpack.c.bf16 %v1566_v22, %v1565_v17 }
 0x13b   : > { %v975_v54 = vsel %vm974_vm11, %v3661_v1, %v971_v23  ;;  %v983_v24 = vmul.f32 %v3665_v9, %v4465_v38  ;;  %3666 = vpow2.f32 %v3314_v34  ;;  %v4482_v19 = vpack.c.bf16 %v2086_v18, %v2085_v58  ;;  %3336 = vmatmul.msk.bf16.gmra.mxu2 %vm441_vm1, %v1352_v14  ;;  %v1342_v29 = vld [vmem:[#allocation3 + $0x70] sm:$0xff] }
 0x13c   : > { %v980_v40 = vsel %vm977_vm12, %v979_v7, %v975_v54  ;;  %3668 = vrcp.f32 %v720_v63  ;;  %vm988_vm13 = vweird.f32 %v3665_v9  ;;  %v1008_v38 = vand.u32 2147483648, %v720_v63 }
 0x13d   : > { %v1118_v49 = vmul.f32 %v980_v40, %v4417_v61  ;;  %v984_v10 = vsub.f32 1.0, %v983_v24  ;;  %3327 = vmatmul.msk.bf16.gmra.mxu1 %vm441_vm1, %v1380_v36  ;;  %vm989_vm15 = vmor %vm987_vm14, %vm988_vm13  ;;  %v1006_v53 = vand.u32 2147483647, %v720_v63  ;;  %vm1002_vm4 = vweird.f32 %v720_v63 }
 0x13e   : > { %3346 = vmatmul.msk.bf16.gmra.mxu3 %vm441_vm1, %v4480_v2  ;;  %v2396_v24 = vsel %vm550_vm0, %v3399_v21, 0 }
 0x13f   : > { %v1294_v35 = vmul.f32 %v4092_v31, %v1118_v49  ;;  %v985_v39 = vmul.f32 %v3665_v9, %v984_v10  ;;  %3384 = vmatmul.msk.bf16.gmra.mxu0 %vm441_vm1, %v4482_v19  ;;  %v994_v31 = vor.u32 1.1754944e-38, %v993_v50  ;;  %vm1007_vm6 = vcmp.eq.f32.partialorder %v1006_v53, 8.507059e+37  ;;  %2405 = vmatpush.bf16.msrb.mxu2 %v2396_v24 }
 0x140   : > { %v1343_v47 = vld [vmem:[#allocation3 + $0x78] sm:$0xff] }
 0x141   : > { %v3667_v61 = vpop.eup %3666  ;;  %1319 = vst.msk [vmem:[#allocation3 + $0x80] sm:$0xff] %vm441_vm1, %v1294_v35  ;;  %v986_v33 = vadd.f32 %v3665_v9, %v985_v39  ;;  %v1353_v8 = vpack.c.bf16 %v1343_v47, %v1342_v29  ;;  %v1370_v56 = vld [vmem:[#allocation3 + $0x71] sm:$0xff] }
 0x142   : > { %v3669_v51 = vpop.eup %3668  ;;  %v721_v45 = vadd.f32 1.0, %v3667_v61  ;;  %v1567_v14 = vld [vmem:[#allocation3 + $0x72] sm:$0xff] }
 0x143   : > { %v990_v41 = vsel %vm989_vm15, %v3665_v9, %v986_v33  ;;  %v998_v62 = vmul.f32 %v3669_v51, %v720_v63  ;;  %vm1003_vm3 = vweird.f32 %v3669_v51  ;;  %v2087_v34 = vld [vmem:[#allocation3 + $0x74] sm:$0xff] }
 0x144   : > { %v995_v1 = vsel %vm992_vm2, %v994_v31, %v990_v41  ;;  %3670 = vrcp.f32 %v721_v45  ;;  %vm1004_vm5 = vmor %vm1002_vm4, %vm1003_vm3  ;;  %v1023_v54 = vand.u32 2147483648, %v721_v45  ;;  %v1021_v58 = vand.u32 2147483647, %v721_v45 }
 0x145   : > { %v1119_v30 = vmul.f32 %v995_v1, %v4436_v37  ;;  %v999_v3 = vsub.f32 1.0, %v998_v62  ;;  %v1009_v37 = vor.u32 1.1754944e-38, %v1008_v38  ;;  %vm1017_vm8 = vweird.f32 %v721_v45 }
 0x146   : > { %v1024_v40 = vor.u32 1.1754944e-38, %v1023_v54  ;;  %vm1022_vm10 = vcmp.eq.f32.partialorder %v1021_v58, 8.507059e+37  ;;  %v1817_v58 = vld [vmem:[#allocation3 + $0x23] sm:$0xff] }
 0x147   : > { %v1295_v52 = vmul.f32 %v4126_v16, %v1119_v30  ;;  %v1000_v43 = vmul.f32 %v3669_v51, %v999_v3 }
 0x148   : > { %v1371_v27 = vld [vmem:[#allocation3 + $0x79] sm:$0xff] }
 0x149   : > { %1320 = vst.msk [vmem:[#allocation3 + $0x88] sm:$0xff] %vm441_vm1, %v1295_v52  ;;  %v1001_v32 = vadd.f32 %v3669_v51, %v1000_v43  ;;  %v1568_v5 = vld [vmem:[#allocation3 + $0x7a] sm:$0xff]  ;;  %v1381_v16 = vpack.c.bf16 %v1371_v27, %v1370_v56 }
 0x14a   : > { %v2088_v12 = vld [vmem:[#allocation3 + $0x7c] sm:$0xff]  ;;  %v3671_v20 = vpop.eup %3670  ;;  %v4503_v18 = vpack.c.bf16 %v1568_v5, %v1567_v14 }
 0x14b   : > { %v1005_v0 = vsel %vm1004_vm5, %v3669_v51, %v1001_v32  ;;  %v1013_v23 = vmul.f32 %v3671_v20, %v721_v45  ;;  %v4505_v9 = vpack.c.bf16 %v2088_v12, %v2087_v34  ;;  %3337 = vmatmul.msk.bf16.gmra.mxu2 %vm441_vm1, %v1353_v8  ;;  %vm1018_vm7 = vweird.f32 %v3671_v20  ;;  %v1344_v61 = vld [vmem:[#allocation3 + $0x80] sm:$0xff]  ;;  %v1815_v12 = vld [vmem:[#allocation3 + $0x13] sm:$0xff] }
 0x14c   : > { %v1010_v22 = vsel %vm1007_vm6, %v1009_v37, %v1005_v0  ;;  %vm1019_vm9 = vmor %vm1017_vm8, %vm1018_vm7  ;;  %v1816_v27 = vld [vmem:[#allocation3 + $0x1b] sm:$0xff] }
 0x14d   : > { %v1120_v7 = vmul.f32 %v1010_v22, %v4456_v60  ;;  %v1014_v63 = vsub.f32 1.0, %v1013_v23  ;;  %3328 = vmatmul.msk.bf16.gmra.mxu1 %vm441_vm1, %v1381_v16  ;;  %v1833_v37 = vpack.c.bf16 %v1816_v27, %v1815_v12  ;;  %v1947_v56 = vld [vmem:[#allocation3 + $0x1c] sm:$0xff]  ;;  %v1946_v16 = vld [vmem:[#allocation3 + $0x14] sm:$0xff] }
 0x14e   : > { %3347 = vmatmul.msk.bf16.gmra.mxu3 %vm441_vm1, %v4503_v18  ;;  %v1964_v14 = vpack.c.bf16 %v1947_v56, %v1946_v16  ;;  %v1824_v56 = vld [vmem:[#allocation3 + $0x5b] sm:$0xff] }
 0x14f   : > { %v1296_v36 = vmul.f32 %v4045_v46, %v1120_v7  ;;  %v1015_v17 = vmul.f32 %v3671_v20, %v1014_v63  ;;  %3385 = vmatmul.msk.bf16.gmra.mxu0 %vm441_vm1, %v4505_v9  ;;  %v3389_v46 = vld [vmem:[%s5172_s4 + $0xe] sm:$0x3] }
 0x150   : > { %v2265_v49 = vsel %vm550_vm0, %v3389_v46, 0  ;;  %v1345_v39 = vld [vmem:[#allocation3 + $0x88] sm:$0xff] }
 0x151   : > { %1321 = vst.msk [vmem:[#allocation3 + $0x90] sm:$0xff] %vm441_vm1, %v1296_v36  ;;  %v1016_v60 = vadd.f32 %v3671_v20, %v1015_v17  ;;  %2274 = vmatpush.bf16.msrb.mxu1 %v2265_v49  ;;  %v1354_v31 = vpack.c.bf16 %v1345_v39, %v1344_v61  ;;  %v1372_v11 = vld [vmem:[#allocation3 + $0x81] sm:$0xff]  ;;  %v1818_v36 = vld [vmem:[#allocation3 + $0x2b] sm:$0xff] }
 0x152   : > { %v1569_v30 = vld [vmem:[#allocation3 + $0x82] sm:$0xff] }
 0x153   : > { %v1020_v10 = vsel %vm1019_vm9, %v3671_v20, %v1016_v60  ;;  %v2089_v3 = vld [vmem:[#allocation3 + $0x84] sm:$0xff]  ;;  %v1834_v60 = vpack.c.bf16 %v1818_v36, %v1817_v58 }
 0x154   : > { %v1025_v50 = vsel %vm1022_vm10, %v1024_v40, %v1020_v10  ;;  %v2093_v40 = vld [vmem:[#allocation3 + $0xa4] sm:$0xff] }
 0x155   : > { %v1121_v35 = vmul.f32 %v1025_v50, %v4474_v44  ;;  %v1826_v58 = vld [vmem:[#allocation3 + $0x6b] sm:$0xff] }
 0x157   : > { %v1297_v26 = vmul.f32 %v4144_v15, %v1121_v35  ;;  %v1508_v45 = vpop.f32.mrf.mxu2 }
 0x158   : > { %v1424_v33 = vpop.f32.mrf.mxu1  ;;  %v1373_v51 = vld [vmem:[#allocation3 + $0x89] sm:$0xff] }
 0x159   : > { %1322 = vst.msk [vmem:[#allocation3 + $0x98] sm:$0xff] %vm441_vm1, %v1297_v26  ;;  %v1570_v6 = vld [vmem:[#allocation3 + $0x8a] sm:$0xff]  ;;  %v1509_v62 = vadd.f32 %v1508_v45, %v1424_v33  ;;  %v1382_v1 = vpack.c.bf16 %v1373_v51, %v1372_v11  ;;  %v1820_v33 = vld [vmem:[#allocation3 + $0x3b] sm:$0xff]  ;;  %v1819_v45 = vld [vmem:[#allocation3 + $0x33] sm:$0xff] }
 0x15a   : > { %v2090_v41 = vld [vmem:[#allocation3 + $0x8c] sm:$0xff]  ;;  %v4527_v38 = vpack.c.bf16 %v1570_v6, %v1569_v30  ;;  %v1835_v6 = vpack.c.bf16 %v1820_v33, %v1819_v45  ;;  %v1828_v33 = vld [vmem:[#allocation3 + $0x7b] sm:$0xff] }
 0x15b   : > { %v4529_v44 = vpack.c.bf16 %v2090_v41, %v2089_v3  ;;  %3338 = vmatmul.msk.bf16.gmra.mxu2 %vm441_vm1, %v1354_v31 }
 0x15d   : > { %3329 = vmatmul.msk.bf16.gmra.mxu1 %vm441_vm1, %v1382_v1 }
 0x15e   : > { %3348 = vmatmul.msk.bf16.gmra.mxu3 %vm441_vm1, %v4527_v38 }
 0x15f   : > { %v1621_v15 = vpop.f32.mrf.mxu3  ;;  %3386 = vmatmul.msk.bf16.gmra.mxu0 %vm441_vm1, %v4529_v44  ;;  %v1510_v43 = vpop.f32.mrf.mxu2 }
 0x160   : > { %v4537_v47 = vadd.f32 %v1621_v15, %v1509_v62  ;;  %v1426_v52 = vpop.f32.mrf.mxu1  ;;  %v2091_v0 = vld [vmem:[#allocation3 + $0x94] sm:$0xff]  ;;  %v2092_v23 = vld [vmem:[#allocation3 + $0x9c] sm:$0xff]  ;;  %v1822_v15 = vld [vmem:[#allocation3 + $0x4b] sm:$0xff] }
 0x161   : > { %v1511_v53 = vadd.f32 %v1510_v43, %v1426_v52  ;;  %v4542_v34 = vpack.c.bf16 %v2092_v23, %v2091_v0  ;;  %v1823_v23 = vld [vmem:[#allocation3 + $0x53] sm:$0xff] }
 0x162   : > { %v1837_v16 = vpack.c.bf16 %v1824_v56, %v1823_v23  ;;  %v1701_v23 = vld [vmem:[#allocation3 + $0x9a] sm:$0xff] }
 0x167   : > { %v1623_v29 = vpop.f32.mrf.mxu3 }
 0x168   : > { %v4539_v32 = vadd.f32 %v1623_v29, %v1511_v53  ;;  %v1429_v8 = vpop.f32.mrf.mxu1  ;;  %v1513_v5 = vpop.f32.mrf.mxu2  ;;  %v1821_v53 = vld [vmem:[#allocation3 + $0x43] sm:$0xff] }
 0x169   : > { %v1514_v20 = vadd.f32 %v1513_v5, %v1429_v8  ;;  %v1836_v29 = vpack.c.bf16 %v1822_v15, %v1821_v53 }
 0x16b   : > { %3360 = vmatmul.msk.bf16.vlgmr.msra.gmra.mxu2 %vm441_vm1, %v1833_v37 }
 0x16d   : > { %3350 = vmatmul.msk.bf16.vlgmr.msra.gmra.mxu1 %vm441_vm1, %v4282_v4  ;;  %v2094_v4 = vld [vmem:[#allocation3 + $0xac] sm:$0xff] }
 0x16e   : > { %3370 = vmatmul.msk.bf16.vlgmr.msra.gmra.mxu3 %vm441_vm1, %v1964_v14  ;;  %v2103_v49 = vpack.c.bf16 %v2094_v4, %v2093_v40 }
 0x16f   : > { %v1626_v22 = vpop.f32.mrf.mxu3  ;;  %3387 = vmatmul.msk.bf16.gmra.mxu0 %vm441_vm1, %v4542_v34 }
 0x170   : > { %v4549_v7 = vadd.f32 %v1626_v22, %v1514_v20  ;;  %v1431_v63 = vpop.f32.mrf.mxu1  ;;  %v1515_v21 = vpop.f32.mrf.mxu2 }
 0x171   : > { %v1516_v54 = vadd.f32 %v1515_v21, %v1431_v63 }
 0x177   : > { %v1628_v24 = vpop.f32.mrf.mxu3 }
 0x178   : > { %v4551_v17 = vadd.f32 %v1628_v24, %v1516_v54 }
 0x179   : > { %v1434_v46 = vpop.f32.mrf.mxu1 }
 0x17b   : > { %3361 = vmatmul.msk.bf16.gmra.mxu2 %vm441_vm1, %v1834_v60 }
 0x17d   : > { %3351 = vmatmul.msk.bf16.gmra.mxu1 %vm441_vm1, %v4319_v59 }
 0x17e   : > { %v1518_v10 = vpop.f32.mrf.mxu2  ;;  %3371 = vmatmul.msk.bf16.gmra.mxu3 %vm441_vm1, %v4324_v48 }
 0x17f   : > { %3388 = vmatmul.msk.bf16.gmra.mxu0 %vm441_vm1, %v2103_v49  ;;  %v1519_v50 = vadd.f32 %v1518_v10, %v1434_v46  ;;  %v1825_v46 = vld [vmem:[#allocation3 + $0x63] sm:$0xff] }
 0x180   : > { %v1631_v35 = vpop.f32.mrf.mxu3  ;;  %v1838_v40 = vpack.c.bf16 %v1826_v58, %v1825_v46  ;;  %v2209_v46 = vld [vmem:[#allocation3 + $0x2d] sm:$0xff] }
 0x181   : > { %v4559_v39 = vadd.f32 %v1631_v35, %v1519_v50  ;;  %v1436_v26 = vpop.f32.mrf.mxu1 }
 0x186   : > { %v1520_v61 = vpop.f32.mrf.mxu2 }
 0x187   : > { %v1521_v51 = vadd.f32 %v1520_v61, %v1436_v26 }
 0x188   : > { %v1633_v31 = vpop.f32.mrf.mxu3 }
 0x189   : > { %v4561_v41 = vadd.f32 %v1633_v31, %v1521_v51  ;;  %v1827_v31 = vld [vmem:[#allocation3 + $0x73] sm:$0xff] }
 0x18a   : > { %v1439_v59 = vpop.f32.mrf.mxu1  ;;  %v1839_v45 = vpack.c.bf16 %v1828_v33, %v1827_v31 }
 0x18b   : > { %3362 = vmatmul.msk.bf16.gmra.mxu2 %vm441_vm1, %v1835_v6 }
 0x18d   : > { %3352 = vmatmul.msk.bf16.gmra.mxu1 %vm441_vm1, %v4359_v57 }
 0x18e   : > { %v1523_v48 = vpop.f32.mrf.mxu2  ;;  %3372 = vmatmul.msk.bf16.gmra.mxu3 %vm441_vm1, %v4363_v13 }
 0x18f   : > { %v1524_v62 = vadd.f32 %v1523_v48, %v1439_v59 }
 0x191   : > { %v1636_v11 = vpop.f32.mrf.mxu3 }
 0x192   : > { %v4568_v1 = vadd.f32 %v1636_v11, %v1524_v62  ;;  %v1441_v30 = vpop.f32.mrf.mxu1 }
 0x196   : > { %v1525_v3 = vpop.f32.mrf.mxu2 }
 0x197   : > { %v1526_v52 = vadd.f32 %v1525_v3, %v1441_v30  ;;  %v1830_v3 = vld [vmem:[#allocation3 + $0x8b] sm:$0xff] }
 0x199   : > { %v1638_v43 = vpop.f32.mrf.mxu3 }
 0x19a   : > { %v4570_v27 = vadd.f32 %v1638_v43, %v1526_v52  ;;  %v1444_v8 = vpop.f32.mrf.mxu1  ;;  %v1829_v52 = vld [vmem:[#allocation3 + $0x83] sm:$0xff] }
 0x19b   : > { %3363 = vmatmul.msk.bf16.gmra.mxu2 %vm441_vm1, %v1836_v29  ;;  %v1840_v43 = vpack.c.bf16 %v1830_v3, %v1829_v52 }
 0x19d   : > { %3353 = vmatmul.msk.bf16.gmra.mxu1 %vm441_vm1, %v4410_v42 }
 0x19e   : > { %v1528_v57 = vpop.f32.mrf.mxu2  ;;  %3373 = vmatmul.msk.bf16.gmra.mxu3 %vm441_vm1, %v4412_v28 }
 0x19f   : > { %v1529_v13 = vadd.f32 %v1528_v57, %v1444_v8 }
 0x1a1   : > { %v1641_v5 = vpop.f32.mrf.mxu3 }
 0x1a2   : > { %v4577_v12 = vadd.f32 %v1641_v5, %v1529_v13  ;;  %v1446_v20 = vpop.f32.mrf.mxu1 }
 0x1a6   : > { %v1530_v37 = vpop.f32.mrf.mxu2 }
 0x1a7   : > { %v1531_v0 = vadd.f32 %v1530_v37, %v1446_v20  ;;  %v1831_v20 = vld [vmem:[#allocation3 + $0x93] sm:$0xff]  ;;  %v1832_v37 = vld [vmem:[#allocation3 + $0x9b] sm:$0xff] }
 0x1a9   : > { %v1643_v14 = vpop.f32.mrf.mxu3 }
 0x1aa   : > { %v4579_v22 = vadd.f32 %v1643_v14, %v1531_v0  ;;  %v1449_v63 = vpop.f32.mrf.mxu1  ;;  %v1700_v0 = vld [vmem:[#allocation3 + $0x92] sm:$0xff] }
 0x1ab   : > { %3364 = vmatmul.msk.bf16.gmra.mxu2 %vm441_vm1, %v1837_v16  ;;  %v1841_v16 = vpack.c.bf16 %v1832_v37, %v1831_v20  ;;  %v2213_v20 = vld [vmem:[#allocation3 + $0x4d] sm:$0xff] }
 0x1ad   : > { %3354 = vmatmul.msk.bf16.gmra.mxu1 %vm441_vm1, %v4445_v55 }
 0x1ae   : > { %v1533_v42 = vpop.f32.mrf.mxu2  ;;  %3374 = vmatmul.msk.bf16.gmra.mxu3 %vm441_vm1, %v4447_v25 }
 0x1af   : > { %v1534_v28 = vadd.f32 %v1533_v42, %v1449_v63  ;;  %v1710_v63 = vpack.c.bf16 %v1701_v23, %v1700_v0  ;;  %v2212_v23 = vld [vmem:[#allocation3 + $0x45] sm:$0xff] }
 0x1b1   : > { %v1646_v21 = vpop.f32.mrf.mxu3 }
 0x1b2   : > { %v4586_v54 = vadd.f32 %v1646_v21, %v1534_v28  ;;  %v1451_v24 = vpop.f32.mrf.mxu1 }
 0x1b6   : > { %v1535_v36 = vpop.f32.mrf.mxu2 }
 0x1b7   : > { %v1536_v60 = vadd.f32 %v1535_v36, %v1451_v24  ;;  %v2340_v36 = vld [vmem:[#allocation3 + $0x2e] sm:$0xff] }
 0x1b9   : > { %v1648_v4 = vpop.f32.mrf.mxu3 }
 0x1ba   : > { %v4588_v49 = vadd.f32 %v1648_v4, %v1536_v60  ;;  %v1454_v10 = vpop.f32.mrf.mxu1  ;;  %v2339_v60 = vld [vmem:[#allocation3 + $0x26] sm:$0xff] }
 0x1bb   : > { %3365 = vmatmul.msk.bf16.gmra.mxu2 %vm441_vm1, %v1838_v40  ;;  %v2357_v40 = vpack.c.bf16 %v2340_v36, %v2339_v60  ;;  %v2208_v4 = vld [vmem:[#allocation3 + $0x25] sm:$0xff]  ;;  %v2215_v36 = vld [vmem:[#allocation3 + $0x5d] sm:$0xff] }
 0x1bd   : > { %3355 = vmatmul.msk.bf16.gmra.mxu1 %vm441_vm1, %v4480_v2 }
 0x1be   : > { %v1538_v55 = vpop.f32.mrf.mxu2  ;;  %3375 = vmatmul.msk.bf16.gmra.mxu3 %vm441_vm1, %v4482_v19 }
 0x1bf   : > { %v1539_v25 = vadd.f32 %v1538_v55, %v1454_v10  ;;  %v2226_v55 = vpack.c.bf16 %v2209_v46, %v2208_v4 }
 0x1c1   : > { %v1651_v50 = vpop.f32.mrf.mxu3 }
 0x1c2   : > { %v4595_v35 = vadd.f32 %v1651_v50, %v1539_v25  ;;  %v1456_v26 = vpop.f32.mrf.mxu1  ;;  %v2977_v25 = vld [vmem:[%s5176_s8] sm:$0x3] }
 0x1c6   : > { %v1540_v61 = vpop.f32.mrf.mxu2 }
 0x1c7   : > { %v4597_v51 = vadd.f32 %v1540_v61, %v1456_v26  ;;  %v3010_v61 = vsel %vm550_vm0, %v2977_v25, 0 }
 0x1c8   : > { %3019 = vmatpush.bf16.msra.mxu0 %v3010_v61  ;;  %v2217_v61 = vld [vmem:[#allocation3 + $0x6d] sm:$0xff] }
 0x1c9   : > { %v4599_v6 = vpop.f32.mrf.mxu3 }
 0x1ca   : > { %v1459_v59 = vpop.f32.mrf.mxu1 }
 0x1cb   : > { %3366 = vmatmul.msk.bf16.gmra.mxu2 %vm441_vm1, %v1839_v45  ;;  %v2342_v45 = vld [vmem:[#allocation3 + $0x3e] sm:$0xff] }
 0x1cd   : > { %3356 = vmatmul.msk.bf16.gmra.mxu1 %vm441_vm1, %v4503_v18 }
 0x1ce   : > { %v1543_v2 = vpop.f32.mrf.mxu2  ;;  %3376 = vmatmul.msk.bf16.gmra.mxu3 %vm441_vm1, %v4505_v9 }
 0x1cf   : > { %v1544_v19 = vadd.f32 %v1543_v2, %v1459_v59  ;;  %v2341_v2 = vld [vmem:[#allocation3 + $0x36] sm:$0xff] }
 0x1d1   : > { %v1656_v48 = vpop.f32.mrf.mxu3 }
 0x1d2   : > { %v4606_v62 = vadd.f32 %v1656_v48, %v1544_v19  ;;  %v1461_v11 = vpop.f32.mrf.mxu1  ;;  %v2211_v19 = vld [vmem:[#allocation3 + $0x3d] sm:$0xff]  ;;  %v2358_v48 = vpack.c.bf16 %v2342_v45, %v2341_v2 }
 0x1d6   : > { %v1545_v30 = vpop.f32.mrf.mxu2 }
 0x1d7   : > { %v4608_v15 = vadd.f32 %v1545_v30, %v1461_v11  ;;  %v2210_v30 = vld [vmem:[#allocation3 + $0x35] sm:$0xff] }
 0x1d8   : > { %v2227_v52 = vpack.c.bf16 %v2211_v19, %v2210_v30 }
 0x1d9   : > { %v4610_v53 = vpop.f32.mrf.mxu3 }
 0x1da   : > { %v1464_v29 = vpop.f32.mrf.mxu1 }
 0x1db   : > { %3367 = vmatmul.msk.bf16.gmra.mxu2 %vm441_vm1, %v1840_v43 }
 0x1dd   : > { %3357 = vmatmul.msk.bf16.gmra.mxu1 %vm441_vm1, %v4527_v38 }
 0x1de   : > { %v1548_v18 = vpop.f32.mrf.mxu2  ;;  %3377 = vmatmul.msk.bf16.gmra.mxu3 %vm441_vm1, %v4529_v44 }
 0x1df   : > { %v1549_v9 = vadd.f32 %v1548_v18, %v1464_v29 }
 0x1e1   : > { %v1661_v8 = vpop.f32.mrf.mxu3 }
 0x1e2   : > { %v4617_v57 = vadd.f32 %v1661_v8, %v1549_v9  ;;  %v1466_v13 = vpop.f32.mrf.mxu1  ;;  %v2344_v8 = vld [vmem:[#allocation3 + $0x4e] sm:$0xff] }
 0x1e6   : > { %v1550_v5 = vpop.f32.mrf.mxu2 }
 0x1e7   : > { %v4619_v56 = vadd.f32 %v1550_v5, %v1466_v13  ;;  %v2343_v5 = vld [vmem:[#allocation3 + $0x46] sm:$0xff] }
 0x1e8   : > { %v2359_v37 = vpack.c.bf16 %v2344_v8, %v2343_v5  ;;  %v2218_v8 = vld [vmem:[#allocation3 + $0x75] sm:$0xff] }
 0x1ea   : > { %v1752_v14 = vpop.f32.mrf.mxu1 }
 0x1eb   : > { %3368 = vmatmul.msk.bf16.gmra.mxu2 %vm441_vm1, %v1841_v16  ;;  %v1797_v38 = vadd.f32 %v1752_v14, %v4537_v47  ;;  %v2228_v16 = vpack.c.bf16 %v2213_v20, %v2212_v23 }
 0x1ed   : > { %3358 = vmatmul.msk.bf16.gmra.mxu1 %vm441_vm1, %v1710_v63 }
 0x1ee   : > { %v1883_v44 = vpop.f32.mrf.mxu2  ;;  %3378 = vmatmul.msk.bf16.gmra.mxu3 %vm441_vm1, %v4542_v34 }
 0x1ef   : > { %v4626_v42 = vadd.f32 %v1883_v44, %v1797_v38 }
 0x1f2   : > { %v1754_v28 = vpop.f32.mrf.mxu1 }
 0x1f3   : > { %v1798_v21 = vadd.f32 %v1754_v28, %v4539_v32  ;;  %v2861_v32 = vld [vmem:[%s5174_s6] sm:$0x3]  ;;  %v2346_v28 = vld [vmem:[#allocation3 + $0x5e] sm:$0xff] }
 0x1f4   : > { %v2894_v26 = vsel %vm550_vm0, %v2861_v32, 0  ;;  %v2348_v32 = vld [vmem:[#allocation3 + $0x6e] sm:$0xff] }
 0x1f5   : > { %2903 = vmatpush.bf16.msrb.mxu3 %v2894_v26  ;;  %v2347_v26 = vld [vmem:[#allocation3 + $0x66] sm:$0xff] }
 0x1f6   : > { %v1885_v24 = vpop.f32.mrf.mxu2 }
 0x1f7   : > { %v4629_v58 = vadd.f32 %v1885_v24, %v1798_v21  ;;  %v2345_v24 = vld [vmem:[#allocation3 + $0x56] sm:$0xff] }
 0x1f8   : > { %v2360_v60 = vpack.c.bf16 %v2346_v28, %v2345_v24  ;;  %v2221_v28 = vld [vmem:[#allocation3 + $0x8d] sm:$0xff] }
 0x1fa   : > { %v1757_v47 = vpop.f32.mrf.mxu1 }
 0x1fb   : > { %3400 = vmatmul.msk.bf16.vlgmr.msrb.gmra.mxu2 %vm441_vm1, %v2357_v40  ;;  %v1799_v10 = vadd.f32 %v1757_v47, %v4549_v7  ;;  %v2214_v40 = vld [vmem:[#allocation3 + $0x55] sm:$0xff] }
 0x1fc   : > { %v2229_v47 = vpack.c.bf16 %v2215_v36, %v2214_v40 }
 0x1fd   : > { %3390 = vmatmul.msk.bf16.vlgmr.msrb.gmra.mxu1 %vm441_vm1, %v2226_v55 }
 0x1fe   : > { %v1888_v34 = vpop.f32.mrf.mxu2 }
 0x1ff   : > { %v4640_v50 = vadd.f32 %v1888_v34, %v1799_v10 }
 0x202   : > { %v1759_v7 = vpop.f32.mrf.mxu1 }
 0x203   : > { %v1800_v33 = vadd.f32 %v1759_v7, %v4551_v17  ;;  %v2361_v7 = vpack.c.bf16 %v2348_v32, %v2347_v26  ;;  %v2353_v32 = vld [vmem:[#allocation3 + $0x96] sm:$0xff]  ;;  %v2354_v26 = vld [vmem:[#allocation3 + $0x9e] sm:$0xff] }
 0x206   : > { %v1890_v31 = vpop.f32.mrf.mxu2 }
 0x207   : > { %v4645_v59 = vadd.f32 %v1890_v31, %v1800_v33  ;;  %v2216_v31 = vld [vmem:[#allocation3 + $0x65] sm:$0xff] }
 0x208   : > { %v2230_v45 = vpack.c.bf16 %v2217_v61, %v2216_v31  ;;  %v2364_v31 = vpack.c.bf16 %v2354_v26, %v2353_v32 }
 0x20a   : > { %v1762_v11 = vpop.f32.mrf.mxu1 }
 0x20b   : > { %3401 = vmatmul.msk.bf16.gmra.mxu2 %vm441_vm1, %v2358_v48  ;;  %v1801_v3 = vadd.f32 %v1762_v11, %v4559_v39  ;;  %v1663_v11 = vpop.f32.mrf.mxu3 }
 0x20d   : > { %3391 = vmatmul.msk.bf16.gmra.mxu1 %vm441_vm1, %v2227_v52 }
 0x20e   : > { %v1893_v43 = vpop.f32.mrf.mxu2 }
 0x20f   : > { %v4650_v29 = vadd.f32 %v1893_v43, %v1801_v3  ;;  %v2350_v3 = vld [vmem:[#allocation3 + $0x7e] sm:$0xff]  ;;  %v2349_v43 = vld [vmem:[#allocation3 + $0x76] sm:$0xff] }
 0x212   : > { %v1764_v17 = vpop.f32.mrf.mxu1 }
 0x213   : > { %v1802_v18 = vadd.f32 %v1764_v17, %v4561_v41  ;;  %v2219_v17 = vld [vmem:[#allocation3 + $0x7d] sm:$0xff] }
 0x214   : > { %v2231_v5 = vpack.c.bf16 %v2219_v17, %v2218_v8  ;;  %v2356_v8 = vld [vmem:[#allocation3 + $0xae] sm:$0xff] }
 0x216   : > { %v1895_v9 = vpop.f32.mrf.mxu2 }
 0x217   : > { %v4653_v13 = vadd.f32 %v1895_v9, %v1802_v18  ;;  %v2362_v18 = vpack.c.bf16 %v2350_v3, %v2349_v43 }
 0x21a   : > { %v1767_v0 = vpop.f32.mrf.mxu1 }
 0x21b   : > { %3402 = vmatmul.msk.bf16.gmra.mxu2 %vm441_vm1, %v2359_v37  ;;  %v1803_v39 = vadd.f32 %v1767_v0, %v4568_v1  ;;  %v2014_v37 = vpop.f32.mrf.mxu3  ;;  %v1679_v0 = vadd.f32 %v4599_v6, %v4597_v51 }
 0x21c   : > { %v2059_v17 = vadd.f32 %v2014_v37, %v4626_v42  ;;  %v4711_v42 = vld [vmem:[%s5173_s5] ss:$0 sm:$0xff] }
 0x21d   : > { %3392 = vmatmul.msk.bf16.gmra.mxu1 %vm441_vm1, %v2228_v16  ;;  %v2145_v16 = vpop.f32.mrf.mxu0 }
 0x21e   : > { %v1898_v14 = vpop.f32.mrf.mxu2 }
 0x21f   : > { %v4658_v38 = vadd.f32 %v1898_v14, %v1803_v39 }
 0x222   : > { %v1769_v41 = vpop.f32.mrf.mxu1 }
 0x223   : > { %v1804_v63 = vadd.f32 %v1769_v41, %v4570_v27  ;;  %v2352_v41 = vld [vmem:[#allocation3 + $0x8e] sm:$0xff] }
 0x225   : > { %v2147_v6 = vpop.f32.mrf.mxu0 }
 0x226   : > { %v1900_v44 = vpop.f32.mrf.mxu2 }
 0x227   : > { %v4661_v21 = vadd.f32 %v1900_v44, %v1804_v63  ;;  %v2351_v44 = vld [vmem:[#allocation3 + $0x86] sm:$0xff] }
 0x228   : > { %v2363_v24 = vpack.c.bf16 %v2352_v41, %v2351_v44 }
 0x22a   : > { %v1772_v46 = vpop.f32.mrf.mxu1 }
 0x22b   : > { %3403 = vmatmul.msk.bf16.gmra.mxu2 %vm441_vm1, %v2360_v60  ;;  %v1805_v1 = vadd.f32 %v1772_v46, %v4577_v12  ;;  %v2220_v60 = vld [vmem:[#allocation3 + $0x85] sm:$0xff] }
 0x22c   : > { %v2232_v40 = vpack.c.bf16 %v2221_v28, %v2220_v60 }
 0x22d   : > { %3393 = vmatmul.msk.bf16.gmra.mxu1 %vm441_vm1, %v2229_v47  ;;  %v1681_v47 = vadd.f32 %v4610_v53, %v4608_v15 }
 0x22e   : > { %v1903_v4 = vpop.f32.mrf.mxu2 }
 0x22f   : > { %v4666_v10 = vadd.f32 %v1903_v4, %v1805_v1 }
 0x232   : > { %v1774_v27 = vpop.f32.mrf.mxu1 }
 0x233   : > { %v1806_v55 = vadd.f32 %v1774_v27, %v4579_v22 }
 0x236   : > { %v1905_v34 = vpop.f32.mrf.mxu2 }
 0x237   : > { %v4669_v25 = vadd.f32 %v1905_v34, %v1806_v55 }
 0x23a   : > { %v1777_v33 = vpop.f32.mrf.mxu1 }
 0x23b   : > { %3404 = vmatmul.msk.bf16.gmra.mxu2 %vm441_vm1, %v2361_v7  ;;  %v1807_v12 = vadd.f32 %v1777_v33, %v4586_v54  ;;  %v2222_v7 = vld [vmem:[#allocation3 + $0x95] sm:$0xff]  ;;  %v2150_v33 = vpop.f32.mrf.mxu0 }
 0x23d   : > { %3394 = vmatmul.msk.bf16.gmra.mxu1 %vm441_vm1, %v2230_v45 }
 0x23e   : > { %v1908_v2 = vpop.f32.mrf.mxu2 }
 0x23f   : > { %v4674_v19 = vadd.f32 %v1908_v2, %v1807_v12 }
 0x242   : > { %v1779_v22 = vpop.f32.mrf.mxu1 }
 0x243   : > { %v1808_v48 = vadd.f32 %v1779_v22, %v4588_v49  ;;  %v2152_v3 = vpop.f32.mrf.mxu0 }
 0x246   : > { %v1910_v30 = vpop.f32.mrf.mxu2 }
 0x247   : > { %v4677_v52 = vadd.f32 %v1910_v30, %v1808_v48  ;;  %v1683_v48 = vadd.f32 %v1663_v11, %v4619_v56 }
 0x24a   : > { %v1782_v9 = vpop.f32.mrf.mxu1 }
 0x24b   : > { %3405 = vmatmul.msk.bf16.gmra.mxu2 %vm441_vm1, %v2362_v18  ;;  %v1809_v54 = vadd.f32 %v1782_v9, %v4595_v35  ;;  %v2016_v35 = vpop.f32.mrf.mxu3  ;;  %v2355_v9 = vld [vmem:[#allocation3 + $0xa6] sm:$0xff]  ;;  %v2155_v11 = vpop.f32.mrf.mxu0 }
 0x24c   : > { %v2060_v41 = vadd.f32 %v2016_v35, %v4629_v58 }
 0x24d   : > { %3395 = vmatmul.msk.bf16.gmra.mxu1 %vm441_vm1, %v2231_v5 }
 0x24e   : > { %v1913_v20 = vpop.f32.mrf.mxu2 }
 0x24f   : > { %v4682_v49 = vadd.f32 %v1913_v20, %v1809_v54  ;;  %v2225_v20 = vld [vmem:[#allocation3 + $0xad] sm:$0xff] }
 0x252   : > { %v1784_v23 = vpop.f32.mrf.mxu1 }
 0x253   : > { %v1810_v39 = vadd.f32 %v1784_v23, %v1679_v0  ;;  %v2019_v27 = vpop.f32.mrf.mxu3  ;;  %v2365_v0 = vpack.c.bf16 %v2356_v8, %v2355_v9  ;;  %v2190_v23 = vadd.f32 %v2145_v16, %v2059_v17 }
 0x254   : > { %v2061_v58 = vadd.f32 %v2019_v27, %v4640_v50 }
 0x256   : > { %v1915_v14 = vpop.f32.mrf.mxu2 }
 0x257   : > { %v4686_v63 = vadd.f32 %v1915_v14, %v1810_v39 }
 0x25a   : > { %v1787_v36 = vpop.f32.mrf.mxu1 }
 0x25b   : > { %3406 = vmatmul.msk.bf16.gmra.mxu2 %vm441_vm1, %v2363_v24  ;;  %v1811_v46 = vadd.f32 %v1787_v36, %v4606_v62  ;;  %v2223_v62 = vld [vmem:[#allocation3 + $0x9d] sm:$0xff]  ;;  %v2021_v22 = vpop.f32.mrf.mxu3  ;;  %v2191_v24 = vadd.f32 %v2147_v6, %v2060_v41 }
 0x25c   : > { %v2233_v2 = vpack.c.bf16 %v2223_v62, %v2222_v7  ;;  %v2062_v62 = vadd.f32 %v2021_v22, %v4645_v59 }
 0x25d   : > { %3396 = vmatmul.msk.bf16.gmra.mxu1 %vm441_vm1, %v2232_v40  ;;  %v2157_v40 = vpop.f32.mrf.mxu0 }
 0x25e   : > { %v1918_v51 = vpop.f32.mrf.mxu2 }
 0x25f   : > { %v4691_v1 = vadd.f32 %v1918_v51, %v1811_v46 }
 0x262   : > { %v1789_v4 = vpop.f32.mrf.mxu1 }
 0x263   : > { %v1812_v55 = vadd.f32 %v1789_v4, %v1681_v47  ;;  %v2024_v54 = vpop.f32.mrf.mxu3  ;;  %v2192_v4 = vadd.f32 %v2150_v33, %v2061_v58  ;;  %v2193_v33 = vadd.f32 %v2152_v3, %v2062_v62 }
 0x264   : > { %v2063_v22 = vadd.f32 %v2024_v54, %v4650_v29 }
 0x266   : > { %v1920_v34 = vpop.f32.mrf.mxu2 }
 0x267   : > { %v4695_v61 = vadd.f32 %v1920_v34, %v1812_v55 }
 0x26a   : > { %v1792_v12 = vpop.f32.mrf.mxu1 }
 0x26b   : > { %3407 = vmatmul.msk.bf16.gmra.mxu2 %vm441_vm1, %v2364_v31  ;;  %v1813_v45 = vadd.f32 %v1792_v12, %v4617_v57  ;;  %v2224_v57 = vld [vmem:[#allocation3 + $0xa5] sm:$0xff]  ;;  %v2026_v28 = vpop.f32.mrf.mxu3  ;;  %v4726_v31 = vpop.f32.mrf.mxu0 }
 0x26c   : > { %v2234_v56 = vpack.c.bf16 %v2225_v20, %v2224_v57 }
 0x26d   : > { %3397 = vmatmul.msk.bf16.gmra.mxu1 %vm441_vm1, %v2233_v2  ;;  %v2950_v2 = vld [vmem:[#allocation2 + $0x13] sm:$0xff] }
 0x26e   : > { %v1923_v15 = vpop.f32.mrf.mxu2 }
 0x26f   : > { %v4700_v53 = vadd.f32 %v1923_v15, %v1813_v45  ;;  %v2951_v15 = vld [vmem:[#allocation2 + $0x1b] sm:$0xff] }
 0x270   : > { %v2968_v17 = vpack.c.bf16 %v2951_v15, %v2950_v2 }
 0x272   : > { %v1794_v30 = vpop.f32.mrf.mxu1  ;;  %3436 = vmatmul.msk.bf16.vlgmr.msra.gmra.mxu0 %vm441_vm1, %v2968_v17 }
 0x273   : > { %v1814_v43 = vadd.f32 %v1794_v30, %v1683_v48  ;;  %v4722_v32 = vpop.f32.mrf.mxu3  ;;  %v4739_v41 = vpop.f32.mrf.mxu0 }
 0x276   : > { %v1925_v18 = vpop.f32.mrf.mxu2 }
 0x277   : > { %v4704_v5 = vadd.f32 %v1925_v18, %v1814_v43 }
 0x27a   : > { %v2276_v39 = vpop.f32.mrf.mxu1 }
 0x27b   : > { %3408 = vmatmul.msk.bf16.gmra.mxu2 %vm441_vm1, %v2365_v0  ;;  %v2321_v14 = vadd.f32 %v2276_v39, %v2190_v23  ;;  %v4733_v9 = vpop.f32.mrf.mxu3  ;;  %v2194_v39 = vadd.f32 %v2155_v11, %v2063_v22 }
 0x27d   : > { %3398 = vmatmul.msk.bf16.gmra.mxu1 %vm441_vm1, %v2234_v56 }
 0x27e   : > { %v2407_v37 = vpop.f32.mrf.mxu2 }
 0x27f   : > { %v2452_v44 = vadd.f32 %v2407_v37, %v2321_v14 }
 0x281   : > { %v4715_v16 = vadd.f32 %v4711_v42, %v2452_v44  ;;  %v2064_v44 = vadd.f32 %v2026_v28, %v4653_v13 }
 0x282   : > { %v2278_v36 = vpop.f32.mrf.mxu1 }
 0x283   : > { %v3409_v60 = vmul.f32 -1.442695, %v4715_v16  ;;  %v2322_v46 = vadd.f32 %v2278_v36, %v2191_v24 }
 0x285   : > { %3672 = vpow2.f32 %v3409_v60 }
 0x286   : > { %v2409_v35 = vpop.f32.mrf.mxu2 }
 0x287   : > { %v2453_v51 = vadd.f32 %v2409_v35, %v2322_v46  ;;  %v4746_v35 = vpop.f32.mrf.mxu3 }
 0x289   : > { %v4720_v47 = vadd.f32 %v4711_v42, %v2453_v51 }
 0x28a   : > { %v2281_v55 = vpop.f32.mrf.mxu1 }
 0x28b   : > { %v3673_v34 = vpop.eup %3672  ;;  %v3410_v6 = vmul.f32 -1.442695, %v4720_v47  ;;  %v2323_v26 = vadd.f32 %v2281_v55, %v2192_v4 }
 0x28c   : > { %v2546_v7 = vadd.f32 1.0, %v3673_v34  ;;  %v2195_v34 = vadd.f32 %v2157_v40, %v2064_v44 }
 0x28d   : > { %3674 = vpow2.f32 %v3410_v6 }
 0x28e   : > { %3676 = vrcp.f32 %v2546_v7  ;;  %v2412_v50 = vpop.f32.mrf.mxu2  ;;  %v2573_v46 = vand.u32 2147483647, %v2546_v7  ;;  %v2575_v58 = vand.u32 2147483648, %v2546_v7  ;;  %vm2569_vm11 = vweird.f32 %v2546_v7 }
 0x28f   : > { %v2454_v27 = vadd.f32 %v2412_v50, %v2323_v26 }
 0x290   : > { %vm2574_vm14 = vcmp.eq.f32.partialorder %v2573_v46, 8.507059e+37  ;;  %v2576_v50 = vor.u32 1.1754944e-38, %v2575_v58  ;;  %v2066_v46 = vadd.f32 %v4733_v9, %v4661_v21 }
 0x291   : > { %v4729_v12 = vadd.f32 %v4711_v42, %v2454_v27  ;;  %v2952_v27 = vld [vmem:[#allocation2 + $0x23] sm:$0xff] }
 0x292   : > { %v2283_v45 = vpop.f32.mrf.mxu1 }
 0x293   : > { %v3675_v48 = vpop.eup %3674  ;;  %v3411_v30 = vmul.f32 -1.442695, %v4729_v12  ;;  %v2324_v43 = vadd.f32 %v2283_v45, %v2193_v33  ;;  %v2953_v33 = vld [vmem:[#allocation2 + $0x2b] sm:$0xff] }
 0x294   : > { %v3677_v18 = vpop.eup %3676  ;;  %v2547_v59 = vadd.f32 1.0, %v3675_v48  ;;  %v2969_v40 = vpack.c.bf16 %v2953_v33, %v2952_v27 }
 0x295   : > { %v2565_v8 = vmul.f32 %v3677_v18, %v2546_v7  ;;  %3678 = vpow2.f32 %v3411_v30  ;;  %vm2570_vm0 = vweird.f32 %v3677_v18 }
 0x296   : > { %3680 = vrcp.f32 %v2547_v59  ;;  %v2414_v3 = vpop.f32.mrf.mxu2  ;;  %vm4748_vm12 = vmor %vm2569_vm11, %vm2570_vm0  ;;  %v2588_v13 = vand.u32 2147483647, %v2547_v59  ;;  %v2590_v28 = vand.u32 2147483648, %v2547_v59  ;;  %vm2584_vm15 = vweird.f32 %v2547_v59  ;;  %3437 = vmatmul.msk.bf16.gmra.mxu0 %vm441_vm1, %v2969_v40 }
 0x297   : > { %v2566_v57 = vsub.f32 1.0, %v2565_v8  ;;  %v2455_v20 = vadd.f32 %v2414_v3, %v2324_v43  ;;  %v2065_v43 = vadd.f32 %v4722_v32, %v4658_v38 }
 0x298   : > { %vm2589_vm3 = vcmp.eq.f32.partialorder %v2588_v13, 8.507059e+37 }
 0x299   : > { %v2567_v0 = vmul.f32 %v3677_v18, %v2566_v57  ;;  %v4737_v23 = vadd.f32 %v4711_v42, %v2455_v20 }
 0x29a   : > { %v2286_v14 = vpop.f32.mrf.mxu1 }
 0x29b   : > { %v3679_v56 = vpop.eup %3678  ;;  %v3412_v29 = vmul.f32 -1.442695, %v4737_v23  ;;  %v2325_v54 = vadd.f32 %v2286_v14, %v2194_v39  ;;  %v2568_v36 = vadd.f32 %v3677_v18, %v2567_v0  ;;  %v4773_v14 = vpop.f32.mrf.mxu3 }
 0x29c   : > { %v3681_v37 = vpop.eup %3680  ;;  %v4743_v24 = vadd.f32 1.0, %v3679_v56 }
 0x29d   : > { %v2580_v60 = vmul.f32 %v3681_v37, %v2547_v59  ;;  %3682 = vpow2.f32 %v3412_v29  ;;  %v2572_v6 = vsel %vm4748_vm12, %v3677_v18, %v2568_v36  ;;  %vm2585_vm13 = vweird.f32 %v3681_v37  ;;  %v4765_v59 = vpop.f32.mrf.mxu0 }
 0x29e   : > { %3684 = vrcp.f32 %v4743_v24  ;;  %v2417_v11 = vpop.f32.mrf.mxu2  ;;  %v2577_v17 = vsel %vm2574_vm14, %v2576_v50, %v2572_v6  ;;  %vm2586_vm2 = vmor %vm2584_vm15, %vm2585_vm13  ;;  %v2591_v18 = vor.u32 1.1754944e-38, %v2590_v28  ;;  %vm2599_vm5 = vweird.f32 %v4743_v24 }
 0x29f   : > { %v2581_v51 = vsub.f32 1.0, %v2580_v60  ;;  %v2456_v4 = vadd.f32 %v2417_v11, %v2325_v54  ;;  %v2834_v32 = vmul.f32 %v2577_v17, %v4715_v16 }
 0x2a1   : > { %v2582_v26 = vmul.f32 %v3681_v37, %v2581_v51  ;;  %v4755_v62 = vadd.f32 %v4711_v42, %v2456_v4  ;;  %v2605_v4 = vand.u32 2147483648, %v4743_v24 }
 0x2a2   : > { %v2288_v7 = vpop.f32.mrf.mxu1 }
 0x2a3   : > { %v3683_v45 = vpop.eup %3682  ;;  %v2583_v2 = vadd.f32 %v3681_v37, %v2582_v26  ;;  %v3413_v15 = vmul.f32 -1.442695, %v4755_v62  ;;  %v2326_v48 = vadd.f32 %v2288_v7, %v2195_v34  ;;  %v2197_v26 = vadd.f32 %v4739_v41, %v2066_v46 }
 0x2a4   : > { %v4758_v30 = vpop.eup %3684  ;;  %v4763_v22 = vadd.f32 1.0, %v3683_v45  ;;  %v2606_v27 = vor.u32 1.1754944e-38, %v2605_v4  ;;  %v2954_v45 = vld [vmem:[#allocation2 + $0x33] sm:$0xff]  ;;  %v2068_v46 = vadd.f32 %v4773_v14, %v4669_v25 }
 0x2a5   : > { %v2587_v8 = vsel %vm2586_vm2, %v3681_v37, %v2583_v2  ;;  %v2595_v3 = vmul.f32 %v4758_v30, %v4743_v24  ;;  %3686 = vpow2.f32 %v3413_v15  ;;  %v2196_v37 = vadd.f32 %v4726_v31, %v2065_v43  ;;  %v4792_v13 = vpop.f32.mrf.mxu0  ;;  %v2955_v2 = vld [vmem:[#allocation2 + $0x3b] sm:$0xff] }
 0x2a6   : > { %v2592_v57 = vsel %vm2589_vm3, %v2591_v18, %v2587_v8  ;;  %3688 = vrcp.f32 %v4763_v22  ;;  %v2419_v38 = vpop.f32.mrf.mxu2  ;;  %vm2600_vm4 = vweird.f32 %v4758_v30  ;;  %v2603_v31 = vand.u32 2147483647, %v4743_v24 }
 0x2a7   : > { %v2835_v20 = vmul.f32 %v2592_v57, %v4720_v47  ;;  %v2596_v0 = vsub.f32 1.0, %v2595_v3  ;;  %v2457_v39 = vadd.f32 %v2419_v38, %v2326_v48  ;;  %vm4795_vm6 = vmor %vm2599_vm5, %vm2600_vm4  ;;  %v2618_v34 = vand.u32 2147483647, %v4763_v22  ;;  %v4809_v48 = vpop.f32.mrf.mxu3 }
 0x2a8   : > { %v2620_v6 = vand.u32 2147483648, %v4763_v22  ;;  %vm2604_vm8 = vcmp.eq.f32.partialorder %v2603_v31, 8.507059e+37  ;;  %vm2614_vm9 = vweird.f32 %v4763_v22  ;;  %v2067_v18 = vadd.f32 %v4746_v35, %v4666_v10 }
 0x2a9   : > { %v2852_v56 = vpack.c.bf16 %v2835_v20, %v2834_v32  ;;  %v2597_v29 = vmul.f32 %v4758_v30, %v2596_v0  ;;  %v4777_v54 = vadd.f32 %v4711_v42, %v2457_v39  ;;  %vm2619_vm0 = vcmp.eq.f32.partialorder %v2618_v34, 8.507059e+37 }
 0x2aa   : > { %v2291_v44 = vpop.f32.mrf.mxu1 }
 0x2ab   : > { %v3687_v36 = vpop.eup %3686  ;;  %v3414_v60 = vmul.f32 -1.442695, %v4777_v54  ;;  %3427 = vmatmul.msk.bf16.vlgmr.msrb.gmra.mxu3 %vm441_vm1, %v2852_v56  ;;  %v2327_v16 = vadd.f32 %v2291_v44, %v2196_v37  ;;  %v2598_v11 = vadd.f32 %v4758_v30, %v2597_v29 }
 0x2ac   : > { %v3689_v47 = vpop.eup %3688  ;;  %v4784_v58 = vadd.f32 1.0, %v3687_v36  ;;  %v2198_v36 = vadd.f32 %v4765_v59, %v2067_v18 }
 0x2ad   : > { %v2610_v51 = vmul.f32 %v3689_v47, %v4763_v22  ;;  %3690 = vpow2.f32 %v3414_v60  ;;  %v2602_v50 = vsel %vm4795_vm6, %v4758_v30, %v2598_v11  ;;  %vm2615_vm7 = vweird.f32 %v3689_v47  ;;  %v4825_v56 = vpop.f32.mrf.mxu0 }
 0x2ae   : > { %3692 = vrcp.f32 %v4784_v58  ;;  %v2422_v55 = vpop.f32.mrf.mxu2  ;;  %v2970_v30 = vpack.c.bf16 %v2955_v2, %v2954_v45  ;;  %v2607_v8 = vsel %vm2604_vm8, %v2606_v27, %v2602_v50  ;;  %vm2616_vm10 = vmor %vm2614_vm9, %vm2615_vm7  ;;  %v2621_v22 = vor.u32 1.1754944e-38, %v2620_v6  ;;  %v2957_v45 = vld [vmem:[#allocation2 + $0x4b] sm:$0xff] }
 0x2af   : > { %v2611_v21 = vsub.f32 1.0, %v2610_v51  ;;  %v2458_v9 = vadd.f32 %v2422_v55, %v2327_v16  ;;  %v2836_v10 = vmul.f32 %v2607_v8, %v4729_v12  ;;  %v2041_v51 = vpop.f32.mrf.mxu3  ;;  %v2633_v4 = vand.u32 2147483647, %v4784_v58 }
 0x2b0   : > { %3438 = vmatmul.msk.bf16.gmra.mxu0 %vm441_vm1, %v2970_v30  ;;  %v2635_v55 = vand.u32 2147483648, %v4784_v58  ;;  %vm2629_vm12 = vweird.f32 %v4784_v58  ;;  %v2199_v6 = vadd.f32 %v4792_v13, %v2068_v46 }
 0x2b1   : > { %v2612_v7 = vmul.f32 %v3689_v47, %v2611_v21  ;;  %v4806_v24 = vadd.f32 %v4711_v42, %v2458_v9  ;;  %vm2634_vm15 = vcmp.eq.f32.partialorder %v2633_v4, 8.507059e+37 }
 0x2b2   : > { %v2293_v33 = vpop.f32.mrf.mxu1 }
 0x2b3   : > { %v3691_v15 = vpop.eup %3690  ;;  %v2613_v41 = vadd.f32 %v3689_v47, %v2612_v7  ;;  %v3415_v40 = vmul.f32 -1.442695, %v4806_v24  ;;  %v2328_v43 = vadd.f32 %v2293_v33, %v2197_v26  ;;  %v2636_v7 = vor.u32 1.1754944e-38, %v2635_v55  ;;  %v2956_v33 = vld [vmem:[#allocation2 + $0x43] sm:$0xff] }
 0x2b4   : > { %v4812_v17 = vpop.eup %3692  ;;  %v4817_v3 = vadd.f32 1.0, %v3691_v15 }
 0x2b5   : > { %v2617_v57 = vsel %vm2616_vm10, %v3689_v47, %v2613_v41  ;;  %v2625_v38 = vmul.f32 %v4812_v17, %v4784_v58  ;;  %3694 = vpow2.f32 %v3415_v40  ;;  %vm2630_vm11 = vweird.f32 %v4812_v17  ;;  %v2172_v15 = vpop.f32.mrf.mxu0 }
 0x2b6   : > { %v2622_v32 = vsel %vm2619_vm0, %v2621_v22, %v2617_v57  ;;  %3696 = vrcp.f32 %v4817_v3  ;;  %v2424_v20 = vpop.f32.mrf.mxu2  ;;  %vm4845_vm13 = vmor %vm2629_vm12, %vm2630_vm11  ;;  %v2648_v28 = vand.u32 2147483647, %v4817_v3  ;;  %v2650_v34 = vand.u32 2147483648, %v4817_v3 }
 0x2b7   : > { %v2837_v35 = vmul.f32 %v2622_v32, %v4737_v23  ;;  %v2626_v0 = vsub.f32 1.0, %v2625_v38  ;;  %v2459_v39 = vadd.f32 %v2424_v20, %v2328_v43  ;;  %vm2644_vm2 = vweird.f32 %v4817_v3  ;;  %v2044_v20 = vpop.f32.mrf.mxu3 }
 0x2b8   : > { %v2971_v43 = vpack.c.bf16 %v2957_v45, %v2956_v33  ;;  %v2651_v8 = vor.u32 1.1754944e-38, %v2650_v34  ;;  %vm2649_vm4 = vcmp.eq.f32.partialorder %v2648_v28, 8.507059e+37 }
 0x2b9   : > { %v2627_v29 = vmul.f32 %v4812_v17, %v2626_v0  ;;  %v4829_v37 = vadd.f32 %v4711_v42, %v2459_v39  ;;  %v2853_v44 = vpack.c.bf16 %v2837_v35, %v2836_v10 }
 0x2ba   : > { %v2296_v60 = vpop.f32.mrf.mxu1 }
 0x2bb   : > { %v3695_v16 = vpop.eup %3694  ;;  %v3416_v47 = vmul.f32 -1.442695, %v4829_v37  ;;  %3428 = vmatmul.msk.bf16.gmra.mxu3 %vm441_vm1, %v2853_v44  ;;  %v2329_v12 = vadd.f32 %v2296_v60, %v2198_v36  ;;  %v2628_v31 = vadd.f32 %v4812_v17, %v2627_v29 }
 0x2bc   : > { %v3697_v23 = vpop.eup %3696  ;;  %v4836_v11 = vadd.f32 1.0, %v3695_v16 }
 0x2bd   : > { %v2640_v59 = vmul.f32 %v3697_v23, %v4817_v3  ;;  %3698 = vpow2.f32 %v3416_v47  ;;  %v2632_v26 = vsel %vm4845_vm13, %v4812_v17, %v2628_v31  ;;  %vm2645_vm14 = vweird.f32 %v3697_v23 }
 0x2be   : > { %3700 = vrcp.f32 %v4836_v11  ;;  %v2427_v21 = vpop.f32.mrf.mxu2  ;;  %v2069_v17 = vadd.f32 %v4809_v48, %v4674_v19  ;;  %v2637_v18 = vsel %vm2634_vm15, %v2636_v7, %v2632_v26  ;;  %vm2646_vm3 = vmor %vm2644_vm2, %vm2645_vm14  ;;  %vm2659_vm6 = vweird.f32 %v4836_v11  ;;  %v2959_v7 = vld [vmem:[#allocation2 + $0x5b] sm:$0xff] }
 0x2bf   : > { %v2641_v25 = vsub.f32 1.0, %v2640_v59  ;;  %v2460_v14 = vadd.f32 %v2427_v21, %v2329_v12  ;;  %v2838_v19 = vmul.f32 %v2637_v18, %v4755_v62  ;;  %v2665_v59 = vand.u32 2147483648, %v4836_v11  ;;  %v2046_v9 = vpop.f32.mrf.mxu3 }
 0x2c0   : > { %3439 = vmatmul.msk.bf16.gmra.mxu0 %vm441_vm1, %v2971_v43  ;;  %v2200_v44 = vadd.f32 %v4825_v56, %v2069_v17  ;;  %v2663_v56 = vand.u32 2147483647, %v4836_v11 }
 0x2c1   : > { %v2642_v50 = vmul.f32 %v3697_v23, %v2641_v25  ;;  %v4856_v58 = vadd.f32 %v4711_v42, %v2460_v14 }
 0x2c2   : > { %v2298_v27 = vpop.f32.mrf.mxu1  ;;  %vm2664_vm9 = vcmp.eq.f32.partialorder %v2663_v56, 8.507059e+37 }
 0x2c3   : > { %v3699_v2 = vpop.eup %3698  ;;  %v2643_v41 = vadd.f32 %v3697_v23, %v2642_v50  ;;  %v3417_v13 = vmul.f32 -1.442695, %v4856_v58  ;;  %v2330_v40 = vadd.f32 %v2298_v27, %v2199_v6  ;;  %v2666_v6 = vor.u32 1.1754944e-38, %v2665_v59  ;;  %v2958_v50 = vld [vmem:[#allocation2 + $0x53] sm:$0xff] }
 0x2c4   : > { %v4860_v30 = vpop.eup %3700  ;;  %v4865_v22 = vadd.f32 1.0, %v3699_v2 }
 0x2c5   : > { %v2647_v3 = vsel %vm2646_vm3, %v3697_v23, %v2643_v41  ;;  %v2655_v57 = vmul.f32 %v4860_v30, %v4836_v11  ;;  %3702 = vpow2.f32 %v3417_v13  ;;  %v2175_v23 = vpop.f32.mrf.mxu0  ;;  %vm2660_vm5 = vweird.f32 %v4860_v30 }
 0x2c6   : > { %v2652_v38 = vsel %vm2649_vm4, %v2651_v8, %v2647_v3  ;;  %3704 = vrcp.f32 %v4865_v22  ;;  %v2429_v32 = vpop.f32.mrf.mxu2  ;;  %vm4890_vm7 = vmor %vm2659_vm6, %vm2660_vm5  ;;  %v2678_v21 = vand.u32 2147483647, %v4865_v22  ;;  %v2680_v25 = vand.u32 2147483648, %v4865_v22 }
 0x2c7   : > { %v2839_v48 = vmul.f32 %v2652_v38, %v4777_v54  ;;  %v2656_v10 = vsub.f32 1.0, %v2655_v57  ;;  %v2461_v35 = vadd.f32 %v2429_v32, %v2330_v40  ;;  %v2070_v54 = vadd.f32 %v2041_v51, %v4677_v52 }
 0x2c8   : > { %vm2674_vm10 = vweird.f32 %v4865_v22  ;;  %v2071_v13 = vadd.f32 %v2044_v20, %v4682_v49  ;;  %v2681_v43 = vor.u32 1.1754944e-38, %v2680_v25  ;;  %vm2679_vm11 = vcmp.eq.f32.partialorder %v2678_v21, 8.507059e+37 }
 0x2c9   : > { %v2657_v0 = vmul.f32 %v4860_v30, %v2656_v10  ;;  %v4875_v39 = vadd.f32 %v4711_v42, %v2461_v35  ;;  %v2854_v29 = vpack.c.bf16 %v2839_v48, %v2838_v19  ;;  %v2201_v14 = vadd.f32 %v2172_v15, %v2070_v54 }
 0x2ca   : > { %v2301_v36 = vpop.f32.mrf.mxu1  ;;  %v2972_v15 = vpack.c.bf16 %v2959_v7, %v2958_v50  ;;  %v2202_v10 = vadd.f32 %v2175_v23, %v2071_v13 }
 0x2cb   : > { %v3703_v60 = vpop.eup %3702  ;;  %v3418_v16 = vmul.f32 -1.442695, %v4875_v39  ;;  %3429 = vmatmul.msk.bf16.gmra.mxu3 %vm441_vm1, %v2854_v29  ;;  %v2331_v47 = vadd.f32 %v2301_v36, %v2200_v44  ;;  %v2658_v46 = vadd.f32 %v4860_v30, %v2657_v0  ;;  %v2049_v29 = vpop.f32.mrf.mxu3 }
 0x2cc   : > { %v3705_v62 = vpop.eup %3704  ;;  %v4881_v12 = vadd.f32 1.0, %v3703_v60 }
 0x2cd   : > { %v2670_v31 = vmul.f32 %v3705_v62, %v4865_v22  ;;  %3706 = vpow2.f32 %v3418_v16  ;;  %v2662_v28 = vsel %vm4890_vm7, %v4860_v30, %v2658_v46  ;;  %vm2675_vm8 = vweird.f32 %v3705_v62  ;;  %v2177_v3 = vpop.f32.mrf.mxu0 }
 0x2ce   : > { %3708 = vrcp.f32 %v4881_v12  ;;  %v2432_v4 = vpop.f32.mrf.mxu2  ;;  %v2667_v40 = vsel %vm2664_vm9, %v2666_v6, %v2662_v28  ;;  %vm2676_vm0 = vmor %vm2674_vm10, %vm2675_vm8  ;;  %v2695_v54 = vand.u32 2147483648, %v4881_v12  ;;  %vm2689_vm13 = vweird.f32 %v4881_v12 }
 0x2cf   : > { %v2671_v52 = vsub.f32 1.0, %v2670_v31  ;;  %v2462_v51 = vadd.f32 %v2432_v4, %v2331_v47  ;;  %v2840_v49 = vmul.f32 %v2667_v40, %v4806_v24 }
 0x2d0   : > { %3440 = vmatmul.msk.bf16.gmra.mxu0 %vm441_vm1, %v2972_v15  ;;  %v2696_v21 = vor.u32 1.1754944e-38, %v2695_v54 }
 0x2d1   : > { %v2672_v34 = vmul.f32 %v3705_v62, %v2671_v52  ;;  %v4900_v11 = vadd.f32 %v4711_v42, %v2462_v51 }
 0x2d2   : > { %v2303_v26 = vpop.f32.mrf.mxu1 }
 0x2d3   : > { %v3707_v27 = vpop.eup %3706  ;;  %v2673_v33 = vadd.f32 %v3705_v62, %v2672_v34  ;;  %v3419_v45 = vmul.f32 -1.442695, %v4900_v11  ;;  %v2332_v2 = vadd.f32 %v2303_v26, %v2201_v14  ;;  %v2960_v14 = vld [vmem:[#allocation2 + $0x63] sm:$0xff]  ;;  %v2051_v15 = vpop.f32.mrf.mxu3 }
 0x2d4   : > { %v4904_v41 = vpop.eup %3708  ;;  %v4908_v30 = vadd.f32 1.0, %v3707_v27  ;;  %v2073_v27 = vadd.f32 %v2049_v29, %v4691_v1 }
 0x2d5   : > { %v2677_v17 = vsel %vm2676_vm0, %v3705_v62, %v2673_v33  ;;  %v2685_v18 = vmul.f32 %v4904_v41, %v4881_v12  ;;  %3710 = vpow2.f32 %v3419_v45  ;;  %vm2690_vm12 = vweird.f32 %v4904_v41  ;;  %v2180_v52 = vpop.f32.mrf.mxu0 }
 0x2d6   : > { %v2682_v8 = vsel %vm2679_vm11, %v2681_v43, %v2677_v17  ;;  %3712 = vrcp.f32 %v4908_v30  ;;  %v2434_v22 = vpop.f32.mrf.mxu2  ;;  %v2693_v62 = vand.u32 2147483647, %v4881_v12  ;;  %vm4932_vm14 = vmor %vm2689_vm13, %vm2690_vm12  ;;  %v2708_v56 = vand.u32 2147483647, %v4908_v30 }
 0x2d7   : > { %v2841_v57 = vmul.f32 %v2682_v8, %v4829_v37  ;;  %v2686_v38 = vsub.f32 1.0, %v2685_v18  ;;  %v2463_v32 = vadd.f32 %v2434_v22, %v2332_v2  ;;  %v2072_v37 = vadd.f32 %v2046_v9, %v4686_v63  ;;  %v2961_v9 = vld [vmem:[#allocation2 + $0x6b] sm:$0xff] }
 0x2d8   : > { %v2710_v59 = vand.u32 2147483648, %v4908_v30  ;;  %vm2694_vm2 = vcmp.eq.f32.partialorder %v2693_v62, 8.507059e+37  ;;  %vm2704_vm3 = vweird.f32 %v4908_v30  ;;  %v2973_v50 = vpack.c.bf16 %v2961_v9, %v2960_v14 }
 0x2d9   : > { %v2687_v20 = vmul.f32 %v4904_v41, %v2686_v38  ;;  %v4918_v19 = vadd.f32 %v4711_v42, %v2463_v32  ;;  %v2855_v48 = vpack.c.bf16 %v2841_v57, %v2840_v49  ;;  %v2203_v4 = vadd.f32 %v2177_v3, %v2072_v37 }
 0x2da   : > { %v2306_v35 = vpop.f32.mrf.mxu1  ;;  %v2711_v45 = vor.u32 1.1754944e-38, %v2710_v59  ;;  %vm2709_vm5 = vcmp.eq.f32.partialorder %v2708_v56, 8.507059e+37  ;;  %v2204_v49 = vadd.f32 %v2180_v52, %v2073_v27  ;;  %v2962_v56 = vld [vmem:[#allocation2 + $0x73] sm:$0xff]  ;;  %v2963_v59 = vld [vmem:[#allocation2 + $0x7b] sm:$0xff] }
 0x2db   : > { %v3711_v0 = vpop.eup %3710  ;;  %v3420_v44 = vmul.f32 -1.442695, %v4918_v19  ;;  %3430 = vmatmul.msk.bf16.gmra.mxu3 %vm441_vm1, %v2855_v48  ;;  %v2333_v36 = vadd.f32 %v2306_v35, %v2202_v10  ;;  %v2688_v16 = vadd.f32 %v4904_v41, %v2687_v20 }
 0x2dc   : > { %v3713_v24 = vpop.eup %3712  ;;  %v4923_v60 = vadd.f32 1.0, %v3711_v0 }
 0x2dd   : > { %v2700_v47 = vmul.f32 %v3713_v24, %v4908_v30  ;;  %3714 = vpow2.f32 %v3420_v44  ;;  %v2692_v51 = vsel %vm4932_vm14, %v4904_v41, %v2688_v16  ;;  %vm2705_vm15 = vweird.f32 %v3713_v24  ;;  %v2182_v32 = vpop.f32.mrf.mxu0 }
 0x2de   : > { %3716 = vrcp.f32 %v4923_v60  ;;  %v2437_v23 = vpop.f32.mrf.mxu2  ;;  %v2697_v33 = vsel %vm2694_vm2, %v2696_v21, %v2692_v51  ;;  %vm2706_vm4 = vmor %vm2704_vm3, %vm2705_vm15  ;;  %v2723_v29 = vand.u32 2147483647, %v4923_v60  ;;  %v2725_v44 = vand.u32 2147483648, %v4923_v60 }
 0x2df   : > { %v2701_v46 = vsub.f32 1.0, %v2700_v47  ;;  %v2464_v63 = vadd.f32 %v2437_v23, %v2333_v36  ;;  %v2842_v1 = vmul.f32 %v2697_v33, %v4856_v58  ;;  %vm2719_vm7 = vweird.f32 %v4923_v60 }
 0x2e0   : > { %3441 = vmatmul.msk.bf16.gmra.mxu0 %vm441_vm1, %v2973_v50  ;;  %vm2724_vm10 = vcmp.eq.f32.partialorder %v2723_v29, 8.507059e+37  ;;  %v2974_v21 = vpack.c.bf16 %v2963_v59, %v2962_v56 }
 0x2e1   : > { %v2702_v55 = vmul.f32 %v3713_v24, %v2701_v46  ;;  %v4942_v12 = vadd.f32 %v4711_v42, %v2464_v63 }
 0x2e2   : > { %v2308_v25 = vpop.f32.mrf.mxu1 }
 0x2e3   : > { %v3715_v28 = vpop.eup %3714  ;;  %v2703_v34 = vadd.f32 %v3713_v24, %v2702_v55  ;;  %v3421_v6 = vmul.f32 -1.442695, %v4942_v12  ;;  %v2334_v26 = vadd.f32 %v2308_v25, %v2203_v4 }
 0x2e4   : > { %v4946_v7 = vpop.eup %3716  ;;  %v4950_v2 = vadd.f32 1.0, %v3715_v28 }
 0x2e5   : > { %v2707_v41 = vsel %vm2706_vm4, %v3713_v24, %v2703_v34  ;;  %v2715_v13 = vmul.f32 %v4946_v7, %v4923_v60  ;;  %3718 = vpow2.f32 %v3421_v6  ;;  %vm2720_vm6 = vweird.f32 %v4946_v7  ;;  %v2054_v24 = vpop.f32.mrf.mxu3  ;;  %v2185_v6 = vpop.f32.mrf.mxu0 }
 0x2e6   : > { %v2712_v40 = vsel %vm2709_vm5, %v2711_v45, %v2707_v41  ;;  %3720 = vrcp.f32 %v4950_v2  ;;  %v2439_v43 = vpop.f32.mrf.mxu2  ;;  %vm4974_vm8 = vmor %vm2719_vm7, %vm2720_vm6  ;;  %v2738_v47 = vand.u32 2147483647, %v4950_v2  ;;  %v2740_v62 = vand.u32 2147483648, %v4950_v2 }
 0x2e7   : > { %v2843_v30 = vmul.f32 %v2712_v40, %v4875_v39  ;;  %v2716_v17 = vsub.f32 1.0, %v2715_v13  ;;  %v2465_v18 = vadd.f32 %v2439_v43, %v2334_v26  ;;  %v2074_v39 = vadd.f32 %v2051_v15, %v4695_v61 }
 0x2e8   : > { %v2726_v60 = vor.u32 1.1754944e-38, %v2725_v44  ;;  %vm2734_vm0 = vweird.f32 %v4950_v2  ;;  %v2075_v14 = vadd.f32 %v2054_v24, %v4700_v53  ;;  %v2741_v28 = vor.u32 1.1754944e-38, %v2740_v62 }
 0x2e9   : > { %v2717_v8 = vmul.f32 %v4946_v7, %v2716_v17  ;;  %v4960_v22 = vadd.f32 %v4711_v42, %v2465_v18  ;;  %v2856_v3 = vpack.c.bf16 %v2843_v30, %v2842_v1  ;;  %v2205_v54 = vadd.f32 %v2182_v32, %v2074_v39 }
 0x2ea   : > { %v2311_v57 = vpop.f32.mrf.mxu1  ;;  %vm2739_vm12 = vcmp.eq.f32.partialorder %v2738_v47, 8.507059e+37  ;;  %v2206_v43 = vadd.f32 %v2185_v6, %v2075_v14 }
 0x2eb   : > { %v3719_v38 = vpop.eup %3718  ;;  %v3422_v20 = vmul.f32 -1.442695, %v4960_v22  ;;  %3431 = vmatmul.msk.bf16.gmra.mxu3 %vm441_vm1, %v2856_v3  ;;  %v2335_v48 = vadd.f32 %v2311_v57, %v2204_v49  ;;  %v2718_v35 = vadd.f32 %v4946_v7, %v2717_v8 }
 0x2ec   : > { %v3721_v58 = vpop.eup %3720  ;;  %v4965_v10 = vadd.f32 1.0, %v3719_v38 }
 0x2ed   : > { %v2730_v0 = vmul.f32 %v3721_v58, %v4950_v2  ;;  %3722 = vpow2.f32 %v3422_v20  ;;  %v2722_v23 = vsel %vm4974_vm8, %v4946_v7, %v2718_v35  ;;  %vm2735_vm9 = vweird.f32 %v3721_v58  ;;  %v2056_v15 = vpop.f32.mrf.mxu3  ;;  %v2187_v20 = vpop.f32.mrf.mxu0 }
 0x2ee   : > { %3724 = vrcp.f32 %v4965_v10  ;;  %v2442_v36 = vpop.f32.mrf.mxu2  ;;  %v2727_v9 = vsel %vm2724_vm10, %v2726_v60, %v2722_v23  ;;  %vm2736_vm11 = vmor %vm2734_vm0, %vm2735_vm9  ;;  %v2753_v57 = vand.u32 2147483647, %v4965_v10  ;;  %v2755_v38 = vand.u32 2147483648, %v4965_v10 }
 0x2ef   : > { %v2731_v61 = vsub.f32 1.0, %v2730_v0  ;;  %v2466_v37 = vadd.f32 %v2442_v36, %v2335_v48  ;;  %v2844_v53 = vmul.f32 %v2727_v9, %v4900_v11  ;;  %vm2749_vm14 = vweird.f32 %v4965_v10 }
 0x2f0   : > { %3442 = vmatmul.msk.bf16.gmra.mxu0 %vm441_vm1, %v2974_v21  ;;  %vm2754_vm3 = vcmp.eq.f32.partialorder %v2753_v57, 8.507059e+37 }
 0x2f1   : > { %v2732_v46 = vmul.f32 %v3721_v58, %v2731_v61  ;;  %v4984_v63 = vadd.f32 %v4711_v42, %v2466_v37  ;;  %v2964_v61 = vld [vmem:[#allocation2 + $0x83] sm:$0xff]  ;;  %v2965_v37 = vld [vmem:[#allocation2 + $0x8b] sm:$0xff] }
 0x2f2   : > { %v2313_v31 = vpop.f32.mrf.mxu1  ;;  %v2975_v23 = vpack.c.bf16 %v2965_v37, %v2964_v61 }
 0x2f3   : > { %v3723_v4 = vpop.eup %3722  ;;  %v2733_v52 = vadd.f32 %v3721_v58, %v2732_v46  ;;  %v3423_v51 = vmul.f32 -1.442695, %v4984_v63  ;;  %v2336_v55 = vadd.f32 %v2313_v31, %v2205_v54 }
 0x2f4   : > { %v4988_v25 = vpop.eup %3724  ;;  %v4992_v34 = vadd.f32 1.0, %v3723_v4 }
 0x2f5   : > { %v2737_v26 = vsel %vm2736_vm11, %v3721_v58, %v2733_v52  ;;  %v2745_v50 = vmul.f32 %v4988_v25, %v4965_v10  ;;  %3726 = vpow2.f32 %v3423_v51  ;;  %vm2750_vm13 = vweird.f32 %v4988_v25 }
 0x2f6   : > { %v2742_v7 = vsel %vm2739_vm12, %v2741_v28, %v2737_v26  ;;  %3728 = vrcp.f32 %v4992_v34  ;;  %v2444_v27 = vpop.f32.mrf.mxu2  ;;  %vm5016_vm15 = vmor %vm2749_vm14, %vm2750_vm13  ;;  %v2768_v39 = vand.u32 2147483647, %v4992_v34  ;;  %v2770_v35 = vand.u32 2147483648, %v4992_v34 }
 0x2f7   : > { %v2845_v33 = vmul.f32 %v2742_v7, %v4918_v19  ;;  %v2746_v45 = vsub.f32 1.0, %v2745_v50  ;;  %v2467_v2 = vadd.f32 %v2444_v27, %v2336_v55  ;;  %v2076_v19 = vadd.f32 %v2056_v15, %v4704_v5 }
 0x2f8   : > { %v2756_v10 = vor.u32 1.1754944e-38, %v2755_v38  ;;  %vm2764_vm4 = vweird.f32 %v4992_v34  ;;  %v2771_v31 = vor.u32 1.1754944e-38, %v2770_v35  ;;  %vm2769_vm6 = vcmp.eq.f32.partialorder %v2768_v39, 8.507059e+37 }
 0x2f9   : > { %v2747_v41 = vmul.f32 %v4988_v25, %v2746_v45  ;;  %v5002_v13 = vadd.f32 %v4711_v42, %v2467_v2  ;;  %v2857_v40 = vpack.c.bf16 %v2845_v33, %v2844_v53  ;;  %v2207_v0 = vadd.f32 %v2187_v20, %v2076_v19  ;;  %v2967_v33 = vld [vmem:[#allocation2 + $0x9b] sm:$0xff] }
 0x2fa   : > { %v2316_v1 = vpop.f32.mrf.mxu1 }
 0x2fb   : > { %v3727_v30 = vpop.eup %3726  ;;  %v3424_v17 = vmul.f32 -1.442695, %v5002_v13  ;;  %3432 = vmatmul.msk.bf16.gmra.mxu3 %vm441_vm1, %v2857_v40  ;;  %v2337_v18 = vadd.f32 %v2316_v1, %v2206_v43  ;;  %v2748_v3 = vadd.f32 %v4988_v25, %v2747_v41 }
 0x2fc   : > { %v3729_v11 = vpop.eup %3728  ;;  %v5007_v8 = vadd.f32 1.0, %v3727_v30  ;;  %v3021_v30 = vpop.f32.mrf.mxu0 }
 0x2fd   : > { %v2760_v49 = vmul.f32 %v3729_v11, %v4992_v34  ;;  %3730 = vpow2.f32 %v3424_v17  ;;  %v2752_v29 = vsel %vm5016_vm15, %v4988_v25, %v2748_v3  ;;  %vm2765_vm2 = vweird.f32 %v3729_v11 }
 0x2fe   : > { %3732 = vrcp.f32 %v5007_v8  ;;  %v2447_v32 = vpop.f32.mrf.mxu2  ;;  %v2757_v60 = vsel %vm2754_vm3, %v2756_v10, %v2752_v29  ;;  %vm2766_vm5 = vmor %vm2764_vm4, %vm2765_vm2  ;;  %vm2779_vm8 = vweird.f32 %v5007_v8 }
 0x2ff   : > { %v2761_v5 = vsub.f32 1.0, %v2760_v49  ;;  %v2468_v48 = vadd.f32 %v2447_v32, %v2337_v18  ;;  %v2846_v55 = vmul.f32 %v2757_v60, %v4942_v12  ;;  %v2785_v12 = vand.u32 2147483648, %v5007_v8 }
 0x300   : > { %3443 = vmatmul.msk.bf16.gmra.mxu0 %vm441_vm1, %v2975_v23 }
 0x301   : > { %v2762_v44 = vmul.f32 %v3729_v11, %v2761_v5  ;;  %v5026_v36 = vadd.f32 %v4711_v42, %v2468_v48  ;;  %v2786_v1 = vor.u32 1.1754944e-38, %v2785_v12 }
 0x302   : > { %v2318_v24 = vpop.f32.mrf.mxu1 }
 0x303   : > { %v3731_v16 = vpop.eup %3730  ;;  %v2763_v47 = vadd.f32 %v3729_v11, %v2762_v44  ;;  %v3425_v62 = vmul.f32 -1.442695, %v5026_v36  ;;  %v2338_v54 = vadd.f32 %v2318_v24, %v2207_v0 }
 0x304   : > { %v3733_v46 = vpop.eup %3732  ;;  %v2561_v56 = vadd.f32 1.0, %v3731_v16  ;;  %v3023_v39 = vpop.f32.mrf.mxu0 }
 0x305   : > { %v2767_v59 = vsel %vm2766_vm5, %v3729_v11, %v2763_v47  ;;  %v2775_v4 = vmul.f32 %v3733_v46, %v5007_v8  ;;  %3734 = vpow2.f32 %v3425_v62  ;;  %vm2780_vm7 = vweird.f32 %v3733_v46 }
 0x306   : > { %v2772_v52 = vsel %vm2769_vm6, %v2771_v31, %v2767_v59  ;;  %3736 = vrcp.f32 %v2561_v56  ;;  %v2449_v51 = vpop.f32.mrf.mxu2  ;;  %vm2781_vm9 = vmor %vm2779_vm8, %vm2780_vm7  ;;  %v2798_v2 = vand.u32 2147483647, %v2561_v56  ;;  %v2800_v15 = vand.u32 2147483648, %v2561_v56  ;;  %v5053_v59 = vld [vmem:[%s5177_s9] ss:$0 sm:$0xff] }
 0x307   : > { %v2847_v21 = vmul.f32 %v2772_v52, %v4960_v22  ;;  %v2776_v25 = vsub.f32 1.0, %v2775_v4  ;;  %v2469_v14 = vadd.f32 %v2449_v51, %v2338_v54  ;;  %v2966_v22 = vld [vmem:[#allocation2 + $0x93] sm:$0xff]  ;;  %vm2794_vm11 = vweird.f32 %v2561_v56  ;;  %v5059_v51 = vld [vmem:[%s5175_s7] ss:$0 sm:$0xff] }
 0x308   : > { %v2976_v43 = vpack.c.bf16 %v2967_v33, %v2966_v22  ;;  %v2801_v3 = vor.u32 1.1754944e-38, %v2800_v15  ;;  %vm2799_vm13 = vcmp.eq.f32.partialorder %v2798_v2, 8.507059e+37  ;;  %vm3102_vm8 = vcmask 130048  }
 0x309   : > { %v2777_v9 = vmul.f32 %v3733_v46, %v2776_v25  ;;  %v5036_v28 = vadd.f32 %v4711_v42, %v2469_v14  ;;  %v2858_v34 = vpack.c.bf16 %v2847_v21, %v2846_v55  ;;  %v2783_v42 = vand.u32 2147483647, %v5007_v8 }
 0x30b   : > { %v3735_v6 = vpop.eup %3734  ;;  %v3426_v26 = vmul.f32 -1.442695, %v5036_v28  ;;  %3433 = vmatmul.msk.bf16.gmra.mxu3 %vm441_vm1, %v2858_v34  ;;  %v2778_v27 = vadd.f32 %v3733_v46, %v2777_v9  ;;  %vm2784_vm0 = vcmp.eq.f32.partialorder %v2783_v42, 8.507059e+37  ;;  %v3024_v34 = vadd.f32 %v5053_v59, %v3023_v39 }
 0x30c   : > { %v3737_v50 = vpop.eup %3736  ;;  %v2562_v7 = vadd.f32 1.0, %v3735_v6 }
 0x30d   : > { %v2790_v53 = vmul.f32 %v3737_v50, %v2561_v56  ;;  %3738 = vpow2.f32 %v3426_v26  ;;  %v2782_v41 = vsel %vm2781_vm9, %v3733_v46, %v2778_v27  ;;  %vm2795_vm10 = vweird.f32 %v3737_v50 }
 0x30e   : > { %3740 = vrcp.f32 %v2562_v7  ;;  %v2787_v19 = vsel %vm2784_vm0, %v2786_v1, %v2782_v41  ;;  %vm2796_vm12 = vmor %vm2794_vm11, %vm2795_vm10  ;;  %v2815_v44 = vand.u32 2147483648, %v2562_v7  ;;  %vm2809_vm15 = vweird.f32 %v2562_v7 }
 0x30f   : > { %v2791_v45 = vsub.f32 1.0, %v2790_v53  ;;  %v2848_v32 = vmul.f32 %v2787_v19, %v4984_v63  ;;  %v2813_v10 = vand.u32 2147483647, %v2562_v7 }
 0x310   : > { %3444 = vmatmul.msk.bf16.gmra.mxu0 %vm441_vm1, %v2976_v43  ;;  %v2816_v16 = vor.u32 1.1754944e-38, %v2815_v44 }
 0x311   : > { %v2792_v40 = vmul.f32 %v3737_v50, %v2791_v45  ;;  %vm2814_vm4 = vcmp.eq.f32.partialorder %v2813_v10, 8.507059e+37 }
 0x313   : > { %v3739_v17 = vpop.eup %3738  ;;  %v2793_v18 = vadd.f32 %v3737_v50, %v2792_v40  ;;  %v3026_v47 = vpop.f32.mrf.mxu0 }
 0x314   : > { %v3741_v11 = vpop.eup %3740  ;;  %v2563_v49 = vadd.f32 1.0, %v3739_v17  ;;  %v3027_v12 = vadd.f32 %v5053_v59, %v3026_v47 }
 0x315   : > { %v2797_v8 = vsel %vm2796_vm12, %v3737_v50, %v2793_v18  ;;  %v2805_v57 = vmul.f32 %v3741_v11, %v2562_v7  ;;  %vm2810_vm14 = vweird.f32 %v3741_v11 }
 0x316   : > { %v2802_v38 = vsel %vm2799_vm13, %v2801_v3, %v2797_v8  ;;  %3742 = vrcp.f32 %v2563_v49  ;;  %vm2811_vm2 = vmor %vm2809_vm15, %vm2810_vm14  ;;  %v2830_v61 = vand.u32 2147483648, %v2563_v49  ;;  %vm2824_vm5 = vweird.f32 %v2563_v49 }
 0x317   : > { %v2849_v20 = vmul.f32 %v2802_v38, %v5002_v13  ;;  %v2806_v5 = vsub.f32 1.0, %v2805_v57  ;;  %v2828_v13 = vand.u32 2147483647, %v2563_v49 }
 0x318   : > { %v2831_v23 = vor.u32 1.1754944e-38, %v2830_v61 }
 0x319   : > { %v2807_v48 = vmul.f32 %v3741_v11, %v2806_v5  ;;  %v2859_v58 = vpack.c.bf16 %v2849_v20, %v2848_v32  ;;  %vm2829_vm7 = vcmp.eq.f32.partialorder %v2828_v13, 8.507059e+37 }
 0x31b   : > { %3434 = vmatmul.msk.bf16.gmra.mxu3 %vm441_vm1, %v2859_v58  ;;  %v2808_v0 = vadd.f32 %v3741_v11, %v2807_v48  ;;  %v3028_v52 = vpop.f32.mrf.mxu0 }
 0x31c   : > { %v3743_v35 = vpop.eup %3742  ;;  %v3029_v43 = vadd.f32 %v5053_v59, %v3028_v52 }
 0x31d   : > { %v2820_v29 = vmul.f32 %v3743_v35, %v2563_v49  ;;  %v2812_v37 = vsel %vm2811_vm2, %v3741_v11, %v2808_v0  ;;  %vm2825_vm3 = vweird.f32 %v3743_v35 }
 0x31e   : > { %v2817_v54 = vsel %vm2814_vm4, %v2816_v16, %v2812_v37  ;;  %vm2826_vm6 = vmor %vm2824_vm5, %vm2825_vm3 }
 0x31f   : > { %v2821_v24 = vsub.f32 1.0, %v2820_v29  ;;  %v2850_v31 = vmul.f32 %v2817_v54, %v5026_v36  ;;  %v3022_v36 = vadd.f32 %v5053_v59, %v3021_v30 }
 0x321   : > { %v2822_v63 = vmul.f32 %v3743_v35, %v2821_v24 }
 0x323   : > { %v2823_v62 = vadd.f32 %v3743_v35, %v2822_v63 }
 0x325   : > { %v2827_v46 = vsel %vm2826_vm6, %v3743_v35, %v2823_v62 }
 0x326   : > { %v2832_v60 = vsel %vm2829_vm7, %v2831_v23, %v2827_v46 }
 0x327   : > { %v2851_v56 = vmul.f32 %v2832_v60, %v5036_v28 }
 0x329   : > { %v2860_v4 = vpack.c.bf16 %v2851_v56, %v2850_v31 }
 0x32b   : > { %3435 = vmatmul.msk.bf16.gmra.mxu3 %vm441_vm1, %v2860_v4  ;;  %vm3125_vm1 = vcmask 125952  }
 0x32d   : > { %v3031_v14 = vpop.f32.mrf.mxu0 }
 0x32e   : > { %v2905_v55 = vpop.f32.mrf.mxu3  ;;  %v3032_v18 = vadd.f32 %v5053_v59, %v3031_v14 }
 0x32f   : > { %v2906_v21 = vadd.f32 %v5059_v51, %v2905_v55 }
 0x331   : > { %v3066_v25 = vadd.f32 %v3022_v36, %v2906_v21 }
 0x333   : > { %v3084_v9 = vmax.f32 %v3066_v25, 0.0 }
 0x335   : > { %3103 = vst.msk [vmem:[#allocation4] sm:$0xff] %vm3102_vm8, %v3084_v9  ;;  %v3033_v27 = vpop.f32.mrf.mxu0 }
 0x336   : > { %v2907_v28 = vpop.f32.mrf.mxu3  ;;  %v3034_v20 = vadd.f32 %v5053_v59, %v3033_v27 }
 0x337   : > { %v2908_v6 = vadd.f32 %v5059_v51, %v2907_v28 }
 0x339   : > { %v3067_v26 = vadd.f32 %v3024_v34, %v2908_v6 }
 0x33b   : > { %v3085_v50 = vmax.f32 %v3067_v26, 0.0 }
 0x33c   : > { %v3121_v7 = vld [vmem:[#allocation4] sm:$0xff] }
 0x33d   : > { %v3123_v53 = vpack.c.bf16 %v3121_v7, %v3121_v7  ;;  %3104 = vst.msk [vmem:[#allocation4 + $0x8] sm:$0xff] %vm3102_vm8, %v3085_v50  ;;  %v3036_v40 = vpop.f32.mrf.mxu0 }
 0x33e   : > { %v2910_v22 = vpop.f32.mrf.mxu3  ;;  %v3037_v29 = vadd.f32 %v5053_v59, %v3036_v40 }
 0x33f   : > { %3126 = vst.msk [vmem:[%s5070_s12] sm:$0xf] %vm3125_vm1, %v3123_v53  ;;  %v2911_v33 = vadd.f32 %v5059_v51, %v2910_v22 }
 0x341   : > { %v3068_v42 = vadd.f32 %v3027_v12, %v2911_v33 }
 0x343   : > { %v3086_v45 = vmax.f32 %v3068_v42, 0.0 }
 0x344   : > { %v3122_v2 = vld [vmem:[#allocation4 + $0x8] sm:$0xff] }
 0x345   : > { %v3124_v15 = vpack.c.bf16 %v3122_v2, %v3122_v2  ;;  %3105 = vst.msk [vmem:[#allocation4 + $0x10] sm:$0xff] %vm3102_vm8, %v3086_v45  ;;  %v3038_v3 = vpop.f32.mrf.mxu0 }
 0x346   : > { %v2912_v41 = vpop.f32.mrf.mxu3  ;;  %v3039_v47 = vadd.f32 %v5053_v59, %v3038_v3 }
 0x347   : > { %3127 = vst.msk [vmem:[%s5070_s12 + $0x4] sm:$0xf] %vm3125_vm1, %v3124_v15  ;;  %v2913_v1 = vadd.f32 %v5059_v51, %v2912_v41 }
 0x349   : > { %v3069_v30 = vadd.f32 %v3029_v43, %v2913_v1 }
 0x34b   : > { %v3087_v17 = vmax.f32 %v3069_v30, 0.0 }
 0x34d   : > { %3106 = vst.msk [vmem:[#allocation4 + $0x18] sm:$0xff] %vm3102_vm8, %v3087_v17  ;;  %v3041_v58 = vpop.f32.mrf.mxu0 }
 0x34e   : > { %v2915_v11 = vpop.f32.mrf.mxu3  ;;  %v3042_v31 = vadd.f32 %v5053_v59, %v3041_v58 }
 0x34f   : > { %v2916_v19 = vadd.f32 %v5059_v51, %v2915_v11 }
 0x351   : > { %v3070_v49 = vadd.f32 %v3032_v18, %v2916_v19 }
 0x353   : > { %v3088_v8 = vmax.f32 %v3070_v49, 0.0 }
 0x354   : > { %v3128_v57 = vld [vmem:[#allocation4 + $0x12] sm:$0xff] }
 0x355   : > { %v3130_v38 = vpack.c.bf16 %v3128_v57, %v3128_v57  ;;  %3107 = vst.msk [vmem:[#allocation4 + $0x20] sm:$0xff] %vm3102_vm8, %v3088_v8  ;;  %v3043_v63 = vpop.f32.mrf.mxu0 }
 0x356   : > { %v2917_v32 = vpop.f32.mrf.mxu3  ;;  %v3044_v9 = vadd.f32 %v5053_v59, %v3043_v63 }
 0x357   : > { %3445 = vst.msk [vmem:[%s5070_s12 + $0x8] sm:$0xf] %vm3125_vm1, %v3130_v38  ;;  %v2918_v5 = vadd.f32 %v5059_v51, %v2917_v32 }
 0x359   : > { %v3071_v48 = vadd.f32 %v3034_v20, %v2918_v5 }
 0x35b   : > { %v3089_v39 = vmax.f32 %v3071_v48, 0.0 }
 0x35c   : > { %v3129_v35 = vld [vmem:[#allocation4 + $0x1a] sm:$0xff] }
 0x35d   : > { %v3131_v0 = vpack.c.bf16 %v3129_v35, %v3129_v35  ;;  %3108 = vst.msk [vmem:[#allocation4 + $0x28] sm:$0xff] %vm3102_vm8, %v3089_v39  ;;  %v3046_v4 = vpop.f32.mrf.mxu0 }
 0x35e   : > { %v2920_v44 = vpop.f32.mrf.mxu3  ;;  %v3047_v27 = vadd.f32 %v5053_v59, %v3046_v4 }
 0x35f   : > { %3446 = vst.msk [vmem:[%s5070_s12 + $0xc] sm:$0xf] %vm3125_vm1, %v3131_v0  ;;  %v2921_v10 = vadd.f32 %v5059_v51, %v2920_v44 }
 0x361   : > { %v3072_v24 = vadd.f32 %v3037_v29, %v2921_v10 }
 0x363   : > { %v3090_v61 = vmax.f32 %v3072_v24, 0.0 }
 0x364   : > { %v3135_v37 = vld [vmem:[#allocation4 + $0x24] sm:$0xff] }
 0x365   : > { %v3137_v13 = vpack.c.bf16 %v3135_v37, %v3135_v37  ;;  %3109 = vst.msk [vmem:[#allocation4 + $0x30] sm:$0xff] %vm3102_vm8, %v3090_v61  ;;  %v3048_v34 = vpop.f32.mrf.mxu0 }
 0x366   : > { %v2922_v16 = vpop.f32.mrf.mxu3  ;;  %v3049_v41 = vadd.f32 %v5053_v59, %v3048_v34 }
 0x367   : > { %3447 = vst.msk [vmem:[%s5070_s12 + $0x10] sm:$0xf] %vm3125_vm1, %v3137_v13  ;;  %v2923_v62 = vadd.f32 %v5059_v51, %v2922_v16 }
 0x369   : > { %v3073_v54 = vadd.f32 %v3039_v47, %v2923_v62 }
 0x36b   : > { %v3091_v23 = vmax.f32 %v3073_v54, 0.0 }
 0x36c   : > { %v3136_v46 = vld [vmem:[#allocation4 + $0x2c] sm:$0xff] }
 0x36d   : > { %v3138_v60 = vpack.c.bf16 %v3136_v46, %v3136_v46  ;;  %3110 = vst.msk [vmem:[#allocation4 + $0x38] sm:$0xff] %vm3102_vm8, %v3091_v23  ;;  %v3051_v33 = vpop.f32.mrf.mxu0 }
 0x36e   : > { %v2925_v56 = vpop.f32.mrf.mxu3  ;;  %v3052_v11 = vadd.f32 %v5053_v59, %v3051_v33 }
 0x36f   : > { %3448 = vst.msk [vmem:[%s5070_s12 + $0x14] sm:$0xf] %vm3125_vm1, %v3138_v60  ;;  %v2926_v52 = vadd.f32 %v5059_v51, %v2925_v56 }
 0x371   : > { %v3074_v36 = vadd.f32 %v3042_v31, %v2926_v52 }
 0x373   : > { %v3092_v55 = vmax.f32 %v3074_v36, 0.0 }
 0x374   : > { %v3142_v21 = vld [vmem:[#allocation4 + $0x36] sm:$0xff] }
 0x375   : > { %v3144_v25 = vpack.c.bf16 %v3142_v21, %v3142_v21  ;;  %3111 = vst.msk [vmem:[#allocation4 + $0x40] sm:$0xff] %vm3102_vm8, %v3092_v55  ;;  %v3053_v17 = vpop.f32.mrf.mxu0 }
 0x376   : > { %v2927_v14 = vpop.f32.mrf.mxu3  ;;  %v3054_v32 = vadd.f32 %v5053_v59, %v3053_v17 }
 0x377   : > { %3449 = vst.msk [vmem:[%s5070_s12 + $0x18] sm:$0xf] %vm3125_vm1, %v3144_v25  ;;  %v2928_v28 = vadd.f32 %v5059_v51, %v2927_v14 }
 0x379   : > { %v3075_v6 = vadd.f32 %v3044_v9, %v2928_v28 }
 0x37b   : > { %v3093_v26 = vmax.f32 %v3075_v6, 0.0 }
 0x37c   : > { %v3143_v50 = vld [vmem:[#allocation4 + $0x3e] sm:$0xff] }
 0x37d   : > { %v3145_v7 = vpack.c.bf16 %v3143_v50, %v3143_v50  ;;  %3112 = vst.msk [vmem:[#allocation4 + $0x48] sm:$0xff] %vm3102_vm8, %v3093_v26  ;;  %v3056_v38 = vpop.f32.mrf.mxu0 }
 0x37e   : > { %v2930_v53 = vpop.f32.mrf.mxu3  ;;  %v3057_v35 = vadd.f32 %v5053_v59, %v3056_v38 }
 0x37f   : > { %3450 = vst.msk [vmem:[%s5070_s12 + $0x1c] sm:$0xf] %vm3125_vm1, %v3145_v7  ;;  %v2931_v12 = vadd.f32 %v5059_v51, %v2930_v53 }
 0x381   : > { %v3076_v22 = vadd.f32 %v3047_v27, %v2931_v12 }
 0x383   : > { %v3094_v42 = vmax.f32 %v3076_v22, 0.0 }
 0x384   : > { %v3149_v45 = vld [vmem:[#allocation4 + $0x48] sm:$0xff] }
 0x385   : > { %v3151_v2 = vpack.c.bf16 %v3149_v45, %v3149_v45  ;;  %3113 = vst.msk [vmem:[#allocation4 + $0x50] sm:$0xff] %vm3102_vm8, %v3094_v42  ;;  %v3058_v44 = vpop.f32.mrf.mxu0 }
 0x386   : > { %v2932_v15 = vpop.f32.mrf.mxu3  ;;  %v3059_v13 = vadd.f32 %v5053_v59, %v3058_v44 }
 0x387   : > { %3451 = vst.msk [vmem:[%s5070_s12 + $0x20] sm:$0xf] %vm3125_vm1, %v3151_v2  ;;  %v2933_v40 = vadd.f32 %v5059_v51, %v2932_v15 }
 0x389   : > { %v3077_v43 = vadd.f32 %v3049_v41, %v2933_v40 }
 0x38b   : > { %v3095_v1 = vmax.f32 %v3077_v43, 0.0 }
 0x38c   : > { %v3150_v30 = vld [vmem:[#allocation4 + $0x50] sm:$0xff] }
 0x38d   : > { %v3152_v18 = vpack.c.bf16 %v3150_v30, %v3150_v30  ;;  %3114 = vst.msk [vmem:[#allocation4 + $0x58] sm:$0xff] %vm3102_vm8, %v3095_v1  ;;  %v3061_v62 = vpop.f32.mrf.mxu0 }
 0x38e   : > { %v2935_v19 = vpop.f32.mrf.mxu3  ;;  %v3062_v60 = vadd.f32 %v5053_v59, %v3061_v62 }
 0x38f   : > { %3452 = vst.msk [vmem:[%s5070_s12 + $0x24] sm:$0xf] %vm3125_vm1, %v3152_v18  ;;  %v2936_v3 = vadd.f32 %v5059_v51, %v2935_v19 }
 0x391   : > { %v3078_v49 = vadd.f32 %v3052_v11, %v2936_v3 }
 0x393   : > { %v3096_v8 = vmax.f32 %v3078_v49, 0.0 }
 0x395   : > { %3115 = vst.msk [vmem:[#allocation4 + $0x60] sm:$0xff] %vm3102_vm8, %v3096_v8  ;;  %v3063_v55 = vpop.f32.mrf.mxu0 }
 0x396   : > { %v2937_v57 = vpop.f32.mrf.mxu3  ;;  %v3064_v14 = vadd.f32 %v5053_v59, %v3063_v55 }
 0x397   : > { %v2938_v20 = vadd.f32 %v5059_v51, %v2937_v57 }
 0x399   : > { %v3079_v5 = vadd.f32 %v3054_v32, %v2938_v20 }
 0x39b   : > { %v3097_v48 = vmax.f32 %v3079_v5, 0.0 }
 0x39c   : > { %v3156_v58 = vld [vmem:[#allocation4 + $0x5a] sm:$0xff] }
 0x39d   : > { %v3158_v39 = vpack.c.bf16 %v3156_v58, %v3156_v58  ;;  %3116 = vst.msk [vmem:[#allocation4 + $0x68] sm:$0xff] %vm3102_vm8, %v3097_v48 }
 0x39e   : > { %v2940_v0 = vpop.f32.mrf.mxu3 }
 0x39f   : > { %3453 = vst.msk [vmem:[%s5070_s12 + $0x28] sm:$0xf] %vm3125_vm1, %v3158_v39  ;;  %v2941_v29 = vadd.f32 %v5059_v51, %v2940_v0 }
 0x3a1   : > { %v3080_v10 = vadd.f32 %v3057_v35, %v2941_v29 }
 0x3a3   : > { %v3098_v24 = vmax.f32 %v3080_v10, 0.0 }
 0x3a4   : > { %v3157_v61 = vld [vmem:[#allocation4 + $0x62] sm:$0xff] }
 0x3a5   : > { %v3159_v37 = vpack.c.bf16 %v3157_v61, %v3157_v61  ;;  %3117 = vst.msk [vmem:[#allocation4 + $0x70] sm:$0xff] %vm3102_vm8, %v3098_v24 }
 0x3a6   : > { %v2942_v63 = vpop.f32.mrf.mxu3 }
 0x3a7   : > { %3454 = vst.msk [vmem:[%s5070_s12 + $0x2c] sm:$0xf] %vm3125_vm1, %v3159_v37  ;;  %v2943_v16 = vadd.f32 %v5059_v51, %v2942_v63 }
 0x3a9   : > { %v3081_v47 = vadd.f32 %v3059_v13, %v2943_v16 }
 0x3ab   : > { %v3099_v54 = vmax.f32 %v3081_v47, 0.0 }
 0x3ac   : > { %v3163_v23 = vld [vmem:[#allocation4 + $0x6c] sm:$0xff] }
 0x3ad   : > { %v3165_v46 = vpack.c.bf16 %v3163_v23, %v3163_v23  ;;  %3118 = vst.msk [vmem:[#allocation4 + $0x78] sm:$0xff] %vm3102_vm8, %v3099_v54 }
 0x3ae   : > { %v2945_v31 = vpop.f32.mrf.mxu3 }
 0x3af   : > { %3455 = vst.msk [vmem:[%s5070_s12 + $0x30] sm:$0xf] %vm3125_vm1, %v3165_v46  ;;  %v2946_v56 = vadd.f32 %v5059_v51, %v2945_v31 }
 0x3b1   : > { %v3082_v4 = vadd.f32 %v3062_v60, %v2946_v56 }
 0x3b3   : > { %v3100_v52 = vmax.f32 %v3082_v4, 0.0 }
 0x3b4   : > { %v3164_v36 = vld [vmem:[#allocation4 + $0x74] sm:$0xff] }
 0x3b5   : > { %v3166_v21 = vpack.c.bf16 %v3164_v36, %v3164_v36  ;;  %3119 = vst.msk [vmem:[#allocation4 + $0x80] sm:$0xff] %vm3102_vm8, %v3100_v52 }
 0x3b6   : > { %v2947_v25 = vpop.f32.mrf.mxu3 }
 0x3b7   : > { %3456 = vst.msk [vmem:[%s5070_s12 + $0x34] sm:$0xf] %vm3125_vm1, %v3166_v21  ;;  %v2948_v9 = vadd.f32 %v5059_v51, %v2947_v25 }
 0x3b9   : > { %v3083_v28 = vadd.f32 %v3064_v14, %v2948_v9 }
 0x3bb   : > { %v3101_v34 = vmax.f32 %v3083_v28, 0.0 }
 0x3bc   : > { %v3170_v6 = vld [vmem:[#allocation4 + $0x7e] sm:$0xff] }
 0x3bd   : > { %v3172_v26 = vpack.c.bf16 %v3170_v6, %v3170_v6  ;;  %3120 = vst.msk [vmem:[#allocation4 + $0x88] sm:$0xff] %vm3102_vm8, %v3101_v34 }
 0x3bf   : > { %3457 = vst.msk [vmem:[%s5070_s12 + $0x38] sm:$0xf] %vm3125_vm1, %v3172_v26 }
 0x3c4   : > { %v3171_v50 = vld [vmem:[#allocation4 + $0x86] sm:$0xff] }
 0x3c5   : > { %v3173_v7 = vpack.c.bf16 %v3171_v50, %v3171_v50 }
 0x3c7   : > { %3458 = vst.msk [vmem:[%s5070_s12 + $0x3c] sm:$0xf] %vm3125_vm1, %v3173_v7 }
 0x3c8 PF: > { %s20_s17 = sadd.s32 1, %s3783_s17   ;;  %s5215_s13 = smov %s3775_s15 }
 0x3c9   : > { %p17_p7 = scmp.ge.s32.totalorder %s20_s17, 6   ;;  %s5216_s14 = smov %s3779_s16 }
 0x3ca   : > { %s5217_s15 = smov %s5220_s18  ;;  %s5218_s16 = smov %s5224_s19 }
 0x3cb   :  { %19 = sbr.rel (!%p17_p7) target bundleno = 3 (0x3), region = 107 }

// kernel: resnet_layer_forward.3
= control target key start
LH: loop header
LB: loop body
LE: loop exit
PB: predicated region body
PF: predicated region fallthrough
CT: control target
= control target key end

     0   :  { %s3662_s27 = smov 0   ;;  %s3664_s28 = smov 0   ;;  %s4793_s0 = inlined_call_operand.vmem [shape: bf16[2,342,16], index: 0, kind: input, shape index: {}]   ;;  %s4794_s1 = inlined_call_operand.vmem [shape: f32[342,1], index: 1, kind: input, shape index: {}]   ;;  %s4795_s2 = inlined_call_operand.vmem [shape: bf16[16,4], index: 2, kind: input, shape index: {}]   ;;  %s4796_s3 = inlined_call_operand.vmem [shape: f32[1,4], index: 3, kind: input, shape index: {}]   ;;  %s4797_s4 = inlined_call_operand.vmem [shape: bf16[9,4,4], index: 4, kind: input, shape index: {}]   ;;  %s4798_s5 = inlined_call_operand.vmem [shape: f32[1,4], index: 5, kind: input, shape index: {}]   ;;  %s4799_s6 = inlined_call_operand.vmem [shape: bf16[4,16], index: 6, kind: input, shape index: {}]   ;;  %s4800_s7 = inlined_call_operand.vmem [shape: f32[1,16], index: 7, kind: input, shape index: {}]   ;;  %s4801_s8 = inlined_call_operand.vmem [shape: f32[2,16,16,16], index: 8, kind: output, shape index: {}]  }
   0x1   :  { %s3666_s29 = smov 0   ;;  %s3668_s30 = smov 0  }
   0x2   :  { %s3670_s9 = smov 0  }
   0x3 LB: > { %s27_s10 = sadd.s32 1, %s3606_s29  ;;  %s30_s11 = sadd.s32 1, %s3610_s30  ;;  %s3614_s9 = sphi %s3670_s9, %s18_s9   ;;  %s3610_s30 = sphi %s3668_s30, %s4825_s30   ;;  %s3606_s29 = sphi %s3666_s29, %s4824_s29   ;;  %s3602_s28 = sphi %s3664_s28, %s4823_s28   ;;  %s3598_s27 = sphi %s3662_s27, %s4822_s27  }
   0x4   : > { %p28_p0 = scmp.ge.s32.totalorder %s27_s10, 2  ;;  %p3111_p1 = scmp.ge.s32.totalorder %s3614_s9, 1 }
   0x5   : > { %p276_p2 = scmp.lt.s32.totalorder %s3614_s9, 5 }
   0x6   : > { %s4827_s10 = smov (%p28_p0, %s27_s10), 0  ;;  %s4829_s11 = smov (!%p28_p0, %s30_s11), %s3610_s30 }
   0x7   : > { %p277_p3 = pnand %p3111_p1, %p276_p2  ;;  %p32_p4 = scmp.ge.s32.totalorder %s4829_s11, 2 }
   0x8   : > { %s332_s14 = smul.u32 (!%p277_p3), 144, %s3598_s27  ;;  %p315_p5 = scmp.lt.s32.totalorder (!%p277_p3), %s3602_s28, 1 }
   0x9   : > { %s4831_s11 = smov (%p32_p4, %s4829_s11), 0  ;;  %280 = sbr.rel (%p277_p3) target bundleno = 967 (0x3c7), region = 52 }
   0xa   : > { %s3701_s17 = scalar_lea.vmem (!%p277_p3), %s4794_s1, %s332_s14  ;;  %s333_s19 = sshra.s32 (!%p277_p3), %s332_s14, 3 }
   0xb   : > { %s3117_s23 = sshll.u32 (!%p277_p3), %s333_s19, 2  ;;  %s3113_s21 = sshll.u32 (!%p277_p3), %s3598_s27, 3 }
   0xc   : > { %p323_p6 = scmp.lt.s32.totalorder (!%p277_p3), %s3113_s21, 15 }
   0xe   : > { %v3292_v0 = vld [vmem:[%s4795_s2] sm:$0xff]  ;;  %v3616_v1 = vmov 0   ;;  %v1079_v2 = vld [vmem:[%s3701_s17 + $0x10] sm:$0xff]  ;;  %s4833_s28 = smov (!%p315_p5, %s3602_s28), 1  ;;  %v1080_v5 = vld [vmem:[%s3701_s17 + $0x18] sm:$0xff]  ;;  %vm387_vm0 = vcmask 130048  }
   0xf   : > { %3397 = vset.pattern.permute.xlu0 %v3616_v1  ;;  %3398 = vset.pattern.permute.xlu1 %v3616_v1  ;;  %s3355_s18 = smul.u32 172, %s4833_s28  ;;  %v1081_v3 = vld [vmem:[%s3701_s17 + $0x20] sm:$0xff]  ;;  %v1083_v4 = vld [vmem:[%s3701_s17 + $0x30] sm:$0xff]  ;;  %v1082_v14 = vld [vmem:[%s3701_s17 + $0x28] sm:$0xff]  ;;  %vm412_vm2 = vcmask 128000   ;;  %vm1252_vm6 = vcmask 31744  }
  0x10   : > { %510 = vmatpush.bf16.msra.mxu0 %v3292_v0  ;;  %3399 = vset.pattern.permute.xlu2 %v3616_v1  ;;  %v1085_v16 = vld [vmem:[%s3701_s17 + $0x40] sm:$0xff]  ;;  %v1084_v20 = vld [vmem:[%s3701_s17 + $0x38] sm:$0xff]  ;;  %v1086_v21 = vld [vmem:[%s3701_s17 + $0x48] sm:$0xff]  ;;  %vm1363_vm8 = vcmask 1041408   ;;  %s4835_s21 = smov (!%p323_p6, %s3113_s21), 15  ;;  %s3115_s25 = sshll.u32 %s4833_s28, 5 }
  0x11   : > { %1114 = vperm.xlu0 %3397, %v1079_v2   ;;  %s319_s22 = scalar_lea.vmem %s4793_s0, %s3355_s18  ;;  %1124 = vperm.xlu1 %3398, %v1081_v3   ;;  %v1088_v22 = vld [vmem:[%s3701_s17 + $0x58] sm:$0xff]  ;;  %v1087_v26 = vld [vmem:[%s3701_s17 + $0x50] sm:$0xff]  ;;  %v1089_v27 = vld [vmem:[%s3701_s17 + $0x60] sm:$0xff] }
  0x12   : > { %s3712_s24 = scalar_lea.vmem %s319_s22, %s3117_s23  ;;  %1134 = vperm.xlu2 %3399, %v1083_v4   ;;  %v1091_v30 = vld [vmem:[%s3701_s17 + $0x70] sm:$0xff]  ;;  %v1090_v32 = vld [vmem:[%s3701_s17 + $0x68] sm:$0xff]  ;;  %v1092_v33 = vld [vmem:[%s3701_s17 + $0x78] sm:$0xff] }
  0x13   : > { %v3294_v6 = vld [vmem:[%s3712_s24] sm:$0xff]   ;;  %v3341_v7 = vld [vmem:[%s3712_s24 + $0x8] sm:$0xff]   ;;  %v3342_v8 = vld [vmem:[%s3712_s24 + $0x10] sm:$0xff]  }
  0x14   : > { %v3295_v9 = vunpack.c.l.bf16 %v3294_v6  ;;  %v3296_v10 = vunpack.c.h.bf16 %v3294_v6  ;;  %v3299_v11 = vunpack.c.l.bf16 %v3341_v7  ;;  %v3300_v12 = vunpack.c.h.bf16 %v3341_v7  ;;  %v3343_v23 = vld [vmem:[%s3712_s24 + $0x18] sm:$0xff]   ;;  %v1094_v34 = vld [vmem:[%s3701_s17 + $0x88] sm:$0xff]  ;;  %v3344_v35 = vld [vmem:[%s3712_s24 + $0x20] sm:$0xff]  }
  0x15   : > { %v3303_v13 = vunpack.c.l.bf16 %v3342_v8  ;;  %v3304_v15 = vunpack.c.h.bf16 %v3342_v8  ;;  %v3307_v24 = vunpack.c.l.bf16 %v3343_v23  ;;  %v3308_v25 = vunpack.c.h.bf16 %v3343_v23  ;;  %v1093_v38 = vld [vmem:[%s3701_s17 + $0x80] sm:$0xff]  ;;  %v1095_v39 = vld [vmem:[%s3701_s17 + $0x90] sm:$0xff]  ;;  %v1078_v42 = vld [vmem:[%s3701_s17 + $0x8] sm:$0xff] }
  0x16   : > { %388 = vst.msk [vmem:[#allocation2] sm:$0xff] %vm387_vm0, %v3295_v9  ;;  %v3311_v36 = vunpack.c.l.bf16 %v3344_v35  ;;  %v3312_v37 = vunpack.c.h.bf16 %v3344_v35  ;;  %v1096_v44 = vld [vmem:[%s3701_s17 + $0x98] sm:$0xff]  ;;  %v1077_v45 = vld [vmem:[%s3701_s17] sm:$0xff]  ;;  %v1098_v46 = vld [vmem:[%s3701_s17 + $0xa8] sm:$0xff] }
  0x17   : > { %389 = vst.msk [vmem:[#allocation2 + $0x8] sm:$0xff] %vm387_vm0, %v3296_v10  ;;  %v3345_v47 = vld [vmem:[%s3712_s24 + $0x28] sm:$0xff]   ;;  %v1099_v50 = vld [vmem:[%s3701_s17 + $0xb0] sm:$0xff]  ;;  %v1101_v53 = vld [vmem:[%s3701_s17 + $0xc0] sm:$0x3f] }
  0x18   : > { %390 = vst.msk [vmem:[#allocation2 + $0x10] sm:$0xff] %vm387_vm0, %v3299_v11  ;;  %v3315_v48 = vunpack.c.l.bf16 %v3345_v47  ;;  %v3316_v49 = vunpack.c.h.bf16 %v3345_v47  ;;  %v3346_v55 = vld [vmem:[%s3712_s24 + $0x30] sm:$0xff]   ;;  %v1097_v61 = vld [vmem:[%s3701_s17 + $0xa0] sm:$0xff]  ;;  %v3347_v62 = vld [vmem:[%s3712_s24 + $0x38] sm:$0xff]  }
  0x19   : > { %1119 = vperm.xlu0 %3397, %v1080_v5   ;;  %391 = vst.msk [vmem:[#allocation2 + $0x18] sm:$0xff] %vm387_vm0, %v3300_v12  ;;  %1129 = vperm.xlu1 %3398, %v1082_v14   ;;  %v3319_v56 = vunpack.c.l.bf16 %v3346_v55  ;;  %v3320_v57 = vunpack.c.h.bf16 %v3346_v55  ;;  %v3323_v63 = vunpack.c.l.bf16 %v3347_v62  ;;  %v3324_v0 = vunpack.c.h.bf16 %v3347_v62  ;;  %v1100_v4 = vld [vmem:[%s3701_s17 + $0xb8] sm:$0xff]  ;;  %v3348_v5 = vld [vmem:[%s3712_s24 + $0x40] sm:$0xff]   ;;  %v3349_v11 = vld [vmem:[%s3712_s24 + $0x48] sm:$0xff]  }
  0x1a   : > { %392 = vst.msk [vmem:[#allocation2 + $0x20] sm:$0xff] %vm387_vm0, %v3303_v13  ;;  %1139 = vperm.xlu2 %3399, %v1084_v20   ;;  %v3327_v6 = vunpack.c.l.bf16 %v3348_v5  ;;  %v3328_v7 = vunpack.c.h.bf16 %v3348_v5  ;;  %v3331_v12 = vunpack.c.l.bf16 %v3349_v11  ;;  %v3332_v13 = vunpack.c.h.bf16 %v3349_v11 }
  0x1b   : > { %393 = vst.msk [vmem:[#allocation2 + $0x28] sm:$0xff] %vm387_vm0, %v3304_v15 }
  0x1c   : > { %394 = vst.msk [vmem:[#allocation2 + $0x30] sm:$0xff] %vm387_vm0, %v3307_v24 }
  0x1d   : > { %v414_v17 = vld [vmem:[#allocation2] sm:$0xff]  ;;  %395 = vst.msk [vmem:[#allocation2 + $0x38] sm:$0xff] %vm387_vm0, %v3308_v25 }
  0x1e   : > { %v415_v18 = vld [vmem:[#allocation2 + $0x8] sm:$0xff]  ;;  %396 = vst.msk [vmem:[#allocation2 + $0x40] sm:$0xff] %vm387_vm0, %v3311_v36 }
  0x1f   : > { %v439_v19 = vpack.c.bf16 %v415_v18, %v414_v17  ;;  %v416_v28 = vld [vmem:[#allocation2 + $0x10] sm:$0xff]  ;;  %397 = vst.msk [vmem:[#allocation2 + $0x48] sm:$0xff] %vm387_vm0, %v3312_v37 }
  0x20   : > { %v417_v29 = vld [vmem:[#allocation2 + $0x18] sm:$0xff]  ;;  %398 = vst.msk [vmem:[#allocation2 + $0x50] sm:$0xff] %vm387_vm0, %v3315_v48 }
  0x21   : > { %1144 = vperm.xlu0 %3397, %v1085_v16   ;;  %3122 = vmatmul.msk.bf16.vlgmr.msra.gmra.mxu0 %vm387_vm0, %v439_v19  ;;  %v440_v31 = vpack.c.bf16 %v417_v29, %v416_v28  ;;  %v418_v40 = vld [vmem:[#allocation2 + $0x20] sm:$0xff]  ;;  %399 = vst.msk [vmem:[#allocation2 + $0x58] sm:$0xff] %vm387_vm0, %v3316_v49 }
  0x22   : > { %1149 = vperm.xlu1 %3398, %v1086_v21   ;;  %1154 = vperm.xlu2 %3399, %v1087_v26   ;;  %v419_v41 = vld [vmem:[#allocation2 + $0x28] sm:$0xff]  ;;  %400 = vst.msk [vmem:[#allocation2 + $0x60] sm:$0xff] %vm387_vm0, %v3319_v56  ;;  %v3350_v21 = vld [vmem:[%s3712_s24 + $0x50] sm:$0xff]   ;;  %v3788_v26 = vld [vmem:[%s4796_s3] ss:$0 sm:$0xff] }
  0x23   : > { %v441_v43 = vpack.c.bf16 %v419_v41, %v418_v40  ;;  %v420_v51 = vld [vmem:[#allocation2 + $0x30] sm:$0xff]  ;;  %401 = vst.msk [vmem:[#allocation2 + $0x68] sm:$0xff] %vm387_vm0, %v3320_v57  ;;  %v3336_v23 = vunpack.c.h.bf16 %v3350_v21  ;;  %v361_v56 = vld [vmem:[%s3712_s24 + $0x60] sm:$0x7] }
  0x24   : > { %v421_v52 = vld [vmem:[#allocation2 + $0x38] sm:$0xff]  ;;  %402 = vst.msk [vmem:[#allocation2 + $0x70] sm:$0xff] %vm387_vm0, %v3323_v63 }
  0x25   : > { %v442_v54 = vpack.c.bf16 %v421_v52, %v420_v51  ;;  %v422_v58 = vld [vmem:[#allocation2 + $0x40] sm:$0xff]  ;;  %403 = vst.msk [vmem:[#allocation2 + $0x78] sm:$0xff] %vm387_vm0, %v3324_v0 }
  0x26   : > { %v423_v59 = vld [vmem:[#allocation2 + $0x48] sm:$0xff]  ;;  %404 = vst.msk [vmem:[#allocation2 + $0x80] sm:$0xff] %vm387_vm0, %v3327_v6 }
  0x27   : > { %v443_v60 = vpack.c.bf16 %v423_v59, %v422_v58  ;;  %v424_v1 = vld [vmem:[#allocation2 + $0x50] sm:$0xff]  ;;  %405 = vst.msk [vmem:[#allocation2 + $0x88] sm:$0xff] %vm387_vm0, %v3328_v7  ;;  %v386_v59 = vunpack.c.l.bf16 %v361_v56 }
  0x28   : > { %v425_v2 = vld [vmem:[#allocation2 + $0x58] sm:$0xff]  ;;  %406 = vst.msk [vmem:[#allocation2 + $0x90] sm:$0xff] %vm387_vm0, %v3331_v12 }
  0x29   : > { %1159 = vperm.xlu0 %3397, %v1088_v22   ;;  %v444_v3 = vpack.c.bf16 %v425_v2, %v424_v1  ;;  %v426_v8 = vld [vmem:[#allocation2 + $0x60] sm:$0xff]  ;;  %407 = vst.msk [vmem:[#allocation2 + $0x98] sm:$0xff] %vm387_vm0, %v3332_v13  ;;  %v3335_v22 = vunpack.c.l.bf16 %v3350_v21 }
  0x2a   : > { %1164 = vperm.xlu1 %3398, %v1089_v27   ;;  %1169 = vperm.xlu2 %3399, %v1090_v32   ;;  %v427_v9 = vld [vmem:[#allocation2 + $0x68] sm:$0xff]  ;;  %409 = vst.msk [vmem:[#allocation2 + $0xa8] sm:$0xff] %vm387_vm0, %v3336_v23  ;;  %v1306_v23 = vld [vmem:[%s4797_s4] sm:$0x3] }
  0x2b   : > { %v445_v10 = vpack.c.bf16 %v427_v9, %v426_v8  ;;  %v428_v14 = vld [vmem:[#allocation2 + $0x70] sm:$0xff]  ;;  %408 = vst.msk [vmem:[#allocation2 + $0xa0] sm:$0xff] %vm387_vm0, %v3335_v22 }
  0x2c   : > { %v429_v15 = vld [vmem:[#allocation2 + $0x78] sm:$0xff]  ;;  %413 = vst.msk [vmem:[#allocation2 + $0xc0] sm:$0x3f] %vm412_vm2, %v386_v59 }
  0x2d   : > { %v446_v18 = vpack.c.bf16 %v429_v15, %v428_v14  ;;  %v430_v24 = vld [vmem:[#allocation2 + $0x80] sm:$0xff] }
  0x2e   : > { %v431_v25 = vld [vmem:[#allocation2 + $0x88] sm:$0xff] }
  0x2f   : > { %v447_v27 = vpack.c.bf16 %v431_v25, %v430_v24 }
  0x31   : > { %1174 = vperm.xlu0 %3397, %v1091_v30   ;;  %3123 = vmatmul.msk.bf16.gmra.mxu0 %vm387_vm0, %v440_v31  ;;  %v435_v5 = vld [vmem:[#allocation2 + $0xa8] sm:$0xff] }
  0x32   : > { %1179 = vperm.xlu1 %3398, %v1092_v33   ;;  %1184 = vperm.xlu2 %3399, %v1093_v38   ;;  %v3351_v33 = vld [vmem:[%s3712_s24 + $0x58] sm:$0xff]   ;;  %s3114_s24 = sshll.u32 %s4835_s21, 1 }
  0x33   : > { %v3339_v35 = vunpack.c.l.bf16 %v3351_v33  ;;  %v3340_v36 = vunpack.c.h.bf16 %v3351_v33  ;;  %s327_s27 = sadd.s32 %s3115_s25, %s3114_s24 }
  0x34   : > { %s3116_s26 = sshll.u32 %s327_s27, 3 }
  0x35   : > { %410 = vst.msk [vmem:[#allocation2 + $0xb0] sm:$0xff] %vm387_vm0, %v3339_v35  ;;  %s4711_s14 = scalar_lea.vmem %s4801_s8, %s3116_s26 }
  0x36   : > { %411 = vst.msk [vmem:[#allocation2 + $0xb8] sm:$0xff] %vm387_vm0, %v3340_v36 }
  0x39   : > { %1189 = vperm.xlu0 %3397, %v1094_v34  }
  0x3a   : > { %1194 = vperm.xlu1 %3398, %v1095_v39   ;;  %1104 = vperm.xlu2 %3399, %v1077_v45  }
  0x41   : > { %1109 = vperm.xlu0 %3397, %v1078_v42   ;;  %3124 = vmatmul.msk.bf16.gmra.mxu0 %vm387_vm0, %v441_v43  ;;  %v432_v43 = vld [vmem:[#allocation2 + $0x90] sm:$0xff] }
  0x42   : > { %1199 = vperm.xlu1 %3398, %v1096_v44   ;;  %1204 = vperm.xlu2 %3399, %v1097_v61   ;;  %v433_v44 = vld [vmem:[#allocation2 + $0x98] sm:$0xff] }
  0x43   : > { %v448_v45 = vpack.c.bf16 %v433_v44, %v432_v43 }
  0x49   : > { %1209 = vperm.xlu0 %3397, %v1098_v46  }
  0x4a   : > { %1214 = vperm.xlu1 %3398, %v1099_v50   ;;  %1219 = vperm.xlu2 %3399, %v1100_v4   ;;  %v434_v4 = vld [vmem:[#allocation2 + $0xa0] sm:$0xff] }
  0x4b   : > { %v449_v12 = vpack.c.bf16 %v435_v5, %v434_v4 }
  0x51   : > { %1224 = vperm.xlu0 %3397, %v1101_v53   ;;  %3125 = vmatmul.msk.bf16.gmra.mxu0 %vm387_vm0, %v442_v54 }
  0x61   : > { %3126 = vmatmul.msk.bf16.gmra.mxu0 %vm387_vm0, %v443_v60 }
  0x6c   : > { %v3775_v17 = vpop.permute.xlu2 %1134 }
  0x71   : > { %3127 = vmatmul.msk.bf16.gmra.mxu0 %vm387_vm0, %v444_v3 }
  0x74   : > { %v3780_v20 = vpop.permute.xlu2 %1139 }
  0x7c   : > { %v3795_v31 = vpop.permute.xlu2 %1154 }
  0x81   : > { %3128 = vmatmul.msk.bf16.gmra.mxu0 %vm387_vm0, %v445_v10 }
  0x83   : > { %v3773_v16 = vpop.permute.xlu0 %1114 }
  0x84   : > { %v3807_v41 = vpop.permute.xlu2 %1169 }
  0x8b   : > { %v3778_v19 = vpop.permute.xlu0 %1119 }
  0x8c   : > { %v3819_v53 = vpop.permute.xlu2 %1184 }
  0x91   : > { %3129 = vmatmul.msk.bf16.gmra.mxu0 %vm387_vm0, %v446_v18 }
  0x93   : > { %v3793_v30 = vpop.permute.xlu0 %1144 }
  0x94   : > { %v1105_v10 = vpop.permute.xlu2 %1104 }
  0x9b   : > { %v3805_v40 = vpop.permute.xlu0 %1159 }
  0x9e   : > { %v512_v28 = vpop.f32.mrf.mxu0 }
  0x9f   : > { %v3791_v29 = vadd.f32 %v3788_v26, %v512_v28 }
  0xa1   : > { %v3135_v32 = vmul.f32 -1.442695, %v3791_v29  ;;  %3130 = vmatmul.msk.bf16.gmra.mxu0 %vm387_vm0, %v447_v27  ;;  %v1449_v27 = vsel %vm1363_vm8, %v1306_v23, 0 }
  0xa2   : > { %3353 = vmatpush.bf16.msra.mxu2 %v1449_v27 }
  0xa3   : > { %3403 = vpow2.f32 %v3135_v32  ;;  %v3817_v52 = vpop.permute.xlu0 %1174 }
  0xa6   : > { %v514_v34 = vpop.f32.mrf.mxu0 }
  0xa7   : > { %v3801_v37 = vadd.f32 %v3788_v26, %v514_v34 }
  0xa9   : > { %v3404_v38 = vpop.eup %3403  ;;  %v3136_v39 = vmul.f32 -1.442695, %v3801_v37 }
  0xaa   : > { %v651_v42 = vadd.f32 1.0, %v3404_v38 }
  0xab   : > { %3405 = vpow2.f32 %v3136_v39  ;;  %v3831_v9 = vpop.permute.xlu0 %1189 }
  0xac   : > { %3407 = vrcp.f32 %v651_v42  ;;  %v687_v58 = vand.u32 2147483648, %v651_v42  ;;  %v685_v62 = vand.u32 2147483647, %v651_v42  ;;  %vm681_vm3 = vweird.f32 %v651_v42 }
  0xae   : > { %v517_v46 = vpop.f32.mrf.mxu0  ;;  %v688_v7 = vor.u32 1.1754944e-38, %v687_v58  ;;  %vm686_vm5 = vcmp.eq.f32.partialorder %v685_v62, 8.507059e+37 }
  0xaf   : > { %v3811_v47 = vadd.f32 %v3788_v26, %v517_v46 }
  0xb1   : > { %v3406_v48 = vpop.eup %3405  ;;  %v3137_v49 = vmul.f32 -1.442695, %v3811_v47  ;;  %3131 = vmatmul.msk.bf16.gmra.mxu0 %vm387_vm0, %v448_v45 }
  0xb2   : > { %v3408_v50 = vpop.eup %3407  ;;  %v3815_v51 = vadd.f32 1.0, %v3406_v48 }
  0xb3   : > { %3409 = vpow2.f32 %v3137_v49  ;;  %v677_v54 = vmul.f32 %v3408_v50, %v651_v42  ;;  %vm682_vm1 = vweird.f32 %v3408_v50  ;;  %v1110_v49 = vpop.permute.xlu0 %1109 }
  0xb4   : > { %3411 = vrcp.f32 %v3815_v51  ;;  %vm683_vm4 = vmor %vm681_vm3, %vm682_vm1  ;;  %v702_v18 = vand.u32 2147483648, %v3815_v51  ;;  %v700_v25 = vand.u32 2147483647, %v3815_v51  ;;  %vm696_vm9 = vweird.f32 %v3815_v51 }
  0xb5   : > { %v678_v55 = vsub.f32 1.0, %v677_v54  ;;  %v3179_v54 = vld [vmem:[%s4797_s4 + $0x4] sm:$0x3] }
  0xb6   : > { %v519_v57 = vpop.f32.mrf.mxu0  ;;  %v703_v38 = vor.u32 1.1754944e-38, %v702_v18  ;;  %vm701_vm11 = vcmp.eq.f32.partialorder %v700_v25, 8.507059e+37  ;;  %v3866_v56 = vsel %vm1363_vm8, %v3179_v54, 0 }
  0xb7   : > { %v3824_v60 = vadd.f32 %v3788_v26, %v519_v57  ;;  %v679_v61 = vmul.f32 %v3408_v50, %v678_v55  ;;  %3354 = vmatpush.bf16.msra.mxu3 %v3866_v56 }
  0xb9   : > { %v3410_v63 = vpop.eup %3409  ;;  %v3138_v0 = vmul.f32 -1.442695, %v3824_v60  ;;  %v680_v1 = vadd.f32 %v3408_v50, %v679_v61 }
  0xba   : > { %v3412_v2 = vpop.eup %3411  ;;  %v3827_v3 = vadd.f32 1.0, %v3410_v63 }
  0xbb   : > { %3413 = vpow2.f32 %v3138_v0  ;;  %v684_v6 = vsel %vm683_vm4, %v3408_v50, %v680_v1  ;;  %v692_v8 = vmul.f32 %v3412_v2, %v3815_v51  ;;  %vm697_vm7 = vweird.f32 %v3412_v2  ;;  %v3160_v51 = vld [vmem:[%s4797_s4 + $0x2] sm:$0x3]  ;;  %v436_v0 = vld [vmem:[#allocation2 + $0xb0] sm:$0xff]  ;;  %v437_v1 = vld [vmem:[#allocation2 + $0xb8] sm:$0xff] }
  0xbc   : > { %3415 = vrcp.f32 %v3827_v3  ;;  %v689_v11 = vsel %vm686_vm5, %v688_v7, %v684_v6  ;;  %vm698_vm10 = vmor %vm696_vm9, %vm697_vm7  ;;  %v717_v43 = vand.u32 2147483648, %v3827_v3  ;;  %v715_v48 = vand.u32 2147483647, %v3827_v3 }
  0xbd   : > { %v693_v13 = vsub.f32 1.0, %v692_v8  ;;  %v1051_v14 = vmul.f32 %v689_v11, %v3791_v29  ;;  %vm711_vm13 = vweird.f32 %v3827_v3  ;;  %v450_v7 = vpack.c.bf16 %v437_v1, %v436_v0 }
  0xbe   : > { %v522_v15 = vpop.f32.mrf.mxu0  ;;  %v718_v62 = vor.u32 1.1754944e-38, %v717_v43  ;;  %vm716_vm15 = vcmp.eq.f32.partialorder %v715_v48, 8.507059e+37 }
  0xbf   : > { %v3836_v21 = vadd.f32 %v3788_v26, %v522_v15  ;;  %v694_v22 = vmul.f32 %v3412_v2, %v693_v13  ;;  %v1227_v24 = vmul.f32 %v1105_v10, %v1051_v14 }
  0xc1   : > { %v3414_v28 = vpop.eup %3413  ;;  %v3139_v29 = vmul.f32 -1.442695, %v3836_v21  ;;  %3132 = vmatmul.msk.bf16.gmra.mxu0 %vm387_vm0, %v449_v12  ;;  %v695_v32 = vadd.f32 %v3412_v2, %v694_v22  ;;  %1253 = vst.msk [vmem:[#allocation3] sm:$0xff] %vm1252_vm6, %v1227_v24 }
  0xc2   : > { %v3416_v33 = vpop.eup %3415  ;;  %v3846_v34 = vadd.f32 1.0, %v3414_v28 }
  0xc3   : > { %v707_v35 = vmul.f32 %v3416_v33, %v3827_v3  ;;  %3417 = vpow2.f32 %v3139_v29  ;;  %v699_v36 = vsel %vm698_vm10, %v3412_v2, %v695_v32  ;;  %vm712_vm12 = vweird.f32 %v3416_v33 }
  0xc4   : > { %3419 = vrcp.f32 %v3846_v34  ;;  %v704_v42 = vsel %vm701_vm11, %v703_v38, %v699_v36  ;;  %vm713_vm14 = vmor %vm711_vm13, %vm712_vm12  ;;  %v730_v8 = vand.u32 2147483647, %v3846_v34  ;;  %v732_v10 = vand.u32 2147483648, %v3846_v34 }
  0xc5   : > { %v708_v39 = vsub.f32 1.0, %v707_v35  ;;  %v1052_v44 = vmul.f32 %v704_v42, %v3801_v37  ;;  %v1365_v37 = vsel %vm1363_vm8, %v3160_v51, 0  ;;  %vm726_vm2 = vweird.f32 %v3846_v34 }
  0xc6   : > { %v524_v45 = vpop.f32.mrf.mxu0  ;;  %3352 = vmatpush.bf16.msra.mxu1 %v1365_v37  ;;  %1374 = vmatpush.bf16.msrb.mxu0 %v1365_v37  ;;  %v733_v23 = vor.u32 1.1754944e-38, %v732_v10  ;;  %vm731_vm4 = vcmp.eq.f32.partialorder %v730_v8, 8.507059e+37 }
  0xc7   : > { %v709_v46 = vmul.f32 %v3416_v33, %v708_v39  ;;  %v3856_v50 = vadd.f32 %v3788_v26, %v524_v45  ;;  %v1228_v55 = vmul.f32 %v1110_v49, %v1052_v44  ;;  %v1125_v49 = vpop.permute.xlu1 %1124 }
  0xc9   : > { %v3418_v57 = vpop.eup %3417  ;;  %v710_v58 = vadd.f32 %v3416_v33, %v709_v46  ;;  %v3140_v59 = vmul.f32 -1.442695, %v3856_v50  ;;  %1254 = vst.msk [vmem:[#allocation3 + $0x8] sm:$0xff] %vm1252_vm6, %v1228_v55  ;;  %v438_v46 = vld [vmem:[#allocation2 + $0xc0] sm:$0x3f] }
  0xca   : > { %v3420_v61 = vpop.eup %3419  ;;  %v655_v63 = vadd.f32 1.0, %v3418_v57  ;;  %1458 = vmatpush.bf16.msra.mxu0 %v1449_v27  ;;  %v451_v37 = vpack.c.bf16 %v438_v46, %v438_v46 }
  0xcb   : > { %v714_v2 = vsel %vm713_vm14, %v3416_v33, %v710_v58  ;;  %v722_v4 = vmul.f32 %v3420_v61, %v3846_v34  ;;  %3421 = vpow2.f32 %v3140_v59  ;;  %vm727_vm1 = vweird.f32 %v3420_v61 }
  0xcc   : > { %v719_v3 = vsel %vm716_vm15, %v718_v62, %v714_v2  ;;  %3423 = vrcp.f32 %v655_v63  ;;  %vm728_vm3 = vmor %vm726_vm2, %vm727_vm1  ;;  %v745_v32 = vand.u32 2147483647, %v655_v63  ;;  %v747_v33 = vand.u32 2147483648, %v655_v63 }
  0xcd   : > { %v1053_v5 = vmul.f32 %v719_v3, %v3811_v47  ;;  %v723_v6 = vsub.f32 1.0, %v722_v4  ;;  %vm741_vm7 = vweird.f32 %v655_v63 }
  0xce   : > { %v527_v11 = vpop.f32.mrf.mxu0  ;;  %vm746_vm10 = vcmp.eq.f32.partialorder %v745_v32, 8.507059e+37 }
  0xcf   : > { %v1229_v12 = vmul.f32 %v3773_v16, %v1053_v5  ;;  %v724_v13 = vmul.f32 %v3420_v61, %v723_v6  ;;  %v3879_v14 = vadd.f32 %v3788_v26, %v527_v11 }
  0xd1   : > { %v3422_v15 = vpop.eup %3421  ;;  %1255 = vst.msk [vmem:[#allocation3 + $0x10] sm:$0xff] %vm1252_vm6, %v1229_v12  ;;  %v725_v18 = vadd.f32 %v3420_v61, %v724_v13  ;;  %v3141_v47 = vmul.f32 -1.442695, %v3879_v14  ;;  %3133 = vmatmul.msk.bf16.gmra.mxu0 %vm387_vm0, %v450_v7 }
  0xd2   : > { %v3424_v22 = vpop.eup %3423  ;;  %v656_v24 = vadd.f32 1.0, %v3422_v15  ;;  %v1130_v15 = vpop.permute.xlu1 %1129 }
  0xd3   : > { %v729_v16 = vsel %vm728_vm3, %v3420_v61, %v725_v18  ;;  %v737_v25 = vmul.f32 %v3424_v22, %v655_v63  ;;  %3425 = vpow2.f32 %v3141_v47  ;;  %vm742_vm5 = vweird.f32 %v3424_v22 }
  0xd4   : > { %v734_v27 = vsel %vm731_vm4, %v733_v23, %v729_v16  ;;  %3427 = vrcp.f32 %v656_v24  ;;  %vm743_vm9 = vmor %vm741_vm7, %vm742_vm5  ;;  %v760_v57 = vand.u32 2147483647, %v656_v24  ;;  %v762_v58 = vand.u32 2147483648, %v656_v24 }
  0xd5   : > { %v1054_v28 = vmul.f32 %v734_v27, %v3824_v60  ;;  %v738_v29 = vsub.f32 1.0, %v737_v25  ;;  %v748_v60 = vor.u32 1.1754944e-38, %v747_v33  ;;  %vm756_vm12 = vweird.f32 %v656_v24 }
  0xd6   : > { %v529_v34 = vpop.f32.mrf.mxu0  ;;  %v763_v6 = vor.u32 1.1754944e-38, %v762_v58  ;;  %vm761_vm14 = vcmp.eq.f32.partialorder %v760_v57, 8.507059e+37 }
  0xd7   : > { %v1230_v35 = vmul.f32 %v3778_v19, %v1054_v28  ;;  %v739_v36 = vmul.f32 %v3424_v22, %v738_v29  ;;  %v3888_v38 = vadd.f32 %v3788_v26, %v529_v34  ;;  %v3199_v34 = vld [vmem:[%s4797_s4 + $0x8] sm:$0x3] }
  0xd8   : > { %v1281_v0 = vld [vmem:[#allocation3 + $0x10] sm:$0xff] }
  0xd9   : > { %v3426_v39 = vpop.eup %3425  ;;  %1256 = vst.msk [vmem:[#allocation3 + $0x18] sm:$0xff] %vm1252_vm6, %v1230_v35  ;;  %v740_v42 = vadd.f32 %v3424_v22, %v739_v36  ;;  %v3142_v43 = vmul.f32 -1.442695, %v3888_v38 }
  0xda   : > { %v3428_v44 = vpop.eup %3427  ;;  %v3892_v45 = vadd.f32 1.0, %v3426_v39 }
  0xdb   : > { %v744_v48 = vsel %vm743_vm9, %v3424_v22, %v740_v42  ;;  %v752_v19 = vmul.f32 %v3428_v44, %v656_v24  ;;  %3429 = vpow2.f32 %v3142_v43  ;;  %vm757_vm11 = vweird.f32 %v3428_v44 }
  0xdc   : > { %v749_v51 = vsel %vm746_vm10, %v748_v60, %v744_v48  ;;  %3431 = vrcp.f32 %v3892_v45  ;;  %vm758_vm13 = vmor %vm756_vm12, %vm757_vm11  ;;  %v775_v18 = vand.u32 2147483647, %v3892_v45  ;;  %v777_v47 = vand.u32 2147483648, %v3892_v45  ;;  %v3189_v60 = vld [vmem:[%s4797_s4 + $0x6] sm:$0x3]  ;;  %v1308_v48 = vld [vmem:[#allocation3 + $0x9] sm:$0xff] }
  0xdd   : > { %v1055_v54 = vmul.f32 %v749_v51, %v3836_v21  ;;  %v753_v55 = vsub.f32 1.0, %v752_v19  ;;  %vm771_vm1 = vweird.f32 %v3892_v45 }
  0xde   : > { %v532_v59 = vpop.f32.mrf.mxu0  ;;  %v778_v42 = vor.u32 1.1754944e-38, %v777_v47  ;;  %vm776_vm3 = vcmp.eq.f32.partialorder %v775_v18, 8.507059e+37 }
  0xdf   : > { %v1231_v61 = vmul.f32 %v1125_v49, %v1055_v54  ;;  %v754_v62 = vmul.f32 %v3428_v44, %v753_v55  ;;  %v3897_v63 = vadd.f32 %v3788_v26, %v532_v59  ;;  %v1693_v54 = vsel %vm1363_vm8, %v3189_v60, 0  ;;  %v1307_v55 = vld [vmem:[#allocation3 + $0x1] sm:$0xff] }
  0xe0   : > { %v1282_v1 = vld [vmem:[#allocation3 + $0x18] sm:$0xff]  ;;  %1702 = vmatpush.bf16.msrb.mxu1 %v1693_v54  ;;  %v1325_v59 = vpack.c.bf16 %v1308_v48, %v1307_v55 }
  0xe1   : > { %v3430_v2 = vpop.eup %3429  ;;  %1257 = vst.msk [vmem:[#allocation3 + $0x20] sm:$0xff] %vm1252_vm6, %v1231_v61  ;;  %v755_v4 = vadd.f32 %v3428_v44, %v754_v62  ;;  %v3143_v21 = vmul.f32 -1.442695, %v3897_v63  ;;  %3134 = vmatmul.msk.bf16.gmra.mxu0 %vm387_vm0, %v451_v37  ;;  %v1298_v3 = vpack.c.bf16 %v1282_v1, %v1281_v0  ;;  %v1309_v25 = vld [vmem:[#allocation3 + $0x11] sm:$0xff] }
  0xe2   : > { %v3432_v5 = vpop.eup %3431  ;;  %v3902_v7 = vadd.f32 1.0, %v3430_v2  ;;  %v1507_v28 = vld [vmem:[#allocation3 + $0x12] sm:$0xff] }
  0xe3   : > { %v759_v8 = vsel %vm758_vm13, %v3428_v44, %v755_v4  ;;  %v767_v10 = vmul.f32 %v3432_v5, %v3892_v45  ;;  %3433 = vpow2.f32 %v3143_v21  ;;  %3171 = vmatmul.msk.bf16.vlgmr.msra.gmra.mxu2 %vm1252_vm6, %v1298_v3  ;;  %vm772_vm15 = vweird.f32 %v3432_v5 }
  0xe4   : > { %v764_v11 = vsel %vm761_vm14, %v763_v6, %v759_v8  ;;  %3435 = vrcp.f32 %v3902_v7  ;;  %vm773_vm2 = vmor %vm771_vm1, %vm772_vm15  ;;  %v1824_v44 = vsel %vm1363_vm8, %v3199_v34, 0  ;;  %v790_v37 = vand.u32 2147483647, %v3902_v7 }
  0xe5   : > { %v1056_v12 = vmul.f32 %v764_v11, %v3856_v50  ;;  %v768_v13 = vsub.f32 1.0, %v767_v10  ;;  %1833 = vmatpush.bf16.msrb.mxu2 %v1824_v44  ;;  %v792_v57 = vand.u32 2147483648, %v3902_v7  ;;  %vm786_vm5 = vweird.f32 %v3902_v7 }
  0xe6   : > { %v534_v22 = vpop.f32.mrf.mxu0  ;;  %vm791_vm9 = vcmp.eq.f32.partialorder %v790_v37, 8.507059e+37 }
  0xe7   : > { %v1232_v23 = vmul.f32 %v1130_v15, %v1056_v12  ;;  %v769_v24 = vmul.f32 %v3432_v5, %v768_v13  ;;  %v3911_v16 = vadd.f32 %v3788_v26, %v534_v22 }
  0xe8   : > { %v1310_v27 = vld [vmem:[#allocation3 + $0x19] sm:$0xff] }
  0xe9   : > { %v1508_v29 = vld [vmem:[#allocation3 + $0x1a] sm:$0xff]  ;;  %v3434_v50 = vpop.eup %3433  ;;  %1258 = vst.msk [vmem:[#allocation3 + $0x28] sm:$0xff] %vm1252_vm6, %v1232_v23  ;;  %v770_v32 = vadd.f32 %v3432_v5, %v769_v24  ;;  %v3144_v33 = vmul.f32 -1.442695, %v3911_v16  ;;  %v1326_v35 = vpack.c.bf16 %v1310_v27, %v1309_v25 }
  0xea   : > { %v3919_v36 = vpack.c.bf16 %v1508_v29, %v1507_v28  ;;  %v3436_v39 = vpop.eup %3435  ;;  %v3922_v43 = vadd.f32 1.0, %v3434_v50  ;;  %v1283_v1 = vld [vmem:[#allocation3 + $0x20] sm:$0xff] }
  0xeb   : > { %v774_v45 = vsel %vm773_vm2, %v3432_v5, %v770_v32  ;;  %v782_v46 = vmul.f32 %v3436_v39, %v3902_v7  ;;  %3437 = vpow2.f32 %v3144_v33  ;;  %3162 = vmatmul.msk.bf16.vlgmr.msra.gmra.mxu1 %vm1252_vm6, %v1326_v35  ;;  %vm787_vm4 = vweird.f32 %v3436_v39 }
  0xec   : > { %v779_v19 = vsel %vm776_vm3, %v778_v42, %v774_v45  ;;  %3439 = vrcp.f32 %v3922_v43  ;;  %3181 = vmatmul.msk.bf16.vlgmr.msra.gmra.mxu3 %vm1252_vm6, %v3919_v36  ;;  %vm788_vm7 = vmor %vm786_vm5, %vm787_vm4  ;;  %v805_v13 = vand.u32 2147483647, %v3922_v43  ;;  %v807_v15 = vand.u32 2147483648, %v3922_v43  ;;  %v1280_v42 = vld [vmem:[#allocation3 + $0x8] sm:$0xff]  ;;  %v1279_v45 = vld [vmem:[#allocation3] sm:$0xff] }
  0xed   : > { %v1057_v49 = vmul.f32 %v779_v19, %v3879_v14  ;;  %v783_v51 = vsub.f32 1.0, %v782_v46  ;;  %vm801_vm11 = vweird.f32 %v3922_v43  ;;  %v3219_v46 = vld [vmem:[%s4797_s4 + $0xc] sm:$0x3] }
  0xee   : > { %v537_v58 = vpop.f32.mrf.mxu0  ;;  %v808_v33 = vor.u32 1.1754944e-38, %v807_v15  ;;  %vm806_vm13 = vcmp.eq.f32.partialorder %v805_v13, 8.507059e+37 }
  0xef   : > { %v1233_v61 = vmul.f32 %v3775_v17, %v1057_v49  ;;  %v784_v62 = vmul.f32 %v3436_v39, %v783_v51  ;;  %v3939_v0 = vadd.f32 %v3788_v26, %v537_v58  ;;  %v793_v17 = vor.u32 1.1754944e-38, %v792_v57 }
  0xf0   : > { %v1284_v14 = vld [vmem:[#allocation3 + $0x28] sm:$0xff]  ;;  %v1297_v51 = vpack.c.bf16 %v1280_v42, %v1279_v45 }
  0xf1   : > { %v3438_v2 = vpop.eup %3437  ;;  %1259 = vst.msk [vmem:[#allocation3 + $0x30] sm:$0xff] %vm1252_vm6, %v1233_v61  ;;  %v785_v4 = vadd.f32 %v3436_v39, %v784_v62  ;;  %v3145_v21 = vmul.f32 -1.442695, %v3939_v0  ;;  %3161 = vmatmul.msk.bf16.vlgmr.msrb.gmra.mxu0 %vm1252_vm6, %v1325_v59  ;;  %v1299_v3 = vpack.c.bf16 %v1284_v14, %v1283_v1  ;;  %v1311_v23 = vld [vmem:[#allocation3 + $0x21] sm:$0xff] }
  0xf2   : > { %v3440_v5 = vpop.eup %3439  ;;  %v3945_v6 = vadd.f32 1.0, %v3438_v2  ;;  %1571 = vmatpush.bf16.msrb.mxu0 %v3866_v56  ;;  %v1509_v25 = vld [vmem:[#allocation3 + $0x22] sm:$0xff] }
  0xf3   : > { %v789_v8 = vsel %vm788_vm7, %v3436_v39, %v785_v4  ;;  %v797_v10 = vmul.f32 %v3440_v5, %v3922_v43  ;;  %3441 = vpow2.f32 %v3145_v21  ;;  %3172 = vmatmul.msk.bf16.gmra.mxu2 %vm1252_vm6, %v1299_v3  ;;  %vm802_vm10 = vweird.f32 %v3440_v5  ;;  %v1505_v42 = vld [vmem:[#allocation3 + $0x2] sm:$0xff] }
  0xf4   : > { %v794_v7 = vsel %vm791_vm9, %v793_v17, %v789_v8  ;;  %3443 = vrcp.f32 %v3945_v6  ;;  %vm803_vm12 = vmor %vm801_vm11, %vm802_vm10  ;;  %v820_v48 = vand.u32 2147483647, %v3945_v6  ;;  %v822_v19 = vand.u32 2147483648, %v3945_v6 }
  0xf5   : > { %v1058_v11 = vmul.f32 %v794_v7, %v3888_v38  ;;  %v798_v12 = vsub.f32 1.0, %v797_v10  ;;  %vm816_vm15 = vweird.f32 %v3945_v6 }
  0xf6   : > { %v539_v18 = vpop.f32.mrf.mxu0  ;;  %v823_v14 = vor.u32 1.1754944e-38, %v822_v19  ;;  %vm821_vm2 = vcmp.eq.f32.partialorder %v820_v48, 8.507059e+37 }
  0xf7   : > { %v1234_v56 = vmul.f32 %v3780_v20, %v1058_v11  ;;  %v799_v47 = vmul.f32 %v3440_v5, %v798_v12  ;;  %v3956_v22 = vadd.f32 %v3788_v26, %v539_v18 }
  0xf8   : > { %v1312_v24 = vld [vmem:[#allocation3 + $0x29] sm:$0xff] }
  0xf9   : > { %v1510_v27 = vld [vmem:[#allocation3 + $0x2a] sm:$0xff]  ;;  %v3442_v38 = vpop.eup %3441  ;;  %1260 = vst.msk [vmem:[#allocation3 + $0x38] sm:$0xff] %vm1252_vm6, %v1234_v56  ;;  %v800_v28 = vadd.f32 %v3440_v5, %v799_v47  ;;  %v3146_v29 = vmul.f32 -1.442695, %v3956_v22  ;;  %v1327_v50 = vpack.c.bf16 %v1312_v24, %v1311_v23 }
  0xfa   : > { %v3961_v32 = vpack.c.bf16 %v1510_v27, %v1509_v25  ;;  %v3444_v20 = vpop.eup %3443  ;;  %v3963_v34 = vadd.f32 1.0, %v3442_v38  ;;  %v1285_v57 = vld [vmem:[#allocation3 + $0x30] sm:$0xff] }
  0xfb   : > { %v804_v35 = vsel %vm803_vm12, %v3440_v5, %v800_v28  ;;  %v812_v39 = vmul.f32 %v3444_v20, %v3945_v6  ;;  %3445 = vpow2.f32 %v3146_v29  ;;  %3163 = vmatmul.msk.bf16.gmra.mxu1 %vm1252_vm6, %v1327_v50  ;;  %vm817_vm14 = vweird.f32 %v3444_v20  ;;  %v1150_v6 = vpop.permute.xlu1 %1149 }
  0xfc   : > { %v809_v43 = vsel %vm806_vm13, %v808_v33, %v804_v35  ;;  %3447 = vrcp.f32 %v3963_v34  ;;  %3182 = vmatmul.msk.bf16.gmra.mxu3 %vm1252_vm6, %v3961_v32  ;;  %vm818_vm1 = vmor %vm816_vm15, %vm817_vm14  ;;  %v835_v8 = vand.u32 2147483647, %v3963_v34  ;;  %v837_v10 = vand.u32 2147483648, %v3963_v34  ;;  %v1506_v33 = vld [vmem:[#allocation3 + $0xa] sm:$0xff] }
  0xfd   : > { %v1059_v44 = vmul.f32 %v809_v43, %v3897_v63  ;;  %v813_v60 = vsub.f32 1.0, %v812_v39  ;;  %v2086_v63 = vsel %vm1363_vm8, %v3219_v46, 0  ;;  %vm831_vm4 = vweird.f32 %v3963_v34 }
  0xfe   : > { %v542_v49 = vpop.f32.mrf.mxu0  ;;  %v838_v28 = vor.u32 1.1754944e-38, %v837_v10  ;;  %vm836_vm7 = vcmp.eq.f32.partialorder %v835_v8, 8.507059e+37  ;;  %v1523_v45 = vpack.c.bf16 %v1506_v33, %v1505_v42 }
  0xff   : > { %v1235_v54 = vmul.f32 %v3793_v30, %v1059_v44  ;;  %v814_v55 = vmul.f32 %v3444_v20, %v813_v60  ;;  %v3978_v37 = vadd.f32 %v3788_v26, %v542_v49 }
 0x100   : > { %v1286_v58 = vld [vmem:[#allocation3 + $0x38] sm:$0xff] }
 0x101   : > { %v3446_v59 = vpop.eup %3445  ;;  %1261 = vst.msk [vmem:[#allocation3 + $0x40] sm:$0xff] %vm1252_vm6, %v1235_v54  ;;  %v815_v61 = vadd.f32 %v3444_v20, %v814_v55  ;;  %v3147_v62 = vmul.f32 -1.442695, %v3978_v37  ;;  %3170 = vmatmul.msk.bf16.vlgmr.msra.gmra.mxu0 %vm1252_vm6, %v1297_v51  ;;  %v1300_v1 = vpack.c.bf16 %v1286_v58, %v1285_v57  ;;  %v1313_v15 = vld [vmem:[#allocation3 + $0x31] sm:$0xff] }
 0x102   : > { %v3448_v30 = vpop.eup %3447  ;;  %v3986_v2 = vadd.f32 1.0, %v3446_v59  ;;  %2095 = vmatpush.bf16.msra.mxu0 %v2086_v63  ;;  %v1511_v56 = vld [vmem:[#allocation3 + $0x32] sm:$0xff] }
 0x103   : > { %v819_v4 = vsel %vm818_vm1, %v3444_v20, %v815_v61  ;;  %v827_v21 = vmul.f32 %v3448_v30, %v3963_v34  ;;  %3449 = vpow2.f32 %v3147_v62  ;;  %3173 = vmatmul.msk.bf16.gmra.mxu2 %vm1252_vm6, %v1300_v1  ;;  %vm832_vm3 = vweird.f32 %v3448_v30 }
 0x104   : > { %v824_v3 = vsel %vm821_vm2, %v823_v14, %v819_v4  ;;  %3451 = vrcp.f32 %v3986_v2  ;;  %vm833_vm5 = vmor %vm831_vm4, %vm832_vm3  ;;  %v850_v43 = vand.u32 2147483647, %v3986_v2  ;;  %v852_v44 = vand.u32 2147483648, %v3986_v2 }
 0x105   : > { %v1060_v5 = vmul.f32 %v824_v3, %v3911_v16  ;;  %v828_v17 = vsub.f32 1.0, %v827_v21  ;;  %vm846_vm10 = vweird.f32 %v3986_v2 }
 0x106   : > { %v544_v7 = vpop.f32.mrf.mxu0  ;;  %vm851_vm12 = vcmp.eq.f32.partialorder %v850_v43, 8.507059e+37 }
 0x107   : > { %v1236_v11 = vmul.f32 %v1150_v6, %v1060_v5  ;;  %v829_v12 = vmul.f32 %v3448_v30, %v828_v17  ;;  %v3995_v13 = vadd.f32 %v3788_v26, %v544_v7 }
 0x108   : > { %v1314_v18 = vld [vmem:[#allocation3 + $0x39] sm:$0xff] }
 0x109   : > { %v1512_v47 = vld [vmem:[#allocation3 + $0x3a] sm:$0xff]  ;;  %v3450_v16 = vpop.eup %3449  ;;  %1262 = vst.msk [vmem:[#allocation3 + $0x48] sm:$0xff] %vm1252_vm6, %v1236_v11  ;;  %v830_v23 = vadd.f32 %v3448_v30, %v829_v12  ;;  %v3148_v24 = vmul.f32 -1.442695, %v3995_v13  ;;  %v1328_v25 = vpack.c.bf16 %v1314_v18, %v1313_v15 }
 0x10a   : > { %v4000_v27 = vpack.c.bf16 %v1512_v47, %v1511_v56  ;;  %v3452_v38 = vpop.eup %3451  ;;  %v4002_v29 = vadd.f32 1.0, %v3450_v16  ;;  %v1287_v49 = vld [vmem:[#allocation3 + $0x40] sm:$0xff] }
 0x10b   : > { %v834_v50 = vsel %vm833_vm5, %v3448_v30, %v830_v23  ;;  %v842_v20 = vmul.f32 %v3452_v38, %v3986_v2  ;;  %3453 = vpow2.f32 %v3148_v24  ;;  %3164 = vmatmul.msk.bf16.gmra.mxu1 %vm1252_vm6, %v1328_v25  ;;  %vm847_vm9 = vweird.f32 %v3452_v38  ;;  %v2030_v23 = vld [vmem:[#allocation3 + $0x2c] sm:$0xff] }
 0x10c   : > { %v839_v34 = vsel %vm836_vm7, %v838_v28, %v834_v50  ;;  %3455 = vrcp.f32 %v4002_v29  ;;  %3183 = vmatmul.msk.bf16.gmra.mxu3 %vm1252_vm6, %v4000_v27  ;;  %vm848_vm11 = vmor %vm846_vm10, %vm847_vm9  ;;  %v865_v14 = vand.u32 2147483647, %v4002_v29  ;;  %v867_v2 = vand.u32 2147483648, %v4002_v29  ;;  %v2029_v28 = vld [vmem:[#allocation3 + $0x24] sm:$0xff] }
 0x10d   : > { %v1061_v35 = vmul.f32 %v839_v34, %v3939_v0  ;;  %v843_v39 = vsub.f32 1.0, %v842_v20  ;;  %vm861_vm14 = vweird.f32 %v4002_v29  ;;  %v4047_v34 = vpack.c.bf16 %v2030_v23, %v2029_v28 }
 0x10e   : > { %v547_v60 = vpop.f32.mrf.mxu0  ;;  %v868_v18 = vor.u32 1.1754944e-38, %v867_v2  ;;  %vm866_vm1 = vcmp.eq.f32.partialorder %v865_v14, 8.507059e+37 }
 0x10f   : > { %v1237_v46 = vmul.f32 %v3795_v31, %v1061_v35  ;;  %v844_v48 = vmul.f32 %v3452_v38, %v843_v39  ;;  %v4014_v19 = vadd.f32 %v3788_v26, %v547_v60  ;;  %v853_v31 = vor.u32 1.1754944e-38, %v852_v44 }
 0x110   : > { %v1288_v51 = vld [vmem:[#allocation3 + $0x48] sm:$0xff] }
 0x111   : > { %v3454_v54 = vpop.eup %3453  ;;  %1263 = vst.msk [vmem:[#allocation3 + $0x50] sm:$0xff] %vm1252_vm6, %v1237_v46  ;;  %v845_v0 = vadd.f32 %v3452_v38, %v844_v48  ;;  %v3149_v55 = vmul.f32 -1.442695, %v4014_v19  ;;  %3180 = vmatmul.msk.bf16.vlgmr.msrb.gmra.mxu0 %vm1252_vm6, %v1523_v45  ;;  %v1301_v63 = vpack.c.bf16 %v1288_v51, %v1287_v49  ;;  %v1315_v17 = vld [vmem:[#allocation3 + $0x41] sm:$0xff] }
 0x112   : > { %v3456_v57 = vpop.eup %3455  ;;  %v4020_v58 = vadd.f32 1.0, %v3454_v54  ;;  %v1513_v8 = vld [vmem:[#allocation3 + $0x42] sm:$0xff] }
 0x113   : > { %v849_v59 = vsel %vm848_vm11, %v3452_v38, %v845_v0  ;;  %v857_v61 = vmul.f32 %v3456_v57, %v4002_v29  ;;  %3457 = vpow2.f32 %v3149_v55  ;;  %3174 = vmatmul.msk.bf16.gmra.mxu2 %vm1252_vm6, %v1301_v63  ;;  %vm862_vm13 = vweird.f32 %v3456_v57  ;;  %v1165_v29 = vpop.permute.xlu1 %1164 }
 0x114   : > { %v854_v62 = vsel %vm851_vm12, %v853_v31, %v849_v59  ;;  %3459 = vrcp.f32 %v4020_v58  ;;  %vm863_vm15 = vmor %vm861_vm14, %vm862_vm13  ;;  %v880_v50 = vand.u32 2147483647, %v4020_v58  ;;  %v882_v20 = vand.u32 2147483648, %v4020_v58 }
 0x115   : > { %v1062_v1 = vmul.f32 %v854_v62, %v3956_v22  ;;  %v858_v30 = vsub.f32 1.0, %v857_v61  ;;  %vm876_vm3 = vweird.f32 %v4020_v58 }
 0x116   : > { %v549_v4 = vpop.f32.mrf.mxu0  ;;  %v883_v49 = vor.u32 1.1754944e-38, %v882_v20  ;;  %vm881_vm5 = vcmp.eq.f32.partialorder %v880_v50, 8.507059e+37 }
 0x117   : > { %v1238_v21 = vmul.f32 %v3805_v40, %v1062_v1  ;;  %v859_v3 = vmul.f32 %v3456_v57, %v858_v30  ;;  %v4030_v5 = vadd.f32 %v3788_v26, %v549_v4 }
 0x118   : > { %v1316_v6 = vld [vmem:[#allocation3 + $0x49] sm:$0xff] }
 0x119   : > { %v1514_v10 = vld [vmem:[#allocation3 + $0x4a] sm:$0xff]  ;;  %v3458_v22 = vpop.eup %3457  ;;  %1264 = vst.msk [vmem:[#allocation3 + $0x58] sm:$0xff] %vm1252_vm6, %v1238_v21  ;;  %v860_v7 = vadd.f32 %v3456_v57, %v859_v3  ;;  %v3150_v11 = vmul.f32 -1.442695, %v4030_v5  ;;  %v1329_v12 = vpack.c.bf16 %v1316_v6, %v1315_v17 }
 0x11a   : > { %v4035_v15 = vpack.c.bf16 %v1514_v10, %v1513_v8  ;;  %v3460_v40 = vpop.eup %3459  ;;  %v4037_v56 = vadd.f32 1.0, %v3458_v22  ;;  %v1289_v43 = vld [vmem:[#allocation3 + $0x50] sm:$0xff] }
 0x11b   : > { %v864_v47 = vsel %vm863_vm15, %v3456_v57, %v860_v7  ;;  %v872_v16 = vmul.f32 %v3460_v40, %v4020_v58  ;;  %3461 = vpow2.f32 %v3150_v11  ;;  %3165 = vmatmul.msk.bf16.gmra.mxu1 %vm1252_vm6, %v1329_v12  ;;  %vm877_vm2 = vweird.f32 %v3460_v40  ;;  %v2032_v7 = vld [vmem:[#allocation3 + $0x3c] sm:$0xff] }
 0x11c   : > { %v869_v24 = vsel %vm866_vm1, %v868_v18, %v864_v47  ;;  %3463 = vrcp.f32 %v4037_v56  ;;  %3184 = vmatmul.msk.bf16.gmra.mxu3 %vm1252_vm6, %v4035_v15  ;;  %vm878_vm4 = vmor %vm876_vm3, %vm877_vm2  ;;  %v895_v31 = vand.u32 2147483647, %v4037_v56  ;;  %v897_v58 = vand.u32 2147483648, %v4037_v56  ;;  %v2031_v18 = vld [vmem:[#allocation3 + $0x34] sm:$0xff] }
 0x11d   : > { %v1063_v25 = vmul.f32 %v869_v24, %v3978_v37  ;;  %v873_v38 = vsub.f32 1.0, %v872_v16  ;;  %vm891_vm9 = vweird.f32 %v4037_v56  ;;  %v4084_v23 = vpack.c.bf16 %v2032_v7, %v2031_v18 }
 0x11e   : > { %v552_v33 = vpop.f32.mrf.mxu0  ;;  %v898_v8 = vor.u32 1.1754944e-38, %v897_v58  ;;  %vm896_vm11 = vcmp.eq.f32.partialorder %v895_v31, 8.507059e+37 }
 0x11f   : > { %v1239_v35 = vmul.f32 %v1165_v29, %v1063_v25  ;;  %v874_v39 = vmul.f32 %v3460_v40, %v873_v38  ;;  %v4050_v42 = vadd.f32 %v3788_v26, %v552_v33  ;;  %v4090_v38 = vld [vmem:[%s4796_s3] ss:$0 sm:$0xff] }
 0x120   : > { %v1290_v44 = vld [vmem:[#allocation3 + $0x58] sm:$0xff] }
 0x121   : > { %v3462_v60 = vpop.eup %3461  ;;  %1265 = vst.msk [vmem:[#allocation3 + $0x60] sm:$0xff] %vm1252_vm6, %v1239_v35  ;;  %v875_v37 = vadd.f32 %v3460_v40, %v874_v39  ;;  %v3151_v45 = vmul.f32 -1.442695, %v4050_v42  ;;  %3220 = vmatmul.msk.bf16.vlgmr.msra.gmra.mxu0 %vm1252_vm6, %v4047_v34  ;;  %v1302_v46 = vpack.c.bf16 %v1290_v44, %v1289_v43  ;;  %v1317_v30 = vld [vmem:[#allocation3 + $0x51] sm:$0xff] }
 0x122   : > { %v3464_v48 = vpop.eup %3463  ;;  %v4057_v51 = vadd.f32 1.0, %v3462_v60  ;;  %v1515_v2 = vld [vmem:[#allocation3 + $0x52] sm:$0xff] }
 0x123   : > { %v879_v54 = vsel %vm878_vm4, %v3460_v40, %v875_v37  ;;  %v887_v0 = vmul.f32 %v3464_v48, %v4037_v56  ;;  %3465 = vpow2.f32 %v3151_v45  ;;  %3175 = vmatmul.msk.bf16.gmra.mxu2 %vm1252_vm6, %v1302_v46  ;;  %vm892_vm7 = vweird.f32 %v3464_v48 }
 0x124   : > { %v884_v55 = vsel %vm881_vm5, %v883_v49, %v879_v54  ;;  %3467 = vrcp.f32 %v4057_v51  ;;  %vm893_vm10 = vmor %vm891_vm9, %vm892_vm7  ;;  %v910_v56 = vand.u32 2147483647, %v4057_v51  ;;  %v912_v47 = vand.u32 2147483648, %v4057_v51 }
 0x125   : > { %v1064_v63 = vmul.f32 %v884_v55, %v3995_v13  ;;  %v888_v57 = vsub.f32 1.0, %v887_v0  ;;  %vm906_vm13 = vweird.f32 %v4057_v51 }
 0x126   : > { %v554_v59 = vpop.f32.mrf.mxu0  ;;  %v913_v39 = vor.u32 1.1754944e-38, %v912_v47  ;;  %vm911_vm15 = vcmp.eq.f32.partialorder %v910_v56, 8.507059e+37 }
 0x127   : > { %v1240_v61 = vmul.f32 %v3807_v41, %v1064_v63  ;;  %v889_v62 = vmul.f32 %v3464_v48, %v888_v57  ;;  %v4067_v1 = vadd.f32 %v3788_v26, %v554_v59 }
 0x128   : > { %v1318_v14 = vld [vmem:[#allocation3 + $0x59] sm:$0xff] }
 0x129   : > { %v1516_v4 = vld [vmem:[#allocation3 + $0x5a] sm:$0xff]  ;;  %v3466_v13 = vpop.eup %3465  ;;  %1266 = vst.msk [vmem:[#allocation3 + $0x68] sm:$0xff] %vm1252_vm6, %v1240_v61  ;;  %v890_v21 = vadd.f32 %v3464_v48, %v889_v62  ;;  %v3152_v3 = vmul.f32 -1.442695, %v4067_v1  ;;  %v1330_v17 = vpack.c.bf16 %v1318_v14, %v1317_v30 }
 0x12a   : > { %v4072_v6 = vpack.c.bf16 %v1516_v4, %v1515_v2  ;;  %v3468_v41 = vpop.eup %3467  ;;  %v4074_v26 = vadd.f32 1.0, %v3466_v13  ;;  %v1291_v28 = vld [vmem:[#allocation3 + $0x60] sm:$0xff] }
 0x12b   : > { %v894_v10 = vsel %vm893_vm10, %v3464_v48, %v890_v21  ;;  %v902_v22 = vmul.f32 %v3468_v41, %v4057_v51  ;;  %3469 = vpow2.f32 %v3152_v3  ;;  %3166 = vmatmul.msk.bf16.gmra.mxu1 %vm1252_vm6, %v1330_v17  ;;  %vm907_vm12 = vweird.f32 %v3468_v41  ;;  %v1180_v48 = vpop.permute.xlu1 %1179  ;;  %v2034_v17 = vld [vmem:[#allocation3 + $0x4c] sm:$0xff] }
 0x12c   : > { %v899_v11 = vsel %vm896_vm11, %v898_v8, %v894_v10  ;;  %3471 = vrcp.f32 %v4074_v26  ;;  %3185 = vmatmul.msk.bf16.gmra.mxu3 %vm1252_vm6, %v4072_v6  ;;  %vm908_vm14 = vmor %vm906_vm13, %vm907_vm12  ;;  %v925_v49 = vand.u32 2147483647, %v4074_v26  ;;  %v927_v51 = vand.u32 2147483648, %v4074_v26  ;;  %v2033_v10 = vld [vmem:[#allocation3 + $0x44] sm:$0xff] }
 0x12d   : > { %v1065_v12 = vmul.f32 %v899_v11, %v4014_v19  ;;  %v903_v40 = vsub.f32 1.0, %v902_v22  ;;  %vm921_vm2 = vweird.f32 %v4074_v26 }
 0x12e   : > { %v557_v16 = vpop.f32.mrf.mxu0  ;;  %v928_v4 = vor.u32 1.1754944e-38, %v927_v51  ;;  %vm926_vm4 = vcmp.eq.f32.partialorder %v925_v49, 8.507059e+37  ;;  %v3209_v49 = vld [vmem:[%s4797_s4 + $0xa] sm:$0x3] }
 0x12f   : > { %v1241_v24 = vmul.f32 %v3817_v52, %v1065_v12  ;;  %v904_v25 = vmul.f32 %v3468_v41, %v903_v40  ;;  %v4093_v19 = vadd.f32 %v4090_v38, %v557_v16  ;;  %v4126_v12 = vpack.c.bf16 %v2034_v17, %v2033_v10  ;;  %v2035_v17 = vld [vmem:[#allocation3 + $0x54] sm:$0xff] }
 0x130   : > { %v1292_v29 = vld [vmem:[#allocation3 + $0x68] sm:$0xff] }
 0x131   : > { %v3470_v50 = vpop.eup %3469  ;;  %1267 = vst.msk [vmem:[#allocation3 + $0x70] sm:$0xff] %vm1252_vm6, %v1241_v24  ;;  %v905_v20 = vadd.f32 %v3468_v41, %v904_v25  ;;  %v3153_v52 = vmul.f32 -1.442695, %v4093_v19  ;;  %3221 = vmatmul.msk.bf16.gmra.mxu0 %vm1252_vm6, %v4084_v23  ;;  %v1303_v33 = vpack.c.bf16 %v1292_v29, %v1291_v28  ;;  %v1319_v57 = vld [vmem:[#allocation3 + $0x61] sm:$0xff] }
 0x132   : > { %v3472_v35 = vpop.eup %3471  ;;  %v4100_v43 = vadd.f32 1.0, %v3470_v50  ;;  %v1517_v58 = vld [vmem:[#allocation3 + $0x62] sm:$0xff] }
 0x133   : > { %v909_v44 = vsel %vm908_vm14, %v3468_v41, %v905_v20  ;;  %v917_v60 = vmul.f32 %v3472_v35, %v4074_v26  ;;  %3473 = vpow2.f32 %v3153_v52  ;;  %3176 = vmatmul.msk.bf16.gmra.mxu2 %vm1252_vm6, %v1303_v33  ;;  %vm922_vm1 = vweird.f32 %v3472_v35 }
 0x134   : > { %v914_v37 = vsel %vm911_vm15, %v913_v39, %v909_v44  ;;  %3475 = vrcp.f32 %v4100_v43  ;;  %vm923_vm3 = vmor %vm921_vm2, %vm922_vm1  ;;  %v940_v22 = vand.u32 2147483647, %v4100_v43  ;;  %v942_v7 = vand.u32 2147483648, %v4100_v43 }
 0x135   : > { %v1066_v45 = vmul.f32 %v914_v37, %v4030_v5  ;;  %v918_v46 = vsub.f32 1.0, %v917_v60  ;;  %vm936_vm7 = vweird.f32 %v4100_v43 }
 0x136   : > { %v559_v54 = vpop.f32.mrf.mxu0  ;;  %v943_v29 = vor.u32 1.1754944e-38, %v942_v7  ;;  %vm941_vm10 = vcmp.eq.f32.partialorder %v940_v22, 8.507059e+37 }
 0x137   : > { %v1242_v0 = vmul.f32 %v1180_v48, %v1066_v45  ;;  %v919_v55 = vmul.f32 %v3472_v35, %v918_v46  ;;  %v4109_v63 = vadd.f32 %v4090_v38, %v559_v54 }
 0x138   : > { %v1320_v31 = vld [vmem:[#allocation3 + $0x69] sm:$0xff] }
 0x139   : > { %v1518_v59 = vld [vmem:[#allocation3 + $0x6a] sm:$0xff]  ;;  %v3474_v5 = vpop.eup %3473  ;;  %1268 = vst.msk [vmem:[#allocation3 + $0x78] sm:$0xff] %vm1252_vm6, %v1242_v0  ;;  %v920_v61 = vadd.f32 %v3472_v35, %v919_v55  ;;  %v3154_v62 = vmul.f32 -1.442695, %v4109_v63  ;;  %v1331_v30 = vpack.c.bf16 %v1320_v31, %v1319_v57  ;;  %v1955_v0 = vsel %vm1363_vm8, %v3209_v49, 0 }
 0x13a   : > { %v4114_v14 = vpack.c.bf16 %v1518_v59, %v1517_v58  ;;  %v3476_v2 = vpop.eup %3475  ;;  %v4116_v13 = vadd.f32 1.0, %v3474_v5  ;;  %v1293_v47 = vld [vmem:[#allocation3 + $0x70] sm:$0xff]  ;;  %1964 = vmatpush.bf16.msrb.mxu3 %v1955_v0 }
 0x13b   : > { %v924_v21 = vsel %vm923_vm3, %v3472_v35, %v920_v61  ;;  %v932_v3 = vmul.f32 %v3476_v2, %v4100_v43  ;;  %3477 = vpow2.f32 %v3154_v62  ;;  %3167 = vmatmul.msk.bf16.gmra.mxu1 %vm1252_vm6, %v1331_v30  ;;  %vm937_vm5 = vweird.f32 %v3476_v2 }
 0x13c   : > { %v929_v41 = vsel %vm926_vm4, %v928_v4, %v924_v21  ;;  %3479 = vrcp.f32 %v4116_v13  ;;  %3186 = vmatmul.msk.bf16.gmra.mxu3 %vm1252_vm6, %v4114_v14  ;;  %vm938_vm9 = vmor %vm936_vm7, %vm937_vm5  ;;  %v955_v43 = vand.u32 2147483647, %v4116_v13  ;;  %v957_v44 = vand.u32 2147483648, %v4116_v13  ;;  %v1195_v4 = vpop.permute.xlu1 %1194 }
 0x13d   : > { %v1067_v8 = vmul.f32 %v929_v41, %v4050_v42  ;;  %v933_v26 = vsub.f32 1.0, %v932_v3  ;;  %vm951_vm12 = vweird.f32 %v4116_v13 }
 0x13e   : > { %v562_v11 = vpop.f32.mrf.mxu0  ;;  %v958_v5 = vor.u32 1.1754944e-38, %v957_v44  ;;  %vm956_vm14 = vcmp.eq.f32.partialorder %v955_v43, 8.507059e+37 }
 0x13f   : > { %v1243_v40 = vmul.f32 %v3819_v53, %v1067_v8  ;;  %v934_v18 = vmul.f32 %v3476_v2, %v933_v26  ;;  %v4130_v56 = vadd.f32 %v4090_v38, %v562_v11 }
 0x140   : > { %v1294_v16 = vld [vmem:[#allocation3 + $0x78] sm:$0xff] }
 0x141   : > { %v3478_v24 = vpop.eup %3477  ;;  %1269 = vst.msk [vmem:[#allocation3 + $0x80] sm:$0xff] %vm1252_vm6, %v1243_v40  ;;  %v935_v42 = vadd.f32 %v3476_v2, %v934_v18  ;;  %v3155_v25 = vmul.f32 -1.442695, %v4130_v56  ;;  %3222 = vmatmul.msk.bf16.gmra.mxu0 %vm1252_vm6, %v4126_v12  ;;  %v1304_v28 = vpack.c.bf16 %v1294_v16, %v1293_v47  ;;  %v1321_v48 = vld [vmem:[#allocation3 + $0x71] sm:$0xff] }
 0x142   : > { %v3480_v53 = vpop.eup %3479  ;;  %v4137_v50 = vadd.f32 1.0, %v3478_v24  ;;  %v1519_v51 = vld [vmem:[#allocation3 + $0x72] sm:$0xff] }
 0x143   : > { %v939_v20 = vsel %vm938_vm9, %v3476_v2, %v935_v42  ;;  %v947_v52 = vmul.f32 %v3480_v53, %v4116_v13  ;;  %3481 = vpow2.f32 %v3155_v25  ;;  %3177 = vmatmul.msk.bf16.gmra.mxu2 %vm1252_vm6, %v1304_v28  ;;  %vm952_vm11 = vweird.f32 %v3480_v53  ;;  %v2036_v2 = vld [vmem:[#allocation3 + $0x5c] sm:$0xff] }
 0x144   : > { %v944_v33 = vsel %vm941_vm10, %v943_v29, %v939_v20  ;;  %3483 = vrcp.f32 %v4137_v50  ;;  %vm953_vm13 = vmor %vm951_vm12, %vm952_vm11  ;;  %v970_v41 = vand.u32 2147483647, %v4137_v50  ;;  %v972_v8 = vand.u32 2147483648, %v4137_v50 }
 0x145   : > { %v1068_v35 = vmul.f32 %v944_v33, %v4067_v1  ;;  %v948_v39 = vsub.f32 1.0, %v947_v52  ;;  %v4166_v10 = vpack.c.bf16 %v2036_v2, %v2035_v17  ;;  %vm966_vm1 = vweird.f32 %v4137_v50  ;;  %v1205_v17 = vpop.permute.xlu2 %1204 }
 0x146   : > { %v564_v60 = vpop.f32.mrf.mxu0  ;;  %v973_v25 = vor.u32 1.1754944e-38, %v972_v8  ;;  %vm971_vm3 = vcmp.eq.f32.partialorder %v970_v41, 8.507059e+37  ;;  %v2037_v8 = vld [vmem:[#allocation3 + $0x64] sm:$0xff] }
 0x147   : > { %v1244_v37 = vmul.f32 %v3831_v9, %v1068_v35  ;;  %v949_v45 = vmul.f32 %v3480_v53, %v948_v39  ;;  %v4147_v46 = vadd.f32 %v4090_v38, %v564_v60  ;;  %v1200_v39 = vpop.permute.xlu1 %1199 }
 0x148   : > { %v1322_v1 = vld [vmem:[#allocation3 + $0x79] sm:$0xff] }
 0x149   : > { %v1520_v54 = vld [vmem:[#allocation3 + $0x7a] sm:$0xff]  ;;  %v3482_v55 = vpop.eup %3481  ;;  %1270 = vst.msk [vmem:[#allocation3 + $0x88] sm:$0xff] %vm1252_vm6, %v1244_v37  ;;  %v950_v9 = vadd.f32 %v3480_v53, %v949_v45  ;;  %v3156_v57 = vmul.f32 -1.442695, %v4147_v46  ;;  %v1332_v31 = vpack.c.bf16 %v1322_v1, %v1321_v48 }
 0x14a   : > { %v4156_v58 = vpack.c.bf16 %v1520_v54, %v1519_v51  ;;  %v3484_v59 = vpop.eup %3483  ;;  %v671_v61 = vadd.f32 1.0, %v3482_v55  ;;  %v1295_v40 = vld [vmem:[#allocation3 + $0x80] sm:$0xff] }
 0x14b   : > { %v954_v62 = vsel %vm953_vm13, %v3480_v53, %v950_v9  ;;  %v962_v30 = vmul.f32 %v3484_v59, %v4137_v50  ;;  %3485 = vpow2.f32 %v3156_v57  ;;  %3168 = vmatmul.msk.bf16.gmra.mxu1 %vm1252_vm6, %v1332_v31  ;;  %vm967_vm15 = vweird.f32 %v3484_v59 }
 0x14c   : > { %v959_v13 = vsel %vm956_vm14, %v958_v5, %v954_v62  ;;  %3487 = vrcp.f32 %v671_v61  ;;  %3187 = vmatmul.msk.bf16.gmra.mxu3 %vm1252_vm6, %v4156_v58  ;;  %vm968_vm2 = vmor %vm966_vm1, %vm967_vm15  ;;  %v985_v52 = vand.u32 2147483647, %v671_v61  ;;  %v987_v33 = vand.u32 2147483648, %v671_v61 }
 0x14d   : > { %v1069_v21 = vmul.f32 %v959_v13, %v4093_v19  ;;  %v963_v3 = vsub.f32 1.0, %v962_v30  ;;  %vm981_vm4 = vweird.f32 %v671_v61 }
 0x14e   : > { %v567_v26 = vpop.f32.mrf.mxu0  ;;  %vm4183_vm9 = vcmp.eq.f32.partialorder %v985_v52, 8.507059e+37 }
 0x14f   : > { %v1245_v22 = vmul.f32 %v1195_v4, %v1069_v21  ;;  %v964_v7 = vmul.f32 %v3484_v59, %v963_v3  ;;  %v4169_v11 = vadd.f32 %v4090_v38, %v567_v26  ;;  %v2038_v4 = vld [vmem:[#allocation3 + $0x6c] sm:$0xff]  ;;  %v1768_v26 = vld [vmem:[#allocation3 + $0x1b] sm:$0xff] }
 0x150   : > { %v1296_v18 = vld [vmem:[#allocation3 + $0x88] sm:$0xff] }
 0x151   : > { %v3486_v47 = vpop.eup %3485  ;;  %1271 = vst.msk [vmem:[#allocation3 + $0x90] sm:$0xff] %vm1252_vm6, %v1245_v22  ;;  %v965_v19 = vadd.f32 %v3484_v59, %v964_v7  ;;  %v3157_v16 = vmul.f32 -1.442695, %v4169_v11  ;;  %3223 = vmatmul.msk.bf16.gmra.mxu0 %vm1252_vm6, %v4166_v10  ;;  %v1305_v24 = vpack.c.bf16 %v1296_v18, %v1295_v40  ;;  %v1323_v45 = vld [vmem:[#allocation3 + $0x81] sm:$0xff]  ;;  %v4202_v18 = vpack.c.bf16 %v2038_v4, %v2037_v8  ;;  %v1215_v4 = vpop.permute.xlu1 %1214 }
 0x152   : > { %v3488_v42 = vpop.eup %3487  ;;  %v672_v28 = vadd.f32 1.0, %v3486_v47  ;;  %v1521_v48 = vld [vmem:[#allocation3 + $0x82] sm:$0xff]  ;;  %v1220_v47 = vpop.permute.xlu2 %1219 }
 0x153   : > { %v969_v53 = vsel %vm968_vm2, %v3484_v59, %v965_v19  ;;  %v977_v29 = vmul.f32 %v3488_v42, %v671_v61  ;;  %3489 = vpow2.f32 %v3157_v16  ;;  %3178 = vmatmul.msk.bf16.gmra.mxu2 %vm1252_vm6, %v1305_v24  ;;  %vm982_vm5 = vweird.f32 %v3488_v42  ;;  %v1778_v47 = vld [vmem:[#allocation3 + $0x6b] sm:$0xff] }
 0x154   : > { %v974_v20 = vsel %vm971_vm3, %v973_v25, %v969_v53  ;;  %3491 = vrcp.f32 %v672_v28  ;;  %vm4179_vm7 = vmor %vm981_vm4, %vm982_vm5  ;;  %vm996_vm10 = vweird.f32 %v672_v28  ;;  %v1002_v2 = vand.u32 2147483648, %v672_v28 }
 0x155   : > { %v1070_v50 = vmul.f32 %v974_v20, %v4109_v63  ;;  %v978_v35 = vsub.f32 1.0, %v977_v29  ;;  %v988_v63 = vor.u32 1.1754944e-38, %v987_v33  ;;  %v1000_v3 = vand.u32 2147483647, %v672_v28  ;;  %v3229_v20 = vld [vmem:[%s4797_s4 + $0xe] sm:$0x3] }
 0x156   : > { %v569_v43 = vpop.f32.mrf.mxu0  ;;  %v1003_v19 = vor.u32 1.1754944e-38, %v1002_v2 }
 0x157   : > { %v1246_v44 = vmul.f32 %v1200_v39, %v1070_v50  ;;  %v979_v60 = vmul.f32 %v3488_v42, %v978_v35  ;;  %v570_v37 = vadd.f32 %v4090_v38, %v569_v43  ;;  %vm1001_vm13 = vcmp.eq.f32.partialorder %v1000_v3, 8.507059e+37  ;;  %v1210_v43 = vpop.permute.xlu0 %1209  ;;  %v1770_v3 = vld [vmem:[#allocation3 + $0x2b] sm:$0xff] }
 0x158   : > { %v1324_v51 = vld [vmem:[#allocation3 + $0x89] sm:$0xff] }
 0x159   : > { %v1522_v54 = vld [vmem:[#allocation3 + $0x8a] sm:$0xff]  ;;  %v3490_v0 = vpop.eup %3489  ;;  %1272 = vst.msk [vmem:[#allocation3 + $0x98] sm:$0xff] %vm1252_vm6, %v1246_v44  ;;  %v980_v55 = vadd.f32 %v3488_v42, %v979_v60  ;;  %v3158_v9 = vmul.f32 -1.442695, %v570_v37  ;;  %v1333_v57 = vpack.c.bf16 %v1324_v51, %v1323_v45  ;;  %v2217_v37 = vsel %vm1363_vm8, %v3229_v20, 0 }
 0x15a   : > { %v4188_v31 = vpack.c.bf16 %v1522_v54, %v1521_v48  ;;  %v3492_v59 = vpop.eup %3491  ;;  %v4190_v5 = vadd.f32 1.0, %v3490_v0  ;;  %2226 = vmatpush.bf16.msra.mxu1 %v2217_v37 }
 0x15b   : > { %v984_v61 = vsel %vm4179_vm7, %v3488_v42, %v980_v55  ;;  %v992_v62 = vmul.f32 %v3492_v59, %v672_v28  ;;  %3493 = vpow2.f32 %v3158_v9  ;;  %3169 = vmatmul.msk.bf16.gmra.mxu1 %vm1252_vm6, %v1333_v57  ;;  %vm997_vm11 = vweird.f32 %v3492_v59  ;;  %v1898_v9 = vld [vmem:[#allocation3 + $0x14] sm:$0xff] }
 0x15c   : > { %v989_v30 = vsel %vm4183_vm9, %v988_v63, %v984_v61  ;;  %3495 = vrcp.f32 %v4190_v5  ;;  %3188 = vmatmul.msk.bf16.gmra.mxu3 %vm1252_vm6, %v4188_v31  ;;  %vm4205_vm12 = vmor %vm996_vm10, %vm997_vm11  ;;  %vm1011_vm14 = vweird.f32 %v4190_v5  ;;  %v1015_v35 = vand.u32 2147483647, %v4190_v5  ;;  %v1899_v63 = vld [vmem:[#allocation3 + $0x1c] sm:$0xff] }
 0x15d   : > { %v1071_v13 = vmul.f32 %v989_v30, %v4130_v56  ;;  %v993_v21 = vsub.f32 1.0, %v992_v62  ;;  %v1767_v56 = vld [vmem:[#allocation3 + $0x13] sm:$0xff]  ;;  %v1017_v39 = vand.u32 2147483648, %v4190_v5  ;;  %v1916_v61 = vpack.c.bf16 %v1899_v63, %v1898_v9 }
 0x15e   : > { %v572_v41 = vpop.f32.mrf.mxu0  ;;  %v1785_v25 = vpack.c.bf16 %v1768_v26, %v1767_v56  ;;  %vm1016_vm2 = vcmp.eq.f32.partialorder %v1015_v35, 8.507059e+37  ;;  %v1771_v35 = vld [vmem:[#allocation3 + $0x33] sm:$0xff] }
 0x15f   : > { %v1247_v22 = vmul.f32 %v1205_v17, %v1071_v13  ;;  %v994_v7 = vmul.f32 %v3492_v59, %v993_v21  ;;  %v573_v40 = vadd.f32 %v4090_v38, %v572_v41  ;;  %v3239_v38 = vld [vmem:[%s4797_s4 + $0x10] sm:$0x3]  ;;  %v1018_v51 = vor.u32 1.1754944e-38, %v1017_v39  ;;  %v2039_v21 = vld [vmem:[#allocation3 + $0x74] sm:$0xff] }
 0x160   : > { %v2348_v29 = vsel %vm1363_vm8, %v3239_v38, 0  ;;  %v1225_v38 = vpop.permute.xlu0 %1224 }
 0x161   : > { %v3494_v16 = vpop.eup %3493  ;;  %1273 = vst.msk [vmem:[#allocation3 + $0xa0] sm:$0xff] %vm1252_vm6, %v1247_v22  ;;  %v995_v24 = vadd.f32 %v3492_v59, %v994_v7  ;;  %v3159_v42 = vmul.f32 -1.442695, %v573_v40  ;;  %3224 = vmatmul.msk.bf16.gmra.mxu0 %vm1252_vm6, %v4202_v18  ;;  %2357 = vmatpush.bf16.msra.mxu2 %v2348_v29  ;;  %v1769_v7 = vld [vmem:[#allocation3 + $0x23] sm:$0xff]  ;;  %v1772_v29 = vld [vmem:[#allocation3 + $0x3b] sm:$0xff] }
 0x162   : > { %v3496_v28 = vpop.eup %3495  ;;  %v674_v53 = vadd.f32 1.0, %v3494_v16  ;;  %v1786_v40 = vpack.c.bf16 %v1770_v3, %v1769_v7 }
 0x163   : > { %v999_v52 = vsel %vm4205_vm12, %v3492_v59, %v995_v24  ;;  %v1007_v33 = vmul.f32 %v3496_v28, %v4190_v5  ;;  %3497 = vpow2.f32 %v3159_v42  ;;  %3200 = vmatmul.msk.bf16.vlgmr.msrb.gmra.mxu2 %vm1252_vm6, %v1785_v25  ;;  %vm1012_vm15 = vweird.f32 %v3496_v28  ;;  %v2040_v5 = vld [vmem:[#allocation3 + $0x7c] sm:$0xff]  ;;  %v2042_v25 = vld [vmem:[#allocation3 + $0x8c] sm:$0xff] }
 0x164   : > { %v1004_v50 = vsel %vm1001_vm13, %v1003_v19, %v999_v52  ;;  %3499 = vrcp.f32 %v674_v53  ;;  %vm1013_vm1 = vmor %vm1011_vm14, %vm1012_vm15  ;;  %v4235_v8 = vpack.c.bf16 %v2040_v5, %v2039_v21  ;;  %v2041_v53 = vld [vmem:[#allocation3 + $0x84] sm:$0xff] }
 0x165   : > { %v1072_v44 = vmul.f32 %v1004_v50, %v4147_v46  ;;  %v1008_v60 = vsub.f32 1.0, %v1007_v33  ;;  %v4249_v52 = vpack.c.bf16 %v2042_v25, %v2041_v53 }
 0x166   : > { %v574_v45 = vpop.f32.mrf.mxu0  ;;  %v1465_v48 = vpop.f32.mrf.mxu2 }
 0x167   : > { %v1248_v49 = vmul.f32 %v1210_v43, %v1072_v44  ;;  %v1009_v1 = vmul.f32 %v3496_v28, %v1008_v60 }
 0x168   : > { %v1381_v54 = vpop.f32.mrf.mxu1  ;;  %v2044_v45 = vld [vmem:[#allocation3 + $0x9c] sm:$0xff] }
 0x169   : > { %v3498_v0 = vpop.eup %3497  ;;  %1274 = vst.msk [vmem:[#allocation3 + $0xa8] sm:$0xff] %vm1252_vm6, %v1248_v49  ;;  %v1010_v55 = vadd.f32 %v3496_v28, %v1009_v1  ;;  %v1466_v46 = vadd.f32 %v1465_v48, %v1381_v54  ;;  %v2043_v49 = vld [vmem:[#allocation3 + $0x94] sm:$0xff]  ;;  %v1774_v1 = vld [vmem:[#allocation3 + $0x4b] sm:$0xff] }
 0x16a   : > { %v3500_v57 = vpop.eup %3499  ;;  %v675_v59 = vadd.f32 1.0, %v3498_v0 }
 0x16b   : > { %v1014_v62 = vsel %vm1013_vm1, %v3496_v28, %v1010_v55  ;;  %3190 = vmatmul.msk.bf16.vlgmr.msrb.gmra.mxu1 %vm1252_vm6, %v3919_v36  ;;  %v1773_v55 = vld [vmem:[#allocation3 + $0x43] sm:$0xff] }
 0x16c   : > { %v1019_v30 = vsel %vm1016_vm2, %v1018_v51, %v1014_v62  ;;  %3501 = vrcp.f32 %v675_v59  ;;  %3210 = vmatmul.msk.bf16.vlgmr.msrb.gmra.mxu3 %vm1252_vm6, %v1916_v61  ;;  %v4262_v51 = vpack.c.bf16 %v2044_v45, %v2043_v49  ;;  %v1788_v9 = vpack.c.bf16 %v1774_v1, %v1773_v55 }
 0x16d   : > { %v1073_v2 = vmul.f32 %v1019_v30, %v4169_v11 }
 0x16e   : > { %v1467_v13 = vpop.f32.mrf.mxu2 }
 0x16f   : > { %v1249_v17 = vmul.f32 %v1215_v4, %v1073_v2  ;;  %v1578_v41 = vpop.f32.mrf.mxu3  ;;  %v1776_v2 = vld [vmem:[#allocation3 + $0x5b] sm:$0xff] }
 0x170   : > { %v4237_v26 = vadd.f32 %v1578_v41, %v1466_v46  ;;  %v1383_v22 = vpop.f32.mrf.mxu1  ;;  %v2045_v5 = vld [vmem:[#allocation3 + $0xa4] sm:$0xff] }
 0x171   : > { %1275 = vst.msk [vmem:[#allocation3 + $0xb0] sm:$0xff] %vm1252_vm6, %v1249_v17  ;;  %v1468_v36 = vadd.f32 %v1467_v13, %v1383_v22  ;;  %3225 = vmatmul.msk.bf16.gmra.mxu0 %vm1252_vm6, %v4235_v8  ;;  %v1775_v17 = vld [vmem:[#allocation3 + $0x53] sm:$0xff] }
 0x172   : > { %v3502_v11 = vpop.eup %3501  ;;  %v1789_v22 = vpack.c.bf16 %v1776_v2, %v1775_v17  ;;  %v1784_v2 = vld [vmem:[#allocation3 + $0x9b] sm:$0xff]  ;;  %v1783_v17 = vld [vmem:[#allocation3 + $0x93] sm:$0xff] }
 0x173   : > { %3201 = vmatmul.msk.bf16.gmra.mxu2 %vm1252_vm6, %v1786_v40 }
 0x176   : > { %v1470_v19 = vpop.f32.mrf.mxu2 }
 0x177   : > { %v1580_v56 = vpop.f32.mrf.mxu3 }
 0x178   : > { %v4243_v16 = vadd.f32 %v1580_v56, %v1468_v36  ;;  %v1386_v24 = vpop.f32.mrf.mxu1  ;;  %v2046_v62 = vld [vmem:[#allocation3 + $0xac] sm:$0xff] }
 0x179   : > { %v1471_v42 = vadd.f32 %v1470_v19, %v1386_v24  ;;  %v2055_v13 = vpack.c.bf16 %v2046_v62, %v2045_v5 }
 0x17b   : > { %3191 = vmatmul.msk.bf16.gmra.mxu1 %vm1252_vm6, %v3961_v32  ;;  %v1787_v32 = vpack.c.bf16 %v1772_v29, %v1771_v35  ;;  %v1780_v35 = vld [vmem:[#allocation3 + $0x7b] sm:$0xff] }
 0x17c   : > { %3211 = vmatmul.msk.bf16.gmra.mxu3 %vm1252_vm6, %v4047_v34 }
 0x17e   : > { %v1472_v28 = vpop.f32.mrf.mxu2 }
 0x17f   : > { %v1583_v20 = vpop.f32.mrf.mxu3 }
 0x180   : > { %v4251_v33 = vadd.f32 %v1583_v20, %v1471_v42  ;;  %v1388_v50 = vpop.f32.mrf.mxu1  ;;  %v1777_v42 = vld [vmem:[#allocation3 + $0x63] sm:$0xff] }
 0x181   : > { %v1473_v39 = vadd.f32 %v1472_v28, %v1388_v50  ;;  %3226 = vmatmul.msk.bf16.gmra.mxu0 %vm1252_vm6, %v4249_v52  ;;  %v1790_v38 = vpack.c.bf16 %v1778_v47, %v1777_v42  ;;  %v1376_v50 = vpop.f32.mrf.mxu0  ;;  %v1652_v47 = vld [vmem:[#allocation3 + $0x92] sm:$0xff] }
 0x183   : > { %3202 = vmatmul.msk.bf16.gmra.mxu2 %vm1252_vm6, %v1787_v32 }
 0x186   : > { %v1475_v34 = vpop.f32.mrf.mxu2 }
 0x187   : > { %v1585_v43 = vpop.f32.mrf.mxu3 }
 0x188   : > { %v4256_v44 = vadd.f32 %v1585_v43, %v1473_v39  ;;  %v1391_v60 = vpop.f32.mrf.mxu1  ;;  %v1779_v43 = vld [vmem:[#allocation3 + $0x73] sm:$0xff] }
 0x189   : > { %v1476_v37 = vadd.f32 %v1475_v34, %v1391_v60  ;;  %v1378_v45 = vpop.f32.mrf.mxu0 }
 0x18b   : > { %3192 = vmatmul.msk.bf16.gmra.mxu1 %vm1252_vm6, %v4000_v27 }
 0x18c   : > { %3212 = vmatmul.msk.bf16.gmra.mxu3 %vm1252_vm6, %v4084_v23 }
 0x18e   : > { %v1477_v48 = vpop.f32.mrf.mxu2 }
 0x18f   : > { %v1588_v63 = vpop.f32.mrf.mxu3 }
 0x190   : > { %v4264_v54 = vadd.f32 %v1588_v63, %v1476_v37  ;;  %v1393_v0 = vpop.f32.mrf.mxu1  ;;  %v1791_v37 = vpack.c.bf16 %v1780_v35, %v1779_v43 }
 0x191   : > { %v1478_v46 = vadd.f32 %v1477_v48, %v1393_v0  ;;  %3227 = vmatmul.msk.bf16.gmra.mxu0 %vm1252_vm6, %v4262_v51  ;;  %v1782_v0 = vld [vmem:[#allocation3 + $0x8b] sm:$0xff] }
 0x193   : > { %3203 = vmatmul.msk.bf16.gmra.mxu2 %vm1252_vm6, %v1788_v9 }
 0x196   : > { %v1480_v27 = vpop.f32.mrf.mxu2 }
 0x197   : > { %v1590_v23 = vpop.f32.mrf.mxu3 }
 0x198   : > { %v4269_v57 = vadd.f32 %v1590_v23, %v1478_v46  ;;  %v1396_v59 = vpop.f32.mrf.mxu1 }
 0x199   : > { %v1481_v61 = vadd.f32 %v1480_v27, %v1396_v59  ;;  %v1781_v27 = vld [vmem:[#allocation3 + $0x83] sm:$0xff] }
 0x19a   : > { %v1792_v59 = vpack.c.bf16 %v1782_v0, %v1781_v27 }
 0x19b   : > { %3193 = vmatmul.msk.bf16.gmra.mxu1 %vm1252_vm6, %v4035_v15 }
 0x19c   : > { %3213 = vmatmul.msk.bf16.gmra.mxu3 %vm1252_vm6, %v4126_v12 }
 0x19e   : > { %v1482_v30 = vpop.f32.mrf.mxu2 }
 0x19f   : > { %v1593_v4 = vpop.f32.mrf.mxu3 }
 0x1a0   : > { %v4275_v21 = vadd.f32 %v1593_v4, %v1481_v61  ;;  %v1398_v3 = vpop.f32.mrf.mxu1 }
 0x1a1   : > { %v1483_v41 = vadd.f32 %v1482_v30, %v1398_v3  ;;  %3228 = vmatmul.msk.bf16.gmra.mxu0 %vm1252_vm6, %v2055_v13 }
 0x1a3   : > { %3204 = vmatmul.msk.bf16.gmra.mxu2 %vm1252_vm6, %v1789_v22  ;;  %v1793_v22 = vpack.c.bf16 %v1784_v2, %v1783_v17 }
 0x1a6   : > { %v1485_v15 = vpop.f32.mrf.mxu2 }
 0x1a7   : > { %v1595_v7 = vpop.f32.mrf.mxu3 }
 0x1a8   : > { %v4279_v36 = vadd.f32 %v1595_v7, %v1483_v41  ;;  %v1401_v12 = vpop.f32.mrf.mxu1 }
 0x1a9   : > { %v1486_v40 = vadd.f32 %v1485_v15, %v1401_v12 }
 0x1ab   : > { %3194 = vmatmul.msk.bf16.gmra.mxu1 %vm1252_vm6, %v4072_v6 }
 0x1ac   : > { %3214 = vmatmul.msk.bf16.gmra.mxu3 %vm1252_vm6, %v4166_v10 }
 0x1ae   : > { %v1487_v11 = vpop.f32.mrf.mxu2 }
 0x1af   : > { %v1598_v19 = vpop.f32.mrf.mxu3 }
 0x1b0   : > { %v4285_v56 = vadd.f32 %v1598_v19, %v1486_v40  ;;  %v1403_v24 = vpop.f32.mrf.mxu1  ;;  %v1653_v40 = vld [vmem:[#allocation3 + $0x9a] sm:$0xff] }
 0x1b1   : > { %v1488_v25 = vadd.f32 %v1487_v11, %v1403_v24  ;;  %v1662_v19 = vpack.c.bf16 %v1653_v40, %v1652_v47  ;;  %v2165_v40 = vld [vmem:[#allocation3 + $0x4d] sm:$0xff] }
 0x1b3   : > { %3205 = vmatmul.msk.bf16.gmra.mxu2 %vm1252_vm6, %v1790_v38 }
 0x1b6   : > { %v1490_v28 = vpop.f32.mrf.mxu2 }
 0x1b7   : > { %v1600_v53 = vpop.f32.mrf.mxu3 }
 0x1b8   : > { %v4288_v29 = vadd.f32 %v1600_v53, %v1488_v25  ;;  %v1406_v20 = vpop.f32.mrf.mxu1 }
 0x1b9   : > { %v1491_v6 = vadd.f32 %v1490_v28, %v1406_v20  ;;  %v2292_v28 = vld [vmem:[#allocation3 + $0x2e] sm:$0xff] }
 0x1bb   : > { %3195 = vmatmul.msk.bf16.gmra.mxu1 %vm1252_vm6, %v4114_v14 }
 0x1bc   : > { %3215 = vmatmul.msk.bf16.gmra.mxu3 %vm1252_vm6, %v4202_v18  ;;  %v1460_v18 = vpop.f32.mrf.mxu0 }
 0x1bd   : > { %v1461_v7 = vadd.f32 %v1460_v18, %v1376_v50 }
 0x1be   : > { %v1492_v10 = vpop.f32.mrf.mxu2 }
 0x1bf   : > { %v1603_v39 = vpop.f32.mrf.mxu3 }
 0x1c0   : > { %v4294_v32 = vadd.f32 %v1603_v39, %v1491_v6  ;;  %v1408_v34 = vpop.f32.mrf.mxu1  ;;  %v2291_v6 = vld [vmem:[#allocation3 + $0x26] sm:$0xff] }
 0x1c1   : > { %v4296_v60 = vadd.f32 %v1492_v10, %v1408_v34  ;;  %v2309_v10 = vpack.c.bf16 %v2292_v28, %v2291_v6  ;;  %v2161_v34 = vld [vmem:[#allocation3 + $0x2d] sm:$0xff]  ;;  %v2167_v6 = vld [vmem:[#allocation3 + $0x5d] sm:$0xff] }
 0x1c3   : > { %3206 = vmatmul.msk.bf16.gmra.mxu2 %vm1252_vm6, %v1791_v37  ;;  %v2160_v37 = vld [vmem:[#allocation3 + $0x25] sm:$0xff] }
 0x1c6   : > { %v1495_v48 = vpop.f32.mrf.mxu2 }
 0x1c7   : > { %v4299_v49 = vpop.f32.mrf.mxu3 }
 0x1c8   : > { %v1411_v14 = vpop.f32.mrf.mxu1 }
 0x1c9   : > { %v1496_v1 = vadd.f32 %v1495_v48, %v1411_v14  ;;  %v2178_v48 = vpack.c.bf16 %v2161_v34, %v2160_v37  ;;  %v2300_v37 = vld [vmem:[#allocation3 + $0x6e] sm:$0xff] }
 0x1cb   : > { %3196 = vmatmul.msk.bf16.gmra.mxu1 %vm1252_vm6, %v4156_v58  ;;  %v1462_v58 = vpop.f32.mrf.mxu0 }
 0x1cc   : > { %3216 = vmatmul.msk.bf16.gmra.mxu3 %vm1252_vm6, %v4235_v8  ;;  %v1463_v25 = vadd.f32 %v1462_v58, %v1378_v45 }
 0x1ce   : > { %v1497_v63 = vpop.f32.mrf.mxu2 }
 0x1cf   : > { %v1608_v55 = vpop.f32.mrf.mxu3 }
 0x1d0   : > { %v4305_v46 = vadd.f32 %v1608_v55, %v1496_v1  ;;  %v1413_v9 = vpop.f32.mrf.mxu1  ;;  %v2293_v55 = vld [vmem:[#allocation3 + $0x36] sm:$0xff] }
 0x1d1   : > { %v4307_v23 = vadd.f32 %v1497_v63, %v1413_v9  ;;  %v2294_v63 = vld [vmem:[#allocation3 + $0x3e] sm:$0xff] }
 0x1d2   : > { %v2310_v27 = vpack.c.bf16 %v2294_v63, %v2293_v55  ;;  %v2169_v63 = vld [vmem:[#allocation3 + $0x6d] sm:$0xff] }
 0x1d3   : > { %3207 = vmatmul.msk.bf16.gmra.mxu2 %vm1252_vm6, %v1792_v59  ;;  %v1573_v15 = vpop.f32.mrf.mxu0 }
 0x1d6   : > { %v1500_v61 = vpop.f32.mrf.mxu2 }
 0x1d7   : > { %v4310_v62 = vpop.f32.mrf.mxu3 }
 0x1d8   : > { %v1416_v30 = vpop.f32.mrf.mxu1 }
 0x1d9   : > { %v1501_v5 = vadd.f32 %v1500_v61, %v1416_v30  ;;  %v2163_v61 = vld [vmem:[#allocation3 + $0x3d] sm:$0xff]  ;;  %v2162_v30 = vld [vmem:[#allocation3 + $0x35] sm:$0xff] }
 0x1db   : > { %3197 = vmatmul.msk.bf16.gmra.mxu1 %vm1252_vm6, %v4188_v31  ;;  %v1618_v31 = vadd.f32 %v1573_v15, %v1461_v7  ;;  %v1575_v42 = vpop.f32.mrf.mxu0 }
 0x1dc   : > { %3217 = vmatmul.msk.bf16.gmra.mxu3 %vm1252_vm6, %v4249_v52  ;;  %v1619_v53 = vadd.f32 %v1575_v42, %v1463_v25  ;;  %v2298_v42 = vld [vmem:[#allocation3 + $0x5e] sm:$0xff] }
 0x1de   : > { %v1502_v8 = vpop.f32.mrf.mxu2 }
 0x1df   : > { %v1613_v4 = vpop.f32.mrf.mxu3 }
 0x1e0   : > { %v4316_v13 = vadd.f32 %v1613_v4, %v1501_v5  ;;  %v1418_v3 = vpop.f32.mrf.mxu1 }
 0x1e1   : > { %v4318_v41 = vadd.f32 %v1502_v8, %v1418_v3  ;;  %v2179_v8 = vpack.c.bf16 %v2163_v61, %v2162_v30  ;;  %v2296_v3 = vld [vmem:[#allocation3 + $0x4e] sm:$0xff]  ;;  %v2302_v61 = vld [vmem:[#allocation3 + $0x7e] sm:$0xff] }
 0x1e3   : > { %3208 = vmatmul.msk.bf16.gmra.mxu2 %vm1252_vm6, %v1793_v22 }
 0x1e6   : > { %v1835_v12 = vpop.f32.mrf.mxu2 }
 0x1e8   : > { %v1704_v11 = vpop.f32.mrf.mxu1 }
 0x1e9   : > { %v1749_v52 = vadd.f32 %v1704_v11, %v1618_v31 }
 0x1eb   : > { %3198 = vmatmul.msk.bf16.gmra.mxu1 %vm1252_vm6, %v1662_v19  ;;  %v4322_v24 = vadd.f32 %v1835_v12, %v1749_v52 }
 0x1ec   : > { %3218 = vmatmul.msk.bf16.gmra.mxu3 %vm1252_vm6, %v4262_v51  ;;  %v2813_v51 = vld [vmem:[%s4799_s6] sm:$0x3] }
 0x1ed   : > { %v2846_v14 = vsel %vm1363_vm8, %v2813_v51, 0 }
 0x1ee   : > { %v1837_v38 = vpop.f32.mrf.mxu2  ;;  %2855 = vmatpush.bf16.msra.mxu3 %v2846_v14 }
 0x1f0   : > { %v1706_v20 = vpop.f32.mrf.mxu1 }
 0x1f1   : > { %v1750_v50 = vadd.f32 %v1706_v20, %v1619_v53 }
 0x1f3   : > { %3240 = vmatmul.msk.bf16.vlgmr.msra.gmra.mxu2 %vm1252_vm6, %v2309_v10  ;;  %v4327_v35 = vadd.f32 %v1837_v38, %v1750_v50 }
 0x1f6   : > { %v1840_v39 = vpop.f32.mrf.mxu2 }
 0x1f8   : > { %v1709_v43 = vpop.f32.mrf.mxu1 }
 0x1f9   : > { %v1751_v45 = vadd.f32 %v1709_v43, %v4237_v26 }
 0x1fb   : > { %3230 = vmatmul.msk.bf16.vlgmr.msra.gmra.mxu1 %vm1252_vm6, %v2178_v48  ;;  %v4335_v1 = vadd.f32 %v1840_v39, %v1751_v45 }
 0x1fe   : > { %v1842_v18 = vpop.f32.mrf.mxu2 }
 0x200   : > { %v1711_v0 = vpop.f32.mrf.mxu1 }
 0x201   : > { %v1752_v9 = vadd.f32 %v1711_v0, %v4243_v16  ;;  %v2295_v16 = vld [vmem:[#allocation3 + $0x46] sm:$0xff] }
 0x202   : > { %v2311_v15 = vpack.c.bf16 %v2296_v3, %v2295_v16  ;;  %v2170_v16 = vld [vmem:[#allocation3 + $0x75] sm:$0xff] }
 0x203   : > { %3241 = vmatmul.msk.bf16.gmra.mxu2 %vm1252_vm6, %v2310_v27  ;;  %v4339_v59 = vadd.f32 %v1842_v18, %v1752_v9 }
 0x206   : > { %v1845_v26 = vpop.f32.mrf.mxu2 }
 0x208   : > { %v1714_v58 = vpop.f32.mrf.mxu1 }
 0x209   : > { %v1753_v5 = vadd.f32 %v1714_v58, %v4251_v33  ;;  %v2164_v33 = vld [vmem:[#allocation3 + $0x45] sm:$0xff] }
 0x20a   : > { %v2180_v47 = vpack.c.bf16 %v2165_v40, %v2164_v33  ;;  %v1631_v33 = vadd.f32 %v4299_v49, %v4296_v60 }
 0x20b   : > { %3231 = vmatmul.msk.bf16.gmra.mxu1 %vm1252_vm6, %v2179_v8  ;;  %v4343_v2 = vadd.f32 %v1845_v26, %v1753_v5  ;;  %v1615_v8 = vpop.f32.mrf.mxu3 }
 0x20e   : > { %v1847_v4 = vpop.f32.mrf.mxu2 }
 0x210   : > { %v1716_v17 = vpop.f32.mrf.mxu1 }
 0x211   : > { %v1754_v22 = vadd.f32 %v1716_v17, %v4256_v44  ;;  %v2297_v44 = vld [vmem:[#allocation3 + $0x56] sm:$0xff] }
 0x212   : > { %v2312_v28 = vpack.c.bf16 %v2298_v42, %v2297_v44  ;;  %v2171_v17 = vld [vmem:[#allocation3 + $0x7d] sm:$0xff] }
 0x213   : > { %3242 = vmatmul.msk.bf16.gmra.mxu2 %vm1252_vm6, %v2311_v15  ;;  %v4347_v7 = vadd.f32 %v1847_v4, %v1754_v22  ;;  %v2183_v15 = vpack.c.bf16 %v2171_v17, %v2170_v16  ;;  %v1966_v40 = vpop.f32.mrf.mxu3 }
 0x214   : > { %v2011_v16 = vadd.f32 %v1966_v40, %v4322_v24 }
 0x216   : > { %v1850_v12 = vpop.f32.mrf.mxu2 }
 0x218   : > { %v1719_v31 = vpop.f32.mrf.mxu1 }
 0x219   : > { %v1755_v11 = vadd.f32 %v1719_v31, %v4264_v54  ;;  %v2166_v54 = vld [vmem:[#allocation3 + $0x55] sm:$0xff] }
 0x21a   : > { %v2181_v39 = vpack.c.bf16 %v2167_v6, %v2166_v54  ;;  %v2172_v6 = vld [vmem:[#allocation3 + $0x85] sm:$0xff] }
 0x21b   : > { %3232 = vmatmul.msk.bf16.gmra.mxu1 %vm1252_vm6, %v2180_v47  ;;  %v4351_v52 = vadd.f32 %v1850_v12, %v1755_v11  ;;  %v2303_v47 = vld [vmem:[#allocation3 + $0x86] sm:$0xff] }
 0x21e   : > { %v1852_v19 = vpop.f32.mrf.mxu2 }
 0x220   : > { %v1721_v25 = vpop.f32.mrf.mxu1 }
 0x221   : > { %v1756_v38 = vadd.f32 %v1721_v25, %v4269_v57  ;;  %v2299_v57 = vld [vmem:[#allocation3 + $0x66] sm:$0xff]  ;;  %v2097_v25 = vpop.f32.mrf.mxu0 }
 0x222   : > { %v2313_v48 = vpack.c.bf16 %v2300_v37, %v2299_v57  ;;  %v2305_v57 = vld [vmem:[#allocation3 + $0x96] sm:$0xff] }
 0x223   : > { %3243 = vmatmul.msk.bf16.gmra.mxu2 %vm1252_vm6, %v2312_v28  ;;  %v4355_v53 = vadd.f32 %v1852_v19, %v1756_v38  ;;  %v2173_v28 = vld [vmem:[#allocation3 + $0x8d] sm:$0xff] }
 0x224   : > { %v2184_v54 = vpack.c.bf16 %v2173_v28, %v2172_v6 }
 0x226   : > { %v1855_v20 = vpop.f32.mrf.mxu2 }
 0x228   : > { %v1724_v50 = vpop.f32.mrf.mxu1 }
 0x229   : > { %v1757_v10 = vadd.f32 %v1724_v50, %v4275_v21  ;;  %v2168_v21 = vld [vmem:[#allocation3 + $0x65] sm:$0xff]  ;;  %v2099_v49 = vpop.f32.mrf.mxu0 }
 0x22a   : > { %v2182_v9 = vpack.c.bf16 %v2169_v63, %v2168_v21  ;;  %v2175_v63 = vld [vmem:[#allocation3 + $0x9d] sm:$0xff] }
 0x22b   : > { %3233 = vmatmul.msk.bf16.gmra.mxu1 %vm1252_vm6, %v2181_v39  ;;  %v4359_v34 = vadd.f32 %v1855_v20, %v1757_v10  ;;  %v2306_v39 = vld [vmem:[#allocation3 + $0x9e] sm:$0xff] }
 0x22e   : > { %v1857_v43 = vpop.f32.mrf.mxu2 }
 0x230   : > { %v1726_v51 = vpop.f32.mrf.mxu1 }
 0x231   : > { %v1758_v45 = vadd.f32 %v1726_v51, %v4279_v36  ;;  %v2301_v36 = vld [vmem:[#allocation3 + $0x76] sm:$0xff] }
 0x232   : > { %v2314_v5 = vpack.c.bf16 %v2302_v61, %v2301_v36  ;;  %v1635_v36 = vadd.f32 %v1615_v8, %v4318_v41  ;;  %v4403_v41 = vld [vmem:[%s4798_s5] ss:$0 sm:$0xff] }
 0x233   : > { %3244 = vmatmul.msk.bf16.gmra.mxu2 %vm1252_vm6, %v2313_v48  ;;  %v4363_v14 = vadd.f32 %v1857_v43, %v1758_v45  ;;  %v1633_v43 = vadd.f32 %v4310_v62, %v4307_v23  ;;  %v2316_v48 = vpack.c.bf16 %v2306_v39, %v2305_v57 }
 0x236   : > { %v1860_v18 = vpop.f32.mrf.mxu2 }
 0x238   : > { %v1729_v0 = vpop.f32.mrf.mxu1 }
 0x239   : > { %v1759_v55 = vadd.f32 %v1729_v0, %v4285_v56  ;;  %v2102_v0 = vpop.f32.mrf.mxu0 }
 0x23b   : > { %3234 = vmatmul.msk.bf16.gmra.mxu1 %vm1252_vm6, %v2182_v9  ;;  %v4367_v27 = vadd.f32 %v1860_v18, %v1759_v55  ;;  %v2174_v55 = vld [vmem:[#allocation3 + $0x95] sm:$0xff] }
 0x23e   : > { %v1862_v26 = vpop.f32.mrf.mxu2 }
 0x240   : > { %v1731_v58 = vpop.f32.mrf.mxu1 }
 0x241   : > { %v1760_v30 = vadd.f32 %v1731_v58, %v4288_v29  ;;  %v2304_v29 = vld [vmem:[#allocation3 + $0x8e] sm:$0xff] }
 0x242   : > { %v2315_v42 = vpack.c.bf16 %v2304_v29, %v2303_v47  ;;  %v2308_v58 = vld [vmem:[#allocation3 + $0xae] sm:$0xff]  ;;  %v2142_v29 = vadd.f32 %v2097_v25, %v2011_v16 }
 0x243   : > { %3245 = vmatmul.msk.bf16.gmra.mxu2 %vm1252_vm6, %v2314_v5  ;;  %v4371_v4 = vadd.f32 %v1862_v26, %v1760_v30  ;;  %v2185_v26 = vpack.c.bf16 %v2175_v63, %v2174_v55  ;;  %v2307_v5 = vld [vmem:[#allocation3 + $0xa6] sm:$0xff] }
 0x246   : > { %v1865_v3 = vpop.f32.mrf.mxu2 }
 0x248   : > { %v1734_v56 = vpop.f32.mrf.mxu1 }
 0x249   : > { %v1761_v22 = vadd.f32 %v1734_v56, %v4294_v32  ;;  %v1968_v32 = vpop.f32.mrf.mxu3  ;;  %v2317_v56 = vpack.c.bf16 %v2308_v58, %v2307_v5 }
 0x24a   : > { %v2012_v24 = vadd.f32 %v1968_v32, %v4327_v35 }
 0x24b   : > { %3235 = vmatmul.msk.bf16.gmra.mxu1 %vm1252_vm6, %v2183_v15  ;;  %v4375_v12 = vadd.f32 %v1865_v3, %v1761_v22  ;;  %v2104_v3 = vpop.f32.mrf.mxu0 }
 0x24e   : > { %v1867_v31 = vpop.f32.mrf.mxu2 }
 0x250   : > { %v1736_v11 = vpop.f32.mrf.mxu1 }
 0x251   : > { %v1762_v19 = vadd.f32 %v1736_v11, %v1631_v33  ;;  %v1971_v37 = vpop.f32.mrf.mxu3  ;;  %v2176_v11 = vld [vmem:[#allocation3 + $0xa5] sm:$0xff] }
 0x253   : > { %3246 = vmatmul.msk.bf16.gmra.mxu2 %vm1252_vm6, %v2315_v42  ;;  %v4380_v44 = vadd.f32 %v1867_v31, %v1762_v19  ;;  %v2177_v31 = vld [vmem:[#allocation3 + $0xad] sm:$0xff]  ;;  %v2107_v19 = vpop.f32.mrf.mxu0 }
 0x254   : > { %v2186_v8 = vpack.c.bf16 %v2177_v31, %v2176_v11 }
 0x256   : > { %v1870_v38 = vpop.f32.mrf.mxu2 }
 0x258   : > { %v1739_v20 = vpop.f32.mrf.mxu1 }
 0x259   : > { %v1763_v50 = vadd.f32 %v1739_v20, %v4305_v46  ;;  %v1973_v61 = vpop.f32.mrf.mxu3  ;;  %v2143_v20 = vadd.f32 %v2099_v49, %v2012_v24 }
 0x25b   : > { %3236 = vmatmul.msk.bf16.gmra.mxu1 %vm1252_vm6, %v2184_v54  ;;  %v4384_v60 = vadd.f32 %v1870_v38, %v1763_v50  ;;  %v2013_v54 = vadd.f32 %v1971_v37, %v4335_v1  ;;  %v4414_v39 = vpop.f32.mrf.mxu0  ;;  %v2014_v1 = vadd.f32 %v1973_v61, %v4339_v59 }
 0x25d   : > { %v2144_v57 = vadd.f32 %v2102_v0, %v2013_v54  ;;  %v2145_v0 = vadd.f32 %v2104_v3, %v2014_v1 }
 0x25e   : > { %v1872_v10 = vpop.f32.mrf.mxu2 }
 0x260   : > { %v1741_v51 = vpop.f32.mrf.mxu1 }
 0x261   : > { %v1764_v45 = vadd.f32 %v1741_v51, %v1633_v43  ;;  %v1976_v22 = vpop.f32.mrf.mxu3 }
 0x263   : > { %3247 = vmatmul.msk.bf16.gmra.mxu2 %vm1252_vm6, %v2316_v48  ;;  %v4389_v18 = vadd.f32 %v1872_v10, %v1764_v45 }
 0x266   : > { %v1875_v46 = vpop.f32.mrf.mxu2 }
 0x268   : > { %v1744_v21 = vpop.f32.mrf.mxu1 }
 0x269   : > { %v1765_v9 = vadd.f32 %v1744_v21, %v4316_v13  ;;  %v4410_v38 = vpop.f32.mrf.mxu3 }
 0x26b   : > { %3237 = vmatmul.msk.bf16.gmra.mxu1 %vm1252_vm6, %v2185_v26  ;;  %v4393_v23 = vadd.f32 %v1875_v46, %v1765_v9  ;;  %v4426_v9 = vpop.f32.mrf.mxu0 }
 0x26e   : > { %v1877_v62 = vpop.f32.mrf.mxu2 }
 0x270   : > { %v1746_v30 = vpop.f32.mrf.mxu1 }
 0x271   : > { %v1766_v17 = vadd.f32 %v1746_v30, %v1635_v36  ;;  %v4420_v45 = vpop.f32.mrf.mxu3 }
 0x273   : > { %3248 = vmatmul.msk.bf16.gmra.mxu2 %vm1252_vm6, %v2317_v56  ;;  %v4398_v13 = vadd.f32 %v1877_v62, %v1766_v17  ;;  %v2015_v56 = vadd.f32 %v1976_v22, %v4343_v2  ;;  %v4438_v24 = vpop.f32.mrf.mxu0 }
 0x276   : > { %v2359_v15 = vpop.f32.mrf.mxu2 }
 0x278   : > { %v2228_v33 = vpop.f32.mrf.mxu1 }
 0x279   : > { %v2273_v47 = vadd.f32 %v2228_v33, %v2142_v29  ;;  %v4429_v17 = vpop.f32.mrf.mxu3 }
 0x27b   : > { %v2404_v40 = vadd.f32 %v2359_v15, %v2273_v47  ;;  %3238 = vmatmul.msk.bf16.gmra.mxu1 %vm1252_vm6, %v2186_v8  ;;  %v2146_v47 = vadd.f32 %v2107_v19, %v2015_v56 }
 0x27d   : > { %v4408_v42 = vadd.f32 %v4403_v41, %v2404_v40 }
 0x27e   : > { %v2361_v25 = vpop.f32.mrf.mxu2 }
 0x27f   : > { %v3249_v28 = vmul.f32 -1.442695, %v4408_v42 }
 0x280   : > { %v2230_v6 = vpop.f32.mrf.mxu1 }
 0x281   : > { %3503 = vpow2.f32 %v3249_v28  ;;  %v2274_v50 = vadd.f32 %v2230_v6, %v2143_v20  ;;  %v4441_v6 = vpop.f32.mrf.mxu3 }
 0x283   : > { %v2405_v10 = vadd.f32 %v2361_v25, %v2274_v50 }
 0x285   : > { %v4417_v35 = vadd.f32 %v4403_v41, %v2405_v10 }
 0x286   : > { %v2364_v32 = vpop.f32.mrf.mxu2 }
 0x287   : > { %v3504_v43 = vpop.eup %3503  ;;  %v3250_v51 = vmul.f32 -1.442695, %v4417_v35 }
 0x288   : > { %v2498_v48 = vadd.f32 1.0, %v3504_v43  ;;  %v2233_v49 = vpop.f32.mrf.mxu1 }
 0x289   : > { %3505 = vpow2.f32 %v3250_v51  ;;  %v2275_v46 = vadd.f32 %v2233_v49, %v2144_v57  ;;  %v2016_v51 = vadd.f32 %v4410_v38, %v4347_v7 }
 0x28a   : > { %3507 = vrcp.f32 %v2498_v48  ;;  %v2527_v2 = vand.u32 2147483648, %v2498_v48  ;;  %vm2521_vm3 = vweird.f32 %v2498_v48  ;;  %v2525_v22 = vand.u32 2147483647, %v2498_v48 }
 0x28b   : > { %v2406_v37 = vadd.f32 %v2364_v32, %v2275_v46 }
 0x28c   : > { %v2528_v57 = vor.u32 1.1754944e-38, %v2527_v2  ;;  %vm2526_vm7 = vcmp.eq.f32.partialorder %v2525_v22, 8.507059e+37 }
 0x28d   : > { %v4424_v63 = vadd.f32 %v4403_v41, %v2406_v37 }
 0x28e   : > { %v2366_v21 = vpop.f32.mrf.mxu2 }
 0x28f   : > { %v3506_v55 = vpop.eup %3505  ;;  %v3251_v26 = vmul.f32 -1.442695, %v4424_v63 }
 0x290   : > { %v3508_v62 = vpop.eup %3507  ;;  %v2499_v58 = vadd.f32 1.0, %v3506_v55  ;;  %v2235_v36 = vpop.f32.mrf.mxu1 }
 0x291   : > { %v2517_v30 = vmul.f32 %v3508_v62, %v2498_v48  ;;  %3509 = vpow2.f32 %v3251_v26  ;;  %v2276_v5 = vadd.f32 %v2235_v36, %v2145_v0  ;;  %vm2522_vm8 = vweird.f32 %v3508_v62 }
 0x292   : > { %3511 = vrcp.f32 %v2499_v58  ;;  %vm4443_vm4 = vmor %vm2521_vm3, %vm2522_vm8  ;;  %v2540_v19 = vand.u32 2147483647, %v2499_v58  ;;  %v2542_v54 = vand.u32 2147483648, %v2499_v58  ;;  %vm2536_vm9 = vweird.f32 %v2499_v58 }
 0x293   : > { %v2518_v59 = vsub.f32 1.0, %v2517_v30  ;;  %v2407_v61 = vadd.f32 %v2366_v21, %v2276_v5  ;;  %v2147_v30 = vadd.f32 %v4414_v39, %v2016_v51  ;;  %v4465_v5 = vpop.f32.mrf.mxu0 }
 0x294   : > { %v2543_v55 = vor.u32 1.1754944e-38, %v2542_v54  ;;  %vm2541_vm11 = vcmp.eq.f32.partialorder %v2540_v19, 8.507059e+37 }
 0x295   : > { %v2519_v16 = vmul.f32 %v3508_v62, %v2518_v59  ;;  %v4433_v15 = vadd.f32 %v4403_v41, %v2407_v61 }
 0x296   : > { %v2369_v31 = vpop.f32.mrf.mxu2 }
 0x297   : > { %v3510_v29 = vpop.eup %3509  ;;  %v3252_v3 = vmul.f32 -1.442695, %v4433_v15  ;;  %v2520_v40 = vadd.f32 %v3508_v62, %v2519_v16 }
 0x298   : > { %v3512_v33 = vpop.eup %3511  ;;  %v4436_v11 = vadd.f32 1.0, %v3510_v29  ;;  %v2238_v8 = vpop.f32.mrf.mxu1 }
 0x299   : > { %v2532_v25 = vmul.f32 %v3512_v33, %v2499_v58  ;;  %3513 = vpow2.f32 %v3252_v3  ;;  %v2277_v20 = vadd.f32 %v2238_v8, %v2146_v47  ;;  %v2524_v10 = vsel %vm4443_vm4, %v3508_v62, %v2520_v40  ;;  %v4470_v3 = vpop.f32.mrf.mxu3 }
 0x29a   : > { %3515 = vrcp.f32 %v4436_v11  ;;  %vm2537_vm5 = vweird.f32 %v3512_v33  ;;  %v2529_v21 = vsel %vm2526_vm7, %v2528_v57, %v2524_v10  ;;  %v2017_v58 = vadd.f32 %v4420_v45, %v4351_v52 }
 0x29b   : > { %v2533_v28 = vsub.f32 1.0, %v2532_v25  ;;  %v2408_v43 = vadd.f32 %v2369_v31, %v2277_v20  ;;  %vm2538_vm10 = vmor %vm2536_vm9, %vm2537_vm5  ;;  %v2786_v59 = vmul.f32 %v2529_v21, %v4408_v42  ;;  %v2018_v40 = vadd.f32 %v4429_v17, %v4355_v53 }
 0x29c   : > { %v2148_v39 = vadd.f32 %v4426_v9, %v2017_v58  ;;  %vm2551_vm13 = vweird.f32 %v4436_v11  ;;  %v2557_v9 = vand.u32 2147483648, %v4436_v11  ;;  %v2555_v50 = vand.u32 2147483647, %v4436_v11 }
 0x29d   : > { %v2534_v32 = vmul.f32 %v3512_v33, %v2533_v28  ;;  %v4452_v1 = vadd.f32 %v4403_v41, %v2408_v43 }
 0x29e   : > { %v2371_v48 = vpop.f32.mrf.mxu2  ;;  %vm2556_vm1 = vcmp.eq.f32.partialorder %v2555_v50, 8.507059e+37 }
 0x29f   : > { %v3514_v49 = vpop.eup %3513  ;;  %v2535_v46 = vadd.f32 %v3512_v33, %v2534_v32  ;;  %v3253_v38 = vmul.f32 -1.442695, %v4452_v1  ;;  %v2119_v32 = vpop.f32.mrf.mxu0 }
 0x2a0   : > { %v4454_v37 = vpop.eup %3515  ;;  %v4456_v26 = vadd.f32 1.0, %v3514_v49  ;;  %v2240_v0 = vpop.f32.mrf.mxu1 }
 0x2a1   : > { %v2539_v62 = vsel %vm2538_vm10, %v3512_v33, %v2535_v46  ;;  %v2547_v7 = vmul.f32 %v4454_v37, %v4436_v11  ;;  %v2278_v16 = vadd.f32 %v2240_v0, %v2147_v30  ;;  %vm2552_vm12 = vweird.f32 %v4454_v37 }
 0x2a2   : > { %v2544_v36 = vsel %vm2541_vm11, %v2543_v55, %v2539_v62  ;;  %3517 = vrcp.f32 %v4456_v26  ;;  %vm4487_vm14 = vmor %vm2551_vm13, %vm2552_vm12  ;;  %v2570_v17 = vand.u32 2147483647, %v4456_v26  ;;  %v2572_v10 = vand.u32 2147483648, %v4456_v26 }
 0x2a3   : > { %v2787_v61 = vmul.f32 %v2544_v36, %v4417_v35  ;;  %v2548_v56 = vsub.f32 1.0, %v2547_v7  ;;  %3519 = vpow2.f32 %v3253_v38  ;;  %v2409_v52 = vadd.f32 %v2371_v48, %v2278_v16 }
 0x2a4   : > { %v2558_v11 = vor.u32 1.1754944e-38, %v2557_v9  ;;  %v2149_v48 = vadd.f32 %v4438_v24, %v2018_v40  ;;  %vm2566_vm2 = vweird.f32 %v4456_v26  ;;  %v2573_v55 = vor.u32 1.1754944e-38, %v2572_v10 }
 0x2a5   : > { %v2804_v31 = vpack.c.bf16 %v2787_v61, %v2786_v59  ;;  %v2549_v29 = vmul.f32 %v4454_v37, %v2548_v56  ;;  %v4477_v42 = vadd.f32 %v4403_v41, %v2409_v52  ;;  %vm2571_vm3 = vcmp.eq.f32.partialorder %v2570_v17, 8.507059e+37 }
 0x2a6   : > { %v2374_v45 = vpop.f32.mrf.mxu2  ;;  %v2019_v36 = vadd.f32 %v4441_v6, %v4359_v34 }
 0x2a7   : > { %3267 = vmatmul.msk.bf16.vlgmr.msra.gmra.mxu3 %vm1252_vm6, %v2804_v31  ;;  %v2550_v47 = vadd.f32 %v4454_v37, %v2549_v29  ;;  %v3254_v28 = vmul.f32 -1.442695, %v4477_v42 }
 0x2a8   : > { %v3518_v33 = vpop.eup %3517  ;;  %v2243_v35 = vpop.f32.mrf.mxu1  ;;  %v2150_v34 = vadd.f32 %v4465_v5, %v2019_v36 }
 0x2a9   : > { %v3520_v8 = vpop.eup %3519  ;;  %v2562_v25 = vmul.f32 %v3518_v33, %v4456_v26  ;;  %v2279_v2 = vadd.f32 %v2243_v35, %v2148_v39  ;;  %v2554_v53 = vsel %vm4487_vm14, %v4454_v37, %v2550_v47  ;;  %vm2567_vm15 = vweird.f32 %v3518_v33  ;;  %v4504_v37 = vpop.f32.mrf.mxu3 }
 0x2aa   : > { %v4484_v22 = vadd.f32 1.0, %v3520_v8  ;;  %v2559_v21 = vsel %vm2556_vm1, %v2558_v11, %v2554_v53  ;;  %vm2568_vm8 = vmor %vm2566_vm2, %vm2567_vm15  ;;  %v2020_v47 = vadd.f32 %v4470_v3, %v4363_v14 }
 0x2ab   : > { %v2563_v19 = vsub.f32 1.0, %v2562_v25  ;;  %v2410_v54 = vadd.f32 %v2374_v45, %v2279_v2  ;;  %v2788_v26 = vmul.f32 %v2559_v21, %v4424_v63  ;;  %v2122_v45 = vpop.f32.mrf.mxu0 }
 0x2ac   : > { %3521 = vrcp.f32 %v4484_v22  ;;  %v2587_v50 = vand.u32 2147483648, %v4484_v22  ;;  %vm2581_vm7 = vweird.f32 %v4484_v22 }
 0x2ad   : > { %v2564_v43 = vmul.f32 %v3518_v33, %v2563_v19  ;;  %3523 = vpow2.f32 %v3254_v28  ;;  %v4499_v51 = vadd.f32 %v4403_v41, %v2410_v54  ;;  %v2151_v28 = vadd.f32 %v2119_v32, %v2020_v47 }
 0x2ae   : > { %v2376_v57 = vpop.f32.mrf.mxu2 }
 0x2af   : > { %v2565_v49 = vadd.f32 %v3518_v33, %v2564_v43  ;;  %v3255_v46 = vmul.f32 -1.442695, %v4499_v51 }
 0x2b0   : > { %v2245_v0 = vpop.f32.mrf.mxu1 }
 0x2b1   : > { %v2569_v62 = vsel %vm2568_vm8, %v3518_v33, %v2565_v49  ;;  %3525 = vpow2.f32 %v3255_v46  ;;  %v2280_v7 = vadd.f32 %v2245_v0, %v2149_v48  ;;  %v1993_v35 = vpop.f32.mrf.mxu3  ;;  %v2585_v48 = vand.u32 2147483647, %v4484_v22 }
 0x2b2   : > { %v4506_v38 = vpop.eup %3521  ;;  %v2574_v58 = vsel %vm2571_vm3, %v2573_v55, %v2569_v62  ;;  %v2021_v0 = vadd.f32 %v4504_v37, %v4367_v27 }
 0x2b3   : > { %v3524_v24 = vpop.eup %3523  ;;  %v2789_v30 = vmul.f32 %v2574_v58, %v4433_v15  ;;  %v2411_v59 = vadd.f32 %v2376_v57, %v2280_v7  ;;  %v2577_v61 = vmul.f32 %v4506_v38, %v4484_v22  ;;  %vm2582_vm4 = vweird.f32 %v4506_v38  ;;  %v4537_v11 = vpop.f32.mrf.mxu0 }
 0x2b4   : > { %v2503_v56 = vadd.f32 1.0, %v3524_v24  ;;  %vm4546_vm9 = vmor %vm2581_vm7, %vm2582_vm4  ;;  %v2588_v7 = vor.u32 1.1754944e-38, %v2587_v50  ;;  %vm2586_vm13 = vcmp.eq.f32.partialorder %v2585_v48, 8.507059e+37 }
 0x2b5   : > { %v4515_v16 = vadd.f32 %v4403_v41, %v2411_v59  ;;  %v2805_v31 = vpack.c.bf16 %v2789_v30, %v2788_v26  ;;  %v2578_v63 = vsub.f32 1.0, %v2577_v61 }
 0x2b6   : > { %3527 = vrcp.f32 %v2503_v56  ;;  %v2379_v29 = vpop.f32.mrf.mxu2  ;;  %v2600_v53 = vand.u32 2147483647, %v2503_v56  ;;  %v2602_v17 = vand.u32 2147483648, %v2503_v56  ;;  %vm2596_vm10 = vweird.f32 %v2503_v56 }
 0x2b7   : > { %v3526_v52 = vpop.eup %3525  ;;  %v3256_v39 = vmul.f32 -1.442695, %v4515_v16  ;;  %3268 = vmatmul.msk.bf16.gmra.mxu3 %vm1252_vm6, %v2805_v31  ;;  %v2579_v25 = vmul.f32 %v4506_v38, %v2578_v63 }
 0x2b8   : > { %v4520_v15 = vadd.f32 1.0, %v3526_v52  ;;  %v2248_v6 = vpop.f32.mrf.mxu1  ;;  %v2603_v58 = vor.u32 1.1754944e-38, %v2602_v17  ;;  %vm2601_vm12 = vcmp.eq.f32.partialorder %v2600_v53, 8.507059e+37 }
 0x2b9   : > { %3529 = vpow2.f32 %v3256_v39  ;;  %v2281_v33 = vadd.f32 %v2248_v6, %v2150_v34  ;;  %v2580_v54 = vadd.f32 %v4506_v38, %v2579_v25  ;;  %v1996_v62 = vpop.f32.mrf.mxu3  ;;  %v2022_v6 = vadd.f32 %v1993_v35, %v4371_v4 }
 0x2ba   : > { %3531 = vrcp.f32 %v4520_v15  ;;  %v2617_v47 = vand.u32 2147483648, %v4520_v15  ;;  %vm2611_vm15 = vweird.f32 %v4520_v15 }
 0x2bb   : > { %v2412_v8 = vadd.f32 %v2379_v29, %v2281_v33  ;;  %v2584_v22 = vsel %vm4546_vm9, %v4506_v38, %v2580_v54  ;;  %v2152_v29 = vadd.f32 %v2122_v45, %v2021_v0  ;;  %v2615_v45 = vand.u32 2147483647, %v4520_v15 }
 0x2bc   : > { %v3528_v40 = vpop.eup %3527 }
 0x2bd   : > { %v2592_v2 = vmul.f32 %v3528_v40, %v2503_v56  ;;  %v4527_v9 = vadd.f32 %v4403_v41, %v2412_v8  ;;  %vm2597_vm5 = vweird.f32 %v3528_v40  ;;  %v2589_v56 = vsel %vm2586_vm13, %v2588_v7, %v2584_v22 }
 0x2be   : > { %v2381_v5 = vpop.f32.mrf.mxu2  ;;  %vm2598_vm11 = vmor %vm2596_vm10, %vm2597_vm5  ;;  %v2790_v33 = vmul.f32 %v2589_v56, %v4452_v1  ;;  %vm2616_vm8 = vcmp.eq.f32.partialorder %v2615_v45, 8.507059e+37 }
 0x2bf   : > { %v3530_v20 = vpop.eup %3529  ;;  %v2593_v19 = vsub.f32 1.0, %v2592_v2  ;;  %v3257_v14 = vmul.f32 -1.442695, %v4527_v9 }
 0x2c0   : > { %v4532_v3 = vpop.eup %3531  ;;  %v4535_v10 = vadd.f32 1.0, %v3530_v20  ;;  %v2250_v43 = vpop.f32.mrf.mxu1 }
 0x2c1   : > { %v2594_v32 = vmul.f32 %v3528_v40, %v2593_v19  ;;  %v2607_v57 = vmul.f32 %v4532_v3, %v4520_v15  ;;  %3533 = vpow2.f32 %v3257_v14  ;;  %v2282_v55 = vadd.f32 %v2250_v43, %v2151_v28  ;;  %v1998_v28 = vpop.f32.mrf.mxu3 }
 0x2c2   : > { %3535 = vrcp.f32 %v4535_v10  ;;  %vm2612_vm14 = vweird.f32 %v4532_v3  ;;  %v2632_v25 = vand.u32 2147483648, %v4535_v10  ;;  %v2618_v15 = vor.u32 1.1754944e-38, %v2617_v47 }
 0x2c3   : > { %v2595_v46 = vadd.f32 %v3528_v40, %v2594_v32  ;;  %v2608_v21 = vsub.f32 1.0, %v2607_v57  ;;  %v2413_v26 = vadd.f32 %v2381_v5, %v2282_v55  ;;  %vm4573_vm1 = vmor %vm2611_vm15, %vm2612_vm14  ;;  %v2630_v5 = vand.u32 2147483647, %v4535_v10 }
 0x2c4   : > { %vm2626_vm3 = vweird.f32 %v4535_v10  ;;  %v2153_v14 = vadd.f32 %v4537_v11, %v2022_v6  ;;  %v2024_v56 = vadd.f32 %v1998_v28, %v4380_v44 }
 0x2c5   : > { %v2599_v24 = vsel %vm2598_vm11, %v3528_v40, %v2595_v46  ;;  %v2609_v36 = vmul.f32 %v4532_v3, %v2608_v21  ;;  %v4558_v27 = vadd.f32 %v4403_v41, %v2413_v26  ;;  %vm2631_vm5 = vcmp.eq.f32.partialorder %v2630_v5, 8.507059e+37 }
 0x2c6   : > { %v2604_v30 = vsel %vm2601_vm12, %v2603_v58, %v2599_v24  ;;  %v2384_v59 = vpop.f32.mrf.mxu2 }
 0x2c7   : > { %v3534_v61 = vpop.eup %3533  ;;  %v2791_v38 = vmul.f32 %v2604_v30, %v4477_v42  ;;  %v2610_v39 = vadd.f32 %v4532_v3, %v2609_v36  ;;  %v3258_v63 = vmul.f32 -1.442695, %v4558_v27  ;;  %v2127_v42 = vpop.f32.mrf.mxu0 }
 0x2c8   : > { %v3536_v37 = vpop.eup %3535  ;;  %v4561_v31 = vadd.f32 1.0, %v3534_v61  ;;  %v2253_v52 = vpop.f32.mrf.mxu1 }
 0x2c9   : > { %v2622_v34 = vmul.f32 %v3536_v37, %v4535_v10  ;;  %v2806_v4 = vpack.c.bf16 %v2791_v38, %v2790_v33  ;;  %v2283_v35 = vadd.f32 %v2253_v52, %v2152_v29  ;;  %v2614_v1 = vsel %vm4573_vm1, %v4532_v3, %v2610_v39 }
 0x2ca   : > { %3537 = vrcp.f32 %v4561_v31  ;;  %vm2627_vm2 = vweird.f32 %v3536_v37  ;;  %v2619_v53 = vsel %vm2616_vm8, %v2618_v15, %v2614_v1  ;;  %v2633_v3 = vor.u32 1.1754944e-38, %v2632_v25 }
 0x2cb   : > { %v2623_v8 = vsub.f32 1.0, %v2622_v34  ;;  %3539 = vpow2.f32 %v3258_v63  ;;  %3269 = vmatmul.msk.bf16.gmra.mxu3 %vm1252_vm6, %v2806_v4  ;;  %v2414_v20 = vadd.f32 %v2384_v59, %v2283_v35  ;;  %vm2628_vm4 = vmor %vm2626_vm3, %vm2627_vm2  ;;  %v2023_v10 = vadd.f32 %v1996_v62, %v4375_v12  ;;  %v2001_v59 = vpop.f32.mrf.mxu3 }
 0x2cc   : > { %v2792_v55 = vmul.f32 %v2619_v53, %v4499_v51  ;;  %v2645_v39 = vand.u32 2147483647, %v4561_v31  ;;  %v2647_v34 = vand.u32 2147483648, %v4561_v31  ;;  %vm2641_vm9 = vweird.f32 %v4561_v31 }
 0x2cd   : > { %v2624_v2 = vmul.f32 %v3536_v37, %v2623_v8  ;;  %v4588_v17 = vadd.f32 %v4403_v41, %v2414_v20  ;;  %v2154_v30 = vadd.f32 %v2127_v42, %v2023_v10 }
 0x2ce   : > { %v2386_v50 = vpop.f32.mrf.mxu2  ;;  %vm2646_vm12 = vcmp.eq.f32.partialorder %v2645_v39, 8.507059e+37  ;;  %v2648_v1 = vor.u32 1.1754944e-38, %v2647_v34 }
 0x2cf   : > { %v2625_v19 = vadd.f32 %v3536_v37, %v2624_v2  ;;  %v3259_v21 = vmul.f32 -1.442695, %v4588_v17  ;;  %v2129_v58 = vpop.f32.mrf.mxu0 }
 0x2d0   : > { %v4585_v54 = vpop.eup %3537  ;;  %v2255_v43 = vpop.f32.mrf.mxu1  ;;  %v2155_v8 = vadd.f32 %v2129_v58, %v2024_v56 }
 0x2d1   : > { %v3540_v32 = vpop.eup %3539  ;;  %v2629_v57 = vsel %vm2628_vm4, %v3536_v37, %v2625_v19  ;;  %v2637_v48 = vmul.f32 %v4585_v54, %v4561_v31  ;;  %v2284_v49 = vadd.f32 %v2255_v43, %v2153_v14  ;;  %vm2642_vm7 = vweird.f32 %v4585_v54 }
 0x2d2   : > { %v2634_v46 = vsel %vm2631_vm5, %v2633_v3, %v2629_v57  ;;  %v2507_v11 = vadd.f32 1.0, %v3540_v32  ;;  %vm4612_vm10 = vmor %vm2641_vm9, %vm2642_vm7  ;;  %v2025_v3 = vadd.f32 %v2001_v59, %v4384_v60 }
 0x2d3   : > { %v2793_v0 = vmul.f32 %v2634_v46, %v4515_v16  ;;  %v2638_v22 = vsub.f32 1.0, %v2637_v48  ;;  %v2415_v7 = vadd.f32 %v2386_v50, %v2284_v49  ;;  %v2003_v20 = vpop.f32.mrf.mxu3 }
 0x2d4   : > { %3541 = vrcp.f32 %v2507_v11  ;;  %v2660_v47 = vand.u32 2147483647, %v2507_v11  ;;  %v2662_v42 = vand.u32 2147483648, %v2507_v11  ;;  %vm2656_vm13 = vweird.f32 %v2507_v11 }
 0x2d5   : > { %3543 = vpow2.f32 %v3259_v21  ;;  %v4597_v24 = vadd.f32 %v4403_v41, %v2415_v7  ;;  %v2807_v36 = vpack.c.bf16 %v2793_v0, %v2792_v55  ;;  %v2639_v12 = vmul.f32 %v4585_v54, %v2638_v22 }
 0x2d6   : > { %v2389_v26 = vpop.f32.mrf.mxu2  ;;  %v2663_v19 = vor.u32 1.1754944e-38, %v2662_v42  ;;  %vm2661_vm15 = vcmp.eq.f32.partialorder %v2660_v47, 8.507059e+37 }
 0x2d7   : > { %v3260_v62 = vmul.f32 -1.442695, %v4597_v24  ;;  %v2640_v38 = vadd.f32 %v4585_v54, %v2639_v12  ;;  %v2132_v25 = vpop.f32.mrf.mxu0 }
 0x2d8   : > { %v2258_v61 = vpop.f32.mrf.mxu1  ;;  %v2156_v60 = vadd.f32 %v2132_v25, %v2025_v3 }
 0x2d9   : > { %3545 = vpow2.f32 %v3260_v62  ;;  %v2285_v51 = vadd.f32 %v2258_v61, %v2154_v30  ;;  %v2644_v31 = vsel %vm4612_vm10, %v4585_v54, %v2640_v38 }
 0x2da   : > { %v3542_v16 = vpop.eup %3541  ;;  %v2649_v50 = vsel %vm2646_vm12, %v2648_v1, %v2644_v31 }
 0x2db   : > { %v3544_v37 = vpop.eup %3543  ;;  %v2652_v29 = vmul.f32 %v3542_v16, %v2507_v11  ;;  %v2416_v52 = vadd.f32 %v2389_v26, %v2285_v51  ;;  %3270 = vmatmul.msk.bf16.gmra.mxu3 %vm1252_vm6, %v2807_v36  ;;  %vm2657_vm11 = vweird.f32 %v3542_v16  ;;  %v2794_v32 = vmul.f32 %v2649_v50, %v4527_v9  ;;  %v2006_v59 = vpop.f32.mrf.mxu3 }
 0x2dc   : > { %v4606_v63 = vadd.f32 1.0, %v3544_v37  ;;  %vm2658_vm14 = vmor %vm2656_vm13, %vm2657_vm11  ;;  %v2027_v31 = vadd.f32 %v2006_v59, %v4393_v23 }
 0x2dd   : > { %v2653_v6 = vsub.f32 1.0, %v2652_v29  ;;  %v4610_v33 = vadd.f32 %v4403_v41, %v2416_v52  ;;  %v2026_v29 = vadd.f32 %v2003_v20, %v4389_v18 }
 0x2de   : > { %3547 = vrcp.f32 %v4606_v63  ;;  %v2391_v45 = vpop.f32.mrf.mxu2  ;;  %vm2671_vm2 = vweird.f32 %v4606_v63  ;;  %v2677_v36 = vand.u32 2147483648, %v4606_v63  ;;  %v2675_v12 = vand.u32 2147483647, %v4606_v63 }
 0x2df   : > { %v3546_v40 = vpop.eup %3545  ;;  %v2654_v4 = vmul.f32 %v3542_v16, %v2653_v6  ;;  %v3261_v35 = vmul.f32 -1.442695, %v4610_v33  ;;  %v2134_v58 = vpop.f32.mrf.mxu0 }
 0x2e0   : > { %v4622_v2 = vadd.f32 1.0, %v3546_v40  ;;  %v2260_v5 = vpop.f32.mrf.mxu1  ;;  %v2678_v52 = vor.u32 1.1754944e-38, %v2677_v36  ;;  %vm2676_vm4 = vcmp.eq.f32.partialorder %v2675_v12, 8.507059e+37 }
 0x2e1   : > { %v2655_v28 = vadd.f32 %v3542_v16, %v2654_v4  ;;  %3549 = vpow2.f32 %v3261_v35  ;;  %v2286_v15 = vadd.f32 %v2260_v5, %v2155_v8  ;;  %v2157_v35 = vadd.f32 %v2134_v58, %v2026_v29 }
 0x2e2   : > { %3551 = vrcp.f32 %v4622_v2  ;;  %v2690_v51 = vand.u32 2147483647, %v4622_v2  ;;  %vm2686_vm5 = vweird.f32 %v4622_v2 }
 0x2e3   : > { %v2659_v14 = vsel %vm2658_vm14, %v3542_v16, %v2655_v28  ;;  %v2417_v54 = vadd.f32 %v2391_v45, %v2286_v15  ;;  %v2692_v16 = vand.u32 2147483648, %v4622_v2 }
 0x2e4   : > { %v3548_v53 = vpop.eup %3547  ;;  %v2664_v43 = vsel %vm2661_vm15, %v2663_v19, %v2659_v14  ;;  %vm2691_vm9 = vcmp.eq.f32.partialorder %v2690_v51, 8.507059e+37  ;;  %v2008_v19 = vpop.f32.mrf.mxu3 }
 0x2e5   : > { %v2795_v57 = vmul.f32 %v2664_v43, %v4558_v27  ;;  %v2667_v48 = vmul.f32 %v3548_v53, %v4606_v63  ;;  %v4630_v49 = vadd.f32 %v4403_v41, %v2417_v54  ;;  %vm2672_vm1 = vweird.f32 %v3548_v53 }
 0x2e6   : > { %v2394_v10 = vpop.f32.mrf.mxu2  ;;  %vm4640_vm8 = vmor %vm2671_vm2, %vm2672_vm1  ;;  %v2693_v42 = vor.u32 1.1754944e-38, %v2692_v16 }
 0x2e7   : > { %v3550_v46 = vpop.eup %3549  ;;  %v2668_v11 = vsub.f32 1.0, %v2667_v48  ;;  %v3262_v21 = vmul.f32 -1.442695, %v4630_v49  ;;  %v2808_v55 = vpack.c.bf16 %v2795_v57, %v2794_v32  ;;  %v2137_v1 = vpop.f32.mrf.mxu0 }
 0x2e8   : > { %v3552_v0 = vpop.eup %3551  ;;  %v4633_v22 = vadd.f32 1.0, %v3550_v46  ;;  %v2263_v7 = vpop.f32.mrf.mxu1  ;;  %v2158_v54 = vadd.f32 %v2137_v1, %v2027_v31 }
 0x2e9   : > { %v2669_v9 = vmul.f32 %v3548_v53, %v2668_v11  ;;  %v2682_v27 = vmul.f32 %v3552_v0, %v4622_v2  ;;  %3553 = vpow2.f32 %v3262_v21  ;;  %v2287_v30 = vadd.f32 %v2263_v7, %v2156_v60 }
 0x2ea   : > { %3555 = vrcp.f32 %v4633_v22  ;;  %vm2687_vm3 = vweird.f32 %v3552_v0  ;;  %vm2701_vm11 = vweird.f32 %v4633_v22 }
 0x2eb   : > { %v2670_v26 = vadd.f32 %v3548_v53, %v2669_v9  ;;  %v2683_v62 = vsub.f32 1.0, %v2682_v27  ;;  %v2418_v38 = vadd.f32 %v2394_v10, %v2287_v30  ;;  %3271 = vmatmul.msk.bf16.gmra.mxu3 %vm1252_vm6, %v2808_v55  ;;  %vm2688_vm7 = vmor %vm2686_vm5, %vm2687_vm3  ;;  %v2707_v10 = vand.u32 2147483648, %v4633_v22 }
 0x2ec   : > { %v2705_v55 = vand.u32 2147483647, %v4633_v22 }
 0x2ed   : > { %v2674_v56 = vsel %vm4640_vm8, %v3548_v53, %v2670_v26  ;;  %v2684_v37 = vmul.f32 %v3552_v0, %v2683_v62  ;;  %v4652_v6 = vadd.f32 %v4403_v41, %v2418_v38  ;;  %v2708_v26 = vor.u32 1.1754944e-38, %v2707_v10 }
 0x2ee   : > { %v2396_v39 = vpop.f32.mrf.mxu2  ;;  %v2679_v47 = vsel %vm2676_vm4, %v2678_v52, %v2674_v56  ;;  %vm2706_vm14 = vcmp.eq.f32.partialorder %v2705_v55, 8.507059e+37 }
 0x2ef   : > { %v3554_v34 = vpop.eup %3553  ;;  %v2685_v63 = vadd.f32 %v3552_v0, %v2684_v37  ;;  %v3263_v25 = vmul.f32 -1.442695, %v4652_v6  ;;  %v2796_v2 = vmul.f32 %v2679_v47, %v4588_v17  ;;  %v2028_v17 = vadd.f32 %v2008_v19, %v4398_v13  ;;  %v2139_v9 = vpop.f32.mrf.mxu0 }
 0x2f0   : > { %v3556_v44 = vpop.eup %3555  ;;  %v2511_v45 = vadd.f32 1.0, %v3554_v34  ;;  %v2265_v8 = vpop.f32.mrf.mxu1 }
 0x2f1   : > { %v2689_v40 = vsel %vm2688_vm7, %v3552_v0, %v2685_v63  ;;  %v2697_v18 = vmul.f32 %v3556_v44, %v4633_v22  ;;  %v2288_v15 = vadd.f32 %v2265_v8, %v2157_v35  ;;  %vm2702_vm10 = vweird.f32 %v3556_v44 }
 0x2f2   : > { %v2694_v4 = vsel %vm2691_vm9, %v2693_v42, %v2689_v40  ;;  %3557 = vrcp.f32 %v2511_v45  ;;  %vm4668_vm12 = vmor %vm2701_vm11, %vm2702_vm10  ;;  %v2720_v7 = vand.u32 2147483647, %v2511_v45  ;;  %v2722_v58 = vand.u32 2147483648, %v2511_v45 }
 0x2f3   : > { %v2797_v5 = vmul.f32 %v2694_v4, %v4597_v24  ;;  %v2698_v28 = vsub.f32 1.0, %v2697_v18  ;;  %3559 = vpow2.f32 %v3263_v25  ;;  %v2419_v14 = vadd.f32 %v2396_v39, %v2288_v15 }
 0x2f4   : > { %v2159_v22 = vadd.f32 %v2139_v9, %v2028_v17  ;;  %vm2716_vm15 = vweird.f32 %v2511_v45  ;;  %v2723_v59 = vor.u32 1.1754944e-38, %v2722_v58  ;;  %vm2721_vm2 = vcmp.eq.f32.partialorder %v2720_v7, 8.507059e+37 }
 0x2f5   : > { %v2699_v20 = vmul.f32 %v3556_v44, %v2698_v28  ;;  %v2809_v50 = vpack.c.bf16 %v2797_v5, %v2796_v2  ;;  %v4660_v23 = vadd.f32 %v4403_v41, %v2419_v14 }
 0x2f6   : > { %v2399_v43 = vpop.f32.mrf.mxu2 }
 0x2f7   : > { %v2700_v3 = vadd.f32 %v3556_v44, %v2699_v20  ;;  %v3264_v11 = vmul.f32 -1.442695, %v4660_v23 }
 0x2f8   : > { %v3558_v53 = vpop.eup %3557  ;;  %v2268_v32 = vpop.f32.mrf.mxu1 }
 0x2f9   : > { %v3560_v57 = vpop.eup %3559  ;;  %v2712_v24 = vmul.f32 %v3558_v53, %v2511_v45  ;;  %v2289_v48 = vadd.f32 %v2268_v32, %v2158_v54  ;;  %v2704_v13 = vsel %vm4668_vm12, %v3556_v44, %v2700_v3  ;;  %vm2717_vm13 = vweird.f32 %v3558_v53 }
 0x2fa   : > { %v4665_v46 = vadd.f32 1.0, %v3560_v57  ;;  %v2709_v30 = vsel %vm2706_vm14, %v2708_v26, %v2704_v13  ;;  %vm2718_vm1 = vmor %vm2716_vm15, %vm2717_vm13 }
 0x2fb   : > { %v2713_v0 = vsub.f32 1.0, %v2712_v24  ;;  %v2420_v60 = vadd.f32 %v2399_v43, %v2289_v48  ;;  %3272 = vmatmul.msk.bf16.gmra.mxu3 %vm1252_vm6, %v2809_v50  ;;  %v2798_v52 = vmul.f32 %v2709_v30, %v4610_v33 }
 0x2fc   : > { %3561 = vrcp.f32 %v4665_v46  ;;  %v2737_v4 = vand.u32 2147483648, %v4665_v46  ;;  %vm2731_vm3 = vweird.f32 %v4665_v46 }
 0x2fd   : > { %v2714_v27 = vmul.f32 %v3558_v53, %v2713_v0  ;;  %3563 = vpow2.f32 %v3264_v11  ;;  %v4677_v36 = vadd.f32 %v4403_v41, %v2420_v60 }
 0x2fe   : > { %v2401_v38 = vpop.f32.mrf.mxu2  ;;  %v2738_v14 = vor.u32 1.1754944e-38, %v2737_v4 }
 0x2ff   : > { %v2715_v12 = vadd.f32 %v3558_v53, %v2714_v27  ;;  %v3265_v62 = vmul.f32 -1.442695, %v4677_v36 }
 0x300   : > { %v2270_v61 = vpop.f32.mrf.mxu1 }
 0x301   : > { %v2719_v51 = vsel %vm2718_vm1, %v3558_v53, %v2715_v12  ;;  %3565 = vpow2.f32 %v3265_v62  ;;  %v2290_v16 = vadd.f32 %v2270_v61, %v2159_v22  ;;  %v4701_v61 = vld [vmem:[%s4800_s7] ss:$0 sm:$0xff] }
 0x302   : > { %v3562_v56 = vpop.eup %3561  ;;  %v2724_v37 = vsel %vm2721_vm2, %v2723_v59, %v2719_v51 }
 0x303   : > { %v3564_v29 = vpop.eup %3563  ;;  %v2799_v39 = vmul.f32 %v2724_v37, %v4630_v49  ;;  %v2727_v34 = vmul.f32 %v3562_v56, %v4665_v46  ;;  %v2421_v63 = vadd.f32 %v2401_v38, %v2290_v16  ;;  %vm2732_vm8 = vweird.f32 %v3562_v56  ;;  %v2902_v16 = vld [vmem:[#allocation2 + $0x13] sm:$0xff] }
 0x304   : > { %v2513_v44 = vadd.f32 1.0, %v3564_v29  ;;  %vm2733_vm4 = vmor %vm2731_vm3, %vm2732_vm8  ;;  %v2903_v29 = vld [vmem:[#allocation2 + $0x1b] sm:$0xff] }
 0x305   : > { %v2728_v47 = vsub.f32 1.0, %v2727_v34  ;;  %v4685_v42 = vadd.f32 %v4403_v41, %v2421_v63  ;;  %v2810_v45 = vpack.c.bf16 %v2799_v39, %v2798_v52  ;;  %v2735_v41 = vand.u32 2147483647, %v4665_v46 }
 0x306   : > { %3567 = vrcp.f32 %v2513_v44  ;;  %v2750_v5 = vand.u32 2147483647, %v2513_v44  ;;  %v2752_v28 = vand.u32 2147483648, %v2513_v44  ;;  %vm2746_vm9 = vweird.f32 %v2513_v44 }
 0x307   : > { %v3566_v8 = vpop.eup %3565  ;;  %v3266_v40 = vmul.f32 -1.442695, %v4685_v42  ;;  %v2729_v25 = vmul.f32 %v3562_v56, %v2728_v47  ;;  %vm2736_vm7 = vcmp.eq.f32.partialorder %v2735_v41, 8.507059e+37  ;;  %v2904_v47 = vld [vmem:[#allocation2 + $0x23] sm:$0xff]  ;;  %v2906_v41 = vld [vmem:[#allocation2 + $0x33] sm:$0xff] }
 0x308   : > { %v2514_v18 = vadd.f32 1.0, %v3566_v8  ;;  %v2753_v43 = vor.u32 1.1754944e-38, %v2752_v28  ;;  %vm2751_vm11 = vcmp.eq.f32.partialorder %v2750_v5, 8.507059e+37 }
 0x309   : > { %3569 = vpow2.f32 %v3266_v40  ;;  %v2730_v31 = vadd.f32 %v3562_v56, %v2729_v25  ;;  %v2905_v25 = vld [vmem:[#allocation2 + $0x2b] sm:$0xff] }
 0x30a   : > { %3571 = vrcp.f32 %v2514_v18  ;;  %v2767_v55 = vand.u32 2147483648, %v2514_v18  ;;  %vm2761_vm13 = vweird.f32 %v2514_v18  ;;  %v2765_v0 = vand.u32 2147483647, %v2514_v18 }
 0x30b   : > { %3273 = vmatmul.msk.bf16.gmra.mxu3 %vm1252_vm6, %v2810_v45  ;;  %v2734_v20 = vsel %vm2733_vm4, %v3562_v56, %v2730_v31 }
 0x30c   : > { %v3568_v33 = vpop.eup %3567  ;;  %v2739_v3 = vsel %vm2736_vm7, %v2738_v14, %v2734_v20  ;;  %v2768_v27 = vor.u32 1.1754944e-38, %v2767_v55  ;;  %vm2766_vm1 = vcmp.eq.f32.partialorder %v2765_v0, 8.507059e+37  ;;  %v2910_v55 = vld [vmem:[#allocation2 + $0x53] sm:$0xff] }
 0x30d   : > { %v2742_v49 = vmul.f32 %v3568_v33, %v2513_v44  ;;  %vm2747_vm5 = vweird.f32 %v3568_v33  ;;  %v2800_v24 = vmul.f32 %v2739_v3, %v4652_v6 }
 0x30e   : > { %vm2748_vm10 = vmor %vm2746_vm9, %vm2747_vm5 }
 0x30f   : > { %v3570_v35 = vpop.eup %3569  ;;  %v2743_v1 = vsub.f32 1.0, %v2742_v49 }
 0x310   : > { %v3572_v2 = vpop.eup %3571  ;;  %v2515_v15 = vadd.f32 1.0, %v3570_v35 }
 0x311   : > { %v2744_v50 = vmul.f32 %v3568_v33, %v2743_v1  ;;  %v2757_v19 = vmul.f32 %v3572_v2, %v2514_v18  ;;  %vm2762_vm12 = vweird.f32 %v3572_v2 }
 0x312   : > { %3573 = vrcp.f32 %v2515_v15  ;;  %vm2763_vm14 = vmor %vm2761_vm13, %vm2762_vm12  ;;  %v2782_v13 = vand.u32 2147483648, %v2515_v15  ;;  %v2780_v9 = vand.u32 2147483647, %v2515_v15  ;;  %vm2776_vm2 = vweird.f32 %v2515_v15 }
 0x313   : > { %v2745_v54 = vadd.f32 %v3568_v33, %v2744_v50  ;;  %v2758_v53 = vsub.f32 1.0, %v2757_v19 }
 0x314   : > { %v2783_v26 = vor.u32 1.1754944e-38, %v2782_v13  ;;  %vm2781_vm3 = vcmp.eq.f32.partialorder %v2780_v9, 8.507059e+37  ;;  %v2911_v9 = vld [vmem:[#allocation2 + $0x5b] sm:$0xff] }
 0x315   : > { %v2749_v32 = vsel %vm2748_vm10, %v3568_v33, %v2745_v54  ;;  %v2759_v57 = vmul.f32 %v3572_v2, %v2758_v53  ;;  %v2908_v53 = vld [vmem:[#allocation2 + $0x43] sm:$0xff] }
 0x316   : > { %v2754_v17 = vsel %vm2751_vm11, %v2753_v43, %v2749_v32 }
 0x317   : > { %v2801_v48 = vmul.f32 %v2754_v17, %v4660_v23  ;;  %v2760_v46 = vadd.f32 %v3572_v2, %v2759_v57 }
 0x318   : > { %v3574_v10 = vpop.eup %3573 }
 0x319   : > { %v2772_v11 = vmul.f32 %v3574_v10, %v2515_v15  ;;  %v2811_v21 = vpack.c.bf16 %v2801_v48, %v2800_v24  ;;  %v2764_v7 = vsel %vm2763_vm14, %v3572_v2, %v2760_v46  ;;  %vm2777_vm15 = vweird.f32 %v3574_v10  ;;  %v2907_v15 = vld [vmem:[#allocation2 + $0x3b] sm:$0xff]  ;;  %v2909_v24 = vld [vmem:[#allocation2 + $0x4b] sm:$0xff] }
 0x31a   : > { %v2769_v23 = vsel %vm2766_vm1, %v2768_v27, %v2764_v7  ;;  %vm2778_vm8 = vmor %vm2776_vm2, %vm2777_vm15 }
 0x31b   : > { %v2773_v60 = vsub.f32 1.0, %v2772_v11  ;;  %3274 = vmatmul.msk.bf16.gmra.mxu3 %vm1252_vm6, %v2811_v21  ;;  %v2802_v62 = vmul.f32 %v2769_v23, %v4677_v36 }
 0x31d   : > { %v2774_v58 = vmul.f32 %v3574_v10, %v2773_v60 }
 0x31f   : > { %v2775_v6 = vadd.f32 %v3574_v10, %v2774_v58 }
 0x321   : > { %v2779_v22 = vsel %vm2778_vm8, %v3574_v10, %v2775_v6 }
 0x322   : > { %v2784_v12 = vsel %vm2781_vm3, %v2783_v26, %v2779_v22 }
 0x323   : > { %v2803_v30 = vmul.f32 %v2784_v12, %v4685_v42  ;;  %v2912_v12 = vld [vmem:[#allocation2 + $0x63] sm:$0xff] }
 0x325   : > { %v2812_v59 = vpack.c.bf16 %v2803_v30, %v2802_v62 }
 0x32a   : > { %v2857_v51 = vpop.f32.mrf.mxu3 }
 0x32b   : > { %v2858_v56 = vadd.f32 %v4701_v61, %v2857_v51  ;;  %3275 = vmatmul.msk.bf16.gmra.mxu3 %vm1252_vm6, %v2812_v59 }
 0x32d   : > { %v2920_v37 = vadd.f32 %v2902_v16, %v2858_v56  ;;  %v2913_v56 = vld [vmem:[#allocation2 + $0x6b] sm:$0xff] }
 0x32f   : > { %v2938_v36 = vmax.f32 %v2920_v37, 0.0 }
 0x331   : > { %2956 = vst.msk [vmem:[#allocation4] sm:$0xff] %vm387_vm0, %v2938_v36 }
 0x332   : > { %v2859_v38 = vpop.f32.mrf.mxu3 }
 0x333   : > { %v2860_v52 = vadd.f32 %v4701_v61, %v2859_v38 }
 0x335   : > { %v2921_v39 = vadd.f32 %v2903_v29, %v2860_v52 }
 0x337   : > { %v2939_v34 = vmax.f32 %v2921_v39, 0.0  ;;  %v2914_v39 = vld [vmem:[#allocation2 + $0x73] sm:$0xff] }
 0x338   : > { %v2974_v63 = vld [vmem:[#allocation4] sm:$0xff] }
 0x339   : > { %2976 = vst.msk [vmem:[%s4711_s14] sm:$0xff] %vm387_vm0, %v2974_v63 }
 0x33a   : > { %2957 = vst.msk [vmem:[#allocation4 + $0x8] sm:$0xff] %vm387_vm0, %v2939_v34  ;;  %v2862_v44 = vpop.f32.mrf.mxu3 }
 0x33b   : > { %v2863_v42 = vadd.f32 %v4701_v61, %v2862_v44 }
 0x33d   : > { %v2922_v45 = vadd.f32 %v2904_v47, %v2863_v42  ;;  %v2915_v42 = vld [vmem:[#allocation2 + $0x7b] sm:$0xff] }
 0x33f   : > { %v2940_v8 = vmax.f32 %v2922_v45, 0.0 }
 0x341   : > { %v2975_v40 = vld [vmem:[#allocation4 + $0x8] sm:$0xff]  ;;  %2958 = vst.msk [vmem:[#allocation4 + $0x10] sm:$0xff] %vm387_vm0, %v2940_v8 }
 0x342   : > { %2977 = vst.msk [vmem:[%s4711_s14 + $0x8] sm:$0xff] %vm387_vm0, %v2975_v40  ;;  %v2864_v18 = vpop.f32.mrf.mxu3 }
 0x343   : > { %v2865_v33 = vadd.f32 %v4701_v61, %v2864_v18 }
 0x345   : > { %v2923_v31 = vadd.f32 %v2905_v25, %v2865_v33  ;;  %v2916_v33 = vld [vmem:[#allocation2 + $0x83] sm:$0xff] }
 0x347   : > { %v2941_v49 = vmax.f32 %v2923_v31, 0.0 }
 0x349   : > { %2959 = vst.msk [vmem:[#allocation4 + $0x18] sm:$0xff] %vm387_vm0, %v2941_v49 }
 0x34e   : > { %v2867_v35 = vpop.f32.mrf.mxu3 }
 0x34f   : > { %v2868_v1 = vadd.f32 %v4701_v61, %v2867_v35 }
 0x350   : > { %v2978_v4 = vld [vmem:[#allocation4 + $0x12] sm:$0xff] }
 0x351   : > { %3276 = vst.msk [vmem:[%s4711_s14 + $0x10] sm:$0xff] %vm387_vm0, %v2978_v4  ;;  %v2924_v2 = vadd.f32 %v2906_v41, %v2868_v1  ;;  %v2917_v1 = vld [vmem:[#allocation2 + $0x8b] sm:$0xff] }
 0x353   : > { %v2942_v5 = vmax.f32 %v2924_v2, 0.0 }
 0x355   : > { %2960 = vst.msk [vmem:[#allocation4 + $0x20] sm:$0xff] %vm387_vm0, %v2942_v5 }
 0x356   : > { %v2869_v28 = vpop.f32.mrf.mxu3 }
 0x357   : > { %v2870_v20 = vadd.f32 %v4701_v61, %v2869_v28 }
 0x359   : > { %v2925_v50 = vadd.f32 %v2907_v15, %v2870_v20 }
 0x35b   : > { %v2943_v19 = vmax.f32 %v2925_v50, 0.0  ;;  %v2918_v50 = vld [vmem:[#allocation2 + $0x93] sm:$0xff] }
 0x35c   : > { %v2979_v14 = vld [vmem:[#allocation4 + $0x1a] sm:$0xff] }
 0x35d   : > { %3277 = vst.msk [vmem:[%s4711_s14 + $0x18] sm:$0xff] %vm387_vm0, %v2979_v14 }
 0x35e   : > { %2961 = vst.msk [vmem:[#allocation4 + $0x28] sm:$0xff] %vm387_vm0, %v2943_v19  ;;  %v2872_v54 = vpop.f32.mrf.mxu3 }
 0x35f   : > { %v2873_v3 = vadd.f32 %v4701_v61, %v2872_v54 }
 0x361   : > { %v2926_v43 = vadd.f32 %v2908_v53, %v2873_v3 }
 0x363   : > { %v2944_v32 = vmax.f32 %v2926_v43, 0.0  ;;  %v2919_v43 = vld [vmem:[#allocation2 + $0x9b] sm:$0xff] }
 0x365   : > { %v2983_v57 = vld [vmem:[#allocation4 + $0x24] sm:$0xff]  ;;  %2962 = vst.msk [vmem:[#allocation4 + $0x30] sm:$0xff] %vm387_vm0, %v2944_v32 }
 0x366   : > { %3278 = vst.msk [vmem:[%s4711_s14 + $0x20] sm:$0xff] %vm387_vm0, %v2983_v57  ;;  %v2874_v17 = vpop.f32.mrf.mxu3 }
 0x367   : > { %v2875_v48 = vadd.f32 %v4701_v61, %v2874_v17 }
 0x369   : > { %v2927_v10 = vadd.f32 %v2909_v24, %v2875_v48 }
 0x36b   : > { %v2945_v46 = vmax.f32 %v2927_v10, 0.0 }
 0x36c   : > { %v2984_v11 = vld [vmem:[#allocation4 + $0x2c] sm:$0xff] }
 0x36d   : > { %3279 = vst.msk [vmem:[%s4711_s14 + $0x28] sm:$0xff] %vm387_vm0, %v2984_v11 }
 0x36e   : > { %2963 = vst.msk [vmem:[#allocation4 + $0x38] sm:$0xff] %vm387_vm0, %v2945_v46  ;;  %v2877_v21 = vpop.f32.mrf.mxu3 }
 0x36f   : > { %v2878_v0 = vadd.f32 %v4701_v61, %v2877_v21 }
 0x371   : > { %v2928_v60 = vadd.f32 %v2910_v55, %v2878_v0 }
 0x373   : > { %v2946_v13 = vmax.f32 %v2928_v60, 0.0 }
 0x375   : > { %v2988_v7 = vld [vmem:[#allocation4 + $0x36] sm:$0xff]  ;;  %2964 = vst.msk [vmem:[#allocation4 + $0x40] sm:$0xff] %vm387_vm0, %v2946_v13 }
 0x376   : > { %3280 = vst.msk [vmem:[%s4711_s14 + $0x30] sm:$0xff] %vm387_vm0, %v2988_v7  ;;  %v2879_v58 = vpop.f32.mrf.mxu3 }
 0x377   : > { %v2880_v27 = vadd.f32 %v4701_v61, %v2879_v58 }
 0x379   : > { %v2929_v6 = vadd.f32 %v2911_v9, %v2880_v27 }
 0x37b   : > { %v2947_v23 = vmax.f32 %v2929_v6, 0.0 }
 0x37c   : > { %v2989_v26 = vld [vmem:[#allocation4 + $0x3e] sm:$0xff] }
 0x37d   : > { %3281 = vst.msk [vmem:[%s4711_s14 + $0x38] sm:$0xff] %vm387_vm0, %v2989_v26 }
 0x37e   : > { %2965 = vst.msk [vmem:[#allocation4 + $0x48] sm:$0xff] %vm387_vm0, %v2947_v23  ;;  %v2882_v22 = vpop.f32.mrf.mxu3 }
 0x37f   : > { %v2883_v62 = vadd.f32 %v4701_v61, %v2882_v22 }
 0x381   : > { %v2930_v30 = vadd.f32 %v2912_v12, %v2883_v62 }
 0x383   : > { %v2948_v59 = vmax.f32 %v2930_v30, 0.0 }
 0x385   : > { %v2993_v51 = vld [vmem:[#allocation4 + $0x48] sm:$0xff]  ;;  %2966 = vst.msk [vmem:[#allocation4 + $0x50] sm:$0xff] %vm387_vm0, %v2948_v59 }
 0x386   : > { %3282 = vst.msk [vmem:[%s4711_s14 + $0x40] sm:$0xff] %vm387_vm0, %v2993_v51  ;;  %v2884_v16 = vpop.f32.mrf.mxu3 }
 0x387   : > { %v2885_v37 = vadd.f32 %v4701_v61, %v2884_v16 }
 0x389   : > { %v2931_v36 = vadd.f32 %v2913_v56, %v2885_v37 }
 0x38b   : > { %v2949_v38 = vmax.f32 %v2931_v36, 0.0 }
 0x38c   : > { %v2994_v29 = vld [vmem:[#allocation4 + $0x50] sm:$0xff] }
 0x38d   : > { %3283 = vst.msk [vmem:[%s4711_s14 + $0x48] sm:$0xff] %vm387_vm0, %v2994_v29 }
 0x38e   : > { %2967 = vst.msk [vmem:[#allocation4 + $0x58] sm:$0xff] %vm387_vm0, %v2949_v38  ;;  %v2887_v52 = vpop.f32.mrf.mxu3 }
 0x38f   : > { %v2888_v34 = vadd.f32 %v4701_v61, %v2887_v52 }
 0x391   : > { %v2932_v63 = vadd.f32 %v2914_v39, %v2888_v34 }
 0x393   : > { %v2950_v44 = vmax.f32 %v2932_v63, 0.0 }
 0x395   : > { %2968 = vst.msk [vmem:[#allocation4 + $0x60] sm:$0xff] %vm387_vm0, %v2950_v44 }
 0x396   : > { %v2889_v47 = vpop.f32.mrf.mxu3 }
 0x397   : > { %v2890_v45 = vadd.f32 %v4701_v61, %v2889_v47 }
 0x399   : > { %v2933_v8 = vadd.f32 %v2915_v42, %v2890_v45 }
 0x39b   : > { %v2951_v40 = vmax.f32 %v2933_v8, 0.0 }
 0x39c   : > { %v2998_v18 = vld [vmem:[#allocation4 + $0x5a] sm:$0xff] }
 0x39d   : > { %3284 = vst.msk [vmem:[%s4711_s14 + $0x50] sm:$0xff] %vm387_vm0, %v2998_v18 }
 0x39e   : > { %2969 = vst.msk [vmem:[#allocation4 + $0x68] sm:$0xff] %vm387_vm0, %v2951_v40  ;;  %v2892_v25 = vpop.f32.mrf.mxu3 }
 0x39f   : > { %v2893_v31 = vadd.f32 %v4701_v61, %v2892_v25 }
 0x3a1   : > { %v2934_v49 = vadd.f32 %v2916_v33, %v2893_v31 }
 0x3a3   : > { %v2952_v4 = vmax.f32 %v2934_v49, 0.0 }
 0x3a5   : > { %v2999_v35 = vld [vmem:[#allocation4 + $0x62] sm:$0xff]  ;;  %2970 = vst.msk [vmem:[#allocation4 + $0x70] sm:$0xff] %vm387_vm0, %v2952_v4 }
 0x3a6   : > { %3285 = vst.msk [vmem:[%s4711_s14 + $0x58] sm:$0xff] %vm387_vm0, %v2999_v35  ;;  %v2894_v41 = vpop.f32.mrf.mxu3 }
 0x3a7   : > { %v2895_v2 = vadd.f32 %v4701_v61, %v2894_v41 }
 0x3a9   : > { %v2935_v5 = vadd.f32 %v2917_v1, %v2895_v2 }
 0x3ab   : > { %v2953_v28 = vmax.f32 %v2935_v5, 0.0 }
 0x3ac   : > { %v3003_v15 = vld [vmem:[#allocation4 + $0x6c] sm:$0xff] }
 0x3ad   : > { %3286 = vst.msk [vmem:[%s4711_s14 + $0x60] sm:$0xff] %vm387_vm0, %v3003_v15 }
 0x3ae   : > { %2971 = vst.msk [vmem:[#allocation4 + $0x78] sm:$0xff] %vm387_vm0, %v2953_v28  ;;  %v2897_v20 = vpop.f32.mrf.mxu3 }
 0x3af   : > { %v2898_v19 = vadd.f32 %v4701_v61, %v2897_v20 }
 0x3b1   : > { %v2936_v14 = vadd.f32 %v2918_v50, %v2898_v19 }
 0x3b3   : > { %v2954_v54 = vmax.f32 %v2936_v14, 0.0 }
 0x3b5   : > { %v3004_v53 = vld [vmem:[#allocation4 + $0x74] sm:$0xff]  ;;  %2972 = vst.msk [vmem:[#allocation4 + $0x80] sm:$0xff] %vm387_vm0, %v2954_v54 }
 0x3b6   : > { %3287 = vst.msk [vmem:[%s4711_s14 + $0x68] sm:$0xff] %vm387_vm0, %v3004_v53  ;;  %v2899_v3 = vpop.f32.mrf.mxu3 }
 0x3b7   : > { %v2900_v32 = vadd.f32 %v4701_v61, %v2899_v3 }
 0x3b9   : > { %v2937_v57 = vadd.f32 %v2919_v43, %v2900_v32 }
 0x3bb   : > { %v2955_v17 = vmax.f32 %v2937_v57, 0.0 }
 0x3bc   : > { %v3008_v24 = vld [vmem:[#allocation4 + $0x7e] sm:$0xff] }
 0x3bd   : > { %3288 = vst.msk [vmem:[%s4711_s14 + $0x70] sm:$0xff] %vm387_vm0, %v3008_v24 }
 0x3be   : > { %2973 = vst.msk [vmem:[#allocation4 + $0x88] sm:$0xff] %vm387_vm0, %v2955_v17 }
 0x3c5   : > { %v3009_v48 = vld [vmem:[#allocation4 + $0x86] sm:$0xff] }
 0x3c6   : > { %3289 = vst.msk [vmem:[%s4711_s14 + $0x78] sm:$0xff] %vm387_vm0, %v3009_v48 }
 0x3c7 PF: > { %s18_s9 = sadd.s32 1, %s3614_s9   ;;  %s4822_s27 = smov %s3606_s29 }
 0x3c8   : > { %p15_p7 = scmp.ge.s32.totalorder %s18_s9, 6   ;;  %s4823_s28 = smov %s3610_s30 }
 0x3c9   : > { %s4824_s29 = smov %s4827_s10  ;;  %s4825_s30 = smov %s4831_s11 }
 0x3ca   :  { %17 = sbr.rel (!%p15_p7) target bundleno = 3 (0x3), region = 99 }

</bundles_post_ra>
